<compile_context>
chip_gen: v5e
topology: v5e:2x2
jax: 0.10.0
libtpu: 0.0.40
codegen_flags: <defaults>
</compile_context>

<pallas_src>
import numpy as np
import jax
import jax.numpy as jnp
from jax.experimental import pallas as pl
from jax.experimental.pallas import tpu as pltpu

K = 4        # conv kernel size (all three convs)
STRIDE = 2
PAD = 1


# ---------------------------------------------------------------------------
# Fused Pallas kernel: one batch element per grid step, everything in VMEM.
# ---------------------------------------------------------------------------
def _cnn_fused_kernel(xq_ref, w1_ref, b1_ref, s1_ref, t1_ref,
                      g2_ref, w2_ref, b2_ref, s2_ref, t2_ref,
                      g3_ref, w3_ref, b3_ref, o_ref):
    f32 = jnp.float32
    bf16 = jnp.bfloat16

    # ---- stage 1: conv1 (Cin=1) + bias + MaxPool2d(2), unrolled VPU tap FMAs ----
    hp = xq_ref.shape[1] - 1          # pooled height  (= H/4)
    wp = xq_ref.shape[2] - 1          # pooled width   (= W/4)
    c1 = w1_ref.shape[1]              # 32

    pooled = None
    for di in range(2):               # pool-window row phase
        for dj in range(2):           # pool-window col phase
            acc = jnp.zeros((hp, wp, c1), f32)
            for kh in range(K):
                for kw in range(K):
                    rr = 2 * di + kh
                    cc = 2 * dj + kw
                    pidx = (rr % 4) * 4 + (cc % 4)
                    # xq[A, B, r*4+c] = xpad[4A+r, 4B+c]  -> static unit-stride slices only
                    tap = xq_ref[0,
                                 rr // 4: rr // 4 + hp,
                                 cc // 4: cc // 4 + wp,
                                 pidx: pidx + 1]                       # (hp, wp, 1)
                    wrow = w1_ref[kh * K + kw: kh * K + kw + 1, :]     # (1, c1)
                    acc = acc + tap * wrow                             # VPU FMA
            pooled = acc if pooled is None else jnp.maximum(pooled, acc)
    pooled = pooled + b1_ref[...]                                      # conv1 bias

    # Dropout2d -> identity (eval).  ReLU -> BatchNorm2d(32) (eval) fused epilogue.
    a2 = jnp.maximum(pooled, 0.0) * s1_ref[...] + t1_ref[...]
    a2f = a2.reshape(hp * wp, c1).astype(bf16)                         # (hp*wp, 32)

    # ---- stage 2: conv2 via in-VMEM patch gather (selection matmul) + tap matmuls ----
    n2 = g2_ref.shape[0] // (K * K)                                    # conv2 output positions
    c2 = w2_ref.shape[2]                                               # 64
    patches2 = jnp.dot(g2_ref[...], a2f,
                       preferred_element_type=f32).astype(bf16)        # (16*n2, 32)
    out2 = jnp.zeros((n2, c2), f32)
    for t in range(K * K):
        out2 = out2 + jnp.dot(patches2[t * n2:(t + 1) * n2, :], w2_ref[t],
                              preferred_element_type=f32)
    out2 = out2 + b2_ref[...]                                          # conv2 bias

    # Dropout2d -> identity.  ReLU -> BatchNorm2d(64) (eval) fused epilogue.
    a3 = (jnp.maximum(out2, 0.0) * s2_ref[...] + t2_ref[...]).astype(bf16)   # (n2, 64)

    # ---- stage 3: conv3, same gather + per-tap matmul accumulation ----
    n3 = g3_ref.shape[0] // (K * K)
    c3 = w3_ref.shape[2]                                               # 128
    patches3 = jnp.dot(g3_ref[...], a3,
                       preferred_element_type=f32).astype(bf16)        # (16*n3, 64)
    out3 = jnp.zeros((n3, c3), f32)
    for t in range(K * K):
        out3 = out3 + jnp.dot(patches3[t * n3:(t + 1) * n3, :], w3_ref[t],
                              preferred_element_type=f32)
    out3 = out3 + b3_ref[...]                                          # conv3 bias

    o_ref[0] = out3                                                    # lane-dense (n3, 128) store


# ---------------------------------------------------------------------------
# Host-side helpers (trace-time constants / tiny XLA glue on the raw input only)
# ---------------------------------------------------------------------------
def _gather_matrix(in_h, in_w, k=K, stride=STRIDE, pad=PAD):
    """0/1 matrix G with G[t*npos + p, iy*in_w + ix] = 1 selecting tap t of output position p.

    Rows whose tap falls in the zero padding stay all-zero (so no padded buffer is needed)."""
    out_h = (in_h + 2 * pad - k) // stride + 1
    out_w = (in_w + 2 * pad - k) // stride + 1
    npos = out_h * out_w
    g = np.zeros((k * k * npos, in_h * in_w), np.float32)
    for kh in range(k):
        for kw in range(k):
            t = kh * k + kw
            for p in range(npos):
                oy, ox = divmod(p, out_w)
                iy = stride * oy + kh - pad
                ix = stride * ox + kw - pad
                if 0 <= iy < in_h and 0 <= ix < in_w:
                    g[t * npos + p, iy * in_w + ix] = 1.0
    return g, out_h, out_w


def _prep_kernel_operands(params):
    """Torch-layout params -> kernel-layout operands (tap-major weight stacks, (1,C) vectors)."""
    w1 = params["w1"]                                          # (32, 1, 4, 4)
    c1 = w1.shape[0]
    w1r = jnp.transpose(w1.reshape(c1, K * K), (1, 0)).astype(jnp.float32)        # (16, 32)

    def _stack(w):                                             # (Co, Ci, 4, 4) -> (16, Ci, Co)
        return jnp.transpose(w, (2, 3, 1, 0)).reshape(K * K, w.shape[1], w.shape[0])

    w2r = _stack(params["w2"]).astype(jnp.bfloat16)            # (16, 32, 64)
    w3r = _stack(params["w3"]).astype(jnp.bfloat16)            # (16, 64, 128)

    def _row(v):
        return v.reshape(1, -1).astype(jnp.float32)

    return (w1r, _row(params["b1"]), _row(params["bn1_scale"]), _row(params["bn1_shift"]),
            w2r, _row(params["b2"]), _row(params["bn2_scale"]), _row(params["bn2_shift"]),
            w3r, _row(params["b3"]))


# ---------------------------------------------------------------------------
# Parameters (deterministic init, inference-mode BN stats) and forward pass
# ---------------------------------------------------------------------------
def init_params(key, channels=(1, 32, 64, 128), k=K):
    keys = jax.random.split(key, 6)
    params = {}
    for i, (cin, cout) in enumerate(zip(channels[:-1], channels[1:]), start=1):
        fan_in = cin * k * k
        params[f"w{i}"] = (jax.random.normal(keys[2 * i - 2], (cout, cin, k, k),
                                             jnp.float32) * (1.0 / fan_in ** 0.5))
        params[f"b{i}"] = (jax.random.normal(keys[2 * i - 1], (cout,), jnp.float32) * 0.01)
    eps = 1e-5
    for i, c in enumerate((channels[1], channels[2]), start=1):
        gamma = jnp.ones((c,), jnp.float32)
        beta = jnp.zeros((c,), jnp.float32)
        running_mean = jnp.zeros((c,), jnp.float32)
        running_var = jnp.ones((c,), jnp.float32)
        scale = gamma / jnp.sqrt(running_var + eps)
        params[f"bn{i}_scale"] = scale
        params[f"bn{i}_shift"] = beta - running_mean * scale
    return params


def cnn_forward(x, params):
    # Match PyTorch forward(): promote <4-D inputs to NCHW by prepending axes.
    while x.ndim < 4:
        x = x[None]
    n, cin, h, w = x.shape
    assert cin == 1, "first conv expects a single input channel"
    assert h % 16 == 0 and w % 16 == 0, "spatial dims must be divisible by 16"

    x2 = x[:, 0, :, :].astype(jnp.float32)                     # (N, H, W)

    # mod-4 phase split of the zero-padded input: xq[n, A, B, r*4+c] = xpad[n, 4A+r, 4B+c].
    # Same total bytes as the input (no im2col blowup); lets the kernel read every conv1/pool
    # tap as a static unit-stride slice.
    xp = jnp.pad(x2, ((0, 0), (1, 3), (1, 3)))
    ah, aw = (h + 4) // 4, (w + 4) // 4
    xq = xp.reshape(n, ah, 4, aw, 4).transpose(0, 1, 3, 2, 4).reshape(n, ah, aw, 16)

    (w1r, b1r, s1r, t1r, w2r, b2r, s2r, t2r, w3r, b3r) = _prep_kernel_operands(params)

    # Constant im2col-selection matrices (built at trace time; a few KB each).
    hp, wp = h // 4, w // 4                                    # pooled spatial = conv2 input
    g2_np, h2, w2_ = _gather_matrix(hp, wp)
    g3_np, h3, w3_ = _gather_matrix(h2, w2_)
    g2 = jnp.asarray(g2_np, jnp.bfloat16)
    g3 = jnp.asarray(g3_np, jnp.bfloat16)

    c1, c2, c3 = w1r.shape[1], w2r.shape[2], w3r.shape[2]
    n2, n3 = h2 * w2_, h3 * w3_

    operands = (xq, w1r, b1r, s1r, t1r, g2, w2r, b2r, s2r, t2r, g3, w3r, b3r)

    flops = 2 * n * (4 * hp * wp * K * K * c1                  # conv1 + pool (VPU)
                     + g2.shape[0] * g2.shape[1] * c1 + K * K * n2 * c1 * c2
                     + g3.shape[0] * g3.shape[1] * c2 + K * K * n3 * c2 * c3)
    bytes_accessed = int(sum(int(np.prod(a.shape)) * a.dtype.itemsize for a in operands)
                         + n * n3 * c3 * 4)

    out = pl.pallas_call(
        _cnn_fused_kernel,
        out_shape=jax.ShapeDtypeStruct((n, n3, c3), jnp.float32),
        grid=(n,),
        in_specs=[
            pl.BlockSpec((1, ah, aw, 16), lambda i: (i, 0, 0, 0)),   # phase-split input
            pl.BlockSpec(w1r.shape, lambda i: (0, 0)),
            pl.BlockSpec(b1r.shape, lambda i: (0, 0)),
            pl.BlockSpec(s1r.shape, lambda i: (0, 0)),
            pl.BlockSpec(t1r.shape, lambda i: (0, 0)),
            pl.BlockSpec(g2.shape, lambda i: (0, 0)),
            pl.BlockSpec(w2r.shape, lambda i: (0, 0, 0)),
            pl.BlockSpec(b2r.shape, lambda i: (0, 0)),
            pl.BlockSpec(s2r.shape, lambda i: (0, 0)),
            pl.BlockSpec(t2r.shape, lambda i: (0, 0)),
            pl.BlockSpec(g3.shape, lambda i: (0, 0)),
            pl.BlockSpec(w3r.shape, lambda i: (0, 0, 0)),
            pl.BlockSpec(b3r.shape, lambda i: (0, 0)),
        ],
        out_specs=pl.BlockSpec((1, n3, c3), lambda i: (i, 0, 0)),
        compiler_params=pltpu.CompilerParams(
            dimension_semantics=("parallel",)),
        cost_estimate=pl.CostEstimate(flops=int(flops), transcendentals=0,
                                      bytes_accessed=bytes_accessed),
    )(*operands)

    out = out.reshape(n, h3, w3_, c3)                          # rows are (oh, ow) row-major
    return jnp.transpose(out, (0, 3, 1, 2))                    # NHWC -> NCHW


if __name__ == "__main__":
    key = jax.random.PRNGKey(0)
    pkey, xkey = jax.random.split(key)
    params = init_params(pkey)
    x = jax.random.normal(xkey, (2, 1, 32, 32), jnp.float32)   # NCHW, 1 input channel

    out = jax.jit(lambda inp: cnn_forward(inp, params))(x)
    out = jax.block_until_ready(out)

    assert out.shape == (2, 128, 2, 2), out.shape
    assert bool(jnp.all(jnp.isfinite(out)))
    print("KERNEL_OK")
</pallas_src>

<mosaic_0001>
module attributes {stable_mosaic.version = 11 : i64} {
  func.func @_cnn_fused_kernel(%arg0: i32, %arg1: memref<1x9x9x16xf32, #tpu.memory_space<vmem>>, %arg2: memref<16x32xf32, #tpu.memory_space<vmem>>, %arg3: memref<1x32xf32, #tpu.memory_space<vmem>>, %arg4: memref<1x32xf32, #tpu.memory_space<vmem>>, %arg5: memref<1x32xf32, #tpu.memory_space<vmem>>, %arg6: memref<256x64xbf16, #tpu.memory_space<vmem>>, %arg7: memref<16x32x64xbf16, #tpu.memory_space<vmem>>, %arg8: memref<1x64xf32, #tpu.memory_space<vmem>>, %arg9: memref<1x64xf32, #tpu.memory_space<vmem>>, %arg10: memref<1x64xf32, #tpu.memory_space<vmem>>, %arg11: memref<64x16xbf16, #tpu.memory_space<vmem>>, %arg12: memref<16x64x128xbf16, #tpu.memory_space<vmem>>, %arg13: memref<1x128xf32, #tpu.memory_space<vmem>>, %arg14: memref<1x4x128xf32, #tpu.memory_space<vmem>>) attributes {dimension_semantics = [#tpu.dimension_semantics<parallel>], iteration_bounds = array<i64: 2>, scalar_prefetch = 0 : i64, scratch_operands = 0 : i64, tpu.core_type = #tpu.core_type<tc>, window_params = [{transform_indices = @transform_0, window_bounds = array<i64: 1, 9, 9, 16>}, {pipeline_mode = #tpu.pipeline_mode<synchronous>, transform_indices = @transform_1, window_bounds = array<i64: 16, 32>}, {pipeline_mode = #tpu.pipeline_mode<synchronous>, transform_indices = @transform_2, window_bounds = array<i64: 1, 32>}, {pipeline_mode = #tpu.pipeline_mode<synchronous>, transform_indices = @transform_3, window_bounds = array<i64: 1, 32>}, {pipeline_mode = #tpu.pipeline_mode<synchronous>, transform_indices = @transform_4, window_bounds = array<i64: 1, 32>}, {pipeline_mode = #tpu.pipeline_mode<synchronous>, transform_indices = @transform_5, window_bounds = array<i64: 256, 64>}, {pipeline_mode = #tpu.pipeline_mode<synchronous>, transform_indices = @transform_6, window_bounds = array<i64: 16, 32, 64>}, {pipeline_mode = #tpu.pipeline_mode<synchronous>, transform_indices = @transform_7, window_bounds = array<i64: 1, 64>}, {pipeline_mode = #tpu.pipeline_mode<synchronous>, transform_indices = @transform_8, window_bounds = array<i64: 1, 64>}, {pipeline_mode = #tpu.pipeline_mode<synchronous>, transform_indices = @transform_9, window_bounds = array<i64: 1, 64>}, {pipeline_mode = #tpu.pipeline_mode<synchronous>, transform_indices = @transform_10, window_bounds = array<i64: 64, 16>}, {pipeline_mode = #tpu.pipeline_mode<synchronous>, transform_indices = @transform_11, window_bounds = array<i64: 16, 64, 128>}, {pipeline_mode = #tpu.pipeline_mode<synchronous>, transform_indices = @transform_12, window_bounds = array<i64: 1, 128>}, {transform_indices = @transform_13, window_bounds = array<i64: 1, 4, 128>}]} {
    %cst = arith.constant 0.000000e+00 : f32
    %0 = vector.broadcast %cst : f32 to vector<8x8x32xf32>
    %c0 = arith.constant 0 : index
    %c0_0 = arith.constant 0 : index
    %c0_1 = arith.constant 0 : index
    %c0_2 = arith.constant 0 : index
    %1 = vector.load %arg1[%c0, %c0_0, %c0_1, %c0_2] : memref<1x9x9x16xf32, #tpu.memory_space<vmem>>, vector<1x8x8x1xf32>
    %2 = vector.shape_cast %1 : vector<1x8x8x1xf32> to vector<8x8x1xf32>
    %c0_3 = arith.constant 0 : index
    %c0_4 = arith.constant 0 : index
    %3 = vector.load %arg2[%c0_3, %c0_4] : memref<16x32xf32, #tpu.memory_space<vmem>>, vector<1x32xf32>
    %4 = vector.shape_cast %3 : vector<1x32xf32> to vector<1x1x32xf32>
    %5 = vector.broadcast %2 : vector<8x8x1xf32> to vector<8x8x32xf32>
    %6 = vector.broadcast %4 : vector<1x1x32xf32> to vector<8x8x32xf32>
    %7 = arith.mulf %5, %6 : vector<8x8x32xf32>
    %8 = arith.addf %0, %7 : vector<8x8x32xf32>
    %c0_5 = arith.constant 0 : index
    %c0_6 = arith.constant 0 : index
    %c0_7 = arith.constant 0 : index
    %c1 = arith.constant 1 : index
    %9 = vector.load %arg1[%c0_5, %c0_6, %c0_7, %c1] : memref<1x9x9x16xf32, #tpu.memory_space<vmem>>, vector<1x8x8x1xf32>
    %10 = vector.shape_cast %9 : vector<1x8x8x1xf32> to vector<8x8x1xf32>
    %c1_8 = arith.constant 1 : index
    %c0_9 = arith.constant 0 : index
    %11 = vector.load %arg2[%c1_8, %c0_9] : memref<16x32xf32, #tpu.memory_space<vmem>>, vector<1x32xf32>
    %12 = vector.shape_cast %11 : vector<1x32xf32> to vector<1x1x32xf32>
    %13 = vector.broadcast %10 : vector<8x8x1xf32> to vector<8x8x32xf32>
    %14 = vector.broadcast %12 : vector<1x1x32xf32> to vector<8x8x32xf32>
    %15 = arith.mulf %13, %14 : vector<8x8x32xf32>
    %16 = arith.addf %8, %15 : vector<8x8x32xf32>
    %c0_10 = arith.constant 0 : index
    %c0_11 = arith.constant 0 : index
    %c0_12 = arith.constant 0 : index
    %c2 = arith.constant 2 : index
    %17 = vector.load %arg1[%c0_10, %c0_11, %c0_12, %c2] : memref<1x9x9x16xf32, #tpu.memory_space<vmem>>, vector<1x8x8x1xf32>
    %18 = vector.shape_cast %17 : vector<1x8x8x1xf32> to vector<8x8x1xf32>
    %c2_13 = arith.constant 2 : index
    %c0_14 = arith.constant 0 : index
    %19 = vector.load %arg2[%c2_13, %c0_14] : memref<16x32xf32, #tpu.memory_space<vmem>>, vector<1x32xf32>
    %20 = vector.shape_cast %19 : vector<1x32xf32> to vector<1x1x32xf32>
    %21 = vector.broadcast %18 : vector<8x8x1xf32> to vector<8x8x32xf32>
    %22 = vector.broadcast %20 : vector<1x1x32xf32> to vector<8x8x32xf32>
    %23 = arith.mulf %21, %22 : vector<8x8x32xf32>
    %24 = arith.addf %16, %23 : vector<8x8x32xf32>
    %c0_15 = arith.constant 0 : index
    %c0_16 = arith.constant 0 : index
    %c0_17 = arith.constant 0 : index
    %c3 = arith.constant 3 : index
    %25 = vector.load %arg1[%c0_15, %c0_16, %c0_17, %c3] : memref<1x9x9x16xf32, #tpu.memory_space<vmem>>, vector<1x8x8x1xf32>
    %26 = vector.shape_cast %25 : vector<1x8x8x1xf32> to vector<8x8x1xf32>
    %c3_18 = arith.constant 3 : index
    %c0_19 = arith.constant 0 : index
    %27 = vector.load %arg2[%c3_18, %c0_19] : memref<16x32xf32, #tpu.memory_space<vmem>>, vector<1x32xf32>
    %28 = vector.shape_cast %27 : vector<1x32xf32> to vector<1x1x32xf32>
    %29 = vector.broadcast %26 : vector<8x8x1xf32> to vector<8x8x32xf32>
    %30 = vector.broadcast %28 : vector<1x1x32xf32> to vector<8x8x32xf32>
    %31 = arith.mulf %29, %30 : vector<8x8x32xf32>
    %32 = arith.addf %24, %31 : vector<8x8x32xf32>
    %c0_20 = arith.constant 0 : index
    %c0_21 = arith.constant 0 : index
    %c0_22 = arith.constant 0 : index
    %c4 = arith.constant 4 : index
    %33 = vector.load %arg1[%c0_20, %c0_21, %c0_22, %c4] : memref<1x9x9x16xf32, #tpu.memory_space<vmem>>, vector<1x8x8x1xf32>
    %34 = vector.shape_cast %33 : vector<1x8x8x1xf32> to vector<8x8x1xf32>
    %c4_23 = arith.constant 4 : index
    %c0_24 = arith.constant 0 : index
    %35 = vector.load %arg2[%c4_23, %c0_24] : memref<16x32xf32, #tpu.memory_space<vmem>>, vector<1x32xf32>
    %36 = vector.shape_cast %35 : vector<1x32xf32> to vector<1x1x32xf32>
    %37 = vector.broadcast %34 : vector<8x8x1xf32> to vector<8x8x32xf32>
    %38 = vector.broadcast %36 : vector<1x1x32xf32> to vector<8x8x32xf32>
    %39 = arith.mulf %37, %38 : vector<8x8x32xf32>
    %40 = arith.addf %32, %39 : vector<8x8x32xf32>
    %c0_25 = arith.constant 0 : index
    %c0_26 = arith.constant 0 : index
    %c0_27 = arith.constant 0 : index
    %c5 = arith.constant 5 : index
    %41 = vector.load %arg1[%c0_25, %c0_26, %c0_27, %c5] : memref<1x9x9x16xf32, #tpu.memory_space<vmem>>, vector<1x8x8x1xf32>
    %42 = vector.shape_cast %41 : vector<1x8x8x1xf32> to vector<8x8x1xf32>
    %c5_28 = arith.constant 5 : index
    %c0_29 = arith.constant 0 : index
    %43 = vector.load %arg2[%c5_28, %c0_29] : memref<16x32xf32, #tpu.memory_space<vmem>>, vector<1x32xf32>
    %44 = vector.shape_cast %43 : vector<1x32xf32> to vector<1x1x32xf32>
    %45 = vector.broadcast %42 : vector<8x8x1xf32> to vector<8x8x32xf32>
    %46 = vector.broadcast %44 : vector<1x1x32xf32> to vector<8x8x32xf32>
    %47 = arith.mulf %45, %46 : vector<8x8x32xf32>
    %48 = arith.addf %40, %47 : vector<8x8x32xf32>
    %c0_30 = arith.constant 0 : index
    %c0_31 = arith.constant 0 : index
    %c0_32 = arith.constant 0 : index
    %c6 = arith.constant 6 : index
    %49 = vector.load %arg1[%c0_30, %c0_31, %c0_32, %c6] : memref<1x9x9x16xf32, #tpu.memory_space<vmem>>, vector<1x8x8x1xf32>
    %50 = vector.shape_cast %49 : vector<1x8x8x1xf32> to vector<8x8x1xf32>
    %c6_33 = arith.constant 6 : index
    %c0_34 = arith.constant 0 : index
    %51 = vector.load %arg2[%c6_33, %c0_34] : memref<16x32xf32, #tpu.memory_space<vmem>>, vector<1x32xf32>
    %52 = vector.shape_cast %51 : vector<1x32xf32> to vector<1x1x32xf32>
    %53 = vector.broadcast %50 : vector<8x8x1xf32> to vector<8x8x32xf32>
    %54 = vector.broadcast %52 : vector<1x1x32xf32> to vector<8x8x32xf32>
    %55 = arith.mulf %53, %54 : vector<8x8x32xf32>
    %56 = arith.addf %48, %55 : vector<8x8x32xf32>
    %c0_35 = arith.constant 0 : index
    %c0_36 = arith.constant 0 : index
    %c0_37 = arith.constant 0 : index
    %c7 = arith.constant 7 : index
    %57 = vector.load %arg1[%c0_35, %c0_36, %c0_37, %c7] : memref<1x9x9x16xf32, #tpu.memory_space<vmem>>, vector<1x8x8x1xf32>
    %58 = vector.shape_cast %57 : vector<1x8x8x1xf32> to vector<8x8x1xf32>
    %c7_38 = arith.constant 7 : index
    %c0_39 = arith.constant 0 : index
    %59 = vector.load %arg2[%c7_38, %c0_39] : memref<16x32xf32, #tpu.memory_space<vmem>>, vector<1x32xf32>
    %60 = vector.shape_cast %59 : vector<1x32xf32> to vector<1x1x32xf32>
    %61 = vector.broadcast %58 : vector<8x8x1xf32> to vector<8x8x32xf32>
    %62 = vector.broadcast %60 : vector<1x1x32xf32> to vector<8x8x32xf32>
    %63 = arith.mulf %61, %62 : vector<8x8x32xf32>
    %64 = arith.addf %56, %63 : vector<8x8x32xf32>
    %c0_40 = arith.constant 0 : index
    %c0_41 = arith.constant 0 : index
    %c0_42 = arith.constant 0 : index
    %c8 = arith.constant 8 : index
    %65 = vector.load %arg1[%c0_40, %c0_41, %c0_42, %c8] : memref<1x9x9x16xf32, #tpu.memory_space<vmem>>, vector<1x8x8x1xf32>
    %66 = vector.shape_cast %65 : vector<1x8x8x1xf32> to vector<8x8x1xf32>
    %c8_43 = arith.constant 8 : index
    %c0_44 = arith.constant 0 : index
    %67 = vector.load %arg2[%c8_43, %c0_44] : memref<16x32xf32, #tpu.memory_space<vmem>>, vector<1x32xf32>
    %68 = vector.shape_cast %67 : vector<1x32xf32> to vector<1x1x32xf32>
    %69 = vector.broadcast %66 : vector<8x8x1xf32> to vector<8x8x32xf32>
    %70 = vector.broadcast %68 : vector<1x1x32xf32> to vector<8x8x32xf32>
    %71 = arith.mulf %69, %70 : vector<8x8x32xf32>
    %72 = arith.addf %64, %71 : vector<8x8x32xf32>
    %c0_45 = arith.constant 0 : index
    %c0_46 = arith.constant 0 : index
    %c0_47 = arith.constant 0 : index
    %c9 = arith.constant 9 : index
    %73 = vector.load %arg1[%c0_45, %c0_46, %c0_47, %c9] : memref<1x9x9x16xf32, #tpu.memory_space<vmem>>, vector<1x8x8x1xf32>
    %74 = vector.shape_cast %73 : vector<1x8x8x1xf32> to vector<8x8x1xf32>
    %c9_48 = arith.constant 9 : index
    %c0_49 = arith.constant 0 : index
    %75 = vector.load %arg2[%c9_48, %c0_49] : memref<16x32xf32, #tpu.memory_space<vmem>>, vector<1x32xf32>
    %76 = vector.shape_cast %75 : vector<1x32xf32> to vector<1x1x32xf32>
    %77 = vector.broadcast %74 : vector<8x8x1xf32> to vector<8x8x32xf32>
    %78 = vector.broadcast %76 : vector<1x1x32xf32> to vector<8x8x32xf32>
    %79 = arith.mulf %77, %78 : vector<8x8x32xf32>
    %80 = arith.addf %72, %79 : vector<8x8x32xf32>
    %c0_50 = arith.constant 0 : index
    %c0_51 = arith.constant 0 : index
    %c0_52 = arith.constant 0 : index
    %c10 = arith.constant 10 : index
    %81 = vector.load %arg1[%c0_50, %c0_51, %c0_52, %c10] : memref<1x9x9x16xf32, #tpu.memory_space<vmem>>, vector<1x8x8x1xf32>
    %82 = vector.shape_cast %81 : vector<1x8x8x1xf32> to vector<8x8x1xf32>
    %c10_53 = arith.constant 10 : index
    %c0_54 = arith.constant 0 : index
    %83 = vector.load %arg2[%c10_53, %c0_54] : memref<16x32xf32, #tpu.memory_space<vmem>>, vector<1x32xf32>
    %84 = vector.shape_cast %83 : vector<1x32xf32> to vector<1x1x32xf32>
    %85 = vector.broadcast %82 : vector<8x8x1xf32> to vector<8x8x32xf32>
    %86 = vector.broadcast %84 : vector<1x1x32xf32> to vector<8x8x32xf32>
    %87 = arith.mulf %85, %86 : vector<8x8x32xf32>
    %88 = arith.addf %80, %87 : vector<8x8x32xf32>
    %c0_55 = arith.constant 0 : index
    %c0_56 = arith.constant 0 : index
    %c0_57 = arith.constant 0 : index
    %c11 = arith.constant 11 : index
    %89 = vector.load %arg1[%c0_55, %c0_56, %c0_57, %c11] : memref<1x9x9x16xf32, #tpu.memory_space<vmem>>, vector<1x8x8x1xf32>
    %90 = vector.shape_cast %89 : vector<1x8x8x1xf32> to vector<8x8x1xf32>
    %c11_58 = arith.constant 11 : index
    %c0_59 = arith.constant 0 : index
    %91 = vector.load %arg2[%c11_58, %c0_59] : memref<16x32xf32, #tpu.memory_space<vmem>>, vector<1x32xf32>
    %92 = vector.shape_cast %91 : vector<1x32xf32> to vector<1x1x32xf32>
    %93 = vector.broadcast %90 : vector<8x8x1xf32> to vector<8x8x32xf32>
    %94 = vector.broadcast %92 : vector<1x1x32xf32> to vector<8x8x32xf32>
    %95 = arith.mulf %93, %94 : vector<8x8x32xf32>
    %96 = arith.addf %88, %95 : vector<8x8x32xf32>
    %c0_60 = arith.constant 0 : index
    %c0_61 = arith.constant 0 : index
    %c0_62 = arith.constant 0 : index
    %c12 = arith.constant 12 : index
    %97 = vector.load %arg1[%c0_60, %c0_61, %c0_62, %c12] : memref<1x9x9x16xf32, #tpu.memory_space<vmem>>, vector<1x8x8x1xf32>
    %98 = vector.shape_cast %97 : vector<1x8x8x1xf32> to vector<8x8x1xf32>
    %c12_63 = arith.constant 12 : index
    %c0_64 = arith.constant 0 : index
    %99 = vector.load %arg2[%c12_63, %c0_64] : memref<16x32xf32, #tpu.memory_space<vmem>>, vector<1x32xf32>
    %100 = vector.shape_cast %99 : vector<1x32xf32> to vector<1x1x32xf32>
    %101 = vector.broadcast %98 : vector<8x8x1xf32> to vector<8x8x32xf32>
    %102 = vector.broadcast %100 : vector<1x1x32xf32> to vector<8x8x32xf32>
    %103 = arith.mulf %101, %102 : vector<8x8x32xf32>
    %104 = arith.addf %96, %103 : vector<8x8x32xf32>
    %c0_65 = arith.constant 0 : index
    %c0_66 = arith.constant 0 : index
    %c0_67 = arith.constant 0 : index
    %c13 = arith.constant 13 : index
    %105 = vector.load %arg1[%c0_65, %c0_66, %c0_67, %c13] : memref<1x9x9x16xf32, #tpu.memory_space<vmem>>, vector<1x8x8x1xf32>
    %106 = vector.shape_cast %105 : vector<1x8x8x1xf32> to vector<8x8x1xf32>
    %c13_68 = arith.constant 13 : index
    %c0_69 = arith.constant 0 : index
    %107 = vector.load %arg2[%c13_68, %c0_69] : memref<16x32xf32, #tpu.memory_space<vmem>>, vector<1x32xf32>
    %108 = vector.shape_cast %107 : vector<1x32xf32> to vector<1x1x32xf32>
    %109 = vector.broadcast %106 : vector<8x8x1xf32> to vector<8x8x32xf32>
    %110 = vector.broadcast %108 : vector<1x1x32xf32> to vector<8x8x32xf32>
    %111 = arith.mulf %109, %110 : vector<8x8x32xf32>
    %112 = arith.addf %104, %111 : vector<8x8x32xf32>
    %c0_70 = arith.constant 0 : index
    %c0_71 = arith.constant 0 : index
    %c0_72 = arith.constant 0 : index
    %c14 = arith.constant 14 : index
    %113 = vector.load %arg1[%c0_70, %c0_71, %c0_72, %c14] : memref<1x9x9x16xf32, #tpu.memory_space<vmem>>, vector<1x8x8x1xf32>
    %114 = vector.shape_cast %113 : vector<1x8x8x1xf32> to vector<8x8x1xf32>
    %c14_73 = arith.constant 14 : index
    %c0_74 = arith.constant 0 : index
    %115 = vector.load %arg2[%c14_73, %c0_74] : memref<16x32xf32, #tpu.memory_space<vmem>>, vector<1x32xf32>
    %116 = vector.shape_cast %115 : vector<1x32xf32> to vector<1x1x32xf32>
    %117 = vector.broadcast %114 : vector<8x8x1xf32> to vector<8x8x32xf32>
    %118 = vector.broadcast %116 : vector<1x1x32xf32> to vector<8x8x32xf32>
    %119 = arith.mulf %117, %118 : vector<8x8x32xf32>
    %120 = arith.addf %112, %119 : vector<8x8x32xf32>
    %c0_75 = arith.constant 0 : index
    %c0_76 = arith.constant 0 : index
    %c0_77 = arith.constant 0 : index
    %c15 = arith.constant 15 : index
    %121 = vector.load %arg1[%c0_75, %c0_76, %c0_77, %c15] : memref<1x9x9x16xf32, #tpu.memory_space<vmem>>, vector<1x8x8x1xf32>
    %122 = vector.shape_cast %121 : vector<1x8x8x1xf32> to vector<8x8x1xf32>
    %c15_78 = arith.constant 15 : index
    %c0_79 = arith.constant 0 : index
    %123 = vector.load %arg2[%c15_78, %c0_79] : memref<16x32xf32, #tpu.memory_space<vmem>>, vector<1x32xf32>
    %124 = vector.shape_cast %123 : vector<1x32xf32> to vector<1x1x32xf32>
    %125 = vector.broadcast %122 : vector<8x8x1xf32> to vector<8x8x32xf32>
    %126 = vector.broadcast %124 : vector<1x1x32xf32> to vector<8x8x32xf32>
    %127 = arith.mulf %125, %126 : vector<8x8x32xf32>
    %128 = arith.addf %120, %127 : vector<8x8x32xf32>
    %cst_80 = arith.constant 0.000000e+00 : f32
    %129 = vector.broadcast %cst_80 : f32 to vector<8x8x32xf32>
    %c0_81 = arith.constant 0 : index
    %c0_82 = arith.constant 0 : index
    %c0_83 = arith.constant 0 : index
    %c2_84 = arith.constant 2 : index
    %130 = vector.load %arg1[%c0_81, %c0_82, %c0_83, %c2_84] : memref<1x9x9x16xf32, #tpu.memory_space<vmem>>, vector<1x8x8x1xf32>
    %131 = vector.shape_cast %130 : vector<1x8x8x1xf32> to vector<8x8x1xf32>
    %c0_85 = arith.constant 0 : index
    %c0_86 = arith.constant 0 : index
    %132 = vector.load %arg2[%c0_85, %c0_86] : memref<16x32xf32, #tpu.memory_space<vmem>>, vector<1x32xf32>
    %133 = vector.shape_cast %132 : vector<1x32xf32> to vector<1x1x32xf32>
    %134 = vector.broadcast %131 : vector<8x8x1xf32> to vector<8x8x32xf32>
    %135 = vector.broadcast %133 : vector<1x1x32xf32> to vector<8x8x32xf32>
    %136 = arith.mulf %134, %135 : vector<8x8x32xf32>
    %137 = arith.addf %129, %136 : vector<8x8x32xf32>
    %c0_87 = arith.constant 0 : index
    %c0_88 = arith.constant 0 : index
    %c0_89 = arith.constant 0 : index
    %c3_90 = arith.constant 3 : index
    %138 = vector.load %arg1[%c0_87, %c0_88, %c0_89, %c3_90] : memref<1x9x9x16xf32, #tpu.memory_space<vmem>>, vector<1x8x8x1xf32>
    %139 = vector.shape_cast %138 : vector<1x8x8x1xf32> to vector<8x8x1xf32>
    %c1_91 = arith.constant 1 : index
    %c0_92 = arith.constant 0 : index
    %140 = vector.load %arg2[%c1_91, %c0_92] : memref<16x32xf32, #tpu.memory_space<vmem>>, vector<1x32xf32>
    %141 = vector.shape_cast %140 : vector<1x32xf32> to vector<1x1x32xf32>
    %142 = vector.broadcast %139 : vector<8x8x1xf32> to vector<8x8x32xf32>
    %143 = vector.broadcast %141 : vector<1x1x32xf32> to vector<8x8x32xf32>
    %144 = arith.mulf %142, %143 : vector<8x8x32xf32>
    %145 = arith.addf %137, %144 : vector<8x8x32xf32>
    %c0_93 = arith.constant 0 : index
    %c0_94 = arith.constant 0 : index
    %c1_95 = arith.constant 1 : index
    %c0_96 = arith.constant 0 : index
    %146 = vector.load %arg1[%c0_93, %c0_94, %c1_95, %c0_96] : memref<1x9x9x16xf32, #tpu.memory_space<vmem>>, vector<1x8x8x1xf32>
    %147 = vector.shape_cast %146 : vector<1x8x8x1xf32> to vector<8x8x1xf32>
    %c2_97 = arith.constant 2 : index
    %c0_98 = arith.constant 0 : index
    %148 = vector.load %arg2[%c2_97, %c0_98] : memref<16x32xf32, #tpu.memory_space<vmem>>, vector<1x32xf32>
    %149 = vector.shape_cast %148 : vector<1x32xf32> to vector<1x1x32xf32>
    %150 = vector.broadcast %147 : vector<8x8x1xf32> to vector<8x8x32xf32>
    %151 = vector.broadcast %149 : vector<1x1x32xf32> to vector<8x8x32xf32>
    %152 = arith.mulf %150, %151 : vector<8x8x32xf32>
    %153 = arith.addf %145, %152 : vector<8x8x32xf32>
    %c0_99 = arith.constant 0 : index
    %c0_100 = arith.constant 0 : index
    %c1_101 = arith.constant 1 : index
    %c1_102 = arith.constant 1 : index
    %154 = vector.load %arg1[%c0_99, %c0_100, %c1_101, %c1_102] : memref<1x9x9x16xf32, #tpu.memory_space<vmem>>, vector<1x8x8x1xf32>
    %155 = vector.shape_cast %154 : vector<1x8x8x1xf32> to vector<8x8x1xf32>
    %c3_103 = arith.constant 3 : index
    %c0_104 = arith.constant 0 : index
    %156 = vector.load %arg2[%c3_103, %c0_104] : memref<16x32xf32, #tpu.memory_space<vmem>>, vector<1x32xf32>
    %157 = vector.shape_cast %156 : vector<1x32xf32> to vector<1x1x32xf32>
    %158 = vector.broadcast %155 : vector<8x8x1xf32> to vector<8x8x32xf32>
    %159 = vector.broadcast %157 : vector<1x1x32xf32> to vector<8x8x32xf32>
    %160 = arith.mulf %158, %159 : vector<8x8x32xf32>
    %161 = arith.addf %153, %160 : vector<8x8x32xf32>
    %c0_105 = arith.constant 0 : index
    %c0_106 = arith.constant 0 : index
    %c0_107 = arith.constant 0 : index
    %c6_108 = arith.constant 6 : index
    %162 = vector.load %arg1[%c0_105, %c0_106, %c0_107, %c6_108] : memref<1x9x9x16xf32, #tpu.memory_space<vmem>>, vector<1x8x8x1xf32>
    %163 = vector.shape_cast %162 : vector<1x8x8x1xf32> to vector<8x8x1xf32>
    %c4_109 = arith.constant 4 : index
    %c0_110 = arith.constant 0 : index
    %164 = vector.load %arg2[%c4_109, %c0_110] : memref<16x32xf32, #tpu.memory_space<vmem>>, vector<1x32xf32>
    %165 = vector.shape_cast %164 : vector<1x32xf32> to vector<1x1x32xf32>
    %166 = vector.broadcast %163 : vector<8x8x1xf32> to vector<8x8x32xf32>
    %167 = vector.broadcast %165 : vector<1x1x32xf32> to vector<8x8x32xf32>
    %168 = arith.mulf %166, %167 : vector<8x8x32xf32>
    %169 = arith.addf %161, %168 : vector<8x8x32xf32>
    %c0_111 = arith.constant 0 : index
    %c0_112 = arith.constant 0 : index
    %c0_113 = arith.constant 0 : index
    %c7_114 = arith.constant 7 : index
    %170 = vector.load %arg1[%c0_111, %c0_112, %c0_113, %c7_114] : memref<1x9x9x16xf32, #tpu.memory_space<vmem>>, vector<1x8x8x1xf32>
    %171 = vector.shape_cast %170 : vector<1x8x8x1xf32> to vector<8x8x1xf32>
    %c5_115 = arith.constant 5 : index
    %c0_116 = arith.constant 0 : index
    %172 = vector.load %arg2[%c5_115, %c0_116] : memref<16x32xf32, #tpu.memory_space<vmem>>, vector<1x32xf32>
    %173 = vector.shape_cast %172 : vector<1x32xf32> to vector<1x1x32xf32>
    %174 = vector.broadcast %171 : vector<8x8x1xf32> to vector<8x8x32xf32>
    %175 = vector.broadcast %173 : vector<1x1x32xf32> to vector<8x8x32xf32>
    %176 = arith.mulf %174, %175 : vector<8x8x32xf32>
    %177 = arith.addf %169, %176 : vector<8x8x32xf32>
    %c0_117 = arith.constant 0 : index
    %c0_118 = arith.constant 0 : index
    %c1_119 = arith.constant 1 : index
    %c4_120 = arith.constant 4 : index
    %178 = vector.load %arg1[%c0_117, %c0_118, %c1_119, %c4_120] : memref<1x9x9x16xf32, #tpu.memory_space<vmem>>, vector<1x8x8x1xf32>
    %179 = vector.shape_cast %178 : vector<1x8x8x1xf32> to vector<8x8x1xf32>
    %c6_121 = arith.constant 6 : index
    %c0_122 = arith.constant 0 : index
    %180 = vector.load %arg2[%c6_121, %c0_122] : memref<16x32xf32, #tpu.memory_space<vmem>>, vector<1x32xf32>
    %181 = vector.shape_cast %180 : vector<1x32xf32> to vector<1x1x32xf32>
    %182 = vector.broadcast %179 : vector<8x8x1xf32> to vector<8x8x32xf32>
    %183 = vector.broadcast %181 : vector<1x1x32xf32> to vector<8x8x32xf32>
    %184 = arith.mulf %182, %183 : vector<8x8x32xf32>
    %185 = arith.addf %177, %184 : vector<8x8x32xf32>
    %c0_123 = arith.constant 0 : index
    %c0_124 = arith.constant 0 : index
    %c1_125 = arith.constant 1 : index
    %c5_126 = arith.constant 5 : index
    %186 = vector.load %arg1[%c0_123, %c0_124, %c1_125, %c5_126] : memref<1x9x9x16xf32, #tpu.memory_space<vmem>>, vector<1x8x8x1xf32>
    %187 = vector.shape_cast %186 : vector<1x8x8x1xf32> to vector<8x8x1xf32>
    %c7_127 = arith.constant 7 : index
    %c0_128 = arith.constant 0 : index
    %188 = vector.load %arg2[%c7_127, %c0_128] : memref<16x32xf32, #tpu.memory_space<vmem>>, vector<1x32xf32>
    %189 = vector.shape_cast %188 : vector<1x32xf32> to vector<1x1x32xf32>
    %190 = vector.broadcast %187 : vector<8x8x1xf32> to vector<8x8x32xf32>
    %191 = vector.broadcast %189 : vector<1x1x32xf32> to vector<8x8x32xf32>
    %192 = arith.mulf %190, %191 : vector<8x8x32xf32>
    %193 = arith.addf %185, %192 : vector<8x8x32xf32>
    %c0_129 = arith.constant 0 : index
    %c0_130 = arith.constant 0 : index
    %c0_131 = arith.constant 0 : index
    %c10_132 = arith.constant 10 : index
    %194 = vector.load %arg1[%c0_129, %c0_130, %c0_131, %c10_132] : memref<1x9x9x16xf32, #tpu.memory_space<vmem>>, vector<1x8x8x1xf32>
    %195 = vector.shape_cast %194 : vector<1x8x8x1xf32> to vector<8x8x1xf32>
    %c8_133 = arith.constant 8 : index
    %c0_134 = arith.constant 0 : index
    %196 = vector.load %arg2[%c8_133, %c0_134] : memref<16x32xf32, #tpu.memory_space<vmem>>, vector<1x32xf32>
    %197 = vector.shape_cast %196 : vector<1x32xf32> to vector<1x1x32xf32>
    %198 = vector.broadcast %195 : vector<8x8x1xf32> to vector<8x8x32xf32>
    %199 = vector.broadcast %197 : vector<1x1x32xf32> to vector<8x8x32xf32>
    %200 = arith.mulf %198, %199 : vector<8x8x32xf32>
    %201 = arith.addf %193, %200 : vector<8x8x32xf32>
    %c0_135 = arith.constant 0 : index
    %c0_136 = arith.constant 0 : index
    %c0_137 = arith.constant 0 : index
    %c11_138 = arith.constant 11 : index
    %202 = vector.load %arg1[%c0_135, %c0_136, %c0_137, %c11_138] : memref<1x9x9x16xf32, #tpu.memory_space<vmem>>, vector<1x8x8x1xf32>
    %203 = vector.shape_cast %202 : vector<1x8x8x1xf32> to vector<8x8x1xf32>
    %c9_139 = arith.constant 9 : index
    %c0_140 = arith.constant 0 : index
    %204 = vector.load %arg2[%c9_139, %c0_140] : memref<16x32xf32, #tpu.memory_space<vmem>>, vector<1x32xf32>
    %205 = vector.shape_cast %204 : vector<1x32xf32> to vector<1x1x32xf32>
    %206 = vector.broadcast %203 : vector<8x8x1xf32> to vector<8x8x32xf32>
    %207 = vector.broadcast %205 : vector<1x1x32xf32> to vector<8x8x32xf32>
    %208 = arith.mulf %206, %207 : vector<8x8x32xf32>
    %209 = arith.addf %201, %208 : vector<8x8x32xf32>
    %c0_141 = arith.constant 0 : index
    %c0_142 = arith.constant 0 : index
    %c1_143 = arith.constant 1 : index
    %c8_144 = arith.constant 8 : index
    %210 = vector.load %arg1[%c0_141, %c0_142, %c1_143, %c8_144] : memref<1x9x9x16xf32, #tpu.memory_space<vmem>>, vector<1x8x8x1xf32>
    %211 = vector.shape_cast %210 : vector<1x8x8x1xf32> to vector<8x8x1xf32>
    %c10_145 = arith.constant 10 : index
    %c0_146 = arith.constant 0 : index
    %212 = vector.load %arg2[%c10_145, %c0_146] : memref<16x32xf32, #tpu.memory_space<vmem>>, vector<1x32xf32>
    %213 = vector.shape_cast %212 : vector<1x32xf32> to vector<1x1x32xf32>
    %214 = vector.broadcast %211 : vector<8x8x1xf32> to vector<8x8x32xf32>
    %215 = vector.broadcast %213 : vector<1x1x32xf32> to vector<8x8x32xf32>
    %216 = arith.mulf %214, %215 : vector<8x8x32xf32>
    %217 = arith.addf %209, %216 : vector<8x8x32xf32>
    %c0_147 = arith.constant 0 : index
    %c0_148 = arith.constant 0 : index
    %c1_149 = arith.constant 1 : index
    %c9_150 = arith.constant 9 : index
    %218 = vector.load %arg1[%c0_147, %c0_148, %c1_149, %c9_150] : memref<1x9x9x16xf32, #tpu.memory_space<vmem>>, vector<1x8x8x1xf32>
    %219 = vector.shape_cast %218 : vector<1x8x8x1xf32> to vector<8x8x1xf32>
    %c11_151 = arith.constant 11 : index
    %c0_152 = arith.constant 0 : index
    %220 = vector.load %arg2[%c11_151, %c0_152] : memref<16x32xf32, #tpu.memory_space<vmem>>, vector<1x32xf32>
    %221 = vector.shape_cast %220 : vector<1x32xf32> to vector<1x1x32xf32>
    %222 = vector.broadcast %219 : vector<8x8x1xf32> to vector<8x8x32xf32>
    %223 = vector.broadcast %221 : vector<1x1x32xf32> to vector<8x8x32xf32>
    %224 = arith.mulf %222, %223 : vector<8x8x32xf32>
    %225 = arith.addf %217, %224 : vector<8x8x32xf32>
    %c0_153 = arith.constant 0 : index
    %c0_154 = arith.constant 0 : index
    %c0_155 = arith.constant 0 : index
    %c14_156 = arith.constant 14 : index
    %226 = vector.load %arg1[%c0_153, %c0_154, %c0_155, %c14_156] : memref<1x9x9x16xf32, #tpu.memory_space<vmem>>, vector<1x8x8x1xf32>
    %227 = vector.shape_cast %226 : vector<1x8x8x1xf32> to vector<8x8x1xf32>
    %c12_157 = arith.constant 12 : index
    %c0_158 = arith.constant 0 : index
    %228 = vector.load %arg2[%c12_157, %c0_158] : memref<16x32xf32, #tpu.memory_space<vmem>>, vector<1x32xf32>
    %229 = vector.shape_cast %228 : vector<1x32xf32> to vector<1x1x32xf32>
    %230 = vector.broadcast %227 : vector<8x8x1xf32> to vector<8x8x32xf32>
    %231 = vector.broadcast %229 : vector<1x1x32xf32> to vector<8x8x32xf32>
    %232 = arith.mulf %230, %231 : vector<8x8x32xf32>
    %233 = arith.addf %225, %232 : vector<8x8x32xf32>
    %c0_159 = arith.constant 0 : index
    %c0_160 = arith.constant 0 : index
    %c0_161 = arith.constant 0 : index
    %c15_162 = arith.constant 15 : index
    %234 = vector.load %arg1[%c0_159, %c0_160, %c0_161, %c15_162] : memref<1x9x9x16xf32, #tpu.memory_space<vmem>>, vector<1x8x8x1xf32>
    %235 = vector.shape_cast %234 : vector<1x8x8x1xf32> to vector<8x8x1xf32>
    %c13_163 = arith.constant 13 : index
    %c0_164 = arith.constant 0 : index
    %236 = vector.load %arg2[%c13_163, %c0_164] : memref<16x32xf32, #tpu.memory_space<vmem>>, vector<1x32xf32>
    %237 = vector.shape_cast %236 : vector<1x32xf32> to vector<1x1x32xf32>
    %238 = vector.broadcast %235 : vector<8x8x1xf32> to vector<8x8x32xf32>
    %239 = vector.broadcast %237 : vector<1x1x32xf32> to vector<8x8x32xf32>
    %240 = arith.mulf %238, %239 : vector<8x8x32xf32>
    %241 = arith.addf %233, %240 : vector<8x8x32xf32>
    %c0_165 = arith.constant 0 : index
    %c0_166 = arith.constant 0 : index
    %c1_167 = arith.constant 1 : index
    %c12_168 = arith.constant 12 : index
    %242 = vector.load %arg1[%c0_165, %c0_166, %c1_167, %c12_168] : memref<1x9x9x16xf32, #tpu.memory_space<vmem>>, vector<1x8x8x1xf32>
    %243 = vector.shape_cast %242 : vector<1x8x8x1xf32> to vector<8x8x1xf32>
    %c14_169 = arith.constant 14 : index
    %c0_170 = arith.constant 0 : index
    %244 = vector.load %arg2[%c14_169, %c0_170] : memref<16x32xf32, #tpu.memory_space<vmem>>, vector<1x32xf32>
    %245 = vector.shape_cast %244 : vector<1x32xf32> to vector<1x1x32xf32>
    %246 = vector.broadcast %243 : vector<8x8x1xf32> to vector<8x8x32xf32>
    %247 = vector.broadcast %245 : vector<1x1x32xf32> to vector<8x8x32xf32>
    %248 = arith.mulf %246, %247 : vector<8x8x32xf32>
    %249 = arith.addf %241, %248 : vector<8x8x32xf32>
    %c0_171 = arith.constant 0 : index
    %c0_172 = arith.constant 0 : index
    %c1_173 = arith.constant 1 : index
    %c13_174 = arith.constant 13 : index
    %250 = vector.load %arg1[%c0_171, %c0_172, %c1_173, %c13_174] : memref<1x9x9x16xf32, #tpu.memory_space<vmem>>, vector<1x8x8x1xf32>
    %251 = vector.shape_cast %250 : vector<1x8x8x1xf32> to vector<8x8x1xf32>
    %c15_175 = arith.constant 15 : index
    %c0_176 = arith.constant 0 : index
    %252 = vector.load %arg2[%c15_175, %c0_176] : memref<16x32xf32, #tpu.memory_space<vmem>>, vector<1x32xf32>
    %253 = vector.shape_cast %252 : vector<1x32xf32> to vector<1x1x32xf32>
    %254 = vector.broadcast %251 : vector<8x8x1xf32> to vector<8x8x32xf32>
    %255 = vector.broadcast %253 : vector<1x1x32xf32> to vector<8x8x32xf32>
    %256 = arith.mulf %254, %255 : vector<8x8x32xf32>
    %257 = arith.addf %249, %256 : vector<8x8x32xf32>
    %258 = arith.maximumf %128, %257 : vector<8x8x32xf32>
    %cst_177 = arith.constant 0.000000e+00 : f32
    %259 = vector.broadcast %cst_177 : f32 to vector<8x8x32xf32>
    %c0_178 = arith.constant 0 : index
    %c0_179 = arith.constant 0 : index
    %c0_180 = arith.constant 0 : index
    %c8_181 = arith.constant 8 : index
    %260 = vector.load %arg1[%c0_178, %c0_179, %c0_180, %c8_181] : memref<1x9x9x16xf32, #tpu.memory_space<vmem>>, vector<1x8x8x1xf32>
    %261 = vector.shape_cast %260 : vector<1x8x8x1xf32> to vector<8x8x1xf32>
    %c0_182 = arith.constant 0 : index
    %c0_183 = arith.constant 0 : index
    %262 = vector.load %arg2[%c0_182, %c0_183] : memref<16x32xf32, #tpu.memory_space<vmem>>, vector<1x32xf32>
    %263 = vector.shape_cast %262 : vector<1x32xf32> to vector<1x1x32xf32>
    %264 = vector.broadcast %261 : vector<8x8x1xf32> to vector<8x8x32xf32>
    %265 = vector.broadcast %263 : vector<1x1x32xf32> to vector<8x8x32xf32>
    %266 = arith.mulf %264, %265 : vector<8x8x32xf32>
    %267 = arith.addf %259, %266 : vector<8x8x32xf32>
    %c0_184 = arith.constant 0 : index
    %c0_185 = arith.constant 0 : index
    %c0_186 = arith.constant 0 : index
    %c9_187 = arith.constant 9 : index
    %268 = vector.load %arg1[%c0_184, %c0_185, %c0_186, %c9_187] : memref<1x9x9x16xf32, #tpu.memory_space<vmem>>, vector<1x8x8x1xf32>
    %269 = vector.shape_cast %268 : vector<1x8x8x1xf32> to vector<8x8x1xf32>
    %c1_188 = arith.constant 1 : index
    %c0_189 = arith.constant 0 : index
    %270 = vector.load %arg2[%c1_188, %c0_189] : memref<16x32xf32, #tpu.memory_space<vmem>>, vector<1x32xf32>
    %271 = vector.shape_cast %270 : vector<1x32xf32> to vector<1x1x32xf32>
    %272 = vector.broadcast %269 : vector<8x8x1xf32> to vector<8x8x32xf32>
    %273 = vector.broadcast %271 : vector<1x1x32xf32> to vector<8x8x32xf32>
    %274 = arith.mulf %272, %273 : vector<8x8x32xf32>
    %275 = arith.addf %267, %274 : vector<8x8x32xf32>
    %c0_190 = arith.constant 0 : index
    %c0_191 = arith.constant 0 : index
    %c0_192 = arith.constant 0 : index
    %c10_193 = arith.constant 10 : index
    %276 = vector.load %arg1[%c0_190, %c0_191, %c0_192, %c10_193] : memref<1x9x9x16xf32, #tpu.memory_space<vmem>>, vector<1x8x8x1xf32>
    %277 = vector.shape_cast %276 : vector<1x8x8x1xf32> to vector<8x8x1xf32>
    %c2_194 = arith.constant 2 : index
    %c0_195 = arith.constant 0 : index
    %278 = vector.load %arg2[%c2_194, %c0_195] : memref<16x32xf32, #tpu.memory_space<vmem>>, vector<1x32xf32>
    %279 = vector.shape_cast %278 : vector<1x32xf32> to vector<1x1x32xf32>
    %280 = vector.broadcast %277 : vector<8x8x1xf32> to vector<8x8x32xf32>
    %281 = vector.broadcast %279 : vector<1x1x32xf32> to vector<8x8x32xf32>
    %282 = arith.mulf %280, %281 : vector<8x8x32xf32>
    %283 = arith.addf %275, %282 : vector<8x8x32xf32>
    %c0_196 = arith.constant 0 : index
    %c0_197 = arith.constant 0 : index
    %c0_198 = arith.constant 0 : index
    %c11_199 = arith.constant 11 : index
    %284 = vector.load %arg1[%c0_196, %c0_197, %c0_198, %c11_199] : memref<1x9x9x16xf32, #tpu.memory_space<vmem>>, vector<1x8x8x1xf32>
    %285 = vector.shape_cast %284 : vector<1x8x8x1xf32> to vector<8x8x1xf32>
    %c3_200 = arith.constant 3 : index
    %c0_201 = arith.constant 0 : index
    %286 = vector.load %arg2[%c3_200, %c0_201] : memref<16x32xf32, #tpu.memory_space<vmem>>, vector<1x32xf32>
    %287 = vector.shape_cast %286 : vector<1x32xf32> to vector<1x1x32xf32>
    %288 = vector.broadcast %285 : vector<8x8x1xf32> to vector<8x8x32xf32>
    %289 = vector.broadcast %287 : vector<1x1x32xf32> to vector<8x8x32xf32>
    %290 = arith.mulf %288, %289 : vector<8x8x32xf32>
    %291 = arith.addf %283, %290 : vector<8x8x32xf32>
    %c0_202 = arith.constant 0 : index
    %c0_203 = arith.constant 0 : index
    %c0_204 = arith.constant 0 : index
    %c12_205 = arith.constant 12 : index
    %292 = vector.load %arg1[%c0_202, %c0_203, %c0_204, %c12_205] : memref<1x9x9x16xf32, #tpu.memory_space<vmem>>, vector<1x8x8x1xf32>
    %293 = vector.shape_cast %292 : vector<1x8x8x1xf32> to vector<8x8x1xf32>
    %c4_206 = arith.constant 4 : index
    %c0_207 = arith.constant 0 : index
    %294 = vector.load %arg2[%c4_206, %c0_207] : memref<16x32xf32, #tpu.memory_space<vmem>>, vector<1x32xf32>
    %295 = vector.shape_cast %294 : vector<1x32xf32> to vector<1x1x32xf32>
    %296 = vector.broadcast %293 : vector<8x8x1xf32> to vector<8x8x32xf32>
    %297 = vector.broadcast %295 : vector<1x1x32xf32> to vector<8x8x32xf32>
    %298 = arith.mulf %296, %297 : vector<8x8x32xf32>
    %299 = arith.addf %291, %298 : vector<8x8x32xf32>
    %c0_208 = arith.constant 0 : index
    %c0_209 = arith.constant 0 : index
    %c0_210 = arith.constant 0 : index
    %c13_211 = arith.constant 13 : index
    %300 = vector.load %arg1[%c0_208, %c0_209, %c0_210, %c13_211] : memref<1x9x9x16xf32, #tpu.memory_space<vmem>>, vector<1x8x8x1xf32>
    %301 = vector.shape_cast %300 : vector<1x8x8x1xf32> to vector<8x8x1xf32>
    %c5_212 = arith.constant 5 : index
    %c0_213 = arith.constant 0 : index
    %302 = vector.load %arg2[%c5_212, %c0_213] : memref<16x32xf32, #tpu.memory_space<vmem>>, vector<1x32xf32>
    %303 = vector.shape_cast %302 : vector<1x32xf32> to vector<1x1x32xf32>
    %304 = vector.broadcast %301 : vector<8x8x1xf32> to vector<8x8x32xf32>
    %305 = vector.broadcast %303 : vector<1x1x32xf32> to vector<8x8x32xf32>
    %306 = arith.mulf %304, %305 : vector<8x8x32xf32>
    %307 = arith.addf %299, %306 : vector<8x8x32xf32>
    %c0_214 = arith.constant 0 : index
    %c0_215 = arith.constant 0 : index
    %c0_216 = arith.constant 0 : index
    %c14_217 = arith.constant 14 : index
    %308 = vector.load %arg1[%c0_214, %c0_215, %c0_216, %c14_217] : memref<1x9x9x16xf32, #tpu.memory_space<vmem>>, vector<1x8x8x1xf32>
    %309 = vector.shape_cast %308 : vector<1x8x8x1xf32> to vector<8x8x1xf32>
    %c6_218 = arith.constant 6 : index
    %c0_219 = arith.constant 0 : index
    %310 = vector.load %arg2[%c6_218, %c0_219] : memref<16x32xf32, #tpu.memory_space<vmem>>, vector<1x32xf32>
    %311 = vector.shape_cast %310 : vector<1x32xf32> to vector<1x1x32xf32>
    %312 = vector.broadcast %309 : vector<8x8x1xf32> to vector<8x8x32xf32>
    %313 = vector.broadcast %311 : vector<1x1x32xf32> to vector<8x8x32xf32>
    %314 = arith.mulf %312, %313 : vector<8x8x32xf32>
    %315 = arith.addf %307, %314 : vector<8x8x32xf32>
    %c0_220 = arith.constant 0 : index
    %c0_221 = arith.constant 0 : index
    %c0_222 = arith.constant 0 : index
    %c15_223 = arith.constant 15 : index
    %316 = vector.load %arg1[%c0_220, %c0_221, %c0_222, %c15_223] : memref<1x9x9x16xf32, #tpu.memory_space<vmem>>, vector<1x8x8x1xf32>
    %317 = vector.shape_cast %316 : vector<1x8x8x1xf32> to vector<8x8x1xf32>
    %c7_224 = arith.constant 7 : index
    %c0_225 = arith.constant 0 : index
    %318 = vector.load %arg2[%c7_224, %c0_225] : memref<16x32xf32, #tpu.memory_space<vmem>>, vector<1x32xf32>
    %319 = vector.shape_cast %318 : vector<1x32xf32> to vector<1x1x32xf32>
    %320 = vector.broadcast %317 : vector<8x8x1xf32> to vector<8x8x32xf32>
    %321 = vector.broadcast %319 : vector<1x1x32xf32> to vector<8x8x32xf32>
    %322 = arith.mulf %320, %321 : vector<8x8x32xf32>
    %323 = arith.addf %315, %322 : vector<8x8x32xf32>
    %c0_226 = arith.constant 0 : index
    %c1_227 = arith.constant 1 : index
    %c0_228 = arith.constant 0 : index
    %c0_229 = arith.constant 0 : index
    %324 = vector.load %arg1[%c0_226, %c1_227, %c0_228, %c0_229] : memref<1x9x9x16xf32, #tpu.memory_space<vmem>>, vector<1x8x8x1xf32>
    %325 = vector.shape_cast %324 : vector<1x8x8x1xf32> to vector<8x8x1xf32>
    %c8_230 = arith.constant 8 : index
    %c0_231 = arith.constant 0 : index
    %326 = vector.load %arg2[%c8_230, %c0_231] : memref<16x32xf32, #tpu.memory_space<vmem>>, vector<1x32xf32>
    %327 = vector.shape_cast %326 : vector<1x32xf32> to vector<1x1x32xf32>
    %328 = vector.broadcast %325 : vector<8x8x1xf32> to vector<8x8x32xf32>
    %329 = vector.broadcast %327 : vector<1x1x32xf32> to vector<8x8x32xf32>
    %330 = arith.mulf %328, %329 : vector<8x8x32xf32>
    %331 = arith.addf %323, %330 : vector<8x8x32xf32>
    %c0_232 = arith.constant 0 : index
    %c1_233 = arith.constant 1 : index
    %c0_234 = arith.constant 0 : index
    %c1_235 = arith.constant 1 : index
    %332 = vector.load %arg1[%c0_232, %c1_233, %c0_234, %c1_235] : memref<1x9x9x16xf32, #tpu.memory_space<vmem>>, vector<1x8x8x1xf32>
    %333 = vector.shape_cast %332 : vector<1x8x8x1xf32> to vector<8x8x1xf32>
    %c9_236 = arith.constant 9 : index
    %c0_237 = arith.constant 0 : index
    %334 = vector.load %arg2[%c9_236, %c0_237] : memref<16x32xf32, #tpu.memory_space<vmem>>, vector<1x32xf32>
    %335 = vector.shape_cast %334 : vector<1x32xf32> to vector<1x1x32xf32>
    %336 = vector.broadcast %333 : vector<8x8x1xf32> to vector<8x8x32xf32>
    %337 = vector.broadcast %335 : vector<1x1x32xf32> to vector<8x8x32xf32>
    %338 = arith.mulf %336, %337 : vector<8x8x32xf32>
    %339 = arith.addf %331, %338 : vector<8x8x32xf32>
    %c0_238 = arith.constant 0 : index
    %c1_239 = arith.constant 1 : index
    %c0_240 = arith.constant 0 : index
    %c2_241 = arith.constant 2 : index
    %340 = vector.load %arg1[%c0_238, %c1_239, %c0_240, %c2_241] : memref<1x9x9x16xf32, #tpu.memory_space<vmem>>, vector<1x8x8x1xf32>
    %341 = vector.shape_cast %340 : vector<1x8x8x1xf32> to vector<8x8x1xf32>
    %c10_242 = arith.constant 10 : index
    %c0_243 = arith.constant 0 : index
    %342 = vector.load %arg2[%c10_242, %c0_243] : memref<16x32xf32, #tpu.memory_space<vmem>>, vector<1x32xf32>
    %343 = vector.shape_cast %342 : vector<1x32xf32> to vector<1x1x32xf32>
    %344 = vector.broadcast %341 : vector<8x8x1xf32> to vector<8x8x32xf32>
    %345 = vector.broadcast %343 : vector<1x1x32xf32> to vector<8x8x32xf32>
    %346 = arith.mulf %344, %345 : vector<8x8x32xf32>
    %347 = arith.addf %339, %346 : vector<8x8x32xf32>
    %c0_244 = arith.constant 0 : index
    %c1_245 = arith.constant 1 : index
    %c0_246 = arith.constant 0 : index
    %c3_247 = arith.constant 3 : index
    %348 = vector.load %arg1[%c0_244, %c1_245, %c0_246, %c3_247] : memref<1x9x9x16xf32, #tpu.memory_space<vmem>>, vector<1x8x8x1xf32>
    %349 = vector.shape_cast %348 : vector<1x8x8x1xf32> to vector<8x8x1xf32>
    %c11_248 = arith.constant 11 : index
    %c0_249 = arith.constant 0 : index
    %350 = vector.load %arg2[%c11_248, %c0_249] : memref<16x32xf32, #tpu.memory_space<vmem>>, vector<1x32xf32>
    %351 = vector.shape_cast %350 : vector<1x32xf32> to vector<1x1x32xf32>
    %352 = vector.broadcast %349 : vector<8x8x1xf32> to vector<8x8x32xf32>
    %353 = vector.broadcast %351 : vector<1x1x32xf32> to vector<8x8x32xf32>
    %354 = arith.mulf %352, %353 : vector<8x8x32xf32>
    %355 = arith.addf %347, %354 : vector<8x8x32xf32>
    %c0_250 = arith.constant 0 : index
    %c1_251 = arith.constant 1 : index
    %c0_252 = arith.constant 0 : index
    %c4_253 = arith.constant 4 : index
    %356 = vector.load %arg1[%c0_250, %c1_251, %c0_252, %c4_253] : memref<1x9x9x16xf32, #tpu.memory_space<vmem>>, vector<1x8x8x1xf32>
    %357 = vector.shape_cast %356 : vector<1x8x8x1xf32> to vector<8x8x1xf32>
    %c12_254 = arith.constant 12 : index
    %c0_255 = arith.constant 0 : index
    %358 = vector.load %arg2[%c12_254, %c0_255] : memref<16x32xf32, #tpu.memory_space<vmem>>, vector<1x32xf32>
    %359 = vector.shape_cast %358 : vector<1x32xf32> to vector<1x1x32xf32>
    %360 = vector.broadcast %357 : vector<8x8x1xf32> to vector<8x8x32xf32>
    %361 = vector.broadcast %359 : vector<1x1x32xf32> to vector<8x8x32xf32>
    %362 = arith.mulf %360, %361 : vector<8x8x32xf32>
    %363 = arith.addf %355, %362 : vector<8x8x32xf32>
    %c0_256 = arith.constant 0 : index
    %c1_257 = arith.constant 1 : index
    %c0_258 = arith.constant 0 : index
    %c5_259 = arith.constant 5 : index
    %364 = vector.load %arg1[%c0_256, %c1_257, %c0_258, %c5_259] : memref<1x9x9x16xf32, #tpu.memory_space<vmem>>, vector<1x8x8x1xf32>
    %365 = vector.shape_cast %364 : vector<1x8x8x1xf32> to vector<8x8x1xf32>
    %c13_260 = arith.constant 13 : index
    %c0_261 = arith.constant 0 : index
    %366 = vector.load %arg2[%c13_260, %c0_261] : memref<16x32xf32, #tpu.memory_space<vmem>>, vector<1x32xf32>
    %367 = vector.shape_cast %366 : vector<1x32xf32> to vector<1x1x32xf32>
    %368 = vector.broadcast %365 : vector<8x8x1xf32> to vector<8x8x32xf32>
    %369 = vector.broadcast %367 : vector<1x1x32xf32> to vector<8x8x32xf32>
    %370 = arith.mulf %368, %369 : vector<8x8x32xf32>
    %371 = arith.addf %363, %370 : vector<8x8x32xf32>
    %c0_262 = arith.constant 0 : index
    %c1_263 = arith.constant 1 : index
    %c0_264 = arith.constant 0 : index
    %c6_265 = arith.constant 6 : index
    %372 = vector.load %arg1[%c0_262, %c1_263, %c0_264, %c6_265] : memref<1x9x9x16xf32, #tpu.memory_space<vmem>>, vector<1x8x8x1xf32>
    %373 = vector.shape_cast %372 : vector<1x8x8x1xf32> to vector<8x8x1xf32>
    %c14_266 = arith.constant 14 : index
    %c0_267 = arith.constant 0 : index
    %374 = vector.load %arg2[%c14_266, %c0_267] : memref<16x32xf32, #tpu.memory_space<vmem>>, vector<1x32xf32>
    %375 = vector.shape_cast %374 : vector<1x32xf32> to vector<1x1x32xf32>
    %376 = vector.broadcast %373 : vector<8x8x1xf32> to vector<8x8x32xf32>
    %377 = vector.broadcast %375 : vector<1x1x32xf32> to vector<8x8x32xf32>
    %378 = arith.mulf %376, %377 : vector<8x8x32xf32>
    %379 = arith.addf %371, %378 : vector<8x8x32xf32>
    %c0_268 = arith.constant 0 : index
    %c1_269 = arith.constant 1 : index
    %c0_270 = arith.constant 0 : index
    %c7_271 = arith.constant 7 : index
    %380 = vector.load %arg1[%c0_268, %c1_269, %c0_270, %c7_271] : memref<1x9x9x16xf32, #tpu.memory_space<vmem>>, vector<1x8x8x1xf32>
    %381 = vector.shape_cast %380 : vector<1x8x8x1xf32> to vector<8x8x1xf32>
    %c15_272 = arith.constant 15 : index
    %c0_273 = arith.constant 0 : index
    %382 = vector.load %arg2[%c15_272, %c0_273] : memref<16x32xf32, #tpu.memory_space<vmem>>, vector<1x32xf32>
    %383 = vector.shape_cast %382 : vector<1x32xf32> to vector<1x1x32xf32>
    %384 = vector.broadcast %381 : vector<8x8x1xf32> to vector<8x8x32xf32>
    %385 = vector.broadcast %383 : vector<1x1x32xf32> to vector<8x8x32xf32>
    %386 = arith.mulf %384, %385 : vector<8x8x32xf32>
    %387 = arith.addf %379, %386 : vector<8x8x32xf32>
    %388 = arith.maximumf %258, %387 : vector<8x8x32xf32>
    %cst_274 = arith.constant 0.000000e+00 : f32
    %389 = vector.broadcast %cst_274 : f32 to vector<8x8x32xf32>
    %c0_275 = arith.constant 0 : index
    %c0_276 = arith.constant 0 : index
    %c0_277 = arith.constant 0 : index
    %c10_278 = arith.constant 10 : index
    %390 = vector.load %arg1[%c0_275, %c0_276, %c0_277, %c10_278] : memref<1x9x9x16xf32, #tpu.memory_space<vmem>>, vector<1x8x8x1xf32>
    %391 = vector.shape_cast %390 : vector<1x8x8x1xf32> to vector<8x8x1xf32>
    %c0_279 = arith.constant 0 : index
    %c0_280 = arith.constant 0 : index
    %392 = vector.load %arg2[%c0_279, %c0_280] : memref<16x32xf32, #tpu.memory_space<vmem>>, vector<1x32xf32>
    %393 = vector.shape_cast %392 : vector<1x32xf32> to vector<1x1x32xf32>
    %394 = vector.broadcast %391 : vector<8x8x1xf32> to vector<8x8x32xf32>
    %395 = vector.broadcast %393 : vector<1x1x32xf32> to vector<8x8x32xf32>
    %396 = arith.mulf %394, %395 : vector<8x8x32xf32>
    %397 = arith.addf %389, %396 : vector<8x8x32xf32>
    %c0_281 = arith.constant 0 : index
    %c0_282 = arith.constant 0 : index
    %c0_283 = arith.constant 0 : index
    %c11_284 = arith.constant 11 : index
    %398 = vector.load %arg1[%c0_281, %c0_282, %c0_283, %c11_284] : memref<1x9x9x16xf32, #tpu.memory_space<vmem>>, vector<1x8x8x1xf32>
    %399 = vector.shape_cast %398 : vector<1x8x8x1xf32> to vector<8x8x1xf32>
    %c1_285 = arith.constant 1 : index
    %c0_286 = arith.constant 0 : index
    %400 = vector.load %arg2[%c1_285, %c0_286] : memref<16x32xf32, #tpu.memory_space<vmem>>, vector<1x32xf32>
    %401 = vector.shape_cast %400 : vector<1x32xf32> to vector<1x1x32xf32>
    %402 = vector.broadcast %399 : vector<8x8x1xf32> to vector<8x8x32xf32>
    %403 = vector.broadcast %401 : vector<1x1x32xf32> to vector<8x8x32xf32>
    %404 = arith.mulf %402, %403 : vector<8x8x32xf32>
    %405 = arith.addf %397, %404 : vector<8x8x32xf32>
    %c0_287 = arith.constant 0 : index
    %c0_288 = arith.constant 0 : index
    %c1_289 = arith.constant 1 : index
    %c8_290 = arith.constant 8 : index
    %406 = vector.load %arg1[%c0_287, %c0_288, %c1_289, %c8_290] : memref<1x9x9x16xf32, #tpu.memory_space<vmem>>, vector<1x8x8x1xf32>
    %407 = vector.shape_cast %406 : vector<1x8x8x1xf32> to vector<8x8x1xf32>
    %c2_291 = arith.constant 2 : index
    %c0_292 = arith.constant 0 : index
    %408 = vector.load %arg2[%c2_291, %c0_292] : memref<16x32xf32, #tpu.memory_space<vmem>>, vector<1x32xf32>
    %409 = vector.shape_cast %408 : vector<1x32xf32> to vector<1x1x32xf32>
    %410 = vector.broadcast %407 : vector<8x8x1xf32> to vector<8x8x32xf32>
    %411 = vector.broadcast %409 : vector<1x1x32xf32> to vector<8x8x32xf32>
    %412 = arith.mulf %410, %411 : vector<8x8x32xf32>
    %413 = arith.addf %405, %412 : vector<8x8x32xf32>
    %c0_293 = arith.constant 0 : index
    %c0_294 = arith.constant 0 : index
    %c1_295 = arith.constant 1 : index
    %c9_296 = arith.constant 9 : index
    %414 = vector.load %arg1[%c0_293, %c0_294, %c1_295, %c9_296] : memref<1x9x9x16xf32, #tpu.memory_space<vmem>>, vector<1x8x8x1xf32>
    %415 = vector.shape_cast %414 : vector<1x8x8x1xf32> to vector<8x8x1xf32>
    %c3_297 = arith.constant 3 : index
    %c0_298 = arith.constant 0 : index
    %416 = vector.load %arg2[%c3_297, %c0_298] : memref<16x32xf32, #tpu.memory_space<vmem>>, vector<1x32xf32>
    %417 = vector.shape_cast %416 : vector<1x32xf32> to vector<1x1x32xf32>
    %418 = vector.broadcast %415 : vector<8x8x1xf32> to vector<8x8x32xf32>
    %419 = vector.broadcast %417 : vector<1x1x32xf32> to vector<8x8x32xf32>
    %420 = arith.mulf %418, %419 : vector<8x8x32xf32>
    %421 = arith.addf %413, %420 : vector<8x8x32xf32>
    %c0_299 = arith.constant 0 : index
    %c0_300 = arith.constant 0 : index
    %c0_301 = arith.constant 0 : index
    %c14_302 = arith.constant 14 : index
    %422 = vector.load %arg1[%c0_299, %c0_300, %c0_301, %c14_302] : memref<1x9x9x16xf32, #tpu.memory_space<vmem>>, vector<1x8x8x1xf32>
    %423 = vector.shape_cast %422 : vector<1x8x8x1xf32> to vector<8x8x1xf32>
    %c4_303 = arith.constant 4 : index
    %c0_304 = arith.constant 0 : index
    %424 = vector.load %arg2[%c4_303, %c0_304] : memref<16x32xf32, #tpu.memory_space<vmem>>, vector<1x32xf32>
    %425 = vector.shape_cast %424 : vector<1x32xf32> to vector<1x1x32xf32>
    %426 = vector.broadcast %423 : vector<8x8x1xf32> to vector<8x8x32xf32>
    %427 = vector.broadcast %425 : vector<1x1x32xf32> to vector<8x8x32xf32>
    %428 = arith.mulf %426, %427 : vector<8x8x32xf32>
    %429 = arith.addf %421, %428 : vector<8x8x32xf32>
    %c0_305 = arith.constant 0 : index
    %c0_306 = arith.constant 0 : index
    %c0_307 = arith.constant 0 : index
    %c15_308 = arith.constant 15 : index
    %430 = vector.load %arg1[%c0_305, %c0_306, %c0_307, %c15_308] : memref<1x9x9x16xf32, #tpu.memory_space<vmem>>, vector<1x8x8x1xf32>
    %431 = vector.shape_cast %430 : vector<1x8x8x1xf32> to vector<8x8x1xf32>
    %c5_309 = arith.constant 5 : index
    %c0_310 = arith.constant 0 : index
    %432 = vector.load %arg2[%c5_309, %c0_310] : memref<16x32xf32, #tpu.memory_space<vmem>>, vector<1x32xf32>
    %433 = vector.shape_cast %432 : vector<1x32xf32> to vector<1x1x32xf32>
    %434 = vector.broadcast %431 : vector<8x8x1xf32> to vector<8x8x32xf32>
    %435 = vector.broadcast %433 : vector<1x1x32xf32> to vector<8x8x32xf32>
    %436 = arith.mulf %434, %435 : vector<8x8x32xf32>
    %437 = arith.addf %429, %436 : vector<8x8x32xf32>
    %c0_311 = arith.constant 0 : index
    %c0_312 = arith.constant 0 : index
    %c1_313 = arith.constant 1 : index
    %c12_314 = arith.constant 12 : index
    %438 = vector.load %arg1[%c0_311, %c0_312, %c1_313, %c12_314] : memref<1x9x9x16xf32, #tpu.memory_space<vmem>>, vector<1x8x8x1xf32>
    %439 = vector.shape_cast %438 : vector<1x8x8x1xf32> to vector<8x8x1xf32>
    %c6_315 = arith.constant 6 : index
    %c0_316 = arith.constant 0 : index
    %440 = vector.load %arg2[%c6_315, %c0_316] : memref<16x32xf32, #tpu.memory_space<vmem>>, vector<1x32xf32>
    %441 = vector.shape_cast %440 : vector<1x32xf32> to vector<1x1x32xf32>
    %442 = vector.broadcast %439 : vector<8x8x1xf32> to vector<8x8x32xf32>
    %443 = vector.broadcast %441 : vector<1x1x32xf32> to vector<8x8x32xf32>
    %444 = arith.mulf %442, %443 : vector<8x8x32xf32>
    %445 = arith.addf %437, %444 : vector<8x8x32xf32>
    %c0_317 = arith.constant 0 : index
    %c0_318 = arith.constant 0 : index
    %c1_319 = arith.constant 1 : index
    %c13_320 = arith.constant 13 : index
    %446 = vector.load %arg1[%c0_317, %c0_318, %c1_319, %c13_320] : memref<1x9x9x16xf32, #tpu.memory_space<vmem>>, vector<1x8x8x1xf32>
    %447 = vector.shape_cast %446 : vector<1x8x8x1xf32> to vector<8x8x1xf32>
    %c7_321 = arith.constant 7 : index
    %c0_322 = arith.constant 0 : index
    %448 = vector.load %arg2[%c7_321, %c0_322] : memref<16x32xf32, #tpu.memory_space<vmem>>, vector<1x32xf32>
    %449 = vector.shape_cast %448 : vector<1x32xf32> to vector<1x1x32xf32>
    %450 = vector.broadcast %447 : vector<8x8x1xf32> to vector<8x8x32xf32>
    %451 = vector.broadcast %449 : vector<1x1x32xf32> to vector<8x8x32xf32>
    %452 = arith.mulf %450, %451 : vector<8x8x32xf32>
    %453 = arith.addf %445, %452 : vector<8x8x32xf32>
    %c0_323 = arith.constant 0 : index
    %c1_324 = arith.constant 1 : index
    %c0_325 = arith.constant 0 : index
    %c2_326 = arith.constant 2 : index
    %454 = vector.load %arg1[%c0_323, %c1_324, %c0_325, %c2_326] : memref<1x9x9x16xf32, #tpu.memory_space<vmem>>, vector<1x8x8x1xf32>
    %455 = vector.shape_cast %454 : vector<1x8x8x1xf32> to vector<8x8x1xf32>
    %c8_327 = arith.constant 8 : index
    %c0_328 = arith.constant 0 : index
    %456 = vector.load %arg2[%c8_327, %c0_328] : memref<16x32xf32, #tpu.memory_space<vmem>>, vector<1x32xf32>
    %457 = vector.shape_cast %456 : vector<1x32xf32> to vector<1x1x32xf32>
    %458 = vector.broadcast %455 : vector<8x8x1xf32> to vector<8x8x32xf32>
    %459 = vector.broadcast %457 : vector<1x1x32xf32> to vector<8x8x32xf32>
    %460 = arith.mulf %458, %459 : vector<8x8x32xf32>
    %461 = arith.addf %453, %460 : vector<8x8x32xf32>
    %c0_329 = arith.constant 0 : index
    %c1_330 = arith.constant 1 : index
    %c0_331 = arith.constant 0 : index
    %c3_332 = arith.constant 3 : index
    %462 = vector.load %arg1[%c0_329, %c1_330, %c0_331, %c3_332] : memref<1x9x9x16xf32, #tpu.memory_space<vmem>>, vector<1x8x8x1xf32>
    %463 = vector.shape_cast %462 : vector<1x8x8x1xf32> to vector<8x8x1xf32>
    %c9_333 = arith.constant 9 : index
    %c0_334 = arith.constant 0 : index
    %464 = vector.load %arg2[%c9_333, %c0_334] : memref<16x32xf32, #tpu.memory_space<vmem>>, vector<1x32xf32>
    %465 = vector.shape_cast %464 : vector<1x32xf32> to vector<1x1x32xf32>
    %466 = vector.broadcast %463 : vector<8x8x1xf32> to vector<8x8x32xf32>
    %467 = vector.broadcast %465 : vector<1x1x32xf32> to vector<8x8x32xf32>
    %468 = arith.mulf %466, %467 : vector<8x8x32xf32>
    %469 = arith.addf %461, %468 : vector<8x8x32xf32>
    %c0_335 = arith.constant 0 : index
    %c1_336 = arith.constant 1 : index
    %c1_337 = arith.constant 1 : index
    %c0_338 = arith.constant 0 : index
    %470 = vector.load %arg1[%c0_335, %c1_336, %c1_337, %c0_338] : memref<1x9x9x16xf32, #tpu.memory_space<vmem>>, vector<1x8x8x1xf32>
    %471 = vector.shape_cast %470 : vector<1x8x8x1xf32> to vector<8x8x1xf32>
    %c10_339 = arith.constant 10 : index
    %c0_340 = arith.constant 0 : index
    %472 = vector.load %arg2[%c10_339, %c0_340] : memref<16x32xf32, #tpu.memory_space<vmem>>, vector<1x32xf32>
    %473 = vector.shape_cast %472 : vector<1x32xf32> to vector<1x1x32xf32>
    %474 = vector.broadcast %471 : vector<8x8x1xf32> to vector<8x8x32xf32>
    %475 = vector.broadcast %473 : vector<1x1x32xf32> to vector<8x8x32xf32>
    %476 = arith.mulf %474, %475 : vector<8x8x32xf32>
    %477 = arith.addf %469, %476 : vector<8x8x32xf32>
    %c0_341 = arith.constant 0 : index
    %c1_342 = arith.constant 1 : index
    %c1_343 = arith.constant 1 : index
    %c1_344 = arith.constant 1 : index
    %478 = vector.load %arg1[%c0_341, %c1_342, %c1_343, %c1_344] : memref<1x9x9x16xf32, #tpu.memory_space<vmem>>, vector<1x8x8x1xf32>
    %479 = vector.shape_cast %478 : vector<1x8x8x1xf32> to vector<8x8x1xf32>
    %c11_345 = arith.constant 11 : index
    %c0_346 = arith.constant 0 : index
    %480 = vector.load %arg2[%c11_345, %c0_346] : memref<16x32xf32, #tpu.memory_space<vmem>>, vector<1x32xf32>
    %481 = vector.shape_cast %480 : vector<1x32xf32> to vector<1x1x32xf32>
    %482 = vector.broadcast %479 : vector<8x8x1xf32> to vector<8x8x32xf32>
    %483 = vector.broadcast %481 : vector<1x1x32xf32> to vector<8x8x32xf32>
    %484 = arith.mulf %482, %483 : vector<8x8x32xf32>
    %485 = arith.addf %477, %484 : vector<8x8x32xf32>
    %c0_347 = arith.constant 0 : index
    %c1_348 = arith.constant 1 : index
    %c0_349 = arith.constant 0 : index
    %c6_350 = arith.constant 6 : index
    %486 = vector.load %arg1[%c0_347, %c1_348, %c0_349, %c6_350] : memref<1x9x9x16xf32, #tpu.memory_space<vmem>>, vector<1x8x8x1xf32>
    %487 = vector.shape_cast %486 : vector<1x8x8x1xf32> to vector<8x8x1xf32>
    %c12_351 = arith.constant 12 : index
    %c0_352 = arith.constant 0 : index
    %488 = vector.load %arg2[%c12_351, %c0_352] : memref<16x32xf32, #tpu.memory_space<vmem>>, vector<1x32xf32>
    %489 = vector.shape_cast %488 : vector<1x32xf32> to vector<1x1x32xf32>
    %490 = vector.broadcast %487 : vector<8x8x1xf32> to vector<8x8x32xf32>
    %491 = vector.broadcast %489 : vector<1x1x32xf32> to vector<8x8x32xf32>
    %492 = arith.mulf %490, %491 : vector<8x8x32xf32>
    %493 = arith.addf %485, %492 : vector<8x8x32xf32>
    %c0_353 = arith.constant 0 : index
    %c1_354 = arith.constant 1 : index
    %c0_355 = arith.constant 0 : index
    %c7_356 = arith.constant 7 : index
    %494 = vector.load %arg1[%c0_353, %c1_354, %c0_355, %c7_356] : memref<1x9x9x16xf32, #tpu.memory_space<vmem>>, vector<1x8x8x1xf32>
    %495 = vector.shape_cast %494 : vector<1x8x8x1xf32> to vector<8x8x1xf32>
    %c13_357 = arith.constant 13 : index
    %c0_358 = arith.constant 0 : index
    %496 = vector.load %arg2[%c13_357, %c0_358] : memref<16x32xf32, #tpu.memory_space<vmem>>, vector<1x32xf32>
    %497 = vector.shape_cast %496 : vector<1x32xf32> to vector<1x1x32xf32>
    %498 = vector.broadcast %495 : vector<8x8x1xf32> to vector<8x8x32xf32>
    %499 = vector.broadcast %497 : vector<1x1x32xf32> to vector<8x8x32xf32>
    %500 = arith.mulf %498, %499 : vector<8x8x32xf32>
    %501 = arith.addf %493, %500 : vector<8x8x32xf32>
    %c0_359 = arith.constant 0 : index
    %c1_360 = arith.constant 1 : index
    %c1_361 = arith.constant 1 : index
    %c4_362 = arith.constant 4 : index
    %502 = vector.load %arg1[%c0_359, %c1_360, %c1_361, %c4_362] : memref<1x9x9x16xf32, #tpu.memory_space<vmem>>, vector<1x8x8x1xf32>
    %503 = vector.shape_cast %502 : vector<1x8x8x1xf32> to vector<8x8x1xf32>
    %c14_363 = arith.constant 14 : index
    %c0_364 = arith.constant 0 : index
    %504 = vector.load %arg2[%c14_363, %c0_364] : memref<16x32xf32, #tpu.memory_space<vmem>>, vector<1x32xf32>
    %505 = vector.shape_cast %504 : vector<1x32xf32> to vector<1x1x32xf32>
    %506 = vector.broadcast %503 : vector<8x8x1xf32> to vector<8x8x32xf32>
    %507 = vector.broadcast %505 : vector<1x1x32xf32> to vector<8x8x32xf32>
    %508 = arith.mulf %506, %507 : vector<8x8x32xf32>
    %509 = arith.addf %501, %508 : vector<8x8x32xf32>
    %c0_365 = arith.constant 0 : index
    %c1_366 = arith.constant 1 : index
    %c1_367 = arith.constant 1 : index
    %c5_368 = arith.constant 5 : index
    %510 = vector.load %arg1[%c0_365, %c1_366, %c1_367, %c5_368] : memref<1x9x9x16xf32, #tpu.memory_space<vmem>>, vector<1x8x8x1xf32>
    %511 = vector.shape_cast %510 : vector<1x8x8x1xf32> to vector<8x8x1xf32>
    %c15_369 = arith.constant 15 : index
    %c0_370 = arith.constant 0 : index
    %512 = vector.load %arg2[%c15_369, %c0_370] : memref<16x32xf32, #tpu.memory_space<vmem>>, vector<1x32xf32>
    %513 = vector.shape_cast %512 : vector<1x32xf32> to vector<1x1x32xf32>
    %514 = vector.broadcast %511 : vector<8x8x1xf32> to vector<8x8x32xf32>
    %515 = vector.broadcast %513 : vector<1x1x32xf32> to vector<8x8x32xf32>
    %516 = arith.mulf %514, %515 : vector<8x8x32xf32>
    %517 = arith.addf %509, %516 : vector<8x8x32xf32>
    %518 = arith.maximumf %388, %517 : vector<8x8x32xf32>
    %c0_371 = arith.constant 0 : index
    %c0_372 = arith.constant 0 : index
    %519 = vector.load %arg3[%c0_371, %c0_372] : memref<1x32xf32, #tpu.memory_space<vmem>>, vector<1x32xf32>
    %520 = vector.shape_cast %519 : vector<1x32xf32> to vector<1x1x32xf32>
    %521 = vector.broadcast %520 : vector<1x1x32xf32> to vector<8x8x32xf32>
    %522 = arith.addf %518, %521 : vector<8x8x32xf32>
    %cst_373 = arith.constant 0.000000e+00 : f32
    %523 = vector.broadcast %cst_373 : f32 to vector<8x8x32xf32>
    %524 = arith.maximumf %522, %523 : vector<8x8x32xf32>
    %c0_374 = arith.constant 0 : index
    %c0_375 = arith.constant 0 : index
    %525 = vector.load %arg4[%c0_374, %c0_375] : memref<1x32xf32, #tpu.memory_space<vmem>>, vector<1x32xf32>
    %526 = vector.shape_cast %525 : vector<1x32xf32> to vector<1x1x32xf32>
    %527 = vector.broadcast %526 : vector<1x1x32xf32> to vector<8x8x32xf32>
    %528 = arith.mulf %524, %527 : vector<8x8x32xf32>
    %c0_376 = arith.constant 0 : index
    %c0_377 = arith.constant 0 : index
    %529 = vector.load %arg5[%c0_376, %c0_377] : memref<1x32xf32, #tpu.memory_space<vmem>>, vector<1x32xf32>
    %530 = vector.shape_cast %529 : vector<1x32xf32> to vector<1x1x32xf32>
    %531 = vector.broadcast %530 : vector<1x1x32xf32> to vector<8x8x32xf32>
    %532 = arith.addf %528, %531 : vector<8x8x32xf32>
    %533 = vector.shape_cast %532 : vector<8x8x32xf32> to vector<64x32xf32>
    %534 = arith.truncf %533 : vector<64x32xf32> to vector<64x32xbf16>
    %c0_378 = arith.constant 0 : index
    %c0_379 = arith.constant 0 : index
    %535 = vector.load %arg6[%c0_378, %c0_379] : memref<256x64xbf16, #tpu.memory_space<vmem>>, vector<256x64xbf16>
    %cst_380 = arith.constant dense<0.000000e+00> : vector<256x32xf32>
    %536 = tpu.matmul %535, %534, %cst_380 {dimension_numbers = #tpu.dot_dimension_numbers<[1], [0], [0], [1], [0, 0, 1, 1], [], []>} : vector<256x64xbf16>, vector<64x32xbf16>, vector<256x32xf32> -> vector<256x32xf32>
    %537 = arith.truncf %536 : vector<256x32xf32> to vector<256x32xbf16>
    %cst_381 = arith.constant 0.000000e+00 : f32
    %538 = vector.broadcast %cst_381 : f32 to vector<16x64xf32>
    %539 = vector.extract_strided_slice %537 {offsets = [0, 0], sizes = [16, 32], strides = [1, 1]} : vector<256x32xbf16> to vector<16x32xbf16>
    %c0_382 = arith.constant 0 : index
    %c0_383 = arith.constant 0 : index
    %c0_384 = arith.constant 0 : index
    %540 = vector.load %arg7[%c0_382, %c0_383, %c0_384] : memref<16x32x64xbf16, #tpu.memory_space<vmem>>, vector<1x32x64xbf16>
    %541 = vector.shape_cast %540 : vector<1x32x64xbf16> to vector<32x64xbf16>
    %cst_385 = arith.constant dense<0.000000e+00> : vector<16x64xf32>
    %542 = tpu.matmul %539, %541, %cst_385 {dimension_numbers = #tpu.dot_dimension_numbers<[1], [0], [0], [1], [0, 0, 1, 1], [], []>} : vector<16x32xbf16>, vector<32x64xbf16>, vector<16x64xf32> -> vector<16x64xf32>
    %543 = arith.addf %538, %542 : vector<16x64xf32>
    %544 = vector.extract_strided_slice %537 {offsets = [16, 0], sizes = [16, 32], strides = [1, 1]} : vector<256x32xbf16> to vector<16x32xbf16>
    %c1_386 = arith.constant 1 : index
    %c0_387 = arith.constant 0 : index
    %c0_388 = arith.constant 0 : index
    %545 = vector.load %arg7[%c1_386, %c0_387, %c0_388] : memref<16x32x64xbf16, #tpu.memory_space<vmem>>, vector<1x32x64xbf16>
    %546 = vector.shape_cast %545 : vector<1x32x64xbf16> to vector<32x64xbf16>
    %cst_389 = arith.constant dense<0.000000e+00> : vector<16x64xf32>
    %547 = tpu.matmul %544, %546, %cst_389 {dimension_numbers = #tpu.dot_dimension_numbers<[1], [0], [0], [1], [0, 0, 1, 1], [], []>} : vector<16x32xbf16>, vector<32x64xbf16>, vector<16x64xf32> -> vector<16x64xf32>
    %548 = arith.addf %543, %547 : vector<16x64xf32>
    %549 = vector.extract_strided_slice %537 {offsets = [32, 0], sizes = [16, 32], strides = [1, 1]} : vector<256x32xbf16> to vector<16x32xbf16>
    %c2_390 = arith.constant 2 : index
    %c0_391 = arith.constant 0 : index
    %c0_392 = arith.constant 0 : index
    %550 = vector.load %arg7[%c2_390, %c0_391, %c0_392] : memref<16x32x64xbf16, #tpu.memory_space<vmem>>, vector<1x32x64xbf16>
    %551 = vector.shape_cast %550 : vector<1x32x64xbf16> to vector<32x64xbf16>
    %cst_393 = arith.constant dense<0.000000e+00> : vector<16x64xf32>
    %552 = tpu.matmul %549, %551, %cst_393 {dimension_numbers = #tpu.dot_dimension_numbers<[1], [0], [0], [1], [0, 0, 1, 1], [], []>} : vector<16x32xbf16>, vector<32x64xbf16>, vector<16x64xf32> -> vector<16x64xf32>
    %553 = arith.addf %548, %552 : vector<16x64xf32>
    %554 = vector.extract_strided_slice %537 {offsets = [48, 0], sizes = [16, 32], strides = [1, 1]} : vector<256x32xbf16> to vector<16x32xbf16>
    %c3_394 = arith.constant 3 : index
    %c0_395 = arith.constant 0 : index
    %c0_396 = arith.constant 0 : index
    %555 = vector.load %arg7[%c3_394, %c0_395, %c0_396] : memref<16x32x64xbf16, #tpu.memory_space<vmem>>, vector<1x32x64xbf16>
    %556 = vector.shape_cast %555 : vector<1x32x64xbf16> to vector<32x64xbf16>
    %cst_397 = arith.constant dense<0.000000e+00> : vector<16x64xf32>
    %557 = tpu.matmul %554, %556, %cst_397 {dimension_numbers = #tpu.dot_dimension_numbers<[1], [0], [0], [1], [0, 0, 1, 1], [], []>} : vector<16x32xbf16>, vector<32x64xbf16>, vector<16x64xf32> -> vector<16x64xf32>
    %558 = arith.addf %553, %557 : vector<16x64xf32>
    %559 = vector.extract_strided_slice %537 {offsets = [64, 0], sizes = [16, 32], strides = [1, 1]} : vector<256x32xbf16> to vector<16x32xbf16>
    %c4_398 = arith.constant 4 : index
    %c0_399 = arith.constant 0 : index
    %c0_400 = arith.constant 0 : index
    %560 = vector.load %arg7[%c4_398, %c0_399, %c0_400] : memref<16x32x64xbf16, #tpu.memory_space<vmem>>, vector<1x32x64xbf16>
    %561 = vector.shape_cast %560 : vector<1x32x64xbf16> to vector<32x64xbf16>
    %cst_401 = arith.constant dense<0.000000e+00> : vector<16x64xf32>
    %562 = tpu.matmul %559, %561, %cst_401 {dimension_numbers = #tpu.dot_dimension_numbers<[1], [0], [0], [1], [0, 0, 1, 1], [], []>} : vector<16x32xbf16>, vector<32x64xbf16>, vector<16x64xf32> -> vector<16x64xf32>
    %563 = arith.addf %558, %562 : vector<16x64xf32>
    %564 = vector.extract_strided_slice %537 {offsets = [80, 0], sizes = [16, 32], strides = [1, 1]} : vector<256x32xbf16> to vector<16x32xbf16>
    %c5_402 = arith.constant 5 : index
    %c0_403 = arith.constant 0 : index
    %c0_404 = arith.constant 0 : index
    %565 = vector.load %arg7[%c5_402, %c0_403, %c0_404] : memref<16x32x64xbf16, #tpu.memory_space<vmem>>, vector<1x32x64xbf16>
    %566 = vector.shape_cast %565 : vector<1x32x64xbf16> to vector<32x64xbf16>
    %cst_405 = arith.constant dense<0.000000e+00> : vector<16x64xf32>
    %567 = tpu.matmul %564, %566, %cst_405 {dimension_numbers = #tpu.dot_dimension_numbers<[1], [0], [0], [1], [0, 0, 1, 1], [], []>} : vector<16x32xbf16>, vector<32x64xbf16>, vector<16x64xf32> -> vector<16x64xf32>
    %568 = arith.addf %563, %567 : vector<16x64xf32>
    %569 = vector.extract_strided_slice %537 {offsets = [96, 0], sizes = [16, 32], strides = [1, 1]} : vector<256x32xbf16> to vector<16x32xbf16>
    %c6_406 = arith.constant 6 : index
    %c0_407 = arith.constant 0 : index
    %c0_408 = arith.constant 0 : index
    %570 = vector.load %arg7[%c6_406, %c0_407, %c0_408] : memref<16x32x64xbf16, #tpu.memory_space<vmem>>, vector<1x32x64xbf16>
    %571 = vector.shape_cast %570 : vector<1x32x64xbf16> to vector<32x64xbf16>
    %cst_409 = arith.constant dense<0.000000e+00> : vector<16x64xf32>
    %572 = tpu.matmul %569, %571, %cst_409 {dimension_numbers = #tpu.dot_dimension_numbers<[1], [0], [0], [1], [0, 0, 1, 1], [], []>} : vector<16x32xbf16>, vector<32x64xbf16>, vector<16x64xf32> -> vector<16x64xf32>
    %573 = arith.addf %568, %572 : vector<16x64xf32>
    %574 = vector.extract_strided_slice %537 {offsets = [112, 0], sizes = [16, 32], strides = [1, 1]} : vector<256x32xbf16> to vector<16x32xbf16>
    %c7_410 = arith.constant 7 : index
    %c0_411 = arith.constant 0 : index
    %c0_412 = arith.constant 0 : index
    %575 = vector.load %arg7[%c7_410, %c0_411, %c0_412] : memref<16x32x64xbf16, #tpu.memory_space<vmem>>, vector<1x32x64xbf16>
    %576 = vector.shape_cast %575 : vector<1x32x64xbf16> to vector<32x64xbf16>
    %cst_413 = arith.constant dense<0.000000e+00> : vector<16x64xf32>
    %577 = tpu.matmul %574, %576, %cst_413 {dimension_numbers = #tpu.dot_dimension_numbers<[1], [0], [0], [1], [0, 0, 1, 1], [], []>} : vector<16x32xbf16>, vector<32x64xbf16>, vector<16x64xf32> -> vector<16x64xf32>
    %578 = arith.addf %573, %577 : vector<16x64xf32>
    %579 = vector.extract_strided_slice %537 {offsets = [128, 0], sizes = [16, 32], strides = [1, 1]} : vector<256x32xbf16> to vector<16x32xbf16>
    %c8_414 = arith.constant 8 : index
    %c0_415 = arith.constant 0 : index
    %c0_416 = arith.constant 0 : index
    %580 = vector.load %arg7[%c8_414, %c0_415, %c0_416] : memref<16x32x64xbf16, #tpu.memory_space<vmem>>, vector<1x32x64xbf16>
    %581 = vector.shape_cast %580 : vector<1x32x64xbf16> to vector<32x64xbf16>
    %cst_417 = arith.constant dense<0.000000e+00> : vector<16x64xf32>
    %582 = tpu.matmul %579, %581, %cst_417 {dimension_numbers = #tpu.dot_dimension_numbers<[1], [0], [0], [1], [0, 0, 1, 1], [], []>} : vector<16x32xbf16>, vector<32x64xbf16>, vector<16x64xf32> -> vector<16x64xf32>
    %583 = arith.addf %578, %582 : vector<16x64xf32>
    %584 = vector.extract_strided_slice %537 {offsets = [144, 0], sizes = [16, 32], strides = [1, 1]} : vector<256x32xbf16> to vector<16x32xbf16>
    %c9_418 = arith.constant 9 : index
    %c0_419 = arith.constant 0 : index
    %c0_420 = arith.constant 0 : index
    %585 = vector.load %arg7[%c9_418, %c0_419, %c0_420] : memref<16x32x64xbf16, #tpu.memory_space<vmem>>, vector<1x32x64xbf16>
    %586 = vector.shape_cast %585 : vector<1x32x64xbf16> to vector<32x64xbf16>
    %cst_421 = arith.constant dense<0.000000e+00> : vector<16x64xf32>
    %587 = tpu.matmul %584, %586, %cst_421 {dimension_numbers = #tpu.dot_dimension_numbers<[1], [0], [0], [1], [0, 0, 1, 1], [], []>} : vector<16x32xbf16>, vector<32x64xbf16>, vector<16x64xf32> -> vector<16x64xf32>
    %588 = arith.addf %583, %587 : vector<16x64xf32>
    %589 = vector.extract_strided_slice %537 {offsets = [160, 0], sizes = [16, 32], strides = [1, 1]} : vector<256x32xbf16> to vector<16x32xbf16>
    %c10_422 = arith.constant 10 : index
    %c0_423 = arith.constant 0 : index
    %c0_424 = arith.constant 0 : index
    %590 = vector.load %arg7[%c10_422, %c0_423, %c0_424] : memref<16x32x64xbf16, #tpu.memory_space<vmem>>, vector<1x32x64xbf16>
    %591 = vector.shape_cast %590 : vector<1x32x64xbf16> to vector<32x64xbf16>
    %cst_425 = arith.constant dense<0.000000e+00> : vector<16x64xf32>
    %592 = tpu.matmul %589, %591, %cst_425 {dimension_numbers = #tpu.dot_dimension_numbers<[1], [0], [0], [1], [0, 0, 1, 1], [], []>} : vector<16x32xbf16>, vector<32x64xbf16>, vector<16x64xf32> -> vector<16x64xf32>
    %593 = arith.addf %588, %592 : vector<16x64xf32>
    %594 = vector.extract_strided_slice %537 {offsets = [176, 0], sizes = [16, 32], strides = [1, 1]} : vector<256x32xbf16> to vector<16x32xbf16>
    %c11_426 = arith.constant 11 : index
    %c0_427 = arith.constant 0 : index
    %c0_428 = arith.constant 0 : index
    %595 = vector.load %arg7[%c11_426, %c0_427, %c0_428] : memref<16x32x64xbf16, #tpu.memory_space<vmem>>, vector<1x32x64xbf16>
    %596 = vector.shape_cast %595 : vector<1x32x64xbf16> to vector<32x64xbf16>
    %cst_429 = arith.constant dense<0.000000e+00> : vector<16x64xf32>
    %597 = tpu.matmul %594, %596, %cst_429 {dimension_numbers = #tpu.dot_dimension_numbers<[1], [0], [0], [1], [0, 0, 1, 1], [], []>} : vector<16x32xbf16>, vector<32x64xbf16>, vector<16x64xf32> -> vector<16x64xf32>
    %598 = arith.addf %593, %597 : vector<16x64xf32>
    %599 = vector.extract_strided_slice %537 {offsets = [192, 0], sizes = [16, 32], strides = [1, 1]} : vector<256x32xbf16> to vector<16x32xbf16>
    %c12_430 = arith.constant 12 : index
    %c0_431 = arith.constant 0 : index
    %c0_432 = arith.constant 0 : index
    %600 = vector.load %arg7[%c12_430, %c0_431, %c0_432] : memref<16x32x64xbf16, #tpu.memory_space<vmem>>, vector<1x32x64xbf16>
    %601 = vector.shape_cast %600 : vector<1x32x64xbf16> to vector<32x64xbf16>
    %cst_433 = arith.constant dense<0.000000e+00> : vector<16x64xf32>
    %602 = tpu.matmul %599, %601, %cst_433 {dimension_numbers = #tpu.dot_dimension_numbers<[1], [0], [0], [1], [0, 0, 1, 1], [], []>} : vector<16x32xbf16>, vector<32x64xbf16>, vector<16x64xf32> -> vector<16x64xf32>
    %603 = arith.addf %598, %602 : vector<16x64xf32>
    %604 = vector.extract_strided_slice %537 {offsets = [208, 0], sizes = [16, 32], strides = [1, 1]} : vector<256x32xbf16> to vector<16x32xbf16>
    %c13_434 = arith.constant 13 : index
    %c0_435 = arith.constant 0 : index
    %c0_436 = arith.constant 0 : index
    %605 = vector.load %arg7[%c13_434, %c0_435, %c0_436] : memref<16x32x64xbf16, #tpu.memory_space<vmem>>, vector<1x32x64xbf16>
    %606 = vector.shape_cast %605 : vector<1x32x64xbf16> to vector<32x64xbf16>
    %cst_437 = arith.constant dense<0.000000e+00> : vector<16x64xf32>
    %607 = tpu.matmul %604, %606, %cst_437 {dimension_numbers = #tpu.dot_dimension_numbers<[1], [0], [0], [1], [0, 0, 1, 1], [], []>} : vector<16x32xbf16>, vector<32x64xbf16>, vector<16x64xf32> -> vector<16x64xf32>
    %608 = arith.addf %603, %607 : vector<16x64xf32>
    %609 = vector.extract_strided_slice %537 {offsets = [224, 0], sizes = [16, 32], strides = [1, 1]} : vector<256x32xbf16> to vector<16x32xbf16>
    %c14_438 = arith.constant 14 : index
    %c0_439 = arith.constant 0 : index
    %c0_440 = arith.constant 0 : index
    %610 = vector.load %arg7[%c14_438, %c0_439, %c0_440] : memref<16x32x64xbf16, #tpu.memory_space<vmem>>, vector<1x32x64xbf16>
    %611 = vector.shape_cast %610 : vector<1x32x64xbf16> to vector<32x64xbf16>
    %cst_441 = arith.constant dense<0.000000e+00> : vector<16x64xf32>
    %612 = tpu.matmul %609, %611, %cst_441 {dimension_numbers = #tpu.dot_dimension_numbers<[1], [0], [0], [1], [0, 0, 1, 1], [], []>} : vector<16x32xbf16>, vector<32x64xbf16>, vector<16x64xf32> -> vector<16x64xf32>
    %613 = arith.addf %608, %612 : vector<16x64xf32>
    %614 = vector.extract_strided_slice %537 {offsets = [240, 0], sizes = [16, 32], strides = [1, 1]} : vector<256x32xbf16> to vector<16x32xbf16>
    %c15_442 = arith.constant 15 : index
    %c0_443 = arith.constant 0 : index
    %c0_444 = arith.constant 0 : index
    %615 = vector.load %arg7[%c15_442, %c0_443, %c0_444] : memref<16x32x64xbf16, #tpu.memory_space<vmem>>, vector<1x32x64xbf16>
    %616 = vector.shape_cast %615 : vector<1x32x64xbf16> to vector<32x64xbf16>
    %cst_445 = arith.constant dense<0.000000e+00> : vector<16x64xf32>
    %617 = tpu.matmul %614, %616, %cst_445 {dimension_numbers = #tpu.dot_dimension_numbers<[1], [0], [0], [1], [0, 0, 1, 1], [], []>} : vector<16x32xbf16>, vector<32x64xbf16>, vector<16x64xf32> -> vector<16x64xf32>
    %618 = arith.addf %613, %617 : vector<16x64xf32>
    %c0_446 = arith.constant 0 : index
    %c0_447 = arith.constant 0 : index
    %619 = vector.load %arg8[%c0_446, %c0_447] : memref<1x64xf32, #tpu.memory_space<vmem>>, vector<1x64xf32>
    %620 = vector.broadcast %619 : vector<1x64xf32> to vector<16x64xf32>
    %621 = arith.addf %618, %620 : vector<16x64xf32>
    %cst_448 = arith.constant 0.000000e+00 : f32
    %622 = vector.broadcast %cst_448 : f32 to vector<16x64xf32>
    %623 = arith.maximumf %621, %622 : vector<16x64xf32>
    %c0_449 = arith.constant 0 : index
    %c0_450 = arith.constant 0 : index
    %624 = vector.load %arg9[%c0_449, %c0_450] : memref<1x64xf32, #tpu.memory_space<vmem>>, vector<1x64xf32>
    %625 = vector.broadcast %624 : vector<1x64xf32> to vector<16x64xf32>
    %626 = arith.mulf %623, %625 : vector<16x64xf32>
    %c0_451 = arith.constant 0 : index
    %c0_452 = arith.constant 0 : index
    %627 = vector.load %arg10[%c0_451, %c0_452] : memref<1x64xf32, #tpu.memory_space<vmem>>, vector<1x64xf32>
    %628 = vector.broadcast %627 : vector<1x64xf32> to vector<16x64xf32>
    %629 = arith.addf %626, %628 : vector<16x64xf32>
    %630 = arith.truncf %629 : vector<16x64xf32> to vector<16x64xbf16>
    %c0_453 = arith.constant 0 : index
    %c0_454 = arith.constant 0 : index
    %631 = vector.load %arg11[%c0_453, %c0_454] : memref<64x16xbf16, #tpu.memory_space<vmem>>, vector<64x16xbf16>
    %cst_455 = arith.constant dense<0.000000e+00> : vector<64x64xf32>
    %632 = tpu.matmul %631, %630, %cst_455 {dimension_numbers = #tpu.dot_dimension_numbers<[1], [0], [0], [1], [0, 0, 1, 1], [], []>} : vector<64x16xbf16>, vector<16x64xbf16>, vector<64x64xf32> -> vector<64x64xf32>
    %633 = arith.truncf %632 : vector<64x64xf32> to vector<64x64xbf16>
    %cst_456 = arith.constant 0.000000e+00 : f32
    %634 = vector.broadcast %cst_456 : f32 to vector<4x128xf32>
    %635 = vector.extract_strided_slice %633 {offsets = [0, 0], sizes = [4, 64], strides = [1, 1]} : vector<64x64xbf16> to vector<4x64xbf16>
    %c0_457 = arith.constant 0 : index
    %c0_458 = arith.constant 0 : index
    %c0_459 = arith.constant 0 : index
    %636 = vector.load %arg12[%c0_457, %c0_458, %c0_459] : memref<16x64x128xbf16, #tpu.memory_space<vmem>>, vector<1x64x128xbf16>
    %637 = vector.shape_cast %636 : vector<1x64x128xbf16> to vector<64x128xbf16>
    %cst_460 = arith.constant dense<0.000000e+00> : vector<4x128xf32>
    %638 = tpu.matmul %635, %637, %cst_460 {dimension_numbers = #tpu.dot_dimension_numbers<[1], [0], [0], [1], [0, 0, 1, 1], [], []>} : vector<4x64xbf16>, vector<64x128xbf16>, vector<4x128xf32> -> vector<4x128xf32>
    %639 = arith.addf %634, %638 : vector<4x128xf32>
    %640 = vector.extract_strided_slice %633 {offsets = [4, 0], sizes = [4, 64], strides = [1, 1]} : vector<64x64xbf16> to vector<4x64xbf16>
    %c1_461 = arith.constant 1 : index
    %c0_462 = arith.constant 0 : index
    %c0_463 = arith.constant 0 : index
    %641 = vector.load %arg12[%c1_461, %c0_462, %c0_463] : memref<16x64x128xbf16, #tpu.memory_space<vmem>>, vector<1x64x128xbf16>
    %642 = vector.shape_cast %641 : vector<1x64x128xbf16> to vector<64x128xbf16>
    %cst_464 = arith.constant dense<0.000000e+00> : vector<4x128xf32>
    %643 = tpu.matmul %640, %642, %cst_464 {dimension_numbers = #tpu.dot_dimension_numbers<[1], [0], [0], [1], [0, 0, 1, 1], [], []>} : vector<4x64xbf16>, vector<64x128xbf16>, vector<4x128xf32> -> vector<4x128xf32>
    %644 = arith.addf %639, %643 : vector<4x128xf32>
    %645 = vector.extract_strided_slice %633 {offsets = [8, 0], sizes = [4, 64], strides = [1, 1]} : vector<64x64xbf16> to vector<4x64xbf16>
    %c2_465 = arith.constant 2 : index
    %c0_466 = arith.constant 0 : index
    %c0_467 = arith.constant 0 : index
    %646 = vector.load %arg12[%c2_465, %c0_466, %c0_467] : memref<16x64x128xbf16, #tpu.memory_space<vmem>>, vector<1x64x128xbf16>
    %647 = vector.shape_cast %646 : vector<1x64x128xbf16> to vector<64x128xbf16>
    %cst_468 = arith.constant dense<0.000000e+00> : vector<4x128xf32>
    %648 = tpu.matmul %645, %647, %cst_468 {dimension_numbers = #tpu.dot_dimension_numbers<[1], [0], [0], [1], [0, 0, 1, 1], [], []>} : vector<4x64xbf16>, vector<64x128xbf16>, vector<4x128xf32> -> vector<4x128xf32>
    %649 = arith.addf %644, %648 : vector<4x128xf32>
    %650 = vector.extract_strided_slice %633 {offsets = [12, 0], sizes = [4, 64], strides = [1, 1]} : vector<64x64xbf16> to vector<4x64xbf16>
    %c3_469 = arith.constant 3 : index
    %c0_470 = arith.constant 0 : index
    %c0_471 = arith.constant 0 : index
    %651 = vector.load %arg12[%c3_469, %c0_470, %c0_471] : memref<16x64x128xbf16, #tpu.memory_space<vmem>>, vector<1x64x128xbf16>
    %652 = vector.shape_cast %651 : vector<1x64x128xbf16> to vector<64x128xbf16>
    %cst_472 = arith.constant dense<0.000000e+00> : vector<4x128xf32>
    %653 = tpu.matmul %650, %652, %cst_472 {dimension_numbers = #tpu.dot_dimension_numbers<[1], [0], [0], [1], [0, 0, 1, 1], [], []>} : vector<4x64xbf16>, vector<64x128xbf16>, vector<4x128xf32> -> vector<4x128xf32>
    %654 = arith.addf %649, %653 : vector<4x128xf32>
    %655 = vector.extract_strided_slice %633 {offsets = [16, 0], sizes = [4, 64], strides = [1, 1]} : vector<64x64xbf16> to vector<4x64xbf16>
    %c4_473 = arith.constant 4 : index
    %c0_474 = arith.constant 0 : index
    %c0_475 = arith.constant 0 : index
    %656 = vector.load %arg12[%c4_473, %c0_474, %c0_475] : memref<16x64x128xbf16, #tpu.memory_space<vmem>>, vector<1x64x128xbf16>
    %657 = vector.shape_cast %656 : vector<1x64x128xbf16> to vector<64x128xbf16>
    %cst_476 = arith.constant dense<0.000000e+00> : vector<4x128xf32>
    %658 = tpu.matmul %655, %657, %cst_476 {dimension_numbers = #tpu.dot_dimension_numbers<[1], [0], [0], [1], [0, 0, 1, 1], [], []>} : vector<4x64xbf16>, vector<64x128xbf16>, vector<4x128xf32> -> vector<4x128xf32>
    %659 = arith.addf %654, %658 : vector<4x128xf32>
    %660 = vector.extract_strided_slice %633 {offsets = [20, 0], sizes = [4, 64], strides = [1, 1]} : vector<64x64xbf16> to vector<4x64xbf16>
    %c5_477 = arith.constant 5 : index
    %c0_478 = arith.constant 0 : index
    %c0_479 = arith.constant 0 : index
    %661 = vector.load %arg12[%c5_477, %c0_478, %c0_479] : memref<16x64x128xbf16, #tpu.memory_space<vmem>>, vector<1x64x128xbf16>
    %662 = vector.shape_cast %661 : vector<1x64x128xbf16> to vector<64x128xbf16>
    %cst_480 = arith.constant dense<0.000000e+00> : vector<4x128xf32>
    %663 = tpu.matmul %660, %662, %cst_480 {dimension_numbers = #tpu.dot_dimension_numbers<[1], [0], [0], [1], [0, 0, 1, 1], [], []>} : vector<4x64xbf16>, vector<64x128xbf16>, vector<4x128xf32> -> vector<4x128xf32>
    %664 = arith.addf %659, %663 : vector<4x128xf32>
    %665 = vector.extract_strided_slice %633 {offsets = [24, 0], sizes = [4, 64], strides = [1, 1]} : vector<64x64xbf16> to vector<4x64xbf16>
    %c6_481 = arith.constant 6 : index
    %c0_482 = arith.constant 0 : index
    %c0_483 = arith.constant 0 : index
    %666 = vector.load %arg12[%c6_481, %c0_482, %c0_483] : memref<16x64x128xbf16, #tpu.memory_space<vmem>>, vector<1x64x128xbf16>
    %667 = vector.shape_cast %666 : vector<1x64x128xbf16> to vector<64x128xbf16>
    %cst_484 = arith.constant dense<0.000000e+00> : vector<4x128xf32>
    %668 = tpu.matmul %665, %667, %cst_484 {dimension_numbers = #tpu.dot_dimension_numbers<[1], [0], [0], [1], [0, 0, 1, 1], [], []>} : vector<4x64xbf16>, vector<64x128xbf16>, vector<4x128xf32> -> vector<4x128xf32>
    %669 = arith.addf %664, %668 : vector<4x128xf32>
    %670 = vector.extract_strided_slice %633 {offsets = [28, 0], sizes = [4, 64], strides = [1, 1]} : vector<64x64xbf16> to vector<4x64xbf16>
    %c7_485 = arith.constant 7 : index
    %c0_486 = arith.constant 0 : index
    %c0_487 = arith.constant 0 : index
    %671 = vector.load %arg12[%c7_485, %c0_486, %c0_487] : memref<16x64x128xbf16, #tpu.memory_space<vmem>>, vector<1x64x128xbf16>
    %672 = vector.shape_cast %671 : vector<1x64x128xbf16> to vector<64x128xbf16>
    %cst_488 = arith.constant dense<0.000000e+00> : vector<4x128xf32>
    %673 = tpu.matmul %670, %672, %cst_488 {dimension_numbers = #tpu.dot_dimension_numbers<[1], [0], [0], [1], [0, 0, 1, 1], [], []>} : vector<4x64xbf16>, vector<64x128xbf16>, vector<4x128xf32> -> vector<4x128xf32>
    %674 = arith.addf %669, %673 : vector<4x128xf32>
    %675 = vector.extract_strided_slice %633 {offsets = [32, 0], sizes = [4, 64], strides = [1, 1]} : vector<64x64xbf16> to vector<4x64xbf16>
    %c8_489 = arith.constant 8 : index
    %c0_490 = arith.constant 0 : index
    %c0_491 = arith.constant 0 : index
    %676 = vector.load %arg12[%c8_489, %c0_490, %c0_491] : memref<16x64x128xbf16, #tpu.memory_space<vmem>>, vector<1x64x128xbf16>
    %677 = vector.shape_cast %676 : vector<1x64x128xbf16> to vector<64x128xbf16>
    %cst_492 = arith.constant dense<0.000000e+00> : vector<4x128xf32>
    %678 = tpu.matmul %675, %677, %cst_492 {dimension_numbers = #tpu.dot_dimension_numbers<[1], [0], [0], [1], [0, 0, 1, 1], [], []>} : vector<4x64xbf16>, vector<64x128xbf16>, vector<4x128xf32> -> vector<4x128xf32>
    %679 = arith.addf %674, %678 : vector<4x128xf32>
    %680 = vector.extract_strided_slice %633 {offsets = [36, 0], sizes = [4, 64], strides = [1, 1]} : vector<64x64xbf16> to vector<4x64xbf16>
    %c9_493 = arith.constant 9 : index
    %c0_494 = arith.constant 0 : index
    %c0_495 = arith.constant 0 : index
    %681 = vector.load %arg12[%c9_493, %c0_494, %c0_495] : memref<16x64x128xbf16, #tpu.memory_space<vmem>>, vector<1x64x128xbf16>
    %682 = vector.shape_cast %681 : vector<1x64x128xbf16> to vector<64x128xbf16>
    %cst_496 = arith.constant dense<0.000000e+00> : vector<4x128xf32>
    %683 = tpu.matmul %680, %682, %cst_496 {dimension_numbers = #tpu.dot_dimension_numbers<[1], [0], [0], [1], [0, 0, 1, 1], [], []>} : vector<4x64xbf16>, vector<64x128xbf16>, vector<4x128xf32> -> vector<4x128xf32>
    %684 = arith.addf %679, %683 : vector<4x128xf32>
    %685 = vector.extract_strided_slice %633 {offsets = [40, 0], sizes = [4, 64], strides = [1, 1]} : vector<64x64xbf16> to vector<4x64xbf16>
    %c10_497 = arith.constant 10 : index
    %c0_498 = arith.constant 0 : index
    %c0_499 = arith.constant 0 : index
    %686 = vector.load %arg12[%c10_497, %c0_498, %c0_499] : memref<16x64x128xbf16, #tpu.memory_space<vmem>>, vector<1x64x128xbf16>
    %687 = vector.shape_cast %686 : vector<1x64x128xbf16> to vector<64x128xbf16>
    %cst_500 = arith.constant dense<0.000000e+00> : vector<4x128xf32>
    %688 = tpu.matmul %685, %687, %cst_500 {dimension_numbers = #tpu.dot_dimension_numbers<[1], [0], [0], [1], [0, 0, 1, 1], [], []>} : vector<4x64xbf16>, vector<64x128xbf16>, vector<4x128xf32> -> vector<4x128xf32>
    %689 = arith.addf %684, %688 : vector<4x128xf32>
    %690 = vector.extract_strided_slice %633 {offsets = [44, 0], sizes = [4, 64], strides = [1, 1]} : vector<64x64xbf16> to vector<4x64xbf16>
    %c11_501 = arith.constant 11 : index
    %c0_502 = arith.constant 0 : index
    %c0_503 = arith.constant 0 : index
    %691 = vector.load %arg12[%c11_501, %c0_502, %c0_503] : memref<16x64x128xbf16, #tpu.memory_space<vmem>>, vector<1x64x128xbf16>
    %692 = vector.shape_cast %691 : vector<1x64x128xbf16> to vector<64x128xbf16>
    %cst_504 = arith.constant dense<0.000000e+00> : vector<4x128xf32>
    %693 = tpu.matmul %690, %692, %cst_504 {dimension_numbers = #tpu.dot_dimension_numbers<[1], [0], [0], [1], [0, 0, 1, 1], [], []>} : vector<4x64xbf16>, vector<64x128xbf16>, vector<4x128xf32> -> vector<4x128xf32>
    %694 = arith.addf %689, %693 : vector<4x128xf32>
    %695 = vector.extract_strided_slice %633 {offsets = [48, 0], sizes = [4, 64], strides = [1, 1]} : vector<64x64xbf16> to vector<4x64xbf16>
    %c12_505 = arith.constant 12 : index
    %c0_506 = arith.constant 0 : index
    %c0_507 = arith.constant 0 : index
    %696 = vector.load %arg12[%c12_505, %c0_506, %c0_507] : memref<16x64x128xbf16, #tpu.memory_space<vmem>>, vector<1x64x128xbf16>
    %697 = vector.shape_cast %696 : vector<1x64x128xbf16> to vector<64x128xbf16>
    %cst_508 = arith.constant dense<0.000000e+00> : vector<4x128xf32>
    %698 = tpu.matmul %695, %697, %cst_508 {dimension_numbers = #tpu.dot_dimension_numbers<[1], [0], [0], [1], [0, 0, 1, 1], [], []>} : vector<4x64xbf16>, vector<64x128xbf16>, vector<4x128xf32> -> vector<4x128xf32>
    %699 = arith.addf %694, %698 : vector<4x128xf32>
    %700 = vector.extract_strided_slice %633 {offsets = [52, 0], sizes = [4, 64], strides = [1, 1]} : vector<64x64xbf16> to vector<4x64xbf16>
    %c13_509 = arith.constant 13 : index
    %c0_510 = arith.constant 0 : index
    %c0_511 = arith.constant 0 : index
    %701 = vector.load %arg12[%c13_509, %c0_510, %c0_511] : memref<16x64x128xbf16, #tpu.memory_space<vmem>>, vector<1x64x128xbf16>
    %702 = vector.shape_cast %701 : vector<1x64x128xbf16> to vector<64x128xbf16>
    %cst_512 = arith.constant dense<0.000000e+00> : vector<4x128xf32>
    %703 = tpu.matmul %700, %702, %cst_512 {dimension_numbers = #tpu.dot_dimension_numbers<[1], [0], [0], [1], [0, 0, 1, 1], [], []>} : vector<4x64xbf16>, vector<64x128xbf16>, vector<4x128xf32> -> vector<4x128xf32>
    %704 = arith.addf %699, %703 : vector<4x128xf32>
    %705 = vector.extract_strided_slice %633 {offsets = [56, 0], sizes = [4, 64], strides = [1, 1]} : vector<64x64xbf16> to vector<4x64xbf16>
    %c14_513 = arith.constant 14 : index
    %c0_514 = arith.constant 0 : index
    %c0_515 = arith.constant 0 : index
    %706 = vector.load %arg12[%c14_513, %c0_514, %c0_515] : memref<16x64x128xbf16, #tpu.memory_space<vmem>>, vector<1x64x128xbf16>
    %707 = vector.shape_cast %706 : vector<1x64x128xbf16> to vector<64x128xbf16>
    %cst_516 = arith.constant dense<0.000000e+00> : vector<4x128xf32>
    %708 = tpu.matmul %705, %707, %cst_516 {dimension_numbers = #tpu.dot_dimension_numbers<[1], [0], [0], [1], [0, 0, 1, 1], [], []>} : vector<4x64xbf16>, vector<64x128xbf16>, vector<4x128xf32> -> vector<4x128xf32>
    %709 = arith.addf %704, %708 : vector<4x128xf32>
    %710 = vector.extract_strided_slice %633 {offsets = [60, 0], sizes = [4, 64], strides = [1, 1]} : vector<64x64xbf16> to vector<4x64xbf16>
    %c15_517 = arith.constant 15 : index
    %c0_518 = arith.constant 0 : index
    %c0_519 = arith.constant 0 : index
    %711 = vector.load %arg12[%c15_517, %c0_518, %c0_519] : memref<16x64x128xbf16, #tpu.memory_space<vmem>>, vector<1x64x128xbf16>
    %712 = vector.shape_cast %711 : vector<1x64x128xbf16> to vector<64x128xbf16>
    %cst_520 = arith.constant dense<0.000000e+00> : vector<4x128xf32>
    %713 = tpu.matmul %710, %712, %cst_520 {dimension_numbers = #tpu.dot_dimension_numbers<[1], [0], [0], [1], [0, 0, 1, 1], [], []>} : vector<4x64xbf16>, vector<64x128xbf16>, vector<4x128xf32> -> vector<4x128xf32>
    %714 = arith.addf %709, %713 : vector<4x128xf32>
    %c0_521 = arith.constant 0 : index
    %c0_522 = arith.constant 0 : index
    %715 = vector.load %arg13[%c0_521, %c0_522] : memref<1x128xf32, #tpu.memory_space<vmem>>, vector<1x128xf32>
    %716 = vector.broadcast %715 : vector<1x128xf32> to vector<4x128xf32>
    %717 = arith.addf %714, %716 : vector<4x128xf32>
    %c0_523 = arith.constant 0 : index
    %c0_524 = arith.constant 0 : index
    %c0_525 = arith.constant 0 : index
    %718 = vector.load %arg14[%c0_523, %c0_524, %c0_525] : memref<1x4x128xf32, #tpu.memory_space<vmem>>, vector<1x4x128xf32>
    %719 = vector.shape_cast %718 : vector<1x4x128xf32> to vector<4x128xf32>
    %720 = vector.shape_cast %717 : vector<4x128xf32> to vector<1x4x128xf32>
    tpu.vector_store %arg14[%c0_523, %c0_524, %c0_525], %720 {strides = array<i32>} : memref<1x4x128xf32, #tpu.memory_space<vmem>>, vector<1x4x128xf32>,
    return
  }
  func.func @transform_0(%arg0: i32) -> (i32, i32, i32, i32) {
    %c0_i32 = arith.constant 0 : i32
    %c0_i32_0 = arith.constant 0 : i32
    %c0_i32_1 = arith.constant 0 : i32
    %c0_i32_2 = arith.constant 0 : i32
    return %arg0, %c0_i32, %c0_i32_0, %c0_i32_1 : i32, i32, i32, i32
  }
  func.func @transform_1(%arg0: i32) -> (i32, i32) {
    %c0_i32 = arith.constant 0 : i32
    %c0_i32_0 = arith.constant 0 : i32
    %c0_i32_1 = arith.constant 0 : i32
    return %c0_i32, %c0_i32_0 : i32, i32
  }
  func.func @transform_2(%arg0: i32) -> (i32, i32) {
    %c0_i32 = arith.constant 0 : i32
    %c0_i32_0 = arith.constant 0 : i32
    %c0_i32_1 = arith.constant 0 : i32
    return %c0_i32, %c0_i32_0 : i32, i32
  }
  func.func @transform_3(%arg0: i32) -> (i32, i32) {
    %c0_i32 = arith.constant 0 : i32
    %c0_i32_0 = arith.constant 0 : i32
    %c0_i32_1 = arith.constant 0 : i32
    return %c0_i32, %c0_i32_0 : i32, i32
  }
  func.func @transform_4(%arg0: i32) -> (i32, i32) {
    %c0_i32 = arith.constant 0 : i32
    %c0_i32_0 = arith.constant 0 : i32
    %c0_i32_1 = arith.constant 0 : i32
    return %c0_i32, %c0_i32_0 : i32, i32
  }
  func.func @transform_5(%arg0: i32) -> (i32, i32) {
    %c0_i32 = arith.constant 0 : i32
    %c0_i32_0 = arith.constant 0 : i32
    %c0_i32_1 = arith.constant 0 : i32
    return %c0_i32, %c0_i32_0 : i32, i32
  }
  func.func @transform_6(%arg0: i32) -> (i32, i32, i32) {
    %c0_i32 = arith.constant 0 : i32
    %c0_i32_0 = arith.constant 0 : i32
    %c0_i32_1 = arith.constant 0 : i32
    %c0_i32_2 = arith.constant 0 : i32
    return %c0_i32, %c0_i32_0, %c0_i32_1 : i32, i32, i32
  }
  func.func @transform_7(%arg0: i32) -> (i32, i32) {
    %c0_i32 = arith.constant 0 : i32
    %c0_i32_0 = arith.constant 0 : i32
    %c0_i32_1 = arith.constant 0 : i32
    return %c0_i32, %c0_i32_0 : i32, i32
  }
  func.func @transform_8(%arg0: i32) -> (i32, i32) {
    %c0_i32 = arith.constant 0 : i32
    %c0_i32_0 = arith.constant 0 : i32
    %c0_i32_1 = arith.constant 0 : i32
    return %c0_i32, %c0_i32_0 : i32, i32
  }
  func.func @transform_9(%arg0: i32) -> (i32, i32) {
    %c0_i32 = arith.constant 0 : i32
    %c0_i32_0 = arith.constant 0 : i32
    %c0_i32_1 = arith.constant 0 : i32
    return %c0_i32, %c0_i32_0 : i32, i32
  }
  func.func @transform_10(%arg0: i32) -> (i32, i32) {
    %c0_i32 = arith.constant 0 : i32
    %c0_i32_0 = arith.constant 0 : i32
    %c0_i32_1 = arith.constant 0 : i32
    return %c0_i32, %c0_i32_0 : i32, i32
  }
  func.func @transform_11(%arg0: i32) -> (i32, i32, i32) {
    %c0_i32 = arith.constant 0 : i32
    %c0_i32_0 = arith.constant 0 : i32
    %c0_i32_1 = arith.constant 0 : i32
    %c0_i32_2 = arith.constant 0 : i32
    return %c0_i32, %c0_i32_0, %c0_i32_1 : i32, i32, i32
  }
  func.func @transform_12(%arg0: i32) -> (i32, i32) {
    %c0_i32 = arith.constant 0 : i32
    %c0_i32_0 = arith.constant 0 : i32
    %c0_i32_1 = arith.constant 0 : i32
    return %c0_i32, %c0_i32_0 : i32, i32
  }
  func.func @transform_13(%arg0: i32) -> (i32, i32, i32) {
    %c0_i32 = arith.constant 0 : i32
    %c0_i32_0 = arith.constant 0 : i32
    %c0_i32_1 = arith.constant 0 : i32
    return %arg0, %c0_i32, %c0_i32_0 : i32, i32, i32
  }
}

</mosaic_0001>

<bundles_post_ra>
// kernel: _lambda_.1
= control target key start
LH: loop header
LB: loop body
LE: loop exit
PB: predicated region body
PF: predicated region fallthrough
CT: control target
= control target key end

     0   :  { %s8945_s0 = inlined_call_operand.vmem [shape: f32[2,9,9,16], index: 0, kind: input, shape index: {}]   ;;  %s8946_s1 = inlined_call_operand.vmem [shape: f32[16,32], index: 1, kind: input, shape index: {}]   ;;  %s8947_s2 = inlined_call_operand.vmem [shape: f32[1,32], index: 2, kind: input, shape index: {}]   ;;  %s8948_s3 = inlined_call_operand.vmem [shape: f32[1,32], index: 3, kind: input, shape index: {}]   ;;  %s8949_s4 = inlined_call_operand.vmem [shape: f32[1,32], index: 4, kind: input, shape index: {}]   ;;  %s8950_s5 = inlined_call_operand.vmem [shape: bf16[256,64], index: 5, kind: input, shape index: {}]   ;;  %s8951_s6 = inlined_call_operand.vmem [shape: bf16[16,32,64], index: 6, kind: input, shape index: {}]   ;;  %s8952_s7 = inlined_call_operand.vmem [shape: f32[1,64], index: 7, kind: input, shape index: {}]   ;;  %s8953_s8 = inlined_call_operand.vmem [shape: f32[1,64], index: 8, kind: input, shape index: {}]   ;;  %s8954_s9 = inlined_call_operand.vmem [shape: f32[1,64], index: 9, kind: input, shape index: {}]   ;;  %s8955_s10 = inlined_call_operand.vmem [shape: bf16[64,16], index: 10, kind: input, shape index: {}]   ;;  %s8956_s11 = inlined_call_operand.vmem [shape: bf16[16,64,128], index: 11, kind: input, shape index: {}]   ;;  %s8957_s12 = inlined_call_operand.vmem [shape: f32[1,128], index: 12, kind: input, shape index: {}]   ;;  %s8958_s13 = inlined_call_operand.hbm [shape: f32[2,4,128], index: 13, kind: output, shape index: {}]  }
   0x1   :  { %9150 = sst [smem:[#allocation154_spill]] %s8945_s0 }
   0x2   :  { %9151 = sst [smem:[#allocation155_spill]] %s8946_s1 }
   0x3   :  { %9152 = sst [smem:[#allocation156_spill]] %s8947_s2 }
   0x4   :  { %9153 = sst [smem:[#allocation157_spill]] %s8948_s3 }
   0x5   :  { %18 = vsyncpa [#allocation3], 0 }
   0x6   :  { %20 = vsyncpa [#allocation3 + $0x1], 0  ;;  %s6030_s25 = smov 0   ;;  %s6032_s26 = smov 0  }
   0x7   :  { %s6034_s27 = smov 0   ;;  %s6036_s28 = smov 0  }
   0x8 LB: > { %s6051_s29 = sadd.s32 4294967295, %s5942_s28   ;;  %s4728_s30 = sadd.s32 4294967294, %s5942_s28   ;;  %s5942_s28 = sphi %s6036_s28, %s9633_s28   ;;  %s5938_s27 = sphi %s6034_s27, %s9632_s27   ;;  %s5934_s26 = sphi %s6032_s26, %s9631_s26   ;;  %s5930_s25 = sphi %s6030_s25, %s9630_s25  }
   0x9   : > { %s6055_s14 = sadd.s32 1, %s5942_s28   ;;  %s311_s15 = sadd.s32 1, %s5938_s27 }
   0xa   : > { %s308_s16 = ssub.s32 %s5942_s28, %s6055_s14  ;;  %p321_p0 = scmp.ne.s32.totalorder %s5938_s27, %s5934_s26 }
   0xb   : > { %p309_p1 = scmp.eq.s32.totalorder %s308_s16, 0  ;;  %p322_p2 = scmp.eq.s32.totalorder %s6051_s29, 1 }
   0xc   : > { %p327_p3 = scmp.ne.s32.totalorder %s5934_s26, %s5930_s25  ;;  %p328_p4 = scmp.eq.s32.totalorder %s4728_s30, 1 }
   0xd   : > { %s6066_s17 = scalar_select %p309_p1, %s5938_s27, %s311_s15  }
   0xe   : > { %p6068_p5 = por %p322_p2, %p321_p0  ;;  %p6072_p6 = por %p328_p4, %p327_p3 }
   0xf   : > { %p4731_p7 = scmp.ge.s32.totalorder %s5942_s28, 1  ;;  %p390_p8 = scmp.lt.s32.totalorder %s5942_s28, 3 }
  0x11   : > { %p391_p9 = pnand %p4731_p7, %p390_p8 }
  0x13   : > { %394 = sbr.rel (%p391_p9) target bundleno = 1998 (0x7ce), region = 72 }
  0x18   : > { %p434_p10 = scmp.lt.s32.totalorder %s6051_s29, 1  ;;  %v8967_v0 = vmov 8   ;;  %v8987_v1 = vmov 0   ;;  %s9156_s0 = sld [smem:[#allocation154_spill]]  ;;  %v8971_v10 = vmov 1   ;;  %v5947_v11 = vmov 10  }
  0x19   : > { %5651 = vset.pattern.permute.xlu0 %v8967_v0  ;;  %5635 = vset.pattern.permute.xlu2 %v8987_v1  ;;  %v8983_v12 = vmov 11   ;;  %v8977_v13 = vmov 2   ;;  %v8973_v14 = vmov 14   ;;  %v8959_v15 = vmov 3   ;;  %s9232_s1 = sld [smem:[#allocation155_spill]]  ;;  %s5900_s23 = scalar_lea.hbm %s8958_s13, 8 }
  0x1a   : > { %5634 = vset.pattern.permute.xlu1 %v8987_v1  ;;  %s435_s20 = scalar_select %p434_p10, %s6051_s29, 1  ;;  %v8969_v16 = vmov 15   ;;  %v8985_v17 = vmov 9   ;;  %v8963_v19 = vmov 4   ;;  %v8979_v23 = vmov 13  }
  0x1b   : > { %v8965_v27 = vmov 5   ;;  %v8975_v38 = vmov 6   ;;  %v8961_v48 = vmov 7   ;;  %v8981_v50 = vmov 12   ;;  %s9594_s2 = sld [smem:[#allocation156_spill]] }
  0x1c   : > { %s5578_s21 = smul.u32 144, %s435_s20  ;;  %s9599_s3 = sld [smem:[#allocation157_spill]]  ;;  %vm2897_vm0 = vcmask 523264   ;;  %vm3093_vm1 = vcmask 261120   ;;  %vm3768_vm2 = vcmask 130048  }
  0x1d   : > { %s431_s20 = sand.u32 1, %s5934_s26  }
  0x1e   : > { %s6086_s24 = scalar_lea.vmem %s9156_s0, %s5578_s21  ;;  %s4732_s21 = sshll.u32 %s431_s20, 2 }
  0x1f   : > { %v6089_v2 = vld [vmem:[%s6086_s24 + $0x40] sm:$0xff]  ;;  %v6095_v4 = vld [vmem:[%s6086_s24 + $0x10] sm:$0xff]  ;;  %s5447_s0 = sshll.u32 %s6051_s29, 2  ;;  %s433_s15 = scalar_lea.vmem [#allocation2], %s4732_s21 }
  0x20   : > { %v6092_v3 = vld [vmem:[%s6086_s24 + $0x20] sm:$0xff]  ;;  %471 = vperm.xlu2 %5635, %v6089_v2   ;;  %862 = vperm.xlu0 %5651, %v6095_v4   ;;  %v6101_v5 = vld [vmem:[%s6086_s24 + $0x50] sm:$0xff]  ;;  %s4664_s22 = scalar_lea.hbm %s8958_s13, %s5447_s0  ;;  %s4666_s16 = sshll.u32 %s433_s15, 4  ;;  %s4667_s16 = int_to_ptr.vmem [resolvable:$true] %s4666_s16 }
  0x21   : > { %461 = vperm.xlu1 %5634, %v6092_v3   ;;  %v6104_v6 = vld [vmem:[%s6086_s24 + $0x30] sm:$0xff]  ;;  %v6107_v7 = vld [vmem:[%s6086_s24 + $0x60] sm:$0xff]  ;;  %s4654_s29 = scalar_lea.sflag [#allocation3], %s431_s20 }
  0x22   : > { %v6113_v8 = vld [vmem:[%s6086_s24 + $0x70] sm:$0xff]  ;;  %v6116_v9 = vld [vmem:[%s6086_s24] sm:$0xff] }
  0x23   : > { %v6166_v21 = vld [vmem:[%s6086_s24 + $0x21] sm:$0xff]  ;;  %v6268_v56 = vld [vmem:[%s6086_s24 + $0x71] sm:$0xff] }
  0x24   : > { %v6195_v31 = vld [vmem:[%s6086_s24 + $0x41] sm:$0xff] }
  0x25   : > { %v6226_v41 = vld [vmem:[%s6086_s24 + $0x80] sm:$0xff] }
  0x26   : > { %v6290_v63 = vld [vmem:[%s6086_s24 + $0x1] sm:$0xff] }
  0x28   : > { %476 = vperm.xlu2 %5635, %v6101_v5   ;;  %882 = vperm.xlu0 %5651, %v6107_v7  }
  0x29   : > { %466 = vperm.xlu1 %5634, %v6104_v6  }
  0x30   : > { %5636 = vset.pattern.permute.xlu2 %v8971_v10  ;;  %5656 = vset.pattern.permute.xlu0 %v5947_v11 }
  0x31   : > { %486 = vperm.xlu1 %5634, %v6113_v8   ;;  %508 = vperm.xlu2 %5636, %v6116_v9  }
  0x32   : > { %962 = vperm.xlu0 %5656, %v6095_v4  }
  0x39   : > { %5637 = vset.pattern.permute.xlu1 %v8971_v10  ;;  %520 = vperm.xlu2 %5636, %v6104_v6  }
  0x3a   : > { %516 = vperm.xlu1 %5637, %v6092_v3   ;;  %982 = vperm.xlu0 %5656, %v6107_v7  }
  0x41   : > { %528 = vperm.xlu2 %5636, %v6101_v5  }
  0x42   : > { %524 = vperm.xlu1 %5637, %v6089_v2   ;;  %5659 = vset.pattern.permute.xlu0 %v8983_v12 }
  0x43   : > { %1012 = vperm.xlu0 %5659, %v6095_v4  }
  0x49   : > { %5638 = vset.pattern.permute.xlu2 %v8977_v13 }
  0x4a   : > { %536 = vperm.xlu1 %5637, %v6113_v8   ;;  %558 = vperm.xlu2 %5638, %v6116_v9  }
  0x4b   : > { %1032 = vperm.xlu0 %5659, %v6107_v7  }
  0x52   : > { %5639 = vset.pattern.permute.xlu1 %v8977_v13  ;;  %570 = vperm.xlu2 %5638, %v6104_v6  }
  0x53   : > { %566 = vperm.xlu1 %5639, %v6092_v3   ;;  %5666 = vset.pattern.permute.xlu0 %v8973_v14 }
  0x54   : > { %1162 = vperm.xlu0 %5666, %v6095_v4  }
  0x5a   : > { %578 = vperm.xlu2 %5638, %v6101_v5  }
  0x5b   : > { %574 = vperm.xlu1 %5639, %v6089_v2  }
  0x5c   : > { %1182 = vperm.xlu0 %5666, %v6107_v7  }
  0x62   : > { %5640 = vset.pattern.permute.xlu2 %v8959_v15 }
  0x63   : > { %586 = vperm.xlu1 %5639, %v6113_v8   ;;  %608 = vperm.xlu2 %5640, %v6116_v9  }
  0x64   : > { %5669 = vset.pattern.permute.xlu0 %v8969_v16 }
  0x65   : > { %1212 = vperm.xlu0 %5669, %v6095_v4  }
  0x6b   : > { %5641 = vset.pattern.permute.xlu1 %v8959_v15  ;;  %620 = vperm.xlu2 %5640, %v6104_v6  }
  0x6c   : > { %616 = vperm.xlu1 %5641, %v6092_v3  }
  0x6d   : > { %1232 = vperm.xlu0 %5669, %v6107_v7  }
  0x73   : > { %628 = vperm.xlu2 %5640, %v6101_v5  }
  0x74   : > { %624 = vperm.xlu1 %5641, %v6089_v2  }
  0x75   : > { %5685 = vset.pattern.permute.xlu0 %v8985_v17 }
  0x76   : > { %912 = vperm.xlu0 %5685, %v6095_v4  }
  0x7a   : > { %v6156_v18 = vpop.permute.xlu2 %471 }
  0x7b   : > { %9157 = vst [vmem:[#allocation5_spill] sm:$0xff] %v6156_v18  ;;  %5642 = vset.pattern.permute.xlu2 %v8963_v19 }
  0x7c   : > { %636 = vperm.xlu1 %5641, %v6113_v8   ;;  %658 = vperm.xlu2 %5642, %v6116_v9  }
  0x7e   : > { %932 = vperm.xlu0 %5685, %v6107_v7  }
  0x82   : > { %v6162_v20 = vpop.permute.xlu2 %476 }
  0x83   : > { %9158 = vst [vmem:[#allocation6_spill] sm:$0xff] %v6162_v20  ;;  %v9208_v20 = vmov 11  }
  0x84   : > { %5643 = vset.pattern.permute.xlu1 %v8963_v19  ;;  %670 = vperm.xlu2 %5642, %v6104_v6  }
  0x85   : > { %666 = vperm.xlu1 %5643, %v6092_v3  }
  0x86   : > { %1617 = vperm.xlu0 %5685, %v6166_v21  }
  0x8b   : > { %v6171_v22 = vpop.permute.xlu2 %508 }
  0x8c   : > { %9159 = vst [vmem:[#allocation7_spill] sm:$0xff] %v6171_v22  ;;  %678 = vperm.xlu2 %5642, %v6101_v5   ;;  %v9219_v22 = vmov 12  }
  0x8d   : > { %674 = vperm.xlu1 %5643, %v6089_v2  }
  0x8e   : > { %5702 = vset.pattern.permute.xlu0 %v8979_v23 }
  0x8f   : > { %1112 = vperm.xlu0 %5702, %v6095_v4  }
  0x92   : > { %v6181_v26 = vpop.permute.xlu0 %862 }
  0x93   : > { %v6177_v24 = vpop.permute.xlu1 %461  ;;  %v6179_v25 = vpop.permute.xlu2 %520 }
  0x94   : > { %9160 = vst [vmem:[#allocation8_spill] sm:$0xff] %v6177_v24  ;;  %5644 = vset.pattern.permute.xlu2 %v8965_v27  ;;  %v9201_v24 = vmov 0  }
  0x95   : > { %9161 = vst [vmem:[#allocation9_spill] sm:$0xff] %v6179_v25  ;;  %686 = vperm.xlu1 %5643, %v6113_v8   ;;  %708 = vperm.xlu2 %5644, %v6116_v9  }
  0x97   : > { %1132 = vperm.xlu0 %5702, %v6107_v7  }
  0x9a   : > { %v6191_v30 = vpop.permute.xlu0 %882 }
  0x9b   : > { %v6187_v28 = vpop.permute.xlu1 %466  ;;  %v6189_v29 = vpop.permute.xlu2 %528 }
  0x9c   : > { %9162 = vst [vmem:[#allocation10_spill] sm:$0xff] %v6187_v28 }
  0x9d   : > { %9163 = vst [vmem:[#allocation11_spill] sm:$0xff] %v6189_v29  ;;  %5645 = vset.pattern.permute.xlu1 %v8965_v27  ;;  %720 = vperm.xlu2 %5644, %v6104_v6  }
  0x9e   : > { %716 = vperm.xlu1 %5645, %v6092_v3  }
  0x9f   : > { %1753 = vperm.xlu0 %5702, %v6195_v31  }
  0xa3   : > { %v6200_v32 = vpop.permute.xlu1 %486 }
  0xa4   : > { %9164 = vst [vmem:[#allocation12_spill] sm:$0xff] %v6200_v32  ;;  %v6202_v33 = vpop.permute.xlu2 %558  ;;  %v6204_v34 = vpop.permute.xlu0 %962 }
  0xa5   : > { %9165 = vst [vmem:[#allocation13_spill] sm:$0xff] %v6202_v33  ;;  %728 = vperm.xlu2 %5644, %v6101_v5  }
  0xa6   : > { %9166 = vst [vmem:[#allocation14_spill] sm:$0xff] %v6204_v34  ;;  %724 = vperm.xlu1 %5645, %v6089_v2  }
  0xa7   : > { %5719 = vset.pattern.permute.xlu0 %v8959_v15 }
  0xa8   : > { %612 = vperm.xlu0 %5719, %v6095_v4  }
  0xac   : > { %v6210_v35 = vpop.permute.xlu1 %516  ;;  %v6212_v36 = vpop.permute.xlu2 %570 }
  0xad   : > { %9167 = vst [vmem:[#allocation15_spill] sm:$0xff] %v6210_v35  ;;  %v6214_v37 = vpop.permute.xlu0 %982  ;;  %5646 = vset.pattern.permute.xlu2 %v8975_v38 }
  0xae   : > { %9168 = vst [vmem:[#allocation16_spill] sm:$0xff] %v6212_v36  ;;  %736 = vperm.xlu1 %5645, %v6113_v8   ;;  %758 = vperm.xlu2 %5646, %v6116_v9  }
  0xaf   : > { %9169 = vst [vmem:[#allocation17_spill] sm:$0xff] %v6214_v37 }
  0xb0   : > { %632 = vperm.xlu0 %5719, %v6107_v7  }
  0xb4   : > { %v6220_v39 = vpop.permute.xlu1 %524  ;;  %v6222_v40 = vpop.permute.xlu2 %578 }
  0xb5   : > { %9170 = vst [vmem:[#allocation18_spill] sm:$0xff] %v6220_v39  ;;  %v6228_v42 = vpop.permute.xlu0 %1012 }
  0xb6   : > { %9171 = vst [vmem:[#allocation19_spill] sm:$0xff] %v6222_v40  ;;  %5647 = vset.pattern.permute.xlu1 %v8975_v38  ;;  %770 = vperm.xlu2 %5646, %v6104_v6  }
  0xb7   : > { %9172 = vst [vmem:[#allocation20_spill] sm:$0xff] %v6228_v42  ;;  %766 = vperm.xlu1 %5647, %v6092_v3  }
  0xb8   : > { %2110 = vperm.xlu0 %5719, %v6226_v41  }
  0xbc   : > { %v6233_v43 = vpop.permute.xlu1 %536 }
  0xbd   : > { %9173 = vst [vmem:[#allocation21_spill] sm:$0xff] %v6233_v43  ;;  %v6235_v44 = vpop.permute.xlu2 %608  ;;  %v6237_v45 = vpop.permute.xlu0 %1032 }
  0xbe   : > { %9174 = vst [vmem:[#allocation22_spill] sm:$0xff] %v6235_v44  ;;  %778 = vperm.xlu2 %5646, %v6101_v5  }
  0xbf   : > { %774 = vperm.xlu1 %5647, %v6089_v2  }
  0xc0   : > { %2102 = vperm.xlu0 %5719, %v6107_v7  }
  0xc5   : > { %v6242_v46 = vpop.permute.xlu1 %566  ;;  %v6244_v47 = vpop.permute.xlu2 %620 }
  0xc6   : > { %9175 = vst [vmem:[#allocation23_spill] sm:$0xff] %v6242_v46  ;;  %5648 = vset.pattern.permute.xlu2 %v8961_v48  ;;  %v6248_v49 = vpop.permute.xlu0 %1162 }
  0xc7   : > { %9176 = vst [vmem:[#allocation24_spill] sm:$0xff] %v6244_v47  ;;  %786 = vperm.xlu1 %5647, %v6113_v8   ;;  %808 = vperm.xlu2 %5648, %v6116_v9  }
  0xc8   : > { %9177 = vst [vmem:[#allocation25_spill] sm:$0xff] %v6248_v49  ;;  %5738 = vset.pattern.permute.xlu0 %v8981_v50 }
  0xc9   : > { %1062 = vperm.xlu0 %5738, %v6095_v4  }
  0xcd   : > { %v6253_v51 = vpop.permute.xlu1 %574  ;;  %v6255_v52 = vpop.permute.xlu2 %628 }
  0xce   : > { %9178 = vst [vmem:[#allocation26_spill] sm:$0xff] %v6253_v51  ;;  %v6258_v53 = vpop.permute.xlu0 %1182 }
  0xcf   : > { %9179 = vst [vmem:[#allocation27_spill] sm:$0xff] %v6255_v52  ;;  %5649 = vset.pattern.permute.xlu1 %v8961_v48  ;;  %820 = vperm.xlu2 %5648, %v6104_v6  }
  0xd0   : > { %816 = vperm.xlu1 %5649, %v6092_v3  }
  0xd1   : > { %1082 = vperm.xlu0 %5738, %v6107_v7  }
  0xd5   : > { %v6263_v54 = vpop.permute.xlu1 %586 }
  0xd6   : > { %9180 = vst [vmem:[#allocation28_spill] sm:$0xff] %v6263_v54  ;;  %v6265_v55 = vpop.permute.xlu2 %658 }
  0xd7   : > { %9181 = vst [vmem:[#allocation29_spill] sm:$0xff] %v6265_v55  ;;  %828 = vperm.xlu2 %5648, %v6101_v5   ;;  %v6272_v57 = vpop.permute.xlu0 %1212 }
  0xd8   : > { %824 = vperm.xlu1 %5649, %v6089_v2   ;;  %9182 = vst [vmem:[#allocation30_spill] sm:$0xff] %v6272_v57 }
  0xd9   : > { %1717 = vperm.xlu0 %5738, %v6268_v56  }
  0xde   : > { %v6275_v58 = vpop.permute.xlu1 %616  ;;  %v6277_v59 = vpop.permute.xlu2 %670 }
  0xdf   : > { %9183 = vst [vmem:[#allocation31_spill] sm:$0xff] %v6275_v58  ;;  %5650 = vset.pattern.permute.xlu2 %v8967_v0  ;;  %v6281_v60 = vpop.permute.xlu0 %1232 }
  0xe0   : > { %9184 = vst [vmem:[#allocation32_spill] sm:$0xff] %v6277_v59  ;;  %836 = vperm.xlu1 %5649, %v6113_v8   ;;  %858 = vperm.xlu2 %5650, %v6116_v9  }
  0xe1   : > { %1705 = vperm.xlu0 %5738, %v6195_v31  }
  0xe6   : > { %v6285_v61 = vpop.permute.xlu1 %624  ;;  %v6287_v62 = vpop.permute.xlu2 %678 }
  0xe7   : > { %9185 = vst [vmem:[#allocation33_spill] sm:$0xff] %v6285_v61 }
  0xe8   : > { %9186 = vst [vmem:[#allocation34_spill] sm:$0xff] %v6287_v62  ;;  %5652 = vset.pattern.permute.xlu1 %v8967_v0  ;;  %870 = vperm.xlu2 %5650, %v6104_v6   ;;  %v6295_v15 = vpop.permute.xlu0 %912 }
  0xe9   : > { %866 = vperm.xlu1 %5652, %v6092_v3   ;;  %1689 = vperm.xlu0 %5738, %v6290_v63  }
  0xee   : > { %v6298_v48 = vpop.permute.xlu1 %636 }
  0xef   : > { %9187 = vst [vmem:[#allocation35_spill] sm:$0xff] %v6298_v48  ;;  %v6300_v19 = vpop.permute.xlu2 %708 }
  0xf0   : > { %9188 = vst [vmem:[#allocation36_spill] sm:$0xff] %v6300_v19  ;;  %878 = vperm.xlu2 %5650, %v6101_v5   ;;  %v6304_v27 = vpop.permute.xlu0 %932 }
  0xf1   : > { %874 = vperm.xlu1 %5652, %v6089_v2   ;;  %5743 = vset.pattern.permute.xlu0 %v8977_v13 }
  0xf2   : > { %562 = vperm.xlu0 %5743, %v6095_v4  }
  0xf7   : > { %v6308_v0 = vpop.permute.xlu1 %666  ;;  %v6310_v16 = vpop.permute.xlu2 %720 }
  0xf8   : > { %9189 = vst [vmem:[#allocation37_spill] sm:$0xff] %v6308_v0  ;;  %5653 = vset.pattern.permute.xlu2 %v8985_v17  ;;  %v6314_v10 = vpop.permute.xlu0 %1617 }
  0xf9   : > { %9190 = vst [vmem:[#allocation38_spill] sm:$0xff] %v6310_v16  ;;  %886 = vperm.xlu1 %5652, %v6113_v8   ;;  %908 = vperm.xlu2 %5653, %v6116_v9  }
  0xfa   : > { %9191 = vst [vmem:[#allocation39_spill] sm:$0xff] %v6314_v10  ;;  %582 = vperm.xlu0 %5743, %v6107_v7  }
  0xff   : > { %v6318_v14 = vpop.permute.xlu1 %674  ;;  %v6320_v38 = vpop.permute.xlu2 %728 }
 0x100   : > { %9192 = vst [vmem:[#allocation40_spill] sm:$0xff] %v6318_v14  ;;  %v6383_v14 = vld [vmem:[%s6086_s24 + $0x51] sm:$0xff] }
 0x101   : > { %9193 = vst [vmem:[#allocation41_spill] sm:$0xff] %v6320_v38  ;;  %5654 = vset.pattern.permute.xlu1 %v8985_v17  ;;  %920 = vperm.xlu2 %5653, %v6104_v6   ;;  %v6325_v13 = vpop.permute.xlu0 %1112  ;;  %v6370_v38 = vld [vmem:[%s6086_s24 + $0x61] sm:$0xff] }
 0x102   : > { %916 = vperm.xlu1 %5654, %v6092_v3   ;;  %9194 = vst [vmem:[#allocation42_spill] sm:$0xff] %v6325_v13  ;;  %2062 = vperm.xlu0 %5743, %v6226_v41  }
 0x107   : > { %v6328_v23 = vpop.permute.xlu1 %686 }
 0x108   : > { %9195 = vst [vmem:[#allocation43_spill] sm:$0xff] %v6328_v23  ;;  %v6330_v50 = vpop.permute.xlu2 %758  ;;  %v6396_v23 = vld [vmem:[%s6086_s24 + $0x31] sm:$0xff] }
 0x109   : > { %9196 = vst [vmem:[#allocation44_spill] sm:$0xff] %v6330_v50  ;;  %928 = vperm.xlu2 %5653, %v6101_v5   ;;  %v6334_v12 = vpop.permute.xlu0 %1132 }
 0x10a   : > { %924 = vperm.xlu1 %5654, %v6089_v2   ;;  %9197 = vst [vmem:[#allocation45_spill] sm:$0xff] %v6334_v12  ;;  %2046 = vperm.xlu0 %5743, %v6089_v2  }
 0x10b   : > { %9214 = vst [vmem:[#allocation60_spill] sm:$0xff] %v6396_v23 }
 0x110   : > { %v6337_v17 = vpop.permute.xlu1 %716  ;;  %v6339_v1 = vpop.permute.xlu2 %770 }
 0x111   : > { %9198 = vst [vmem:[#allocation46_spill] sm:$0xff] %v6337_v17  ;;  %5655 = vset.pattern.permute.xlu2 %v5947_v11  ;;  %v6343_v0 = vpop.permute.xlu0 %1753 }
 0x112   : > { %9199 = vst [vmem:[#allocation47_spill] sm:$0xff] %v6339_v1  ;;  %936 = vperm.xlu1 %5654, %v6113_v8   ;;  %5747 = vset.pattern.permute.xlu0 %v9201_v24  ;;  %v6544_v1 = vld [vmem:[%s6086_s24 + $0x50] sm:$0xff] }
 0x113   : > { %9200 = vst [vmem:[#allocation48_spill] sm:$0xff] %v6343_v0  ;;  %958 = vperm.xlu2 %5655, %v6116_v9   ;;  %451 = vperm.xlu0 %5747, %v6116_v9   ;;  %v9229_v0 = vmov 13  }
 0x114   : > { %9254 = vst [vmem:[#allocation93_spill] sm:$0xff] %v6544_v1 }
 0x118   : > { %v6348_v35 = vpop.permute.xlu1 %724  ;;  %v6350_v16 = vpop.permute.xlu2 %778 }
 0x119   : > { %9202 = vst [vmem:[#allocation49_spill] sm:$0xff] %v6348_v35 }
 0x11a   : > { %9203 = vst [vmem:[#allocation50_spill] sm:$0xff] %v6350_v16  ;;  %5657 = vset.pattern.permute.xlu1 %v5947_v11  ;;  %v6355_v17 = vpop.permute.xlu0 %612 }
 0x11b   : > { %966 = vperm.xlu1 %5657, %v6092_v3   ;;  %970 = vperm.xlu2 %5655, %v6104_v6  }
 0x11c   : > { %456 = vperm.xlu0 %5747, %v6095_v4  }
 0x120   : > { %v6358_v59 = vpop.permute.xlu1 %736 }
 0x121   : > { %9204 = vst [vmem:[#allocation51_spill] sm:$0xff] %v6358_v59  ;;  %v6360_v28 = vpop.permute.xlu2 %808 }
 0x122   : > { %9205 = vst [vmem:[#allocation52_spill] sm:$0xff] %v6360_v28  ;;  %v6364_v25 = vpop.permute.xlu0 %632 }
 0x123   : > { %974 = vperm.xlu1 %5657, %v6089_v2   ;;  %978 = vperm.xlu2 %5655, %v6101_v5  }
 0x124   : > { %481 = vperm.xlu0 %5747, %v6107_v7  }
 0x129   : > { %v6367_v11 = vpop.permute.xlu1 %766  ;;  %v6372_v62 = vpop.permute.xlu2 %820 }
 0x12a   : > { %9206 = vst [vmem:[#allocation53_spill] sm:$0xff] %v6367_v11  ;;  %v6376_v29 = vpop.permute.xlu0 %2110  ;;  %v6464_v11 = vld [vmem:[%s9232_s1] ss:$0 sm:$0xff] }
 0x12b   : > { %9207 = vst [vmem:[#allocation54_spill] sm:$0xff] %v6372_v62  ;;  %986 = vperm.xlu1 %5657, %v6113_v8   ;;  %5658 = vset.pattern.permute.xlu2 %v9208_v20 }
 0x12c   : > { %9209 = vst [vmem:[#allocation55_spill] sm:$0xff] %v6376_v29  ;;  %1328 = vperm.xlu0 %5747, %v6370_v38   ;;  %1008 = vperm.xlu2 %5658, %v6116_v9   ;;  %v9235_v29 = vmov 6  }
 0x131   : > { %v6380_v35 = vpop.permute.xlu1 %774  ;;  %v6385_v18 = vpop.permute.xlu2 %828 }
 0x132   : > { %9210 = vst [vmem:[#allocation56_spill] sm:$0xff] %v6380_v35  ;;  %v6388_v39 = vpop.permute.xlu0 %2102 }
 0x133   : > { %9211 = vst [vmem:[#allocation57_spill] sm:$0xff] %v6385_v18  ;;  %5660 = vset.pattern.permute.xlu1 %v9208_v20 }
 0x134   : > { %9212 = vst [vmem:[#allocation58_spill] sm:$0xff] %v6388_v39  ;;  %1323 = vperm.xlu0 %5747, %v6383_v14   ;;  %1016 = vperm.xlu1 %5660, %v6092_v3  }
 0x135   : > { %1020 = vperm.xlu2 %5658, %v6104_v6  }
 0x139   : > { %v6393_v59 = vpop.permute.xlu1 %786 }
 0x13a   : > { %9213 = vst [vmem:[#allocation59_spill] sm:$0xff] %v6393_v59  ;;  %v6398_v32 = vpop.permute.xlu2 %858 }
 0x13b   : > { %9215 = vst [vmem:[#allocation61_spill] sm:$0xff] %v6398_v32  ;;  %v6402_v20 = vpop.permute.xlu0 %1062  ;;  %v4749_v32 = vld [vmem:[%s6086_s24 + $0x81] sm:$0xff] }
 0x13c   : > { %1313 = vperm.xlu0 %5747, %v6396_v23   ;;  %1024 = vperm.xlu1 %5660, %v6089_v2   ;;  %9216 = vst [vmem:[#allocation62_spill] sm:$0xff] %v6402_v20 }
 0x13d   : > { %1028 = vperm.xlu2 %5658, %v6101_v5  }
 0x142   : > { %v6405_v43 = vpop.permute.xlu1 %816  ;;  %v6407_v19 = vpop.permute.xlu2 %870 }
 0x143   : > { %9217 = vst [vmem:[#allocation63_spill] sm:$0xff] %v6405_v43  ;;  %v6411_v55 = vpop.permute.xlu0 %1082 }
 0x144   : > { %9218 = vst [vmem:[#allocation64_spill] sm:$0xff] %v6407_v19  ;;  %1966 = vperm.xlu0 %5747, %v6226_v41   ;;  %1036 = vperm.xlu1 %5660, %v6113_v8  }
 0x145   : > { %5661 = vset.pattern.permute.xlu2 %v9219_v22 }
 0x146   : > { %1058 = vperm.xlu2 %5661, %v6116_v9  }
 0x14a   : > { %v6416_v28 = vpop.permute.xlu1 %824  ;;  %v6418_v39 = vpop.permute.xlu2 %878 }
 0x14b   : > { %9220 = vst [vmem:[#allocation65_spill] sm:$0xff] %v6416_v28  ;;  %v6421_v50 = vpop.permute.xlu0 %1717 }
 0x14c   : > { %9221 = vst [vmem:[#allocation66_spill] sm:$0xff] %v6418_v39  ;;  %2534 = vperm.xlu0 %5747, %v4749_v32   ;;  %5662 = vset.pattern.permute.xlu1 %v9219_v22 }
 0x14d   : > { %9222 = vst [vmem:[#allocation67_spill] sm:$0xff] %v6421_v50  ;;  %1066 = vperm.xlu1 %5662, %v6092_v3  }
 0x14e   : > { %1070 = vperm.xlu2 %5661, %v6104_v6  }
 0x152   : > { %v6425_v19 = vpop.permute.xlu1 %836 }
 0x153   : > { %9223 = vst [vmem:[#allocation68_spill] sm:$0xff] %v6425_v19  ;;  %v6428_v44 = vpop.permute.xlu2 %908  ;;  %v6430_v33 = vpop.permute.xlu0 %1705 }
 0x154   : > { %1941 = vperm.xlu0 %5747, %v6104_v6   ;;  %9224 = vst [vmem:[#allocation69_spill] sm:$0xff] %v6428_v44 }
 0x155   : > { %9225 = vst [vmem:[#allocation70_spill] sm:$0xff] %v6430_v33  ;;  %1074 = vperm.xlu1 %5662, %v6089_v2  }
 0x156   : > { %1078 = vperm.xlu2 %5661, %v6101_v5  }
 0x15b   : > { %v6434_v32 = vpop.permute.xlu1 %866  ;;  %v6437_v39 = vpop.permute.xlu2 %920 }
 0x15c   : > { %9226 = vst [vmem:[#allocation71_spill] sm:$0xff] %v6434_v32  ;;  %2519 = vperm.xlu0 %5747, %v6383_v14   ;;  %v6439_v10 = vpop.permute.xlu0 %1689 }
 0x15d   : > { %9227 = vst [vmem:[#allocation72_spill] sm:$0xff] %v6437_v39  ;;  %1086 = vperm.xlu1 %5662, %v6113_v8   ;;  %v6457_v39 = vld [vmem:[%s9232_s1 + $0x1] ss:$0 sm:$0xff] }
 0x15e   : > { %9228 = vst [vmem:[#allocation73_spill] sm:$0xff] %v6439_v10  ;;  %5663 = vset.pattern.permute.xlu2 %v9229_v0 }
 0x15f   : > { %1108 = vperm.xlu2 %5663, %v6116_v9  }
 0x163   : > { %v6444_v44 = vpop.permute.xlu1 %874  ;;  %v6447_v43 = vpop.permute.xlu2 %928 }
 0x164   : > { %9230 = vst [vmem:[#allocation74_spill] sm:$0xff] %v6444_v44  ;;  %1936 = vperm.xlu0 %5747, %v6092_v3   ;;  %v6450_v32 = vpop.permute.xlu0 %562 }
 0x165   : > { %9231 = vst [vmem:[#allocation75_spill] sm:$0xff] %v6447_v43  ;;  %5664 = vset.pattern.permute.xlu1 %v9229_v0  ;;  %v1278_v43 = vmul.f32 %v6457_v39, %v6364_v25 }
 0x166   : > { %1116 = vperm.xlu1 %5664, %v6092_v3  }
 0x167   : > { %1120 = vperm.xlu2 %5663, %v6104_v6  }
 0x16b   : > { %v6459_v10 = vpop.permute.xlu1 %886 }
 0x16c   : > { %9233 = vst [vmem:[#allocation76_spill] sm:$0xff] %v6459_v10  ;;  %2514 = vperm.xlu0 %5747, %v6195_v31   ;;  %v6469_v44 = vpop.permute.xlu0 %582 }
 0x16d   : > { %v6471_v46 = vpop.permute.xlu2 %958  ;;  %v1262_v58 = vmul.f32 %v6464_v11, %v6469_v44 }
 0x16e   : > { %9234 = vst [vmem:[#allocation77_spill] sm:$0xff] %v6471_v46  ;;  %1124 = vperm.xlu1 %5664, %v6089_v2   ;;  %v9239_v46 = vmov 14  }
 0x16f   : > { %1128 = vperm.xlu2 %5663, %v6101_v5   ;;  %v1286_v10 = vadd.f32 %v1278_v43, %v1262_v58 }
 0x174   : > { %5769 = vset.pattern.permute.xlu0 %v9235_v29  ;;  %v6478_v50 = vpop.permute.xlu1 %916  ;;  %v6481_v18 = vpop.permute.xlu0 %2062 }
 0x175   : > { %9236 = vst [vmem:[#allocation78_spill] sm:$0xff] %v6478_v50  ;;  %762 = vperm.xlu0 %5769, %v6095_v4   ;;  %v6483_v33 = vpop.permute.xlu2 %970 }
 0x176   : > { %9237 = vst [vmem:[#allocation79_spill] sm:$0xff] %v6481_v18  ;;  %1136 = vperm.xlu1 %5664, %v6113_v8  }
 0x177   : > { %9238 = vst [vmem:[#allocation80_spill] sm:$0xff] %v6483_v33  ;;  %5665 = vset.pattern.permute.xlu2 %v9239_v46 }
 0x178   : > { %1158 = vperm.xlu2 %5665, %v6116_v9  }
 0x17c   : > { %v6488_v16 = vpop.permute.xlu1 %924  ;;  %v6491_v43 = vpop.permute.xlu0 %2046 }
 0x17d   : > { %9240 = vst [vmem:[#allocation81_spill] sm:$0xff] %v6488_v16  ;;  %782 = vperm.xlu0 %5769, %v6107_v7   ;;  %v6493_v58 = vpop.permute.xlu2 %978 }
 0x17e   : > { %9241 = vst [vmem:[#allocation82_spill] sm:$0xff] %v6491_v43  ;;  %5667 = vset.pattern.permute.xlu1 %v9239_v46  ;;  %v9246_v43 = vmov 1  }
 0x17f   : > { %9242 = vst [vmem:[#allocation83_spill] sm:$0xff] %v6493_v58  ;;  %1166 = vperm.xlu1 %5667, %v6092_v3  }
 0x180   : > { %1170 = vperm.xlu2 %5665, %v6104_v6  }
 0x184   : > { %v6498_v50 = vpop.permute.xlu1 %936 }
 0x185   : > { %9243 = vst [vmem:[#allocation84_spill] sm:$0xff] %v6498_v50  ;;  %2234 = vperm.xlu0 %5769, %v6104_v6   ;;  %v6501_v29 = vpop.permute.xlu0 %451  ;;  %v9249_v50 = vmov 15  }
 0x186   : > { %9244 = vst [vmem:[#allocation85_spill] sm:$0xff] %v6501_v29  ;;  %v6503_v33 = vpop.permute.xlu2 %1008 }
 0x187   : > { %9245 = vst [vmem:[#allocation86_spill] sm:$0xff] %v6503_v33  ;;  %1174 = vperm.xlu1 %5667, %v6089_v2  }
 0x188   : > { %1178 = vperm.xlu2 %5665, %v6101_v5  }
 0x18d   : > { %5780 = vset.pattern.permute.xlu0 %v9246_v43  ;;  %v6508_v16 = vpop.permute.xlu1 %966 }
 0x18e   : > { %9247 = vst [vmem:[#allocation87_spill] sm:$0xff] %v6508_v16  ;;  %512 = vperm.xlu0 %5780, %v6095_v4   ;;  %v6511_v46 = vpop.permute.xlu0 %456 }
 0x18f   : > { %v6513_v58 = vpop.permute.xlu2 %1020  ;;  %1186 = vperm.xlu1 %5667, %v6113_v8  }
 0x190   : > { %9248 = vst [vmem:[#allocation88_spill] sm:$0xff] %v6513_v58  ;;  %5668 = vset.pattern.permute.xlu2 %v9249_v50  ;;  %v6531_v58 = vld [vmem:[%s9232_s1 + $0x2] ss:$0 sm:$0xff] }
 0x191   : > { %1208 = vperm.xlu2 %5668, %v6116_v9  }
 0x195   : > { %v6518_v29 = vpop.permute.xlu1 %974 }
 0x196   : > { %9250 = vst [vmem:[#allocation89_spill] sm:$0xff] %v6518_v29  ;;  %532 = vperm.xlu0 %5780, %v6107_v7   ;;  %v6521_v33 = vpop.permute.xlu0 %481 }
 0x197   : > { %v6523_v16 = vpop.permute.xlu2 %1028  ;;  %5670 = vset.pattern.permute.xlu1 %v9249_v50 }
 0x198   : > { %9251 = vst [vmem:[#allocation90_spill] sm:$0xff] %v6523_v16  ;;  %1216 = vperm.xlu1 %5670, %v6092_v3  }
 0x199   : > { %1220 = vperm.xlu2 %5668, %v6104_v6  }
 0x19d   : > { %v6533_v9 = vpop.permute.xlu1 %986 }
 0x19e   : > { %9252 = vst [vmem:[#allocation91_spill] sm:$0xff] %v6533_v9  ;;  %1369 = vperm.xlu0 %5780, %v6195_v31   ;;  %v1329_v18 = vpop.permute.xlu0 %1328 }
 0x19f   : > { %v1342_v29 = vmul.f32 %v6531_v58, %v1329_v18 }
 0x1a0   : > { %v6537_v62 = vpop.permute.xlu2 %1058  ;;  %1224 = vperm.xlu1 %5670, %v6089_v2  }
 0x1a1   : > { %9253 = vst [vmem:[#allocation92_spill] sm:$0xff] %v6537_v62  ;;  %v6540_v16 = vadd.f32 %v1342_v29, %v1286_v10  ;;  %1228 = vperm.xlu2 %5668, %v6101_v5   ;;  %v1793_v62 = vmul.f32 %v6464_v11, %v6181_v26 }
 0x1a6   : > { %2002 = vperm.xlu0 %5780, %v6544_v1   ;;  %v6547_v28 = vpop.permute.xlu0 %1323  ;;  %v6549_v40 = vpop.permute.xlu1 %1016 }
 0x1a7   : > { %9255 = vst [vmem:[#allocation94_spill] sm:$0xff] %v6547_v28 }
 0x1a8   : > { %9256 = vst [vmem:[#allocation95_spill] sm:$0xff] %v6549_v40  ;;  %v6551_v9 = vpop.permute.xlu2 %1070  ;;  %5671 = vset.pattern.permute.xlu1 %v9201_v24  ;;  %v9264_v40 = vmov 8  }
 0x1a9   : > { %9257 = vst [vmem:[#allocation96_spill] sm:$0xff] %v6551_v9  ;;  %5672 = vset.pattern.permute.xlu2 %v9246_v43  ;;  %1333 = vperm.xlu1 %5671, %v6268_v56   ;;  %v1809_v9 = vmul.f32 %v6457_v39, %v6295_v15 }
 0x1aa   : > { %1377 = vperm.xlu2 %5672, %v6370_v38  }
 0x1ab   : > { %v1817_v28 = vadd.f32 %v1809_v9, %v1793_v62  ;;  %v6605_v62 = vld [vmem:[%s9232_s1 + $0x4] ss:$0 sm:$0xff]  ;;  %v9268_v9 = vmov 9  }
 0x1ae   : > { %2574 = vperm.xlu0 %5780, %v6370_v38   ;;  %v6558_v2 = vpop.permute.xlu0 %1313  ;;  %v6560_v5 = vpop.permute.xlu1 %1024 }
 0x1af   : > { %9258 = vst [vmem:[#allocation97_spill] sm:$0xff] %v6558_v2 }
 0x1b0   : > { %9259 = vst [vmem:[#allocation98_spill] sm:$0xff] %v6560_v5  ;;  %v6562_v10 = vpop.permute.xlu2 %1078  ;;  %v6583_v5 = vld [vmem:[%s6086_s24 + $0x11] sm:$0xff] }
 0x1b1   : > { %9260 = vst [vmem:[#allocation99_spill] sm:$0xff] %v6562_v10  ;;  %5673 = vset.pattern.permute.xlu1 %v9246_v43 }
 0x1b2   : > { %5674 = vset.pattern.permute.xlu2 %v9201_v24  ;;  %1381 = vperm.xlu1 %5673, %v6268_v56  }
 0x1b3   : > { %1318 = vperm.xlu2 %5674, %v6195_v31  }
 0x1b6   : > { %2566 = vperm.xlu0 %5780, %v6195_v31   ;;  %v6569_v18 = vpop.permute.xlu1 %1036  ;;  %v6571_v29 = vpop.permute.xlu0 %1966 }
 0x1b7   : > { %9261 = vst [vmem:[#allocation100_spill] sm:$0xff] %v6569_v18 }
 0x1b8   : > { %9262 = vst [vmem:[#allocation101_spill] sm:$0xff] %v6571_v29  ;;  %v1825_v29 = vmul.f32 %v6531_v58, %v6204_v34 }
 0x1b9   : > { %v6577_v10 = vpop.permute.xlu2 %1108 }
 0x1ba   : > { %9263 = vst [vmem:[#allocation102_spill] sm:$0xff] %v6577_v10  ;;  %5675 = vset.pattern.permute.xlu1 %v9264_v40  ;;  %v6594_v10 = vld [vmem:[%s9232_s1 + $0x3] ss:$0 sm:$0xff]  ;;  %v1833_v35 = vadd.f32 %v1825_v29, %v1817_v28  ;;  %v1857_v28 = vmul.f32 %v6605_v62, %v6402_v20  ;;  %v9269_v29 = vmov 5   ;;  %v6631_v20 = vld [vmem:[%s9232_s1 + $0x6] ss:$0 sm:$0xff] }
 0x1bb   : > { %5676 = vset.pattern.permute.xlu2 %v9264_v40  ;;  %1585 = vperm.xlu1 %5675, %v6370_v38   ;;  %v1841_v2 = vmul.f32 %v6594_v10, %v6228_v42 }
 0x1bc   : > { %1589 = vperm.xlu2 %5676, %v6268_v56  }
 0x1be   : > { %2554 = vperm.xlu0 %5780, %v6583_v5   ;;  %v6589_v18 = vpop.permute.xlu0 %2534 }
 0x1bf   : > { %9265 = vst [vmem:[#allocation103_spill] sm:$0xff] %v6589_v18  ;;  %v6596_v52 = vpop.permute.xlu1 %1066  ;;  %v1849_v18 = vadd.f32 %v1841_v2, %v1833_v35 }
 0x1c0   : > { %9266 = vst [vmem:[#allocation104_spill] sm:$0xff] %v6596_v52  ;;  %v6619_v52 = vld [vmem:[%s9232_s1 + $0x5] ss:$0 sm:$0xff] }
 0x1c1   : > { %v6600_v36 = vpop.permute.xlu2 %1120  ;;  %v1873_v35 = vmul.f32 %v6619_v52, %v6325_v13  ;;  %v1865_v2 = vadd.f32 %v1857_v28, %v1849_v18  ;;  %v6644_v28 = vld [vmem:[%s9232_s1 + $0x7] ss:$0 sm:$0xff] }
 0x1c2   : > { %9267 = vst [vmem:[#allocation105_spill] sm:$0xff] %v6600_v36 }
 0x1c3   : > { %5677 = vset.pattern.permute.xlu1 %v9246_v43 }
 0x1c4   : > { %5678 = vset.pattern.permute.xlu2 %v9268_v9  ;;  %1373 = vperm.xlu1 %5677, %v6383_v14  }
 0x1c5   : > { %1633 = vperm.xlu2 %5678, %v6370_v38  }
 0x1c6   : > { %5788 = vset.pattern.permute.xlu0 %v9269_v29  ;;  %v6614_v36 = vpop.permute.xlu0 %1941 }
 0x1c7   : > { %9270 = vst [vmem:[#allocation106_spill] sm:$0xff] %v6614_v36  ;;  %712 = vperm.xlu0 %5788, %v6095_v4   ;;  %v6622_v47 = vpop.permute.xlu1 %1074  ;;  %v1881_v36 = vadd.f32 %v1873_v35, %v1865_v2  ;;  %v1905_v2 = vmul.f32 %v6644_v28, %v6272_v57 }
 0x1c8   : > { %9271 = vst [vmem:[#allocation107_spill] sm:$0xff] %v6622_v47  ;;  %v1889_v47 = vmul.f32 %v6631_v20, %v6248_v49  ;;  %v6656_v49 = vld [vmem:[%s9232_s1 + $0x8] ss:$0 sm:$0xff] }
 0x1c9   : > { %v6626_v19 = vpop.permute.xlu2 %1128 }
 0x1ca   : > { %9272 = vst [vmem:[#allocation108_spill] sm:$0xff] %v6626_v19  ;;  %v1897_v35 = vadd.f32 %v1889_v47, %v1881_v36 }
 0x1cc   : > { %5679 = vset.pattern.permute.xlu1 %v9268_v9  ;;  %v1913_v59 = vadd.f32 %v1905_v2, %v1897_v35 }
 0x1cd   : > { %5680 = vset.pattern.permute.xlu2 %v9201_v24  ;;  %1637 = vperm.xlu1 %5679, %v6268_v56  }
 0x1ce   : > { %1308 = vperm.xlu2 %5680, %v6166_v21   ;;  %v6639_v18 = vpop.permute.xlu0 %2519 }
 0x1cf   : > { %9273 = vst [vmem:[#allocation109_spill] sm:$0xff] %v6639_v18  ;;  %732 = vperm.xlu0 %5788, %v6107_v7   ;;  %v6647_v13 = vpop.permute.xlu1 %1086  ;;  %v9276_v18 = vmov 4  }
 0x1d0   : > { %9274 = vst [vmem:[#allocation110_spill] sm:$0xff] %v6647_v13 }
 0x1d2   : > { %v6651_v19 = vpop.permute.xlu2 %1158 }
 0x1d3   : > { %9275 = vst [vmem:[#allocation111_spill] sm:$0xff] %v6651_v19 }
 0x1d5   : > { %5681 = vset.pattern.permute.xlu1 %v9276_v18 }
 0x1d6   : > { %5682 = vset.pattern.permute.xlu2 %v9276_v18  ;;  %1457 = vperm.xlu1 %5681, %v6370_v38   ;;  %v1937_v12 = vpop.permute.xlu0 %1936 }
 0x1d7   : > { %1509 = vperm.xlu0 %5788, %v6268_v56   ;;  %1461 = vperm.xlu2 %5682, %v6268_v56   ;;  %v1970_v36 = vmul.f32 %v6656_v49, %v1937_v12 }
 0x1d8   : > { %v6664_v47 = vpop.permute.xlu1 %1116 }
 0x1d9   : > { %9277 = vst [vmem:[#allocation112_spill] sm:$0xff] %v6664_v47  ;;  %v6666_v57 = vadd.f32 %v1970_v36, %v1913_v59 }
 0x1da   : > { %v6668_v19 = vpop.permute.xlu2 %1170 }
 0x1db   : > { %9278 = vst [vmem:[#allocation113_spill] sm:$0xff] %v6666_v57 }
 0x1dc   : > { %9279 = vst [vmem:[#allocation114_spill] sm:$0xff] %v6668_v19  ;;  %v4734_v19 = vld [vmem:[%s6086_s24 + $0x10] sm:$0xff] }
 0x1de   : > { %5683 = vset.pattern.permute.xlu1 %v9264_v40  ;;  %v6671_v35 = vpop.permute.xlu0 %2514 }
 0x1df   : > { %9280 = vst [vmem:[#allocation115_spill] sm:$0xff] %v6671_v35  ;;  %2194 = vperm.xlu0 %5788, %v6544_v1   ;;  %5684 = vset.pattern.permute.xlu2 %v9264_v40  ;;  %v9285_v35 = vmov 7  }
 0x1e0   : > { %1577 = vperm.xlu1 %5683, %v6195_v31   ;;  %1581 = vperm.xlu2 %5684, %v6383_v14   ;;  %v6677_v2 = vpop.permute.xlu1 %1124 }
 0x1e1   : > { %9281 = vst [vmem:[#allocation116_spill] sm:$0xff] %v6677_v2 }
 0x1e2   : > { %v6679_v12 = vpop.permute.xlu2 %1178 }
 0x1e3   : > { %9282 = vst [vmem:[#allocation117_spill] sm:$0xff] %v6679_v12 }
 0x1e7   : > { %2182 = vperm.xlu0 %5788, %v6092_v3   ;;  %v6682_v59 = vpop.permute.xlu0 %762 }
 0x1e8   : > { %5686 = vset.pattern.permute.xlu1 %v9249_v50  ;;  %5687 = vset.pattern.permute.xlu2 %v9246_v43  ;;  %v6686_v36 = vpop.permute.xlu1 %1136 }
 0x1e9   : > { %9283 = vst [vmem:[#allocation118_spill] sm:$0xff] %v6686_v36  ;;  %1236 = vperm.xlu1 %5686, %v6113_v8   ;;  %1361 = vperm.xlu2 %5687, %v6166_v21  }
 0x1eb   : > { %v6690_v57 = vpop.permute.xlu2 %1208 }
 0x1ec   : > { %9284 = vst [vmem:[#allocation119_spill] sm:$0xff] %v6690_v57  ;;  %v591_v57 = vmul.f32 %v6531_v58, %v6450_v32 }
 0x1ef   : > { %5792 = vset.pattern.permute.xlu0 %v9285_v35  ;;  %v6693_v47 = vpop.permute.xlu0 %782 }
 0x1f0   : > { %812 = vperm.xlu0 %5792, %v6095_v4  }
 0x1f1   : > { %5688 = vset.pattern.permute.xlu1 %v9246_v43  ;;  %5689 = vset.pattern.permute.xlu2 %v9269_v29  ;;  %v6698_v3 = vpop.permute.xlu1 %1166 }
 0x1f2   : > { %9286 = vst [vmem:[#allocation120_spill] sm:$0xff] %v6698_v3  ;;  %1365 = vperm.xlu1 %5688, %v6396_v23   ;;  %1505 = vperm.xlu2 %5689, %v6370_v38  }
 0x1f3   : > { %v6702_v8 = vpop.permute.xlu2 %1220 }
 0x1f4   : > { %9287 = vst [vmem:[#allocation121_spill] sm:$0xff] %v6702_v8  ;;  %v491_v8 = vmul.f32 %v6464_v11, %v6511_v46  ;;  %v1406_v46 = vmul.f32 %v6605_v62, %v6693_v47 }
 0x1f7   : > { %v6704_v50 = vpop.permute.xlu0 %2234 }
 0x1f8   : > { %9288 = vst [vmem:[#allocation122_spill] sm:$0xff] %v6704_v50  ;;  %832 = vperm.xlu0 %5792, %v6107_v7  }
 0x1f9   : > { %v6707_v35 = vpop.permute.xlu1 %1174 }
 0x1fa   : > { %9289 = vst [vmem:[#allocation123_spill] sm:$0xff] %v6707_v35  ;;  %5690 = vset.pattern.permute.xlu1 %v9268_v9  ;;  %5691 = vset.pattern.permute.xlu2 %v9268_v9 }
 0x1fb   : > { %1625 = vperm.xlu1 %5690, %v6195_v31   ;;  %1629 = vperm.xlu2 %5691, %v6383_v14   ;;  %v6713_v3 = vpop.permute.xlu2 %1228 }
 0x1fc   : > { %9290 = vst [vmem:[#allocation124_spill] sm:$0xff] %v6713_v3 }
 0x200   : > { %2274 = vperm.xlu0 %5792, %v4734_v19   ;;  %v513_v50 = vpop.permute.xlu0 %512 }
 0x201   : > { %v541_v2 = vmul.f32 %v6457_v39, %v513_v50  ;;  %v6721_v36 = vpop.permute.xlu1 %1186  ;;  %v496_v50 = vmul.f32 %v6464_v11, %v6521_v33 }
 0x202   : > { %9291 = vst [vmem:[#allocation125_spill] sm:$0xff] %v6721_v36  ;;  %v596_v36 = vmul.f32 %v6531_v58, %v6469_v44 }
 0x203   : > { %v549_v13 = vadd.f32 %v541_v2, %v491_v8  ;;  %5692 = vset.pattern.permute.xlu1 %v9201_v24  ;;  %5693 = vset.pattern.permute.xlu2 %v9201_v24 }
 0x204   : > { %1298 = vperm.xlu1 %5692, %v6290_v63   ;;  %v1378_v3 = vpop.permute.xlu2 %1377  ;;  %1303 = vperm.xlu2 %5693, %v6583_v5  }
 0x205   : > { %v6728_v19 = vadd.f32 %v591_v57, %v549_v13  ;;  %v1390_v12 = vmul.f32 %v6594_v10, %v1378_v3 }
 0x207   : > { %v1398_v2 = vadd.f32 %v1390_v12, %v6540_v16 }
 0x208   : > { %5797 = vset.pattern.permute.xlu0 %v9276_v18  ;;  %v533_v8 = vpop.permute.xlu0 %532 }
 0x209   : > { %v546_v35 = vmul.f32 %v6457_v39, %v533_v8  ;;  %662 = vperm.xlu0 %5797, %v6095_v4   ;;  %v6740_v13 = vadd.f32 %v1406_v46, %v1398_v2 }
 0x20a   : > { %v6742_v57 = vpop.permute.xlu1 %1216 }
 0x20b   : > { %9292 = vst [vmem:[#allocation126_spill] sm:$0xff] %v6742_v57  ;;  %v554_v3 = vadd.f32 %v546_v35, %v496_v50 }
 0x20c   : > { %5694 = vset.pattern.permute.xlu1 %v9276_v18  ;;  %5695 = vset.pattern.permute.xlu2 %v9264_v40 }
 0x20d   : > { %v6745_v33 = vadd.f32 %v596_v36, %v554_v3  ;;  %1453 = vperm.xlu1 %5694, %v6383_v14   ;;  %v6749_v16 = vpop.permute.xlu2 %1318  ;;  %1569 = vperm.xlu2 %5695, %v6166_v21  }
 0x210   : > { %v6752_v44 = vpop.permute.xlu0 %1369 }
 0x211   : > { %682 = vperm.xlu0 %5797, %v6107_v7  }
 0x212   : > { %v6755_v4 = vpop.permute.xlu1 %1224 }
 0x213   : > { %9293 = vst [vmem:[#allocation127_spill] sm:$0xff] %v6755_v4 }
 0x215   : > { %5696 = vset.pattern.permute.xlu1 %v9264_v40  ;;  %5697 = vset.pattern.permute.xlu2 %v9219_v22 }
 0x216   : > { %1573 = vperm.xlu1 %5696, %v6396_v23   ;;  %1713 = vperm.xlu2 %5697, %v6370_v38   ;;  %v6761_v35 = vpop.permute.xlu2 %1589 }
 0x217   : > { %9294 = vst [vmem:[#allocation128_spill] sm:$0xff] %v6761_v35 }
 0x218   : > { %v6763_v12 = vpop.permute.xlu0 %2002 }
 0x219   : > { %9295 = vst [vmem:[#allocation129_spill] sm:$0xff] %v6763_v12  ;;  %1449 = vperm.xlu0 %5797, %v6195_v31  }
 0x21b   : > { %v6766_v36 = vpop.permute.xlu1 %1333 }
 0x21e   : > { %5698 = vset.pattern.permute.xlu1 %v9246_v43  ;;  %5699 = vset.pattern.permute.xlu2 %v9246_v43 }
 0x21f   : > { %1353 = vperm.xlu1 %5698, %v6290_v63   ;;  %v6771_v7 = vpop.permute.xlu2 %1633  ;;  %1357 = vperm.xlu2 %5699, %v6583_v5  }
 0x220   : > { %v6774_v46 = vpop.permute.xlu0 %2574 }
 0x221   : > { %9296 = vst [vmem:[#allocation130_spill] sm:$0xff] %v6774_v46  ;;  %2146 = vperm.xlu0 %5797, %v6544_v1  }
 0x224   : > { %v6777_v50 = vpop.permute.xlu1 %1381 }
 0x227   : > { %5700 = vset.pattern.permute.xlu1 %v9269_v29  ;;  %5701 = vset.pattern.permute.xlu2 %v9269_v29 }
 0x228   : > { %1497 = vperm.xlu1 %5700, %v6195_v31   ;;  %v6782_v2 = vpop.permute.xlu2 %1308  ;;  %v6784_v8 = vpop.permute.xlu0 %2566  ;;  %1501 = vperm.xlu2 %5701, %v6383_v14  }
 0x229   : > { %9297 = vst [vmem:[#allocation131_spill] sm:$0xff] %v6782_v2  ;;  %2138 = vperm.xlu0 %5797, %v6104_v6  }
 0x22a   : > { %9298 = vst [vmem:[#allocation132_spill] sm:$0xff] %v6784_v8  ;;  %v6802_v8 = vld [vmem:[%s6086_s24 + $0x70] sm:$0xff] }
 0x22b   : > { %9303 = vst [vmem:[#allocation137_spill] sm:$0xff] %v6802_v8 }
 0x22d   : > { %v6788_v3 = vpop.permute.xlu1 %1585 }
 0x22e   : > { %9299 = vst [vmem:[#allocation133_spill] sm:$0xff] %v6788_v3 }
 0x230   : > { %5703 = vset.pattern.permute.xlu1 %v9268_v9  ;;  %v6791_v46 = vpop.permute.xlu0 %2554  ;;  %5704 = vset.pattern.permute.xlu2 %v9229_v0 }
 0x231   : > { %9300 = vst [vmem:[#allocation134_spill] sm:$0xff] %v6791_v46  ;;  %1621 = vperm.xlu1 %5703, %v6396_v23   ;;  %v6795_v57 = vpop.permute.xlu2 %1461  ;;  %1761 = vperm.xlu2 %5704, %v6370_v38  }
 0x232   : > { %9301 = vst [vmem:[#allocation135_spill] sm:$0xff] %v6795_v57  ;;  %2654 = vperm.xlu0 %5797, %v6370_v38  }
 0x236   : > { %v6799_v31 = vpop.permute.xlu1 %1373 }
 0x237   : > { %9302 = vst [vmem:[#allocation136_spill] sm:$0xff] %v6799_v31 }
 0x239   : > { %5705 = vset.pattern.permute.xlu1 %v9229_v0  ;;  %v6805_v6 = vpop.permute.xlu0 %712  ;;  %5706 = vset.pattern.permute.xlu2 %v9201_v24 }
 0x23a   : > { %1765 = vperm.xlu1 %5705, %v6268_v56   ;;  %1961 = vperm.xlu2 %5706, %v6802_v8   ;;  %v6810_v46 = vpop.permute.xlu2 %1581 }
 0x23b   : > { %9304 = vst [vmem:[#allocation138_spill] sm:$0xff] %v6810_v46 }
 0x23f   : > { %v6812_v12 = vpop.permute.xlu1 %1637 }
 0x240   : > { %9305 = vst [vmem:[#allocation139_spill] sm:$0xff] %v6812_v12 }
 0x241   : > { %v6814_v2 = vpop.permute.xlu0 %732 }
 0x242   : > { %5707 = vset.pattern.permute.xlu1 %v9276_v18  ;;  %5708 = vset.pattern.permute.xlu2 %v9276_v18 }
 0x243   : > { %1441 = vperm.xlu1 %5707, %v6166_v21   ;;  %1445 = vperm.xlu2 %5708, %v6396_v23   ;;  %v6820_v38 = vpop.permute.xlu2 %1361 }
 0x244   : > { %9306 = vst [vmem:[#allocation140_spill] sm:$0xff] %v6820_v38 }
 0x248   : > { %v1458_v4 = vpop.permute.xlu1 %1457 }
 0x249   : > { %v6822_v56 = vpop.permute.xlu0 %1509 }
 0x24a   : > { %9307 = vst [vmem:[#allocation141_spill] sm:$0xff] %v6822_v56  ;;  %v9313_v56 = vmov 2  }
 0x24b   : > { %5709 = vset.pattern.permute.xlu1 %v9264_v40  ;;  %5710 = vset.pattern.permute.xlu2 %v9264_v40 }
 0x24c   : > { %1561 = vperm.xlu1 %5709, %v6290_v63   ;;  %1565 = vperm.xlu2 %5710, %v6583_v5   ;;  %v1506_v46 = vpop.permute.xlu2 %1505 }
 0x251   : > { %v6828_v12 = vpop.permute.xlu0 %2194 }
 0x252   : > { %9308 = vst [vmem:[#allocation142_spill] sm:$0xff] %v6828_v12  ;;  %v6830_v31 = vpop.permute.xlu1 %1577 }
 0x253   : > { %9309 = vst [vmem:[#allocation143_spill] sm:$0xff] %v6830_v31  ;;  %v646_v31 = vmul.f32 %v6594_v10, %v6364_v25 }
 0x254   : > { %5711 = vset.pattern.permute.xlu1 %v9219_v22  ;;  %5712 = vset.pattern.permute.xlu2 %v9246_v43 }
 0x255   : > { %1709 = vperm.xlu1 %5711, %v6383_v14   ;;  %2010 = vperm.xlu2 %5712, %v6802_v8   ;;  %v6836_v38 = vpop.permute.xlu2 %1629 }
 0x256   : > { %9310 = vst [vmem:[#allocation144_spill] sm:$0xff] %v6836_v38 }
 0x259   : > { %v6838_v40 = vpop.permute.xlu0 %2182 }
 0x25a   : > { %9311 = vst [vmem:[#allocation145_spill] sm:$0xff] %v6838_v40  ;;  %v6853_v40 = vadd.f32 %v646_v31, %v6745_v33 }
 0x25b   : > { %v6840_v35 = vpop.permute.xlu1 %1236 }
 0x25c   : > { %9312 = vst [vmem:[#allocation146_spill] sm:$0xff] %v6840_v35  ;;  %v1470_v35 = vmul.f32 %v6631_v20, %v1458_v4 }
 0x25d   : > { %5713 = vset.pattern.permute.xlu1 %v9246_v43  ;;  %5714 = vset.pattern.permute.xlu2 %v9313_v56  ;;  %v1518_v56 = vmul.f32 %v6644_v28, %v1506_v46  ;;  %v1814_v43 = vmul.f32 %v6457_v39, %v6304_v27 }
 0x25e   : > { %2014 = vperm.xlu1 %5713, %v6226_v41   ;;  %2058 = vperm.xlu2 %5714, %v6802_v8   ;;  %v1304_v12 = vpop.permute.xlu2 %1303 }
 0x262   : > { %v6848_v22 = vpop.permute.xlu0 %812 }
 0x264   : > { %v6850_v57 = vpop.permute.xlu1 %1365 }
 0x265   : > { %9314 = vst [vmem:[#allocation147_spill] sm:$0xff] %v6850_v57  ;;  %v1263_v57 = vmul.f32 %v6464_v11, %v6263_v54  ;;  %v796_v54 = vmul.f32 %v6631_v20, %v6693_v47 }
 0x266   : > { %5715 = vset.pattern.permute.xlu1 %v9269_v29  ;;  %5716 = vset.pattern.permute.xlu2 %v9269_v29 }
 0x267   : > { %1489 = vperm.xlu1 %5715, %v6166_v21   ;;  %1493 = vperm.xlu2 %5716, %v6396_v23   ;;  %v6859_v41 = vpop.permute.xlu2 %1569  ;;  %v1273_v21 = vmul.f32 %v6457_v39, %v6355_v17 }
 0x268   : > { %9315 = vst [vmem:[#allocation148_spill] sm:$0xff] %v6859_v41  ;;  %v1257_v41 = vmul.f32 %v6464_v11, %v6450_v32  ;;  %v641_v32 = vmul.f32 %v6594_v10, %v6355_v17 }
 0x26a   : > { %v6861_v38 = vpop.permute.xlu0 %832  ;;  %v1281_v46 = vadd.f32 %v1273_v21, %v1257_v41 }
 0x26b   : > { %v1422_v25 = vmul.f32 %v6619_v52, %v6861_v38  ;;  %v846_v47 = vmul.f32 %v6644_v28, %v6861_v38 }
 0x26d   : > { %v1430_v33 = vadd.f32 %v1422_v25, %v6740_v13  ;;  %v6867_v31 = vpop.permute.xlu1 %1625 }
 0x26e   : > { %9316 = vst [vmem:[#allocation149_spill] sm:$0xff] %v6867_v31 }
 0x26f   : > { %v1478_v29 = vadd.f32 %v1470_v35, %v1430_v33  ;;  %5717 = vset.pattern.permute.xlu1 %v9268_v9  ;;  %5718 = vset.pattern.permute.xlu2 %v9268_v9  ;;  %v1534_v35 = vmul.f32 %v6656_v49, %v6214_v37  ;;  %v6887_v9 = vld [vmem:[%s9232_s1 + $0x9] ss:$0 sm:$0xff]  ;;  %v1337_v33 = vmul.f32 %v6531_v58, %v1304_v12  ;;  %v6904_v12 = vld [vmem:[%s9232_s1 + $0xa] ss:$0 sm:$0xff] }
 0x270   : > { %1609 = vperm.xlu1 %5717, %v6290_v63   ;;  %1613 = vperm.xlu2 %5718, %v6583_v5   ;;  %v6878_v13 = vpop.permute.xlu2 %1713 }
 0x271   : > { %v1526_v4 = vadd.f32 %v1518_v56, %v1478_v29  ;;  %v1550_v56 = vmul.f32 %v6887_v9, %v6237_v45  ;;  %v1345_v41 = vadd.f32 %v1337_v33, %v1281_v46 }
 0x272   : > { %v6880_v25 = vpop.permute.xlu0 %2274 }
 0x273   : > { %9317 = vst [vmem:[#allocation150_spill] sm:$0xff] %v6880_v25  ;;  %v1542_v31 = vadd.f32 %v1534_v35, %v1526_v4  ;;  %v1798_v25 = vmul.f32 %v6464_v11, %v6191_v30  ;;  %v649_v4 = vadd.f32 %v641_v32, %v6728_v19  ;;  %v1401_v35 = vmul.f32 %v6605_v62, %v6682_v59  ;;  %v6923_v19 = vld [vmem:[%s9232_s1 + $0xb] ss:$0 sm:$0xff] }
 0x274   : > { %v1417_v32 = vmul.f32 %v6619_v52, %v6848_v22 }
 0x275   : > { %v1558_v17 = vadd.f32 %v1550_v56, %v1542_v31  ;;  %v1830_v31 = vmul.f32 %v6531_v58, %v6214_v37  ;;  %v1822_v46 = vadd.f32 %v1814_v43, %v1798_v25  ;;  %v1279_v43 = vmul.f32 %v6457_v39, %v6298_v48 }
 0x276   : > { %v6892_v29 = vpop.permute.xlu1 %1298  ;;  %v1862_v48 = vmul.f32 %v6605_v62, %v6411_v55 }
 0x277   : > { %9318 = vst [vmem:[#allocation151_spill] sm:$0xff] %v6892_v29  ;;  %v1598_v29 = vmul.f32 %v6904_v12, %v6788_v3  ;;  %v791_v3 = vmul.f32 %v6631_v20, %v6682_v59  ;;  %v1838_v37 = vadd.f32 %v1830_v31, %v1822_v46  ;;  %v6942_v59 = vld [vmem:[%s9232_s1 + $0xc] ss:$0 sm:$0xff]  ;;  %v9320_v46 = vmov 3  }
 0x278   : > { %5720 = vset.pattern.permute.xlu1 %v9229_v0  ;;  %5721 = vset.pattern.permute.xlu2 %v9201_v24 }
 0x279   : > { %1757 = vperm.xlu1 %5720, %v6383_v14   ;;  %1951 = vperm.xlu2 %5721, %v6544_v1   ;;  %v1358_v21 = vpop.permute.xlu2 %1357  ;;  %v741_v14 = vmul.f32 %v6619_v52, %v6805_v6  ;;  %v1606_v56 = vadd.f32 %v1598_v29, %v1558_v17  ;;  %v1343_v17 = vmul.f32 %v6531_v58, %v6766_v36 }
 0x27a   : > { %v1385_v0 = vmul.f32 %v6594_v10, %v1358_v21  ;;  %v1662_v36 = vmul.f32 %v6942_v59, %v6258_v53 }
 0x27b   : > { %v663_v23 = vpop.permute.xlu0 %662 }
 0x27c   : > { %v691_v33 = vmul.f32 %v6605_v62, %v663_v23  ;;  %v1393_v21 = vadd.f32 %v1385_v0, %v1345_v41  ;;  %v1646_v23 = vmul.f32 %v6923_v19, %v6771_v7  ;;  %v841_v0 = vmul.f32 %v6644_v28, %v6848_v22 }
 0x27d   : > { %v1846_v41 = vmul.f32 %v6594_v10, %v6237_v45  ;;  %v891_v22 = vmul.f32 %v6656_v49, %v6181_v26  ;;  %v1276_v26 = vmul.f32 %v6457_v39, %v6285_v61 }
 0x27e   : > { %v699_v1 = vadd.f32 %v691_v33, %v649_v4  ;;  %v1409_v6 = vadd.f32 %v1401_v35, %v1393_v21  ;;  %v1654_v4 = vadd.f32 %v1646_v23, %v1606_v56  ;;  %v6965_v33 = vld [vmem:[%s9232_s1 + $0xd] ss:$0 sm:$0xff]  ;;  %v941_v23 = vmul.f32 %v6887_v9, %v6295_v15 }
 0x27f   : > { %v6933_v25 = vpop.permute.xlu1 %1453 }
 0x280   : > { %v749_v29 = vadd.f32 %v741_v14, %v699_v1  ;;  %v6949_v35 = vadd.f32 %v1417_v32, %v1409_v6  ;;  %v1260_v1 = vmul.f32 %v6464_v11, %v6253_v51  ;;  %v6957_v14 = vld [vmem:[%s6086_s24 + $0x60] sm:$0xff]  ;;  %v1287_v32 = vadd.f32 %v1279_v43, %v1263_v57 }
 0x281   : > { %5722 = vset.pattern.permute.xlu1 %v9201_v24  ;;  %5723 = vset.pattern.permute.xlu2 %v9320_v46  ;;  %v746_v6 = vmul.f32 %v6619_v52, %v6814_v2  ;;  %v1678_v57 = vmul.f32 %v6965_v33, %v6281_v60  ;;  %v1854_v43 = vadd.f32 %v1846_v41, %v1838_v37  ;;  %v6993_v37 = vld [vmem:[%s9232_s1 + $0xe] ss:$0 sm:$0xff] }
 0x282   : > { %9319 = vst [vmem:[#allocation152_spill] sm:$0xff] %v6949_v35  ;;  %v799_v31 = vadd.f32 %v791_v3, %v749_v29  ;;  %1956 = vperm.xlu1 %5722, %v6957_v14   ;;  %v1391_v3 = vmul.f32 %v6594_v10, %v6777_v50  ;;  %2106 = vperm.xlu2 %5723, %v6802_v8   ;;  %v6972_v56 = vpop.permute.xlu2 %1501 }
 0x283   : > { %v683_v21 = vpop.permute.xlu0 %682  ;;  %v1351_v61 = vadd.f32 %v1343_v17, %v1287_v32  ;;  %v1670_v50 = vadd.f32 %v1662_v36, %v1654_v4  ;;  %v991_v2 = vmul.f32 %v6904_v12, %v6204_v34  ;;  %v1284_v41 = vadd.f32 %v1276_v26, %v1260_v1  ;;  %v9323_v32 = vld [vmem:[#allocation59_spill] sm:$0xff]  ;;  %v9324_v1 = vld [vmem:[#allocation62_spill] sm:$0xff] }
 0x284   : > { %v849_v29 = vadd.f32 %v841_v0, %v799_v31  ;;  %v696_v51 = vmul.f32 %v6605_v62, %v683_v21  ;;  %v1041_v0 = vmul.f32 %v6923_v19, %v6228_v42  ;;  %v1340_v4 = vmul.f32 %v6531_v58, %v6749_v16  ;;  %v9322_v31 = vld [vmem:[#allocation45_spill] sm:$0xff] }
 0x285   : > { %v1399_v17 = vadd.f32 %v1391_v3, %v1351_v61  ;;  %v1878_v36 = vmul.f32 %v6619_v52, %v9322_v31  ;;  %v1407_v21 = vmul.f32 %v6605_v62, %v9323_v32  ;;  %v1726_v61 = vmul.f32 %v6993_v37, %v6878_v13  ;;  %v9336_v32 = vld [vmem:[#allocation147_spill] sm:$0xff] }
 0x286   : > { %v899_v35 = vadd.f32 %v891_v22, %v849_v29  ;;  %v704_v15 = vadd.f32 %v696_v51, %v6853_v40  ;;  %v1686_v29 = vadd.f32 %v1678_v57, %v1670_v50  ;;  %v1091_v16 = vmul.f32 %v6942_v59, %v9324_v1 }
 0x287   : > { %v1870_v26 = vadd.f32 %v1862_v48, %v1854_v43  ;;  %v1415_v57 = vadd.f32 %v1407_v21, %v1399_v17  ;;  %v9325_v48 = vld [vmem:[#allocation68_spill] sm:$0xff]  ;;  %v1348_v43 = vadd.f32 %v1340_v4, %v1284_v41  ;;  %v1894_v41 = vmul.f32 %v6631_v20, %v6258_v53 }
 0x288   : > { %v949_v51 = vadd.f32 %v941_v23, %v899_v35  ;;  %v754_v40 = vadd.f32 %v746_v6, %v704_v15  ;;  %v6999_v22 = vpop.permute.xlu1 %1573  ;;  %v896_v35 = vmul.f32 %v6656_v49, %v6191_v30  ;;  %v7015_v23 = vld [vmem:[%s9232_s1 + $0xf] ss:$0 sm:$0xff]  ;;  %v946_v6 = vmul.f32 %v6887_v9, %v6304_v27 }
 0x289   : > { %9321 = vst [vmem:[#allocation153_spill] sm:$0xff] %v6999_v22  ;;  %v1734_v17 = vadd.f32 %v1726_v61, %v1686_v29  ;;  %v9331_v29 = vld [vmem:[#allocation16_spill] sm:$0xff] }
 0x28a   : > { %v999_v3 = vadd.f32 %v991_v2, %v949_v51  ;;  %v804_v38 = vadd.f32 %v796_v54, %v754_v40  ;;  %5724 = vset.pattern.permute.xlu1 %v9276_v18  ;;  %5725 = vset.pattern.permute.xlu2 %v9276_v18  ;;  %v1423_v54 = vmul.f32 %v6619_v52, %v9325_v48  ;;  %v9326_v51 = vld [vmem:[#allocation135_spill] sm:$0xff] }
 0x28b   : > { %1433 = vperm.xlu1 %5724, %v6290_v63   ;;  %1437 = vperm.xlu2 %5725, %v6583_v5   ;;  %v7024_v30 = vpop.permute.xlu2 %1761  ;;  %v1388_v2 = vmul.f32 %v6594_v10, %v6752_v44  ;;  %v1471_v27 = vmul.f32 %v6631_v20, %v9326_v51  ;;  %v1886_v40 = vadd.f32 %v1878_v36, %v1870_v26  ;;  %v9332_v51 = vld [vmem:[#allocation17_spill] sm:$0xff] }
 0x28c   : > { %v854_v50 = vadd.f32 %v846_v47, %v804_v38  ;;  %v1049_v15 = vadd.f32 %v1041_v0, %v999_v3  ;;  %v1774_v63 = vmul.f32 %v7015_v23, %v7024_v30  ;;  %v9328_v47 = vld [vmem:[#allocation24_spill] sm:$0xff]  ;;  %v1431_v1 = vadd.f32 %v1423_v54, %v1415_v57  ;;  %v9329_v3 = vld [vmem:[#allocation141_spill] sm:$0xff] }
 0x28d   : > { %v1275_v0 = vmul.f32 %v6457_v39, %v9328_v47  ;;  %v1519_v44 = vmul.f32 %v6644_v28, %v9329_v3  ;;  %v1259_v61 = vmul.f32 %v6464_v11, %v9331_v29  ;;  %v996_v36 = vmul.f32 %v6904_v12, %v9332_v51 }
 0x28e   : > { %v904_v21 = vadd.f32 %v896_v35, %v854_v50  ;;  %v7034_v4 = vadd.f32 %v1091_v16, %v1049_v15  ;;  %v7040_v38 = vadd.f32 %v1774_v63, %v1734_v17  ;;  %v1046_v16 = vmul.f32 %v6923_v19, %v6237_v45  ;;  %v9333_v35 = vld [vmem:[#allocation97_spill] sm:$0xff] }
 0x28f   : > { %v1339_v50 = vmul.f32 %v6531_v58, %v9333_v35  ;;  %v1396_v15 = vadd.f32 %v1388_v2, %v1348_v43  ;;  %v1479_v57 = vadd.f32 %v1471_v27, %v1431_v1  ;;  %v1096_v17 = vmul.f32 %v6942_v59, %v6411_v55  ;;  %v9338_v27 = vld [vmem:[#allocation27_spill] sm:$0xff] }
 0x290   : > { %9327 = vst [vmem:[#allocation45_spill] sm:$0xff] %v7034_v4  ;;  %v954_v26 = vadd.f32 %v946_v6, %v904_v21  ;;  %v1902_v3 = vadd.f32 %v1894_v41, %v1886_v40  ;;  %v1910_v47 = vmul.f32 %v6644_v28, %v6281_v60  ;;  %v9335_v6 = vld [vmem:[#allocation56_spill] sm:$0xff]  ;;  %v1283_v29 = vadd.f32 %v1275_v0, %v1259_v61  ;;  %v1450_v40 = vpop.permute.xlu0 %1449  ;;  %v9339_v61 = vld [vmem:[#allocation91_spill] sm:$0xff] }
 0x291   : > { %9330 = vst [vmem:[#allocation62_spill] sm:$0xff] %v7040_v38  ;;  %v7050_v54 = vpop.permute.xlu1 %1353  ;;  %v1404_v21 = vmul.f32 %v6605_v62, %v9335_v6  ;;  %v1527_v48 = vadd.f32 %v1519_v44, %v1479_v57  ;;  %v1387_v43 = vmul.f32 %v6594_v10, %v9336_v32  ;;  %v9337_v2 = vmov 12   ;;  %v9341_v57 = vld [vmem:[#allocation19_spill] sm:$0xff] }
 0x292   : > { %9334 = vst [vmem:[#allocation135_spill] sm:$0xff] %v7050_v54  ;;  %v1004_v63 = vadd.f32 %v996_v36, %v954_v26  ;;  %v1277_v1 = vmul.f32 %v6457_v39, %v9338_v27  ;;  %v1146_v55 = vmul.f32 %v6965_v33, %v9322_v31  ;;  %v7067_v36 = vld [vmem:[%s6086_s24 + $0x21] sm:$0xff]  ;;  %v1347_v0 = vadd.f32 %v1339_v50, %v1283_v29 }
 0x293   : > { %5726 = vset.pattern.permute.xlu1 %v9337_v2  ;;  %5727 = vset.pattern.permute.xlu2 %v9337_v2  ;;  %v1412_v44 = vadd.f32 %v1404_v21, %v1396_v15  ;;  %v1535_v32 = vmul.f32 %v6656_v49, %v9339_v61  ;;  %v9340_v26 = vld [vmem:[#allocation60_spill] sm:$0xff]  ;;  %v1261_v27 = vmul.f32 %v6464_v11, %v9341_v57 }
 0x294   : > { %v1054_v41 = vadd.f32 %v1046_v16, %v1004_v63  ;;  %1697 = vperm.xlu1 %5726, %v7067_v36   ;;  %1701 = vperm.xlu2 %5727, %v9340_v26   ;;  %v1962_v35 = vpop.permute.xlu2 %1961  ;;  %v1918_v6 = vadd.f32 %v1910_v47, %v1902_v3  ;;  %v9342_v63 = vld [vmem:[#allocation65_spill] sm:$0xff]  ;;  %v1395_v2 = vadd.f32 %v1387_v43, %v1347_v0  ;;  %v9343_v47 = vld [vmem:[#allocation47_spill] sm:$0xff]  ;;  %v9345_v43 = vld [vmem:[#allocation54_spill] sm:$0xff] }
 0x295   : > { %v1975_v16 = vmul.f32 %v6656_v49, %v1962_v35  ;;  %v1420_v4 = vmul.f32 %v6619_v52, %v9342_v63  ;;  %v1543_v54 = vadd.f32 %v1535_v32, %v1527_v48  ;;  %v1468_v29 = vmul.f32 %v6631_v20, %v1450_v40 }
 0x296   : > { %v1104_v31 = vadd.f32 %v1096_v17, %v1054_v41  ;;  %v1196_v50 = vmul.f32 %v6993_v37, %v6258_v53  ;;  %v1285_v15 = vadd.f32 %v1277_v1, %v1261_v27  ;;  %v1246_v17 = vmul.f32 %v7015_v23, %v6281_v60  ;;  %v9344_v41 = vld [vmem:[#allocation100_spill] sm:$0xff]  ;;  %v9346_v1 = vld [vmem:[#allocation89_spill] sm:$0xff] }
 0x297   : > { %v7081_v26 = vadd.f32 %v1975_v16, %v1918_v6  ;;  %v1403_v3 = vmul.f32 %v6605_v62, %v9343_v47  ;;  %v1551_v35 = vmul.f32 %v6887_v9, %v9344_v41  ;;  %v1428_v48 = vadd.f32 %v1420_v4, %v1412_v44  ;;  %v9347_v4 = vld [vmem:[#allocation94_spill] sm:$0xff] }
 0x298   : > { %v1154_v21 = vadd.f32 %v1146_v55, %v1104_v31  ;;  %v1419_v40 = vmul.f32 %v6619_v52, %v9345_v43  ;;  %v2352_v0 = vmul.f32 %v6457_v39, %v9344_v41  ;;  %v1532_v6 = vmul.f32 %v6656_v49, %v9346_v1  ;;  %v9348_v43 = vld [vmem:[#allocation128_spill] sm:$0xff] }
 0x299   : > { %v1559_v32 = vadd.f32 %v1551_v35, %v1543_v54  ;;  %v1411_v31 = vadd.f32 %v1403_v3, %v1395_v2  ;;  %v1476_v16 = vadd.f32 %v1468_v29, %v1428_v48  ;;  %v2336_v57 = vmul.f32 %v6464_v11, %v9339_v61  ;;  %v9353_v48 = vld [vmem:[#allocation136_spill] sm:$0xff] }
 0x29a   : > { %v1204_v27 = vadd.f32 %v1196_v50, %v1154_v21  ;;  %v1498_v55 = vpop.permute.xlu1 %1497  ;;  %v1341_v44 = vmul.f32 %v6531_v58, %v9347_v4  ;;  %v2368_v63 = vmul.f32 %v6531_v58, %v9348_v43  ;;  %v9350_v50 = vmov 1   ;;  %v9351_v21 = vld [vmem:[#allocation98_spill] sm:$0xff]  ;;  %v9354_v4 = vld [vmem:[#allocation139_spill] sm:$0xff] }
 0x29b   : > { %v1516_v47 = vmul.f32 %v6644_v28, %v1498_v55  ;;  %v1548_v54 = vmul.f32 %v6887_v9, %v9351_v21  ;;  %v1599_v2 = vmul.f32 %v6904_v12, %v9348_v43  ;;  %v9352_v3 = vmov 2  }
 0x29c   : > { %v7102_v8 = vadd.f32 %v1246_v17, %v1204_v27  ;;  %5728 = vset.pattern.permute.xlu1 %v9350_v50  ;;  %5729 = vset.pattern.permute.xlu2 %v9352_v3  ;;  %v2360_v35 = vadd.f32 %v2352_v0, %v2336_v57  ;;  %v1389_v55 = vmul.f32 %v6594_v10, %v9353_v48  ;;  %v9355_v50 = vld [vmem:[#allocation93_spill] sm:$0xff]  ;;  %v9356_v0 = vld [vmem:[#allocation143_spill] sm:$0xff] }
 0x29d   : > { %v1524_v29 = vadd.f32 %v1516_v47, %v1476_v16  ;;  %2006 = vperm.xlu1 %5728, %v6957_v14   ;;  %v2384_v17 = vmul.f32 %v6594_v10, %v9354_v4  ;;  %2050 = vperm.xlu2 %5729, %v9355_v50   ;;  %v1446_v18 = vpop.permute.xlu2 %1445  ;;  %v1607_v22 = vadd.f32 %v1599_v2, %v1559_v32  ;;  %v9358_v2 = vld [vmem:[#allocation50_spill] sm:$0xff] }
 0x29e   : > { %9349 = vst [vmem:[#allocation141_spill] sm:$0xff] %v7102_v8  ;;  %v1427_v47 = vadd.f32 %v1419_v40, %v1411_v31  ;;  %v1467_v16 = vmul.f32 %v6631_v20, %v1446_v18  ;;  %v1349_v21 = vadd.f32 %v1341_v44, %v1285_v15  ;;  %v2376_v42 = vadd.f32 %v2368_v63, %v2360_v35  ;;  %v9357_v63 = vld [vmem:[#allocation149_spill] sm:$0xff] }
 0x29f   : > { %v1540_v43 = vadd.f32 %v1532_v6, %v1524_v29  ;;  %v1647_v57 = vmul.f32 %v6923_v19, %v9354_v4  ;;  %v1596_v48 = vmul.f32 %v6904_v12, %v9356_v0  ;;  %v2335_v50 = vmul.f32 %v6464_v11, %v9332_v51  ;;  %v9359_v29 = vld [vmem:[#allocation70_spill] sm:$0xff]  ;;  %v9360_v4 = vld [vmem:[#allocation123_spill] sm:$0xff]  ;;  %v9361_v51 = vld [vmem:[#allocation125_spill] sm:$0xff] }
 0x2a0   : > { %v7123_v1 = vadd.f32 %v1467_v16, %v1427_v47  ;;  %v2351_v40 = vmul.f32 %v6457_v39, %v6237_v45  ;;  %v1397_v6 = vadd.f32 %v1389_v55, %v1349_v21  ;;  %v2392_v18 = vadd.f32 %v2384_v17, %v2376_v42  ;;  %v7142_v42 = vld [vmem:[%s6086_s24 + $0x71] sm:$0xff] }
 0x2a1   : > { %v1556_v34 = vadd.f32 %v1548_v54, %v1540_v43  ;;  %v1655_v15 = vadd.f32 %v1647_v57, %v1607_v22  ;;  %v1644_v32 = vmul.f32 %v6923_v19, %v9357_v63  ;;  %v1405_v54 = vmul.f32 %v6605_v62, %v9358_v2  ;;  %v9363_v43 = vld [vmem:[#allocation133_spill] sm:$0xff]  ;;  %v9364_v57 = vld [vmem:[#allocation127_spill] sm:$0xff] }
 0x2a2   : > { %v1724_v35 = vmul.f32 %v6993_v37, %v9359_v29  ;;  %v1660_v11 = vmul.f32 %v6942_v59, %v9360_v4  ;;  %v1663_v39 = vmul.f32 %v6942_v59, %v9361_v51  ;;  %v2400_v45 = vmul.f32 %v6605_v62, %v9361_v51 }
 0x2a3   : > { %v1604_v31 = vadd.f32 %v1596_v48, %v1556_v34  ;;  %v7131_v44 = vpop.permute.xlu1 %1621  ;;  %v9362_v34 = vld [vmem:[#allocation146_spill] sm:$0xff]  ;;  %v2359_v17 = vadd.f32 %v2351_v40, %v2335_v50  ;;  %v2367_v47 = vmul.f32 %v6531_v58, %v9363_v43  ;;  %v1413_v16 = vadd.f32 %v1405_v54, %v1397_v6  ;;  %v9367_v40 = vld [vmem:[#allocation67_spill] sm:$0xff] }
 0x2a4   : > { %v1679_v22 = vmul.f32 %v6965_v33, %v9362_v34  ;;  %v2416_v21 = vmul.f32 %v6619_v52, %v9362_v34  ;;  %v1676_v48 = vmul.f32 %v6965_v33, %v9364_v57  ;;  %v2408_v27 = vadd.f32 %v2400_v45, %v2392_v18  ;;  %v9369_v43 = vld [vmem:[#allocation79_spill] sm:$0xff] }
 0x2a5   : > { %v1652_v55 = vadd.f32 %v1644_v32, %v1604_v31  ;;  %5730 = vset.pattern.permute.xlu1 %v9352_v3  ;;  %5731 = vset.pattern.permute.xlu2 %v9201_v24  ;;  %v1671_v32 = vadd.f32 %v1663_v39, %v1655_v15  ;;  %v9366_v31 = vld [vmem:[#allocation57_spill] sm:$0xff]  ;;  %v1727_v58 = vmul.f32 %v6993_v37, %v9367_v40 }
 0x2a6   : > { %2054 = vperm.xlu1 %5730, %v6957_v14   ;;  %2529 = vperm.xlu2 %5731, %v7142_v42   ;;  %v7158_v38 = vpop.permute.xlu2 %1565  ;;  %v1421_v50 = vmul.f32 %v6619_v52, %v9366_v31  ;;  %v1469_v6 = vmul.f32 %v6631_v20, %v6933_v25  ;;  %v2432_v14 = vmul.f32 %v6631_v20, %v9367_v40 }
 0x2a7   : > { %v1668_v2 = vadd.f32 %v1660_v11, %v1652_v55  ;;  %9365 = vst [vmem:[#allocation17_spill] sm:$0xff] %v7158_v38  ;;  %v1687_v54 = vadd.f32 %v1679_v22, %v1671_v32  ;;  %v2424_v18 = vadd.f32 %v2416_v21, %v2408_v27  ;;  %v2383_v45 = vmul.f32 %v6594_v10, %v6771_v7 }
 0x2a8   : > { %v2375_v55 = vadd.f32 %v2367_v47, %v2359_v17  ;;  %v1429_v15 = vadd.f32 %v1421_v50, %v1413_v16  ;;  %v2464_v31 = vmul.f32 %v6656_v49, %v9369_v43  ;;  %v1517_v25 = vmul.f32 %v6644_v28, %v6972_v56  ;;  %v9371_v17 = vld [vmem:[#allocation55_spill] sm:$0xff]  ;;  %v7187_v56 = vld [vmem:[%s6086_s24 + $0x1] sm:$0xff] }
 0x2a9   : > { %v1684_v11 = vadd.f32 %v1676_v48, %v1668_v2  ;;  %v1735_v40 = vadd.f32 %v1727_v58, %v1687_v54  ;;  %v2440_v2 = vadd.f32 %v2432_v14, %v2424_v18  ;;  %v2399_v7 = vmul.f32 %v6605_v62, %v6258_v53  ;;  %9373 = vst [vmem:[#allocation60_spill] sm:$0xff] %v7187_v56  ;;  %v9374_v53 = vld [vmem:[#allocation103_spill] sm:$0xff] }
 0x2aa   : > { %v1477_v8 = vadd.f32 %v1469_v6, %v1429_v15  ;;  %v9370_v21 = vmov 5   ;;  %v2480_v47 = vmul.f32 %v6887_v9, %v9371_v17  ;;  %v2544_v50 = vmul.f32 %v6904_v12, %v9374_v53  ;;  %v9375_v18 = vld [vmem:[#allocation83_spill] sm:$0xff] }
 0x2ab   : > { %v7170_v39 = vadd.f32 %v1724_v35, %v1684_v11  ;;  %v2391_v35 = vadd.f32 %v2383_v45, %v2375_v55  ;;  %v2415_v14 = vmul.f32 %v6619_v52, %v6281_v60  ;;  %v1533_v11 = vmul.f32 %v6656_v49, %v9375_v18 }
 0x2ac   : > { %v1766_v29 = vpop.permute.xlu1 %1765  ;;  %v1525_v32 = vadd.f32 %v1517_v25, %v1477_v8  ;;  %v9377_v25 = vld [vmem:[#allocation90_spill] sm:$0xff] }
 0x2ad   : > { %9368 = vst [vmem:[#allocation97_spill] sm:$0xff] %v7170_v39  ;;  %v1775_v27 = vmul.f32 %v7015_v23, %v1766_v29  ;;  %v2448_v22 = vmul.f32 %v6644_v28, %v1766_v29  ;;  %v2407_v54 = vadd.f32 %v2399_v7, %v2391_v35  ;;  %v9379_v35 = vld [vmem:[#allocation138_spill] sm:$0xff] }
 0x2ae   : > { %5732 = vset.pattern.permute.xlu1 %v9370_v21  ;;  %5733 = vset.pattern.permute.xlu2 %v9370_v21  ;;  %v1541_v55 = vadd.f32 %v1533_v11, %v1525_v32  ;;  %v9394_v21 = vld [vmem:[#allocation14_spill] sm:$0xff] }
 0x2af   : > { %v7183_v16 = vadd.f32 %v1775_v27, %v1735_v40  ;;  %v2456_v48 = vadd.f32 %v2448_v22, %v2440_v2  ;;  %1481 = vperm.xlu1 %5732, %v7187_v56   ;;  %1485 = vperm.xlu2 %5733, %v6583_v5   ;;  %v2011_v29 = vpop.permute.xlu2 %2010  ;;  %v2431_v5 = vmul.f32 %v6631_v20, %v6878_v13  ;;  %v9378_v2 = vmov 13   ;;  %v5830_v13 = vld [vmem:[%s6086_s24 + $0x31] sm:$0xff] }
 0x2b0   : > { %v2023_v6 = vmul.f32 %v6887_v9, %v2011_v29  ;;  %v1549_v40 = vmul.f32 %v6887_v9, %v9377_v25  ;;  %v2423_v60 = vadd.f32 %v2415_v14, %v2407_v54  ;;  %v2447_v27 = vmul.f32 %v6644_v28, %v7024_v30  ;;  %v9381_v14 = vld [vmem:[#allocation144_spill] sm:$0xff] }
 0x2b1   : > { %9372 = vst [vmem:[#allocation147_spill] sm:$0xff] %v7183_v16  ;;  %v2472_v58 = vadd.f32 %v2464_v31, %v2456_v48  ;;  %v1645_v54 = vmul.f32 %v6923_v19, %v9381_v14 }
 0x2b2   : > { %v2031_v45 = vadd.f32 %v2023_v6, %v7081_v26  ;;  %v2439_v22 = vadd.f32 %v2431_v5, %v2423_v60  ;;  %v1557_v26 = vadd.f32 %v1549_v40, %v1541_v55  ;;  %v7242_v55 = vld [vmem:[%s9232_s1 + $0x2] ss:$0 sm:$0xff]  ;;  %v9383_v60 = vld [vmem:[#allocation31_spill] sm:$0xff] }
 0x2b3   : > { %v2488_v8 = vadd.f32 %v2480_v47, %v2472_v58  ;;  %v1597_v47 = vmul.f32 %v6904_v12, %v9379_v35  ;;  %v9380_v58 = vld [vmem:[#allocation84_spill] sm:$0xff]  ;;  %v1831_v40 = vmul.f32 %v7242_v55, %v9339_v61 }
 0x2b4   : > { %v2455_v48 = vadd.f32 %v2447_v27, %v2439_v22 }
 0x2b5   : > { %v7201_v15 = vpop.permute.xlu1 %1441  ;;  %v7203_v31 = vadd.f32 %v2544_v50, %v2488_v8  ;;  %v1605_v30 = vadd.f32 %v1597_v47, %v1557_v26  ;;  %v9382_v8 = vld [vmem:[#allocation76_spill] sm:$0xff]  ;;  %v9384_v26 = vld [vmem:[#allocation81_spill] sm:$0xff]  ;;  %v1847_v47 = vmul.f32 %v6594_v10, %v9344_v41  ;;  %v9391_v41 = vld [vmem:[#allocation110_spill] sm:$0xff] }
 0x2b6   : > { %v1863_v61 = vmul.f32 %v6605_v62, %v9391_v41  ;;  %v9396_v41 = vld [vmem:[#allocation88_spill] sm:$0xff] }
 0x2b7   : > { %9376 = vst [vmem:[#allocation94_spill] sm:$0xff] %v7203_v31  ;;  %5734 = vset.pattern.permute.xlu1 %v9378_v2  ;;  %5735 = vset.pattern.permute.xlu2 %v9378_v2  ;;  %v1653_v22 = vadd.f32 %v1645_v54, %v1605_v30  ;;  %v9388_v30 = vld [vmem:[#allocation117_spill] sm:$0xff] }
 0x2b8   : > { %1745 = vperm.xlu1 %5734, %v7067_v36   ;;  %1749 = vperm.xlu2 %5735, %v5830_v13   ;;  %v2059_v7 = vpop.permute.xlu2 %2058  ;;  %v7224_v36 = vld [vmem:[%s9232_s1 + $0x1] ss:$0 sm:$0xff]  ;;  %v1661_v54 = vmul.f32 %v6942_v59, %v9388_v30 }
 0x2b9   : > { %v2071_v32 = vmul.f32 %v6904_v12, %v2059_v7  ;;  %v2463_v29 = vmul.f32 %v6656_v49, %v2059_v7  ;;  %v1815_v6 = vmul.f32 %v7224_v36, %v9380_v58  ;;  %v1274_v27 = vmul.f32 %v7224_v36, %v9383_v60  ;;  %v9387_v60 = vld [vmem:[#allocation74_spill] sm:$0xff] }
 0x2ba   : > { %v1812_v13 = vmul.f32 %v7224_v36, %v9384_v26  ;;  %v7265_v26 = vld [vmem:[%s6086_s24 + $0x50] sm:$0xff]  ;;  %v1669_v31 = vadd.f32 %v1661_v54, %v1653_v22  ;;  %v2362_v54 = vmul.f32 %v7242_v55, %v7158_v38 }
 0x2bb   : > { %v7217_v53 = vadd.f32 %v2071_v32, %v2031_v45  ;;  %v7219_v50 = vadd.f32 %v2463_v29, %v2455_v48  ;;  %v7235_v45 = vld [vmem:[%s9232_s1] ss:$0 sm:$0xff]  ;;  %v9386_v32 = vld [vmem:[#allocation23_spill] sm:$0xff]  ;;  %9389 = vst [vmem:[#allocation136_spill] sm:$0xff] %v7265_v26 }
 0x2bc   : > { %v1799_v5 = vmul.f32 %v7235_v45, %v9382_v8  ;;  %v7255_v48 = vld [vmem:[%s6086_s24 + $0x40] sm:$0xff]  ;;  %v1258_v29 = vmul.f32 %v7235_v45, %v9386_v32  ;;  %v1796_v39 = vmul.f32 %v7235_v45, %v9387_v60 }
 0x2bd   : > { %9385 = vst [vmem:[#allocation128_spill] sm:$0xff] %v7255_v48  ;;  %v9392_v8 = vld [vmem:[#allocation80_spill] sm:$0xff] }
 0x2be   : > { %v7230_v11 = vpop.permute.xlu1 %1561  ;;  %v1823_v7 = vadd.f32 %v1815_v6, %v1799_v5  ;;  %v9390_v6 = vld [vmem:[#allocation89_spill] sm:$0xff]  ;;  %v1282_v58 = vadd.f32 %v1274_v27, %v1258_v29  ;;  %v1531_v60 = vmul.f32 %v6656_v49, %v9392_v8  ;;  %v1547_v27 = vmul.f32 %v6887_v9, %v9396_v41  ;;  %v9397_v29 = vld [vmem:[#allocation124_spill] sm:$0xff] }
 0x2bf   : > { %v1828_v5 = vmul.f32 %v7242_v55, %v9390_v6  ;;  %v1677_v49 = vmul.f32 %v6965_v33, %v9397_v29 }
 0x2c0   : > { %5736 = vset.pattern.permute.xlu1 %v9201_v24  ;;  %5737 = vset.pattern.permute.xlu2 %v9320_v46  ;;  %v1839_v16 = vadd.f32 %v1831_v40, %v1823_v7  ;;  %v1820_v46 = vadd.f32 %v1812_v13, %v1796_v39  ;;  %v9393_v24 = vld [vmem:[#allocation118_spill] sm:$0xff]  ;;  %v2330_v40 = vmul.f32 %v7235_v45, %v9394_v21  ;;  %v9395_v7 = vld [vmem:[#allocation20_spill] sm:$0xff] }
 0x2c1   : > { %1946 = vperm.xlu1 %5736, %v7255_v48   ;;  %2098 = vperm.xlu2 %5737, %v7265_v26   ;;  %v1494_v10 = vpop.permute.xlu2 %1493  ;;  %v1879_v26 = vmul.f32 %v6619_v52, %v9393_v24  ;;  %v2346_v62 = vmul.f32 %v7224_v36, %v9395_v7  ;;  %v2072_v21 = vmul.f32 %v6904_v12, %v9369_v43 }
 0x2c2   : > { %v1515_v32 = vmul.f32 %v6644_v28, %v1494_v10  ;;  %v1855_v56 = vadd.f32 %v1847_v47, %v1839_v16  ;;  %v1836_v22 = vadd.f32 %v1828_v5, %v1820_v46  ;;  %v1895_v16 = vmul.f32 %v6631_v20, %v9361_v51  ;;  %v9398_v47 = vld [vmem:[#allocation98_spill] sm:$0xff]  ;;  %v9401_v51 = vld [vmem:[#allocation131_spill] sm:$0xff] }
 0x2c3   : > { %v1685_v10 = vadd.f32 %v1677_v49, %v1669_v31  ;;  %v1911_v5 = vmul.f32 %v6644_v28, %v9362_v34  ;;  %v1338_v24 = vmul.f32 %v7242_v55, %v9401_v51  ;;  %v2354_v7 = vadd.f32 %v2346_v62, %v2330_v40  ;;  %v9402_v31 = vld [vmem:[#allocation137_spill] sm:$0xff]  ;;  %v7322_v51 = vld [vmem:[%s6086_s24 + $0x80] sm:$0xff] }
 0x2c4   : > { %v1523_v2 = vadd.f32 %v1515_v32, %v7123_v1  ;;  %v1871_v39 = vadd.f32 %v1863_v61, %v1855_v56  ;;  %v7293_v1 = vld [vmem:[%s9232_s1 + $0x3] ss:$0 sm:$0xff]  ;;  %v9399_v61 = vld [vmem:[#allocation153_spill] sm:$0xff]  ;;  %v1643_v28 = vmul.f32 %v6923_v19, %v7131_v44 }
 0x2c5   : > { %v1844_v32 = vmul.f32 %v7293_v1, %v9398_v47  ;;  %v1595_v56 = vmul.f32 %v6904_v12, %v9399_v61 }
 0x2c6   : > { %v1539_v52 = vadd.f32 %v1531_v60, %v1523_v2  ;;  %v1887_v20 = vadd.f32 %v1879_v26, %v1871_v39  ;;  %v9400_v60 = vmov 4   ;;  %v7315_v26 = vld [vmem:[%s9232_s1 + $0x4] ss:$0 sm:$0xff] }
 0x2c7   : > { %v7288_v13 = vpop.permute.xlu1 %1709 }
 0x2c8   : > { %v1725_v46 = vmul.f32 %v6993_v37, %v7288_v13  ;;  %v1555_v2 = vadd.f32 %v1547_v27, %v1539_v52  ;;  %v9403_v27 = vld [vmem:[#allocation107_spill] sm:$0xff]  ;;  %v1903_v62 = vadd.f32 %v1895_v16, %v1887_v20  ;;  %v1852_v52 = vadd.f32 %v1844_v32, %v1836_v22  ;;  %v7341_v16 = vld [vmem:[%s9232_s1 + $0x5] ss:$0 sm:$0xff] }
 0x2c9   : > { %5739 = vset.pattern.permute.xlu1 %v9400_v60  ;;  %5740 = vset.pattern.permute.xlu2 %v9400_v60  ;;  %v1860_v49 = vmul.f32 %v7315_v26, %v9403_v27  ;;  %v7334_v27 = vld [vmem:[%s9232_s1 + $0x8] ss:$0 sm:$0xff]  ;;  %v9407_v22 = vld [vmem:[#allocation116_spill] sm:$0xff]  ;;  %v1346_v20 = vadd.f32 %v1338_v24, %v1282_v58 }
 0x2ca   : > { %v7308_v38 = vadd.f32 %v1725_v46, %v1685_v10  ;;  %2154 = vperm.xlu1 %5739, %v9402_v31   ;;  %v1603_v39 = vadd.f32 %v1595_v56, %v1555_v2  ;;  %2158 = vperm.xlu2 %5740, %v7322_v51   ;;  %v7325_v40 = vpop.permute.xlu2 %1613  ;;  %v9405_v10 = vld [vmem:[#allocation140_spill] sm:$0xff]  ;;  %v2370_v31 = vadd.f32 %v2362_v54, %v2354_v7  ;;  %v9406_v56 = vld [vmem:[#allocation101_spill] sm:$0xff] }
 0x2cb   : > { %9404 = vst [vmem:[#allocation139_spill] sm:$0xff] %v7325_v40  ;;  %v1386_v46 = vmul.f32 %v7293_v1, %v9405_v10  ;;  %v2378_v34 = vmul.f32 %v7293_v1, %v7325_v40  ;;  %v1976_v2 = vmul.f32 %v7334_v27, %v9406_v56  ;;  %v1876_v32 = vmul.f32 %v7341_v16, %v9407_v22  ;;  %v7352_v40 = vld [vmem:[%s9232_s1 + $0x6] ss:$0 sm:$0xff] }
 0x2cc   : > { %v1919_v7 = vadd.f32 %v1911_v5, %v1903_v62  ;;  %v7345_v54 = vadd.f32 %v1643_v28, %v1603_v39  ;;  %v1868_v60 = vadd.f32 %v1860_v49, %v1852_v52  ;;  %v1892_v56 = vmul.f32 %v7352_v40, %v9360_v4  ;;  %v9409_v49 = vld [vmem:[#allocation53_spill] sm:$0xff] }
 0x2cd   : > { %v7347_v10 = vadd.f32 %v2378_v34, %v2370_v31  ;;  %v1394_v22 = vadd.f32 %v1386_v46, %v1346_v20  ;;  %v7362_v34 = vld [vmem:[%s9232_s1 + $0x7] ss:$0 sm:$0xff]  ;;  %v1402_v62 = vmul.f32 %v7315_v26, %v9409_v49  ;;  %v9410_v52 = vmov 1  }
 0x2ce   : > { %v1884_v28 = vadd.f32 %v1876_v32, %v1868_v60  ;;  %v1984_v39 = vadd.f32 %v1976_v2, %v1919_v7  ;;  %v1908_v58 = vmul.f32 %v7362_v34, %v9364_v57  ;;  %v2120_v46 = vmul.f32 %v6923_v19, %v9371_v17  ;;  %v7374_v2 = vld [vmem:[%s6086_s24 + $0x81] sm:$0xff] }
 0x2cf   : > { %9408 = vst [vmem:[#allocation93_spill] sm:$0xff] %v7347_v10  ;;  %v1410_v31 = vadd.f32 %v1402_v62, %v1394_v22  ;;  %v9412_v7 = vld [vmem:[#allocation129_spill] sm:$0xff]  ;;  %v1466_v17 = vmul.f32 %v7352_v40, %v7201_v15  ;;  %v2366_v15 = vmul.f32 %v7242_v55, %v9379_v35 }
 0x2d0   : > { %v2015_v5 = vpop.permute.xlu1 %2014  ;;  %v1900_v60 = vadd.f32 %v1892_v56, %v1884_v28  ;;  %9411 = vst [vmem:[#allocation143_spill] sm:$0xff] %v7374_v2  ;;  %v2021_v20 = vmul.f32 %v6887_v9, %v9412_v7  ;;  %v9418_v7 = vld [vmem:[#allocation77_spill] sm:$0xff] }
 0x2d1   : > { %v2024_v24 = vmul.f32 %v6887_v9, %v2015_v5 }
 0x2d2   : > { %5741 = vset.pattern.permute.xlu1 %v9410_v52  ;;  %5742 = vset.pattern.permute.xlu2 %v9410_v52  ;;  %v1916_v49 = vadd.f32 %v1908_v58, %v1900_v60  ;;  %v9415_v60 = vmov 12  }
 0x2d3   : > { %v2032_v43 = vadd.f32 %v2024_v24, %v1984_v39  ;;  %2578 = vperm.xlu1 %5741, %v7142_v42   ;;  %2582 = vperm.xlu2 %5742, %v7374_v2   ;;  %v1952_v32 = vpop.permute.xlu2 %1951  ;;  %v9413_v24 = vld [vmem:[#allocation63_spill] sm:$0xff] }
 0x2d4   : > { %v1973_v39 = vmul.f32 %v7334_v27, %v1952_v32  ;;  %v1418_v42 = vmul.f32 %v7341_v16, %v9413_v24  ;;  %v2334_v32 = vmul.f32 %v7235_v45, %v9375_v18 }
 0x2d5   : > { %v2080_v5 = vadd.f32 %v2072_v21, %v2032_v43  ;;  %v2350_v21 = vmul.f32 %v7224_v36, %v9377_v25 }
 0x2d6   : > { %v1981_v22 = vadd.f32 %v1973_v39, %v1916_v49  ;;  %v1426_v28 = vadd.f32 %v1418_v42, %v1410_v31  ;;  %v7403_v31 = vld [vmem:[%s6086_s24 + $0x11] sm:$0xff] }
 0x2d7   : > { %v7384_v56 = vadd.f32 %v2120_v46, %v2080_v5  ;;  %v7399_v46 = vld [vmem:[%s6086_s24 + $0x30] sm:$0xff]  ;;  %9417 = vst [vmem:[#allocation67_spill] sm:$0xff] %v7403_v31  ;;  %v2358_v42 = vadd.f32 %v2350_v21, %v2334_v32 }
 0x2d8   : > { %v7386_v62 = vadd.f32 %v2021_v20, %v1981_v22  ;;  %v1474_v58 = vadd.f32 %v1466_v17, %v1426_v28  ;;  %9416 = vst [vmem:[#allocation133_spill] sm:$0xff] %v7399_v46  ;;  %v2329_v20 = vmul.f32 %v7235_v45, %v9418_v7  ;;  %v9419_v5 = vld [vmem:[#allocation86_spill] sm:$0xff]  ;;  %v2382_v17 = vmul.f32 %v7293_v1, %v9381_v14 }
 0x2d9   : > { %9414 = vst [vmem:[#allocation149_spill] sm:$0xff] %v7384_v56  ;;  %v1490_v2 = vpop.permute.xlu1 %1489  ;;  %v2345_v39 = vmul.f32 %v7224_v36, %v9419_v5  ;;  %v2374_v24 = vadd.f32 %v2366_v15, %v2358_v42  ;;  %v2364_v14 = vmul.f32 %v7242_v55, %v9399_v61  ;;  %v2365_v15 = vmul.f32 %v7242_v55, %v9356_v0 }
 0x2da   : > { %v1514_v43 = vmul.f32 %v7362_v34, %v1490_v2  ;;  %v2348_v2 = vmul.f32 %v7224_v36, %v9396_v41  ;;  %v2398_v61 = vmul.f32 %v7315_v26, %v9388_v30  ;;  %v2381_v0 = vmul.f32 %v7293_v1, %v9357_v63 }
 0x2db   : > { %5744 = vset.pattern.permute.xlu1 %v9415_v60  ;;  %1994 = vperm.xlu2 %5742, %v7399_v46   ;;  %v2349_v60 = vmul.f32 %v7224_v36, %v9398_v47  ;;  %v2353_v32 = vadd.f32 %v2345_v39, %v2329_v20  ;;  %v2390_v41 = vadd.f32 %v2382_v17, %v2374_v24  ;;  %v9421_v39 = vld [vmem:[#allocation111_spill] sm:$0xff]  ;;  %v9423_v47 = vld [vmem:[#allocation73_spill] sm:$0xff] }
 0x2dc   : > { %v7396_v49 = vadd.f32 %v1514_v43, %v1474_v58  ;;  %1693 = vperm.xlu1 %5744, %v7403_v31   ;;  %v2107_v35 = vpop.permute.xlu2 %2106  ;;  %v2332_v58 = vmul.f32 %v7235_v45, %v9392_v8  ;;  %v2361_v43 = vmul.f32 %v7242_v55, %v7230_v11  ;;  %v2393_v24 = vmul.f32 %v7315_v26, %v9421_v39  ;;  %v9422_v17 = vld [vmem:[#allocation119_spill] sm:$0xff] }
 0x2dd   : > { %v2119_v22 = vmul.f32 %v6923_v19, %v2107_v35  ;;  %v2479_v28 = vmul.f32 %v6887_v9, %v2107_v35  ;;  %v2333_v35 = vmul.f32 %v7235_v45, %v9390_v6  ;;  %v2425_v6 = vmul.f32 %v7352_v40, %v9423_v47 }
 0x2de   : > { %v2356_v8 = vadd.f32 %v2348_v2, %v2332_v58  ;;  %v2369_v42 = vadd.f32 %v2361_v43, %v2353_v32  ;;  %v2414_v63 = vmul.f32 %v7341_v16, %v9397_v29 }
 0x2df   : > { %v7423_v10 = vadd.f32 %v2119_v22, %v7217_v53  ;;  %v7426_v21 = vadd.f32 %v2479_v28, %v7219_v50  ;;  %v2380_v53 = vmul.f32 %v7293_v1, %v7131_v44  ;;  %v2357_v20 = vadd.f32 %v2349_v60, %v2333_v35 }
 0x2e0   : > { %v2372_v2 = vadd.f32 %v2364_v14, %v2356_v8  ;;  %v2409_v22 = vmul.f32 %v7341_v16, %v9422_v17  ;;  %v2406_v28 = vadd.f32 %v2398_v61, %v2390_v41  ;;  %v2430_v8 = vmul.f32 %v7352_v40, %v7288_v13  ;;  %v9425_v41 = vld [vmem:[#allocation152_spill] sm:$0xff] }
 0x2e1   : > { %9420 = vst [vmem:[#allocation79_spill] sm:$0xff] %v7423_v10  ;;  %v2373_v43 = vadd.f32 %v2365_v15, %v2357_v20 }
 0x2e2   : > { %v7432_v56 = vpop.permute.xlu1 %1609  ;;  %v2388_v60 = vadd.f32 %v2380_v53, %v2372_v2  ;;  %v2422_v20 = vadd.f32 %v2414_v63, %v2406_v28  ;;  %v9428_v28 = vld [vmem:[#allocation121_spill] sm:$0xff] }
 0x2e3   : > { %v2377_v50 = vmul.f32 %v7293_v1, %v7432_v56  ;;  %5746 = vset.pattern.permute.xlu2 %v9352_v3  ;;  %v2389_v14 = vadd.f32 %v2381_v0, %v2373_v43  ;;  %v1675_v63 = vmul.f32 %v6965_v33, %v9428_v28 }
 0x2e4   : > { %5745 = vset.pattern.permute.xlu1 %v9410_v52  ;;  %2042 = vperm.xlu2 %5746, %v7399_v46   ;;  %v2438_v13 = vadd.f32 %v2430_v8, %v2422_v20  ;;  %v7484_v8 = vld [vmem:[%s6086_s24 + $0x70] sm:$0xff] }
 0x2e5   : > { %v2385_v44 = vadd.f32 %v2377_v50, %v2369_v42  ;;  %1998 = vperm.xlu1 %5745, %v7255_v48   ;;  %v1438_v58 = vpop.permute.xlu2 %1437  ;;  %v9424_v42 = vld [vmem:[#allocation114_spill] sm:$0xff] }
 0x2e6   : > { %v1465_v35 = vmul.f32 %v7352_v40, %v1438_v58  ;;  %v2396_v50 = vmul.f32 %v7315_v26, %v9424_v42  ;;  %v1659_v53 = vmul.f32 %v6942_v59, %v9424_v42  ;;  %v9430_v20 = vld [vmem:[#allocation70_spill] sm:$0xff] }
 0x2e7   : > { %v2401_v32 = vadd.f32 %v2393_v24, %v2385_v44  ;;  %v2397_v24 = vmul.f32 %v7315_v26, %v9360_v4 }
 0x2e8   : > { %v7462_v61 = vadd.f32 %v1465_v35, %v9425_v41  ;;  %v2404_v2 = vadd.f32 %v2396_v50, %v2388_v60  ;;  %v1667_v35 = vadd.f32 %v1659_v53, %v7345_v54  ;;  %v2412_v54 = vmul.f32 %v7341_v16, %v9428_v28 }
 0x2e9   : > { %v2417_v15 = vadd.f32 %v2409_v22, %v2401_v32  ;;  %v2405_v22 = vadd.f32 %v2397_v24, %v2389_v14  ;;  %v9427_v32 = vmov 5   ;;  %v2413_v14 = vmul.f32 %v7341_v16, %v9364_v57 }
 0x2ea   : > { %v1683_v41 = vadd.f32 %v1675_v63, %v1667_v35  ;;  %v2429_v24 = vmul.f32 %v7352_v40, %v9430_v20  ;;  %v9432_v35 = vld [vmem:[#allocation48_spill] sm:$0xff]  ;;  %v9433_v63 = vld [vmem:[#allocation95_spill] sm:$0xff]  ;;  %v9438_v28 = vmov 13  }
 0x2eb   : > { %v1758_v44 = vpop.permute.xlu1 %1757  ;;  %v7468_v58 = vadd.f32 %v2425_v6, %v2417_v15  ;;  %v2420_v15 = vadd.f32 %v2412_v54, %v2404_v2  ;;  %v2445_v2 = vmul.f32 %v7362_v34, %v9432_v35  ;;  %v1546_v54 = vmul.f32 %v6887_v9, %v9433_v63 }
 0x2ec   : > { %v1773_v0 = vmul.f32 %v7015_v23, %v1758_v44  ;;  %v2446_v43 = vmul.f32 %v7362_v34, %v1758_v44  ;;  %5749 = vset.pattern.permute.xlu2 %v9427_v32  ;;  %v2421_v44 = vadd.f32 %v2413_v14, %v2405_v22 }
 0x2ed   : > { %9426 = vst [vmem:[#allocation55_spill] sm:$0xff] %v7468_v58  ;;  %5748 = vset.pattern.permute.xlu1 %v9427_v32  ;;  %2206 = vperm.xlu2 %5749, %v7322_v51   ;;  %v9434_v58 = vmov 6  }
 0x2ee   : > { %v7478_v60 = vadd.f32 %v1773_v0, %v7308_v38  ;;  %v7480_v6 = vadd.f32 %v2446_v43, %v2438_v13  ;;  %2202 = vperm.xlu1 %5748, %v7484_v8   ;;  %v1702_v50 = vpop.permute.xlu2 %1701  ;;  %v9431_v13 = vld [vmem:[#allocation87_spill] sm:$0xff] }
 0x2ef   : > { %v1723_v38 = vmul.f32 %v6993_v37, %v1702_v50  ;;  %v2428_v53 = vmul.f32 %v7352_v40, %v1702_v50  ;;  %v1530_v0 = vmul.f32 %v7334_v27, %v9431_v13  ;;  %v2437_v50 = vadd.f32 %v2429_v24, %v2421_v44 }
 0x2f0   : > { %9429 = vst [vmem:[#allocation103_spill] sm:$0xff] %v7478_v60 }
 0x2f1   : > { %v7497_v43 = vadd.f32 %v1723_v38, %v1683_v41  ;;  %v7499_v60 = vadd.f32 %v2428_v53, %v2420_v15  ;;  %v1538_v57 = vadd.f32 %v1530_v0, %v7396_v49  ;;  %v9435_v41 = vld [vmem:[#allocation148_spill] sm:$0xff]  ;;  %v2453_v15 = vadd.f32 %v2445_v2, %v2437_v50 }
 0x2f2   : > { %v1594_v49 = vmul.f32 %v6904_v12, %v9435_v41  ;;  %v9439_v2 = vmov 0  }
 0x2f3   : > { %v1554_v22 = vadd.f32 %v1546_v54, %v1538_v57  ;;  %v9436_v57 = vld [vmem:[#allocation39_spill] sm:$0xff] }
 0x2f4   : > { %v1957_v4 = vpop.permute.xlu1 %1956  ;;  %v1642_v44 = vmul.f32 %v6923_v19, %v9436_v57  ;;  %v9437_v54 = vld [vmem:[#allocation75_spill] sm:$0xff]  ;;  %v9443_v19 = vld [vmem:[#allocation120_spill] sm:$0xff] }
 0x2f5   : > { %5751 = vset.pattern.permute.xlu2 %v9434_v58  ;;  %v1602_v53 = vadd.f32 %v1594_v49, %v1554_v22  ;;  %v1813_v35 = vmul.f32 %v7224_v36, %v9437_v54  ;;  %v9441_v49 = vld [vmem:[#allocation60_spill] sm:$0xff] }
 0x2f6   : > { %5750 = vset.pattern.permute.xlu1 %v9434_v58  ;;  %2254 = vperm.xlu2 %5751, %v7322_v51   ;;  %v9446_v58 = vld [vmem:[#allocation108_spill] sm:$0xff] }
 0x2f7   : > { %2250 = vperm.xlu1 %5750, %v7484_v8   ;;  %v2051_v14 = vpop.permute.xlu2 %2050  ;;  %v1650_v50 = vadd.f32 %v1642_v44, %v1602_v53  ;;  %v1845_v53 = vmul.f32 %v7293_v1, %v9377_v25 }
 0x2f8   : > { %v2069_v38 = vmul.f32 %v6904_v12, %v2051_v14  ;;  %v2461_v9 = vmul.f32 %v7334_v27, %v2051_v14  ;;  %v9440_v14 = vld [vmem:[#allocation66_spill] sm:$0xff] }
 0x2f9   : > { %v1797_v22 = vmul.f32 %v7235_v45, %v9440_v14 }
 0x2fa   : > { %v7515_v20 = vadd.f32 %v2069_v38, %v7386_v62  ;;  %v7517_v24 = vadd.f32 %v2461_v9, %v2453_v15  ;;  %v1829_v62 = vmul.f32 %v7242_v55, %v9375_v18  ;;  %v7533_v15 = vld [vmem:[%s6086_s24 + $0x61] sm:$0xff]  ;;  %v1658_v38 = vmul.f32 %v6942_v59, %v9443_v19  ;;  %v9444_v18 = vld [vmem:[#allocation99_spill] sm:$0xff] }
 0x2fb   : > { %9442 = vst [vmem:[#allocation138_spill] sm:$0xff] %v7533_v15  ;;  %v1821_v54 = vadd.f32 %v1813_v35, %v1797_v22  ;;  %v1877_v35 = vmul.f32 %v7341_v16, %v9446_v58 }
 0x2fc   : > { %v1666_v14 = vadd.f32 %v1658_v38, %v1650_v50  ;;  %v1893_v50 = vmul.f32 %v7352_v40, %v9388_v30  ;;  %v1974_v38 = vmul.f32 %v7334_v27, %v1957_v4  ;;  %v9450_v4 = vld [vmem:[#allocation22_spill] sm:$0xff]  ;;  %v9455_v30 = vld [vmem:[#allocation135_spill] sm:$0xff] }
 0x2fd   : > { %v7521_v0 = vpop.permute.xlu1 %1433  ;;  %v1837_v42 = vadd.f32 %v1829_v62, %v1821_v54  ;;  %v1384_v58 = vmul.f32 %v7293_v1, %v9455_v30  ;;  %v2331_v30 = vmul.f32 %v7235_v45, %v9431_v13 }
 0x2fe   : > { %5753 = vset.pattern.permute.xlu2 %v9438_v28 }
 0x2ff   : > { %5752 = vset.pattern.permute.xlu1 %v9439_v2  ;;  %1737 = vperm.xlu2 %5753, %v9441_v49   ;;  %v1861_v49 = vmul.f32 %v7315_v26, %v9444_v18  ;;  %v1853_v59 = vadd.f32 %v1845_v53, %v1837_v42 }
 0x300   : > { %2524 = vperm.xlu1 %5752, %v7533_v15   ;;  %v2530_v9 = vpop.permute.xlu2 %2529  ;;  %v9445_v15 = vld [vmem:[#allocation126_spill] sm:$0xff] }
 0x301   : > { %v2543_v44 = vmul.f32 %v6904_v12, %v2530_v9  ;;  %v1674_v32 = vmul.f32 %v6965_v33, %v9445_v15  ;;  %v1869_v54 = vadd.f32 %v1861_v49, %v1853_v59  ;;  %v7561_v33 = vld [vmem:[%s6086_s24 + $0x10] sm:$0xff]  ;;  %v9448_v49 = vld [vmem:[#allocation20_spill] sm:$0xff] }
 0x302   : > { %v9447_v9 = vld [vmem:[#allocation14_spill] sm:$0xff] }
 0x303   : > { %v7544_v10 = vadd.f32 %v2543_v44, %v7426_v21  ;;  %v1682_v25 = vadd.f32 %v1674_v32, %v1666_v14  ;;  %v1885_v42 = vadd.f32 %v1877_v35, %v1869_v54  ;;  %v7575_v44 = vld [vmem:[%s9232_s1 + $0x9] ss:$0 sm:$0xff] }
 0x304   : > { %v1545_v59 = vmul.f32 %v7575_v44, %v9448_v49  ;;  %v9449_v54 = vld [vmem:[#allocation13_spill] sm:$0xff] }
 0x305   : > { %v1901_v62 = vadd.f32 %v1893_v50, %v1885_v42  ;;  %v1256_v50 = vmul.f32 %v7235_v45, %v9449_v54  ;;  %v1272_v42 = vmul.f32 %v7224_v36, %v9450_v4 }
 0x306   : > { %v7550_v22 = vpop.permute.xlu1 %1697 }
 0x307   : > { %v1722_v12 = vmul.f32 %v6993_v37, %v7550_v22  ;;  %5755 = vset.pattern.permute.xlu2 %v9439_v2  ;;  %v1909_v37 = vmul.f32 %v7362_v34, %v9397_v29 }
 0x308   : > { %5754 = vset.pattern.permute.xlu1 %v9438_v28  ;;  %1931 = vperm.xlu2 %5755, %v7561_v33  }
 0x309   : > { %v7558_v21 = vadd.f32 %v1722_v12, %v1682_v25  ;;  %1741 = vperm.xlu1 %5754, %v7403_v31   ;;  %v1486_v32 = vpop.permute.xlu2 %1485  ;;  %v1529_v25 = vmul.f32 %v7334_v27, %v9447_v9  ;;  %v1917_v53 = vadd.f32 %v1909_v37, %v1901_v62  ;;  %v7587_v37 = vld [vmem:[%s9232_s1 + $0xa] ss:$0 sm:$0xff] }
 0x30a   : > { %v1513_v14 = vmul.f32 %v7362_v34, %v1486_v32 }
 0x30b   : > { %v1982_v32 = vadd.f32 %v1974_v38, %v1917_v53  ;;  %v7600_v38 = vld [vmem:[%s9232_s1 + $0xb] ss:$0 sm:$0xff]  ;;  %v9454_v53 = vld [vmem:[#allocation139_spill] sm:$0xff] }
 0x30c   : > { %v1521_v28 = vadd.f32 %v1513_v14, %v7462_v61  ;;  %v9451_v14 = vld [vmem:[#allocation17_spill] sm:$0xff] }
 0x30d   : > { %v1593_v62 = vmul.f32 %v7587_v37, %v9451_v14  ;;  %v1280_v14 = vadd.f32 %v1272_v42, %v1256_v50 }
 0x30e   : > { %v1537_v35 = vadd.f32 %v1529_v25, %v1521_v28  ;;  %v9452_v25 = vmov 3   ;;  %v9453_v28 = vld [vmem:[#allocation151_spill] sm:$0xff] }
 0x30f   : > { %v2007_v12 = vpop.permute.xlu1 %2006  ;;  %v1336_v49 = vmul.f32 %v7242_v55, %v9453_v28  ;;  %v9456_v28 = vld [vmem:[#allocation82_spill] sm:$0xff] }
 0x310   : > { %v2022_v61 = vmul.f32 %v7575_v44, %v2007_v12  ;;  %v1553_v9 = vadd.f32 %v1545_v59, %v1537_v35  ;;  %5757 = vset.pattern.permute.xlu2 %v9452_v25  ;;  %v1641_v59 = vmul.f32 %v7600_v38, %v9454_v53  ;;  %v2460_v18 = vmul.f32 %v7334_v27, %v9456_v28  ;;  %v7647_v28 = vld [vmem:[%s9232_s1 + $0xc] ss:$0 sm:$0xff] }
 0x311   : > { %5756 = vset.pattern.permute.xlu1 %v9452_v25  ;;  %2094 = vperm.xlu2 %5757, %v7255_v48   ;;  %v1344_v48 = vadd.f32 %v1336_v49, %v1280_v14  ;;  %v9461_v14 = vld [vmem:[#allocation58_spill] sm:$0xff] }
 0x312   : > { %v2030_v29 = vadd.f32 %v2022_v61, %v1982_v32  ;;  %2090 = vperm.xlu1 %5756, %v7399_v46   ;;  %v1601_v35 = vadd.f32 %v1593_v62, %v1553_v9  ;;  %v1750_v12 = vpop.permute.xlu2 %1749  ;;  %v2347_v46 = vmul.f32 %v7224_v36, %v9433_v63 }
 0x313   : > { %v1771_v32 = vmul.f32 %v7015_v23, %v1750_v12  ;;  %v2444_v61 = vmul.f32 %v7362_v34, %v1750_v12  ;;  %v2363_v23 = vmul.f32 %v7242_v55, %v9435_v41  ;;  %v1392_v42 = vadd.f32 %v1384_v58, %v1344_v48 }
 0x314   : > { %v7610_v31 = vadd.f32 %v1641_v59, %v1601_v35  ;;  %v2379_v59 = vmul.f32 %v7293_v1, %v9436_v57  ;;  %v2147_v35 = vpop.permute.xlu0 %2146  ;;  %v2355_v41 = vadd.f32 %v2347_v46, %v2331_v30  ;;  %v9462_v48 = vmov 7  }
 0x315   : > { %v7615_v62 = vadd.f32 %v1771_v32, %v7497_v43  ;;  %v2452_v50 = vadd.f32 %v2444_v61, %v7499_v60  ;;  %v9460_v60 = vld [vmem:[#allocation44_spill] sm:$0xff]  ;;  %v2118_v32 = vmul.f32 %v7600_v38, %v9461_v14  ;;  %v9463_v58 = vmov 4  }
 0x316   : > { %9457 = vst [vmem:[#allocation144_spill] sm:$0xff] %v7610_v31  ;;  %v1400_v12 = vmul.f32 %v7315_v26, %v9460_v60  ;;  %v2371_v46 = vadd.f32 %v2363_v23, %v2355_v41  ;;  %v9470_v31 = vld [vmem:[#allocation71_spill] sm:$0xff] }
 0x317   : > { %9458 = vst [vmem:[#allocation153_spill] sm:$0xff] %v7615_v62  ;;  %v7622_v53 = vadd.f32 %v2460_v18, %v2452_v50  ;;  %v2478_v18 = vmul.f32 %v7575_v44, %v9461_v14  ;;  %v7639_v50 = vld [vmem:[%s6086_s24 + $0x60] sm:$0xff] }
 0x318   : > { %v2055_v9 = vpop.permute.xlu1 %2054  ;;  %v1408_v30 = vadd.f32 %v1400_v12, %v1392_v42  ;;  %v9467_v14 = vld [vmem:[#allocation52_spill] sm:$0xff]  ;;  %v1464_v42 = vmul.f32 %v7352_v40, %v7521_v0  ;;  %v7663_v12 = vld [vmem:[%s9232_s1 + $0xd] ss:$0 sm:$0xff] }
 0x319   : > { %9459 = vst [vmem:[#allocation131_spill] sm:$0xff] %v7622_v53  ;;  %v2070_v49 = vmul.f32 %v7587_v37, %v2055_v9  ;;  %v2462_v43 = vmul.f32 %v7334_v27, %v2055_v9  ;;  %5759 = vset.pattern.permute.xlu2 %v9462_v48  ;;  %v9464_v9 = vld [vmem:[#allocation109_spill] sm:$0xff]  ;;  %v1416_v23 = vmul.f32 %v7341_v16, %v9467_v14 }
 0x31a   : > { %5758 = vset.pattern.permute.xlu1 %v9463_v58  ;;  %2298 = vperm.xlu2 %5759, %v7484_v8   ;;  %v2541_v62 = vmul.f32 %v7587_v37, %v9464_v9  ;;  %v2387_v9 = vadd.f32 %v2379_v59, %v2371_v46  ;;  %v1826_v59 = vmul.f32 %v7242_v55, %v9431_v13 }
 0x31b   : > { %v2078_v57 = vadd.f32 %v2070_v49, %v2030_v29  ;;  %v2470_v61 = vadd.f32 %v2462_v43, %v7480_v6  ;;  %2150 = vperm.xlu1 %5758, %v7639_v50   ;;  %v2099_v53 = vpop.permute.xlu2 %2098  ;;  %v2165_v29 = vmul.f32 %v7647_v28, %v2147_v35  ;;  %v9468_v35 = vld [vmem:[#allocation142_spill] sm:$0xff]  ;;  %v1528_v46 = vmul.f32 %v7334_v27, %v9418_v7 }
 0x31c   : > { %v2117_v6 = vmul.f32 %v7600_v38, %v2099_v53  ;;  %v2477_v8 = vmul.f32 %v7575_v44, %v2099_v53  ;;  %v2213_v41 = vmul.f32 %v7663_v12, %v9468_v35  ;;  %v1794_v35 = vmul.f32 %v7235_v45, %v9470_v31 }
 0x31d   : > { %v7652_v49 = vadd.f32 %v2478_v18, %v2470_v61  ;;  %v7654_v43 = vadd.f32 %v2118_v32, %v2078_v57  ;;  %v1424_v32 = vadd.f32 %v1416_v23, %v1408_v30  ;;  %v9469_v57 = vld [vmem:[#allocation78_spill] sm:$0xff]  ;;  %v9495_v13 = vld [vmem:[#allocation144_spill] sm:$0xff] }
 0x31e   : > { %v2125_v53 = vadd.f32 %v2117_v6, %v7515_v20  ;;  %v2485_v18 = vadd.f32 %v2477_v8, %v7517_v24  ;;  %v1810_v61 = vmul.f32 %v7224_v36, %v9469_v57  ;;  %v2395_v20 = vmul.f32 %v7315_v26, %v9443_v19  ;;  %v7687_v30 = vld [vmem:[%s6086_s24 + $0x51] sm:$0xff] }
 0x31f   : > { %9465 = vst [vmem:[#allocation137_spill] sm:$0xff] %v7652_v49  ;;  %v1472_v25 = vadd.f32 %v1464_v42, %v1424_v32  ;;  %v1544_v42 = vmul.f32 %v7575_v44, %v9419_v5  ;;  %v1592_v32 = vmul.f32 %v7587_v37, %v7230_v11 }
 0x320   : > { %9466 = vst [vmem:[#allocation140_spill] sm:$0xff] %v7654_v43  ;;  %v2173_v43 = vadd.f32 %v2165_v29, %v2125_v53  ;;  %v7671_v49 = vadd.f32 %v2541_v62, %v2485_v18  ;;  %v1818_v29 = vadd.f32 %v1810_v61, %v1794_v35  ;;  %v2403_v6 = vadd.f32 %v2395_v20, %v2387_v9  ;;  %v9473_v9 = vld [vmem:[#allocation149_spill] sm:$0xff]  ;;  %v9474_v35 = vld [vmem:[#allocation104_spill] sm:$0xff] }
 0x321   : > { %v1482_v0 = vpop.permute.xlu1 %1481  ;;  %v2411_v53 = vmul.f32 %v7341_v16, %v9445_v15  ;;  %v1858_v20 = vmul.f32 %v7315_v26, %v9474_v35 }
 0x322   : > { %v1512_v58 = vmul.f32 %v7362_v34, %v1482_v0  ;;  %v7678_v24 = vadd.f32 %v2213_v41, %v2173_v43  ;;  %5761 = vset.pattern.permute.xlu2 %v9410_v52  ;;  %v1842_v43 = vmul.f32 %v7293_v1, %v9433_v63  ;;  %v1834_v18 = vadd.f32 %v1826_v59, %v1818_v29  ;;  %v9476_v63 = vld [vmem:[#allocation112_spill] sm:$0xff] }
 0x323   : > { %5760 = vset.pattern.permute.xlu1 %v9462_v48  ;;  %2570 = vperm.xlu2 %5761, %v7687_v30   ;;  %v1874_v11 = vmul.f32 %v7341_v16, %v9476_v63 }
 0x324   : > { %9471 = vst [vmem:[#allocation101_spill] sm:$0xff] %v7678_v24  ;;  %v1520_v62 = vadd.f32 %v1512_v58, %v1472_v25  ;;  %2302 = vperm.xlu1 %5760, %v7322_v51   ;;  %v2159_v8 = vpop.permute.xlu2 %2158  ;;  %v9472_v58 = vld [vmem:[#allocation85_spill] sm:$0xff]  ;;  %v2427_v51 = vmul.f32 %v7352_v40, %v7550_v22  ;;  %v1640_v22 = vmul.f32 %v7600_v38, %v7432_v56  ;;  %v9503_v24 = vld [vmem:[#allocation92_spill] sm:$0xff] }
 0x325   : > { %v2168_v25 = vmul.f32 %v7647_v28, %v2159_v8  ;;  %v490_v41 = vmul.f32 %v7235_v45, %v9472_v58  ;;  %v1850_v58 = vadd.f32 %v1842_v43, %v1834_v18  ;;  %v1656_v43 = vmul.f32 %v7647_v28, %v9421_v39  ;;  %v7725_v18 = vld [vmem:[%s6086_s24 + $0x20] sm:$0xff] }
 0x326   : > { %v1536_v23 = vadd.f32 %v1528_v46, %v1520_v62  ;;  %v2419_v62 = vadd.f32 %v2411_v53, %v2403_v6  ;;  %v9475_v46 = vld [vmem:[#allocation7_spill] sm:$0xff] }
 0x327   : > { %v7705_v0 = vadd.f32 %v2168_v25, %v9473_v9  ;;  %v540_v8 = vmul.f32 %v7224_v36, %v9475_v46 }
 0x328   : > { %v1552_v61 = vadd.f32 %v1544_v42, %v1536_v23  ;;  %v2435_v23 = vadd.f32 %v2427_v51, %v2419_v62  ;;  %v7718_v42 = vld [vmem:[%s9232_s1 + $0xf] ss:$0 sm:$0xff]  ;;  %v1866_v51 = vadd.f32 %v1858_v20, %v1850_v58  ;;  %v1906_v58 = vmul.f32 %v7362_v34, %v9445_v15 }
 0x329   : > { %v548_v53 = vadd.f32 %v540_v8, %v490_v41  ;;  %v1672_v41 = vmul.f32 %v7663_v12, %v9422_v17  ;;  %v590_v8 = vmul.f32 %v7242_v55, %v9449_v54 }
 0x32a   : > { %v1600_v59 = vadd.f32 %v1592_v32, %v1552_v61  ;;  %v1746_v29 = vpop.permute.xlu1 %1745  ;;  %v1890_v32 = vmul.f32 %v7352_v40, %v9443_v19 }
 0x32b   : > { %v1770_v6 = vmul.f32 %v7718_v42, %v1746_v29  ;;  %v2443_v25 = vmul.f32 %v7362_v34, %v1746_v29  ;;  %1990 = vperm.xlu2 %5761, %v7725_v18  }
 0x32c   : > { %v1648_v56 = vadd.f32 %v1640_v22, %v1600_v59  ;;  %5762 = vset.pattern.permute.xlu1 %v9410_v52  ;;  %v1882_v22 = vadd.f32 %v1874_v11, %v1866_v51 }
 0x32d   : > { %v7732_v61 = vadd.f32 %v1770_v6, %v7558_v21  ;;  %v2451_v9 = vadd.f32 %v2443_v25, %v2435_v23  ;;  %1986 = vperm.xlu1 %5762, %v7561_v33   ;;  %v2583_v62 = vpop.permute.xlu2 %2582  ;;  %v7745_v21 = vld [vmem:[%s9232_s1 + $0xe] ss:$0 sm:$0xff]  ;;  %v598_v23 = vadd.f32 %v590_v8, %v548_v53  ;;  %v9478_v6 = vld [vmem:[#allocation94_spill] sm:$0xff] }
 0x32e   : > { %v1664_v46 = vadd.f32 %v1656_v43, %v1648_v56  ;;  %v2592_v20 = vmul.f32 %v7600_v38, %v2583_v62  ;;  %v1720_v59 = vmul.f32 %v7745_v21, %v9423_v47  ;;  %v1898_v54 = vadd.f32 %v1890_v32, %v1882_v22  ;;  %v9479_v56 = vld [vmem:[#allocation106_spill] sm:$0xff]  ;;  %v9480_v32 = vld [vmem:[#allocation29_spill] sm:$0xff] }
 0x32f   : > { %9477 = vst [vmem:[#allocation129_spill] sm:$0xff] %v7732_v61  ;;  %v640_v43 = vmul.f32 %v7293_v1, %v9450_v4  ;;  %v1971_v51 = vmul.f32 %v7334_v27, %v9479_v56 }
 0x330   : > { %v1680_v29 = vadd.f32 %v1672_v41, %v1664_v46  ;;  %v7750_v25 = vadd.f32 %v2592_v20, %v9478_v6  ;;  %v1914_v61 = vadd.f32 %v1906_v58, %v1898_v54  ;;  %v690_v41 = vmul.f32 %v7315_v26, %v9480_v32  ;;  %v9481_v20 = vld [vmem:[#allocation36_spill] sm:$0xff] }
 0x331   : > { %v648_v47 = vadd.f32 %v640_v43, %v598_v23  ;;  %v740_v58 = vmul.f32 %v7341_v16, %v9481_v20  ;;  %v9483_v6 = vld [vmem:[#allocation136_spill] sm:$0xff]  ;;  %v9484_v54 = vmov 5   ;;  %v9485_v43 = vld [vmem:[#allocation79_spill] sm:$0xff] }
 0x332   : > { %v7752_v11 = vadd.f32 %v1720_v59, %v1680_v29  ;;  %v1979_v4 = vadd.f32 %v1971_v51, %v1914_v61  ;;  %v790_v61 = vmul.f32 %v7352_v40, %v9460_v60 }
 0x333   : > { %v7758_v62 = vpop.permute.xlu1 %1946  ;;  %5764 = vset.pattern.permute.xlu2 %v9352_v3  ;;  %v698_v8 = vadd.f32 %v690_v41, %v648_v47 }
 0x334   : > { %2038 = vperm.xlu2 %5764, %v7725_v18  }
 0x335   : > { %5763 = vset.pattern.permute.xlu1 %v9352_v3  ;;  %v1995_v53 = vpop.permute.xlu2 %1994  ;;  %v748_v29 = vadd.f32 %v740_v58, %v698_v8  ;;  %v9482_v3 = vmov 6   ;;  %v7788_v8 = vld [vmem:[%s6086_s24 + $0x31] sm:$0xff]  ;;  %v9487_v58 = vld [vmem:[#allocation72_spill] sm:$0xff] }
 0x336   : > { %2034 = vperm.xlu1 %5763, %v7561_v33   ;;  %v2019_v46 = vmul.f32 %v7575_v44, %v1995_v53  ;;  %9486 = vst [vmem:[#allocation111_spill] sm:$0xff] %v7788_v8 }
 0x337   : > { %v798_v32 = vadd.f32 %v790_v61, %v748_v29  ;;  %v9490_v29 = vld [vmem:[#allocation80_spill] sm:$0xff] }
 0x338   : > { %v2027_v22 = vadd.f32 %v2019_v46, %v1979_v4  ;;  %v840_v46 = vmul.f32 %v7362_v34, %v9467_v14  ;;  %v1827_v61 = vmul.f32 %v7242_v55, %v9490_v29  ;;  %v9493_v55 = vld [vmem:[#allocation69_spill] sm:$0xff] }
 0x33a   : > { %v848_v60 = vadd.f32 %v840_v46, %v798_v32 }
 0x33c   : > { %v2155_v59 = vpop.permute.xlu1 %2154  ;;  %5766 = vset.pattern.permute.xlu2 %v9482_v3 }
 0x33d   : > { %v2167_v23 = vmul.f32 %v7647_v28, %v2155_v59  ;;  %2242 = vperm.xlu2 %5766, %v9483_v6   ;;  %v1811_v59 = vmul.f32 %v7224_v36, %v9487_v58  ;;  %v9497_v58 = vld [vmem:[#allocation30_spill] sm:$0xff] }
 0x33e   : > { %5765 = vset.pattern.permute.xlu1 %v9484_v54  ;;  %v2043_v51 = vpop.permute.xlu2 %2042 }
 0x33f   : > { %v7776_v56 = vadd.f32 %v2167_v23, %v9485_v43  ;;  %2198 = vperm.xlu1 %5765, %v7639_v50   ;;  %v2067_v47 = vmul.f32 %v7587_v37, %v2043_v51  ;;  %v2459_v53 = vmul.f32 %v7334_v27, %v2043_v51  ;;  %v9488_v43 = vld [vmem:[#allocation61_spill] sm:$0xff] }
 0x341   : > { %v7781_v41 = vadd.f32 %v2067_v47, %v2027_v22  ;;  %v7783_v4 = vadd.f32 %v2459_v53, %v2451_v9  ;;  %v890_v22 = vmul.f32 %v7334_v27, %v9488_v43  ;;  %v9489_v9 = vld [vmem:[#allocation64_spill] sm:$0xff]  ;;  %v9491_v47 = vld [vmem:[#allocation25_spill] sm:$0xff] }
 0x342   : > { %v1795_v14 = vmul.f32 %v7235_v45, %v9489_v9  ;;  %v1657_v53 = vmul.f32 %v7647_v28, %v9491_v47  ;;  %v2394_v46 = vmul.f32 %v7315_v26, %v9491_v47  ;;  %v9492_v45 = vld [vmem:[#allocation88_spill] sm:$0xff]  ;;  %v9501_v9 = vld [vmem:[#allocation143_spill] sm:$0xff] }
 0x343   : > { %v898_v32 = vadd.f32 %v890_v22, %v848_v60  ;;  %v1843_v19 = vmul.f32 %v7293_v1, %v9492_v45  ;;  %v9496_v60 = vld [vmem:[#allocation96_spill] sm:$0xff] }
 0x344   : > { %v1819_v15 = vadd.f32 %v1811_v59, %v1795_v14  ;;  %v1665_v57 = vadd.f32 %v1657_v53, %v9495_v13  ;;  %v1859_v22 = vmul.f32 %v7315_v26, %v9496_v60  ;;  %v1673_v59 = vmul.f32 %v7663_v12, %v9497_v58 }
 0x345   : > { %v2579_v20 = vpop.permute.xlu1 %2578  ;;  %5768 = vset.pattern.permute.xlu2 %v9439_v2  ;;  %v2410_v14 = vmul.f32 %v7341_v16, %v9497_v58 }
 0x346   : > { %v2591_v23 = vmul.f32 %v7600_v38, %v2579_v20  ;;  %2509 = vperm.xlu2 %5768, %v7788_v8   ;;  %v1835_v31 = vadd.f32 %v1827_v61, %v1819_v15  ;;  %v1681_v15 = vadd.f32 %v1673_v59, %v1665_v57 }
 0x347   : > { %5767 = vset.pattern.permute.xlu1 %v9482_v3  ;;  %v2207_v36 = vpop.permute.xlu2 %2206 }
 0x348   : > { %v7803_v51 = vadd.f32 %v2591_v23, %v7544_v10  ;;  %2246 = vperm.xlu1 %5767, %v7639_v50   ;;  %v2216_v20 = vmul.f32 %v7663_v12, %v2207_v36  ;;  %v940_v10 = vmul.f32 %v7575_v44, %v9493_v55  ;;  %v9494_v23 = vld [vmem:[#allocation93_spill] sm:$0xff]  ;;  %v990_v36 = vmul.f32 %v7587_v37, %v9418_v7 }
 0x349   : > { %v2402_v63 = vadd.f32 %v2394_v46, %v9494_v23  ;;  %v1851_v45 = vadd.f32 %v1843_v19, %v1835_v31  ;;  %v9498_v46 = vld [vmem:[#allocation105_spill] sm:$0xff]  ;;  %v9500_v23 = vld [vmem:[#allocation114_spill] sm:$0xff]  ;;  %v1040_v31 = vmul.f32 %v7600_v38, %v9419_v5 }
 0x34a   : > { %v2224_v35 = vadd.f32 %v2216_v20, %v7705_v0  ;;  %v948_v29 = vadd.f32 %v940_v10, %v898_v32  ;;  %v1875_v0 = vmul.f32 %v7341_v16, %v9498_v46  ;;  %v9499_v20 = vmov 4  }
 0x34b   : > { %v2418_v53 = vadd.f32 %v2410_v14, %v2402_v63  ;;  %v1867_v10 = vadd.f32 %v1859_v22, %v1851_v45  ;;  %v1891_v60 = vmul.f32 %v7352_v40, %v9500_v23  ;;  %v7842_v14 = vld [vmem:[%s6086_s24 + $0x71] sm:$0xff]  ;;  %v9502_v22 = vld [vmem:[#allocation121_spill] sm:$0xff] }
 0x34c   : > { %v998_v19 = vadd.f32 %v990_v36, %v948_v29  ;;  %v1090_v29 = vmul.f32 %v7647_v28, %v9503_v24 }
 0x34d   : > { %v1883_v45 = vadd.f32 %v1875_v0, %v1867_v10 }
 0x34e   : > { %v1694_v13 = vpop.permute.xlu1 %1693  ;;  %5771 = vset.pattern.permute.xlu2 %v9499_v20  ;;  %v1048_v0 = vadd.f32 %v1040_v31, %v998_v19 }
 0x34f   : > { %v1721_v61 = vmul.f32 %v7745_v21, %v1694_v13  ;;  %v2426_v32 = vmul.f32 %v7352_v40, %v1694_v13  ;;  %2662 = vperm.xlu2 %5771, %v9501_v9   ;;  %v1907_v13 = vmul.f32 %v7362_v34, %v9502_v22  ;;  %v1899_v36 = vadd.f32 %v1891_v60, %v1883_v45 }
 0x350   : > { %5770 = vset.pattern.permute.xlu1 %v9499_v20  ;;  %v2255_v63 = vpop.permute.xlu2 %2254  ;;  %v1098_v5 = vadd.f32 %v1090_v29, %v1048_v0  ;;  %v9505_v45 = vmov 3  }
 0x351   : > { %v7837_v57 = vadd.f32 %v1721_v61, %v1681_v15  ;;  %v7839_v59 = vadd.f32 %v2426_v32, %v2418_v53  ;;  %2658 = vperm.xlu1 %5770, %v7842_v14   ;;  %v2264_v23 = vmul.f32 %v7745_v21, %v2255_v63  ;;  %v2608_v46 = vmul.f32 %v7647_v28, %v2255_v63  ;;  %v9504_v32 = vld [vmem:[#allocation102_spill] sm:$0xff] }
 0x352   : > { %v1972_v15 = vmul.f32 %v7334_v27, %v7758_v62  ;;  %v1140_v10 = vmul.f32 %v7663_v12, %v9504_v32  ;;  %v1915_v22 = vadd.f32 %v1907_v13, %v1899_v36  ;;  %v1190_v63 = vmul.f32 %v7745_v21, %v9421_v39  ;;  %v9506_v62 = vld [vmem:[#allocation82_spill] sm:$0xff]  ;;  %v9509_v36 = vld [vmem:[#allocation55_spill] sm:$0xff] }
 0x353   : > { %v7853_v61 = vadd.f32 %v2264_v23, %v2224_v35  ;;  %v7856_v53 = vadd.f32 %v2608_v46, %v7750_v25  ;;  %v1240_v25 = vmul.f32 %v7718_v42, %v9422_v17  ;;  %v2068_v46 = vmul.f32 %v7587_v37, %v9506_v62 }
 0x354   : > { %v1980_v24 = vadd.f32 %v1972_v15, %v1915_v22  ;;  %v1148_v35 = vadd.f32 %v1140_v10, %v1098_v5 }
 0x356   : > { %v1198_v19 = vadd.f32 %v1190_v63, %v1148_v35 }
 0x357   : > { %v1999_v7 = vpop.permute.xlu1 %1998  ;;  %5773 = vset.pattern.permute.xlu2 %v9505_v45 }
 0x358   : > { %v2020_v60 = vmul.f32 %v7575_v44, %v1999_v7  ;;  %2086 = vperm.xlu2 %5773, %v7725_v18   ;;  %v7873_v13 = vadd.f32 %v1240_v25, %v1198_v19 }
 0x359   : > { %5772 = vset.pattern.permute.xlu1 %v9505_v45  ;;  %v1738_v31 = vpop.permute.xlu2 %1737 }
 0x35a   : > { %v2028_v23 = vadd.f32 %v2020_v60, %v1980_v24  ;;  %2082 = vperm.xlu1 %5772, %v7561_v33   ;;  %v1768_v7 = vmul.f32 %v7718_v42, %v1738_v31  ;;  %v2441_v22 = vmul.f32 %v7362_v34, %v1738_v31  ;;  %9507 = vst [vmem:[#allocation119_spill] sm:$0xff] %v7873_v13  ;;  %v9511_v31 = vld [vmem:[#allocation115_spill] sm:$0xff]  ;;  %v9522_v24 = vld [vmem:[#allocation45_spill] sm:$0xff] }
 0x35b   : > { %v2540_v19 = vmul.f32 %v7587_v37, %v9511_v31  ;;  %v9523_v13 = vld [vmem:[#allocation35_spill] sm:$0xff] }
 0x35c   : > { %v2076_v5 = vadd.f32 %v2068_v46, %v2028_v23  ;;  %v7876_v29 = vadd.f32 %v1768_v7, %v7752_v11  ;;  %v7879_v15 = vadd.f32 %v2441_v22, %v9509_v36  ;;  %v9510_v11 = vld [vmem:[#allocation128_spill] sm:$0xff] }
 0x35d   : > { %v9512_v7 = vld [vmem:[#allocation132_spill] sm:$0xff] }
 0x35e   : > { %9508 = vst [vmem:[#allocation73_spill] sm:$0xff] %v7876_v29  ;;  %v2588_v22 = vmul.f32 %v7600_v38, %v9512_v7  ;;  %v9519_v7 = vld [vmem:[#allocation12_spill] sm:$0xff] }
 0x360   : > { %v2203_v0 = vpop.permute.xlu1 %2202  ;;  %5775 = vset.pattern.permute.xlu2 %v9462_v48 }
 0x361   : > { %v2215_v10 = vmul.f32 %v7663_v12, %v2203_v0  ;;  %2290 = vperm.xlu2 %5775, %v9483_v6   ;;  %v9514_v0 = vld [vmem:[#allocation131_spill] sm:$0xff] }
 0x362   : > { %5774 = vset.pattern.permute.xlu1 %v9499_v20  ;;  %v7888_v60 = vpop.permute.xlu2 %1931 }
 0x363   : > { %v2223_v63 = vadd.f32 %v2215_v10, %v7776_v56  ;;  %2142 = vperm.xlu1 %5774, %v9510_v11  }
 0x369   : > { %v2251_v45 = vpop.permute.xlu1 %2250  ;;  %5777 = vset.pattern.permute.xlu2 %v9410_v52 }
 0x36a   : > { %v2263_v35 = vmul.f32 %v7745_v21, %v2251_v45  ;;  %v2607_v25 = vmul.f32 %v7647_v28, %v2251_v45  ;;  %2562 = vperm.xlu2 %5777, %v7788_v8   ;;  %v9524_v8 = vld [vmem:[#allocation43_spill] sm:$0xff] }
 0x36b   : > { %5776 = vset.pattern.permute.xlu1 %v9462_v48  ;;  %v2095_v56 = vpop.permute.xlu2 %2094 }
 0x36c   : > { %v2271_v6 = vadd.f32 %v2263_v35, %v2223_v63  ;;  %v2615_v62 = vadd.f32 %v2607_v25, %v7803_v51  ;;  %2294 = vperm.xlu1 %5776, %v7639_v50   ;;  %v2116_v46 = vmul.f32 %v7600_v38, %v2095_v56  ;;  %v2476_v23 = vmul.f32 %v7575_v44, %v2095_v56  ;;  %v7908_v63 = vld [vmem:[%s6086_s24 + $0x21] sm:$0xff]  ;;  %v9515_v50 = vld [vmem:[#allocation42_spill] sm:$0xff] }
 0x36d   : > { %2638 = vperm.xlu0 %5797, %v7908_v63   ;;  %v1141_v11 = vmul.f32 %v7663_v12, %v9515_v50  ;;  %v7916_v35 = vld [vmem:[%s9232_s1 + $0x1] ss:$0 sm:$0xff]  ;;  %v9516_v25 = vld [vmem:[#allocation21_spill] sm:$0xff]  ;;  %v9517_v56 = vld [vmem:[#allocation130_spill] sm:$0xff] }
 0x36e   : > { %v7904_v36 = vadd.f32 %v2116_v46, %v2076_v5  ;;  %v2484_v10 = vadd.f32 %v2476_v23, %v9514_v0  ;;  %v547_v5 = vmul.f32 %v7916_v35, %v9516_v25  ;;  %v2590_v46 = vmul.f32 %v7600_v38, %v9517_v56  ;;  %v9520_v50 = vld [vmem:[#allocation28_spill] sm:$0xff] }
 0x36f   : > { %v1149_v29 = vadd.f32 %v1141_v11, %v9522_v24  ;;  %v9525_v24 = vld [vmem:[#allocation141_spill] sm:$0xff]  ;;  %v9526_v11 = vld [vmem:[#allocation62_spill] sm:$0xff] }
 0x370   : > { %9513 = vst [vmem:[#allocation152_spill] sm:$0xff] %v7904_v36  ;;  %v2548_v51 = vadd.f32 %v2540_v19, %v2484_v10  ;;  %v7931_v19 = vld [vmem:[%s9232_s1] ss:$0 sm:$0xff]  ;;  %v7938_v10 = vld [vmem:[%s9232_s1 + $0x2] ss:$0 sm:$0xff] }
 0x371   : > { %v497_v0 = vmul.f32 %v7931_v19, %v9519_v7 }
 0x372   : > { %v2525_v45 = vpop.permute.xlu1 %2524  ;;  %5779 = vset.pattern.permute.xlu2 %v9484_v54  ;;  %v7924_v31 = vadd.f32 %v2588_v22, %v2548_v51  ;;  %v597_v22 = vmul.f32 %v7938_v10, %v9520_v50  ;;  %v9521_v51 = vld [vmem:[#allocation137_spill] sm:$0xff]  ;;  %v1191_v50 = vmul.f32 %v7745_v21, %v9491_v47  ;;  %v1241_v47 = vmul.f32 %v7718_v42, %v9497_v58 }
 0x373   : > { %v2542_v23 = vmul.f32 %v7587_v37, %v2525_v45  ;;  %2710 = vperm.xlu2 %5779, %v9501_v9   ;;  %v555_v7 = vadd.f32 %v547_v5, %v497_v0  ;;  %v9527_v5 = vmax.f32 %v9525_v24, %v9526_v11 }
 0x374   : > { %9518 = vst [vmem:[#allocation70_spill] sm:$0xff] %v7924_v31  ;;  %5778 = vset.pattern.permute.xlu1 %v9484_v54  ;;  %v2299_v45 = vpop.permute.xlu2 %2298  ;;  %v647_v31 = vmul.f32 %v7293_v1, %v9523_v13  ;;  %v1199_v1 = vadd.f32 %v1191_v50, %v1149_v29  ;;  %v9530_v29 = vld [vmem:[#allocation59_spill] sm:$0xff] }
 0x375   : > { %v2550_v9 = vadd.f32 %v2542_v23, %v9521_v51  ;;  %2706 = vperm.xlu1 %5778, %v7842_v14   ;;  %v2311_v25 = vmul.f32 %v7718_v42, %v2299_v45  ;;  %v2623_v56 = vmul.f32 %v7663_v12, %v2299_v45  ;;  %5803 = vset.pattern.permute.xlu0 %v9484_v54 }
 0x376   : > { %v605_v14 = vadd.f32 %v597_v22, %v555_v7  ;;  %v697_v45 = vmul.f32 %v7315_v26, %v9524_v8  ;;  %v9529_v8 = vld [vmem:[#allocation133_spill] sm:$0xff] }
 0x377   : > { %v7949_v36 = vadd.f32 %v2590_v46, %v2550_v9  ;;  %v2319_v23 = vadd.f32 %v2311_v25, %v2271_v6  ;;  %v7953_v51 = vadd.f32 %v2623_v56, %v2615_v62  ;;  %v9528_v6 = vld [vmem:[#allocation51_spill] sm:$0xff]  ;;  %v7970_v25 = vld [vmem:[%s6086_s24 + $0x40] sm:$0xff]  ;;  %v7976_v56 = vadd.f32 %v1241_v47, %v1199_v1 }
 0x378   : > { %v655_v13 = vadd.f32 %v647_v31, %v605_v14  ;;  %v747_v62 = vmul.f32 %v7341_v16, %v9528_v6  ;;  %v797_v31 = vmul.f32 %v7352_v40, %v9530_v29  ;;  %v9531_v14 = vld [vmem:[#allocation68_spill] sm:$0xff]  ;;  %v9534_v6 = vld [vmem:[#allocation67_spill] sm:$0xff] }
 0x379   : > { %v7961_v0 = vmax.f32 %v9527_v5, %v2319_v23  ;;  %v847_v24 = vmul.f32 %v7362_v34, %v9531_v14  ;;  %v9532_v5 = vld [vmem:[#allocation76_spill] sm:$0xff] }
 0x37a   : > { %v705_v26 = vadd.f32 %v697_v45, %v655_v13  ;;  %v9533_v13 = vld [vmem:[#allocation84_spill] sm:$0xff] }
 0x37b   : > { %v1742_v46 = vpop.permute.xlu1 %1741  ;;  %2190 = vperm.xlu2 %5779, %v7970_v25  }
 0x37c   : > { %v1769_v9 = vmul.f32 %v7718_v42, %v1742_v46  ;;  %v2442_v22 = vmul.f32 %v7362_v34, %v1742_v46  ;;  %v755_v23 = vadd.f32 %v747_v62, %v705_v26  ;;  %v947_v46 = vmul.f32 %v7575_v44, %v9533_v13 }
 0x37d   : > { %2186 = vperm.xlu1 %5778, %v9529_v8   ;;  %v2571_v7 = vpop.permute.xlu2 %2570 }
 0x37e   : > { %v7979_v58 = vadd.f32 %v1769_v9, %v7837_v57  ;;  %v2450_v16 = vadd.f32 %v2442_v22, %v7839_v59  ;;  %v2589_v50 = vmul.f32 %v7600_v38, %v2571_v7  ;;  %v805_v40 = vadd.f32 %v797_v31, %v755_v23  ;;  %v9536_v31 = vld [vmem:[#allocation100_spill] sm:$0xff] }
 0x37f   : > { %v897_v57 = vmul.f32 %v7334_v27, %v9532_v5  ;;  %v9535_v27 = vld [vmem:[#allocation91_spill] sm:$0xff]  ;;  %v1047_v7 = vmul.f32 %v7600_v38, %v9536_v31  ;;  %v1792_v5 = vmul.f32 %v7931_v19, %v9488_v43  ;;  %v9543_v31 = vld [vmem:[#allocation86_spill] sm:$0xff] }
 0x380   : > { %v1785_v45 = vmax.f32 %v7976_v56, %v7979_v58  ;;  %v7988_v11 = vadd.f32 %v2589_v50, %v7671_v49  ;;  %v855_v1 = vadd.f32 %v847_v24, %v805_v40  ;;  %v997_v9 = vmul.f32 %v7587_v37, %v9535_v27  ;;  %v9537_v50 = vld [vmem:[#allocation113_spill] sm:$0xff]  ;;  %v9538_v24 = vld [vmem:[#allocation110_spill] sm:$0xff] }
 0x381   : > { %v1097_v40 = vmul.f32 %v7647_v28, %v9538_v24 }
 0x382   : > { %v905_v49 = vadd.f32 %v897_v57, %v855_v1  ;;  %v9539_v1 = vld [vmem:[#allocation118_spill] sm:$0xff] }
 0x383   : > { %5782 = vset.pattern.permute.xlu2 %v9439_v2 }
 0x384   : > { %v2091_v59 = vpop.permute.xlu1 %2090  ;;  %2499 = vperm.xlu2 %5782, %v9534_v6   ;;  %v955_v29 = vadd.f32 %v947_v46, %v905_v49  ;;  %v9540_v46 = vld [vmem:[#allocation77_spill] sm:$0xff]  ;;  %v9542_v49 = vld [vmem:[#allocation140_spill] sm:$0xff] }
 0x385   : > { %v2115_v47 = vmul.f32 %v7600_v38, %v2091_v59  ;;  %v2475_v34 = vmul.f32 %v7575_v44, %v2091_v59  ;;  %5781 = vset.pattern.permute.xlu1 %v9482_v3  ;;  %v1991_v62 = vpop.permute.xlu2 %1990  ;;  %v1147_v59 = vmul.f32 %v7663_v12, %v9539_v1 }
 0x386   : > { %2238 = vperm.xlu1 %5781, %v7970_v25   ;;  %v2018_v8 = vmul.f32 %v7575_v44, %v1991_v62  ;;  %v1005_v14 = vadd.f32 %v997_v9, %v955_v29  ;;  %v8036_v9 = vld [vmem:[%s9232_s1 + $0x8] ss:$0 sm:$0xff]  ;;  %v8042_v29 = vld [vmem:[%s9232_s1 + $0x3] ss:$0 sm:$0xff] }
 0x387   : > { %v8003_v22 = vadd.f32 %v2115_v47, %v7781_v41  ;;  %v8006_v26 = vadd.f32 %v2475_v34, %v7783_v4  ;;  %v1808_v41 = vmul.f32 %v7916_v35, %v9493_v55  ;;  %v1824_v47 = vmul.f32 %v7938_v10, %v9540_v46  ;;  %v9541_v55 = vld [vmem:[#allocation125_spill] sm:$0xff] }
 0x388   : > { %v2026_v23 = vadd.f32 %v2018_v8, %v9537_v50  ;;  %v1055_v4 = vadd.f32 %v1047_v7, %v1005_v14  ;;  %v1197_v6 = vmul.f32 %v7745_v21, %v9541_v55  ;;  %v1840_v7 = vmul.f32 %v8042_v29, %v9543_v31  ;;  %v9544_v14 = vld [vmem:[#allocation146_spill] sm:$0xff] }
 0x389   : > { %v1816_v8 = vadd.f32 %v1808_v41, %v1792_v5  ;;  %v1247_v24 = vmul.f32 %v7718_v42, %v9544_v14  ;;  %v8055_v5 = vld [vmem:[%s9232_s1 + $0x4] ss:$0 sm:$0xff] }
 0x38a   : > { %v1105_v43 = vadd.f32 %v1097_v40, %v1055_v4  ;;  %v9545_v41 = vld [vmem:[#allocation92_spill] sm:$0xff] }
 0x38b   : > { %v1856_v1 = vmul.f32 %v8055_v5, %v9545_v41 }
 0x38c   : > { %5784 = vset.pattern.permute.xlu2 %v9499_v20  ;;  %v1155_v50 = vadd.f32 %v1147_v59, %v1105_v43  ;;  %v8062_v59 = vld [vmem:[%s9232_s1 + $0x5] ss:$0 sm:$0xff] }
 0x38d   : > { %v2151_v57 = vpop.permute.xlu1 %2150  ;;  %2650 = vperm.xlu2 %5784, %v7687_v30  }
 0x38e   : > { %v2166_v13 = vmul.f32 %v7647_v28, %v2151_v57  ;;  %5783 = vset.pattern.permute.xlu1 %v9439_v2  ;;  %v2039_v34 = vpop.permute.xlu2 %2038  ;;  %v1832_v57 = vadd.f32 %v1824_v47, %v1816_v8 }
 0x38f   : > { %2504 = vperm.xlu1 %5783, %v7908_v63   ;;  %v2066_v27 = vmul.f32 %v7587_v37, %v2039_v34  ;;  %v2458_v2 = vmul.f32 %v8036_v9, %v2039_v34 }
 0x390   : > { %v8030_v62 = vadd.f32 %v2166_v13, %v9542_v49  ;;  %v1205_v13 = vadd.f32 %v1197_v6, %v1155_v50  ;;  %v1848_v46 = vadd.f32 %v1840_v7, %v1832_v57  ;;  %v9546_v6 = vld [vmem:[#allocation147_spill] sm:$0xff]  ;;  %v9547_v57 = vld [vmem:[#allocation18_spill] sm:$0xff] }
 0x391   : > { %v8048_v40 = vadd.f32 %v2066_v27, %v2026_v23  ;;  %v8050_v4 = vadd.f32 %v2458_v2, %v2450_v16  ;;  %v1872_v16 = vmul.f32 %v8062_v59, %v9504_v32  ;;  %v8074_v27 = vld [vmem:[%s9232_s1 + $0x6] ss:$0 sm:$0xff]  ;;  %v544_v41 = vmul.f32 %v7916_v35, %v9547_v57 }
 0x392   : > { %v1255_v23 = vadd.f32 %v1247_v24, %v1205_v13  ;;  %v1864_v55 = vadd.f32 %v1856_v1, %v1848_v46  ;;  %v1888_v32 = vmul.f32 %v8074_v27, %v9421_v39  ;;  %v8088_v24 = vld [vmem:[%s9232_s1 + $0x7] ss:$0 sm:$0xff] }
 0x393   : > { %v1904_v39 = vmul.f32 %v8088_v24, %v9422_v17  ;;  %v9550_v17 = vld [vmem:[#allocation26_spill] sm:$0xff] }
 0x394   : > { %v1791_v49 = vmax.f32 %v1255_v23, %v9546_v6  ;;  %v1880_v14 = vadd.f32 %v1872_v16, %v1864_v55  ;;  %v1969_v16 = vmul.f32 %v8036_v9, %v7888_v60  ;;  %v9549_v23 = vld [vmem:[#allocation5_spill] sm:$0xff] }
 0x395   : > { %2134 = vperm.xlu2 %5784, %v7725_v18   ;;  %v9551_v6 = vld [vmem:[#allocation33_spill] sm:$0xff] }
 0x396   : > { %v2303_v47 = vpop.permute.xlu1 %2302  ;;  %v1896_v46 = vadd.f32 %v1888_v32, %v1880_v14  ;;  %v5870_v14 = vld [vmem:[%s6086_s24 + $0x30] sm:$0xff] }
 0x397   : > { %v2312_v43 = vmul.f32 %v7718_v42, %v2303_v47  ;;  %v2624_v34 = vmul.f32 %v7663_v12, %v2303_v47  ;;  %5785 = vset.pattern.permute.xlu1 %v9499_v20  ;;  %v2243_v2 = vpop.permute.xlu2 %2242  ;;  %v494_v47 = vmul.f32 %v7931_v19, %v9549_v23  ;;  %v9554_v23 = vld [vmem:[#allocation56_spill] sm:$0xff] }
 0x398   : > { %2130 = vperm.xlu1 %5785, %v7561_v33   ;;  %v2261_v7 = vmul.f32 %v7745_v21, %v2243_v2  ;;  %v2605_v50 = vmul.f32 %v7647_v28, %v2243_v2 }
 0x399   : > { %v2320_v8 = vadd.f32 %v2312_v43, %v7853_v61  ;;  %v8081_v31 = vadd.f32 %v2624_v34, %v7856_v53  ;;  %v9548_v53 = vld [vmem:[#allocation101_spill] sm:$0xff]  ;;  %v594_v43 = vmul.f32 %v7938_v10, %v9550_v17  ;;  %v1912_v34 = vadd.f32 %v1904_v39, %v1896_v46 }
 0x39a   : > { %v8097_v1 = vadd.f32 %v2261_v7, %v9548_v53  ;;  %v8100_v13 = vadd.f32 %v2605_v50, %v7988_v11  ;;  %v552_v55 = vadd.f32 %v544_v41, %v494_v47  ;;  %v9553_v53 = vld [vmem:[#allocation49_spill] sm:$0xff]  ;;  %v794_v47 = vmul.f32 %v8074_v27, %v9554_v23 }
 0x39b   : > { %v8094_v61 = vmax.f32 %v1791_v49, %v2320_v8  ;;  %v644_v49 = vmul.f32 %v8042_v29, %v9551_v6  ;;  %v1977_v32 = vadd.f32 %v1969_v16, %v1912_v34  ;;  %v9552_v8 = vld [vmem:[#allocation40_spill] sm:$0xff] }
 0x39c   : > { %v602_v60 = vadd.f32 %v594_v43, %v552_v55  ;;  %v694_v7 = vmul.f32 %v8055_v5, %v9552_v8  ;;  %v9555_v43 = vld [vmem:[#allocation65_spill] sm:$0xff] }
 0x39d   : > { %5787 = vset.pattern.permute.xlu2 %v9462_v48  ;;  %v844_v34 = vmul.f32 %v8088_v24, %v9555_v43  ;;  %v9557_v8 = vld [vmem:[#allocation81_spill] sm:$0xff] }
 0x39e   : > { %2286 = vperm.xlu2 %5787, %v7970_v25   ;;  %v652_v41 = vadd.f32 %v644_v49, %v602_v60  ;;  %v744_v25 = vmul.f32 %v8062_v59, %v9553_v53  ;;  %v9556_v49 = vld [vmem:[#allocation74_spill] sm:$0xff] }
 0x39f   : > { %v1987_v11 = vpop.permute.xlu1 %1986 }
 0x3a0   : > { %v2017_v2 = vmul.f32 %v7575_v44, %v1987_v11  ;;  %5786 = vset.pattern.permute.xlu1 %v9462_v48  ;;  %v2510_v50 = vpop.permute.xlu2 %2509  ;;  %v702_v16 = vadd.f32 %v694_v7, %v652_v41  ;;  %v894_v11 = vmul.f32 %v8036_v9, %v9556_v49  ;;  %v944_v7 = vmul.f32 %v7575_v44, %v9557_v8 }
 0x3a1   : > { %2282 = vperm.xlu1 %5786, %v5870_v14   ;;  %v2539_v57 = vmul.f32 %v7587_v37, %v2510_v50 }
 0x3a2   : > { %v2025_v39 = vadd.f32 %v2017_v2, %v1977_v32  ;;  %v752_v17 = vadd.f32 %v744_v25, %v702_v16  ;;  %v9559_v25 = vld [vmem:[#allocation98_spill] sm:$0xff] }
 0x3a3   : > { %v8121_v46 = vadd.f32 %v2539_v57, %v8006_v26  ;;  %v9558_v57 = vld [vmem:[#allocation89_spill] sm:$0xff] }
 0x3a4   : > { %v802_v6 = vadd.f32 %v794_v47, %v752_v17  ;;  %v994_v41 = vmul.f32 %v7587_v37, %v9558_v57  ;;  %v9560_v47 = vld [vmem:[#allocation107_spill] sm:$0xff] }
 0x3a5   : > { %v1094_v17 = vmul.f32 %v7647_v28, %v9560_v47 }
 0x3a6   : > { %5790 = vset.pattern.permute.xlu2 %v9484_v54  ;;  %v852_v60 = vadd.f32 %v844_v34, %v802_v6  ;;  %v9561_v34 = vld [vmem:[#allocation138_spill] sm:$0xff] }
 0x3a7   : > { %2698 = vperm.xlu2 %5790, %v7687_v30  }
 0x3a8   : > { %v2035_v55 = vpop.permute.xlu1 %2034  ;;  %v902_v14 = vadd.f32 %v894_v11, %v852_v60  ;;  %v9563_v60 = vld [vmem:[#allocation123_spill] sm:$0xff] }
 0x3a9   : > { %v2065_v26 = vmul.f32 %v7587_v37, %v2035_v55  ;;  %v2457_v32 = vmul.f32 %v8036_v9, %v2035_v55  ;;  %5789 = vset.pattern.permute.xlu1 %v9410_v52  ;;  %v8134_v2 = vpop.permute.xlu2 %2662  ;;  %v1044_v52 = vmul.f32 %v7600_v38, %v9559_v25  ;;  %v9562_v55 = vld [vmem:[#allocation116_spill] sm:$0xff]  ;;  %v1194_v8 = vmul.f32 %v7745_v21, %v9563_v60  ;;  %v9568_v60 = vld [vmem:[#allocation6_spill] sm:$0xff] }
 0x3aa   : > { %2558 = vperm.xlu1 %5789, %v7908_v63   ;;  %v952_v53 = vadd.f32 %v944_v7, %v902_v14  ;;  %v1144_v6 = vmul.f32 %v7663_v12, %v9562_v55 }
 0x3ab   : > { %v8139_v30 = vadd.f32 %v2065_v26, %v2025_v39  ;;  %v8142_v50 = vadd.f32 %v2457_v32, %v7879_v15 }
 0x3ac   : > { %v1002_v16 = vadd.f32 %v994_v41, %v952_v53  ;;  %v9564_v41 = vld [vmem:[#allocation127_spill] sm:$0xff] }
 0x3ad   : > { %v1244_v53 = vmul.f32 %v7718_v42, %v9564_v41  ;;  %v9570_v41 = vld [vmem:[#allocation27_spill] sm:$0xff] }
 0x3ae   : > { %v1052_v15 = vadd.f32 %v1044_v52, %v1002_v16 }
 0x3af   : > { %2178 = vperm.xlu2 %5790, %v7561_v33  }
 0x3b0   : > { %v1102_v32 = vadd.f32 %v1094_v17, %v1052_v15 }
 0x3b1   : > { %v2199_v23 = vpop.permute.xlu1 %2198 }
 0x3b2   : > { %v2214_v39 = vmul.f32 %v7663_v12, %v2199_v23  ;;  %5791 = vset.pattern.permute.xlu1 %v9484_v54  ;;  %v2087_v43 = vpop.permute.xlu2 %2086  ;;  %v1152_v57 = vadd.f32 %v1144_v6, %v1102_v32  ;;  %v9567_v6 = vld [vmem:[#allocation11_spill] sm:$0xff] }
 0x3b3   : > { %2702 = vperm.xlu1 %5791, %v9561_v34   ;;  %v2114_v11 = vmul.f32 %v7600_v38, %v2087_v43  ;;  %v2474_v26 = vmul.f32 %v7575_v44, %v2087_v43 }
 0x3b4   : > { %v2222_v49 = vadd.f32 %v2214_v39, %v8030_v62  ;;  %v9565_v62 = vld [vmem:[#allocation48_spill] sm:$0xff]  ;;  %v1202_v52 = vadd.f32 %v1194_v8, %v1152_v57 }
 0x3b5   : > { %v8162_v7 = vadd.f32 %v2114_v11, %v8048_v40  ;;  %v8165_v14 = vadd.f32 %v2474_v26, %v8050_v4  ;;  %v1772_v25 = vmul.f32 %v7718_v42, %v9565_v62  ;;  %v9566_v4 = vld [vmem:[#allocation97_spill] sm:$0xff]  ;;  %v545_v11 = vmul.f32 %v7916_v35, %v9567_v6  ;;  %v9575_v6 = vld [vmem:[#allocation122_spill] sm:$0xff] }
 0x3b6   : > { %v1252_v17 = vadd.f32 %v1244_v53, %v1202_v52  ;;  %v645_v53 = vmul.f32 %v8042_v29, %v9570_v41  ;;  %v5871_v62 = vld [vmem:[%s6086_s24 + $0x41] sm:$0xff] }
 0x3b7   : > { %5794 = vset.pattern.permute.xlu2 %v9482_v3  ;;  %v1780_v47 = vadd.f32 %v1772_v25, %v9566_v4  ;;  %v9571_v25 = vld [vmem:[#allocation34_spill] sm:$0xff]  ;;  %v9573_v4 = vld [vmem:[#allocation41_spill] sm:$0xff] }
 0x3b8   : > { %2230 = vperm.xlu2 %5794, %v7725_v18   ;;  %v695_v52 = vmul.f32 %v8055_v5, %v9571_v25 }
 0x3ba   : > { %v2247_v16 = vpop.permute.xlu1 %2246 }
 0x3bb   : > { %v2262_v23 = vmul.f32 %v7745_v21, %v2247_v16  ;;  %v2606_v40 = vmul.f32 %v7647_v28, %v2247_v16  ;;  %5793 = vset.pattern.permute.xlu1 %v9482_v3  ;;  %v2291_v39 = vpop.permute.xlu2 %2290  ;;  %v1788_v3 = vmax.f32 %v1252_v17, %v1780_v47  ;;  %v745_v47 = vmul.f32 %v8062_v59, %v9573_v4 }
 0x3bc   : > { %2226 = vperm.xlu1 %5793, %v7561_v33   ;;  %v2309_v34 = vmul.f32 %v7718_v42, %v2291_v39  ;;  %v2621_v55 = vmul.f32 %v7663_v12, %v2291_v39  ;;  %v495_v33 = vmul.f32 %v7931_v19, %v9568_v60  ;;  %v9576_v60 = vld [vmem:[#allocation57_spill] sm:$0xff] }
 0x3bd   : > { %v8178_v15 = vadd.f32 %v2262_v23, %v2222_v49  ;;  %v8181_v43 = vadd.f32 %v2606_v40, %v7949_v36  ;;  %v9569_v49 = vld [vmem:[#allocation19_spill] sm:$0xff] }
 0x3be   : > { %v2317_v26 = vadd.f32 %v2309_v34, %v8097_v1  ;;  %v8189_v32 = vadd.f32 %v2621_v55, %v8100_v13  ;;  %v595_v36 = vmul.f32 %v7938_v10, %v9569_v49  ;;  %v553_v57 = vadd.f32 %v545_v11, %v495_v33  ;;  %v9572_v23 = vld [vmem:[#allocation111_spill] sm:$0xff]  ;;  %v9574_v34 = vld [vmem:[#allocation50_spill] sm:$0xff] }
 0x3bf   : > { %v795_v55 = vmul.f32 %v8074_v27, %v9574_v34  ;;  %v2603_v11 = vmul.f32 %v7647_v28, %v9575_v6  ;;  %v845_v33 = vmul.f32 %v8088_v24, %v9576_v60  ;;  %v9579_v34 = vld [vmem:[#allocation83_spill] sm:$0xff] }
 0x3c0   : > { %v8195_v8 = vmax.f32 %v1788_v3, %v2317_v26  ;;  %5796 = vset.pattern.permute.xlu2 %v9499_v20  ;;  %v603_v13 = vadd.f32 %v595_v36, %v553_v57  ;;  %v2672_v36 = vmul.f32 %v7745_v21, %v8134_v2 }
 0x3c1   : > { %2646 = vperm.xlu2 %5796, %v5871_v62  }
 0x3c2   : > { %v653_v40 = vadd.f32 %v645_v53, %v603_v13  ;;  %v9577_v53 = vld [vmem:[#allocation66_spill] sm:$0xff]  ;;  %v2680_v2 = vadd.f32 %v2672_v36, %v8081_v31 }
 0x3c3   : > { %v8201_v1 = vpop.permute.xlu1 %2658  ;;  %v895_v13 = vmul.f32 %v8036_v9, %v9577_v53  ;;  %v5872_v31 = vld [vmem:[%s6086_s24 + $0x11] sm:$0xff] }
 0x3c4   : > { %5795 = vset.pattern.permute.xlu1 %v9499_v20  ;;  %v2563_v16 = vpop.permute.xlu2 %2562  ;;  %v703_v39 = vadd.f32 %v695_v52, %v653_v40 }
 0x3c5   : > { %2642 = vperm.xlu1 %5795, %v9572_v23   ;;  %v2587_v17 = vmul.f32 %v7600_v38, %v2563_v16  ;;  %v9578_v16 = vld [vmem:[#allocation75_spill] sm:$0xff] }
 0x3c6   : > { %v753_v26 = vadd.f32 %v745_v47, %v703_v39  ;;  %v945_v40 = vmul.f32 %v7575_v44, %v9578_v16 }
 0x3c7   : > { %v2595_v3 = vadd.f32 %v2587_v17, %v8121_v46 }
 0x3c8   : > { %v803_v57 = vadd.f32 %v795_v55, %v753_v26  ;;  %v9581_v26 = vld [vmem:[#allocation99_spill] sm:$0xff] }
 0x3c9   : > { %v8217_v49 = vadd.f32 %v2603_v11, %v2595_v3  ;;  %5799 = vset.pattern.permute.xlu2 %v9484_v54  ;;  %v9580_v3 = vld [vmem:[#allocation90_spill] sm:$0xff] }
 0x3ca   : > { %2690 = vperm.xlu2 %5799, %v9572_v23   ;;  %v853_v52 = vadd.f32 %v845_v33, %v803_v57  ;;  %v9582_v57 = vld [vmem:[#allocation108_spill] sm:$0xff] }
 0x3cc   : > { %v2083_v41 = vpop.permute.xlu1 %2082  ;;  %v903_v39 = vadd.f32 %v895_v13, %v853_v52  ;;  %v9584_v13 = vld [vmem:[#allocation117_spill] sm:$0xff] }
 0x3cd   : > { %v2113_v46 = vmul.f32 %v7600_v38, %v2083_v41  ;;  %v2473_v25 = vmul.f32 %v7575_v44, %v2083_v41  ;;  %5798 = vset.pattern.permute.xlu1 %v9462_v48  ;;  %v2711_v4 = vpop.permute.xlu2 %2710  ;;  %v995_v48 = vmul.f32 %v7587_v37, %v9579_v34  ;;  %v1045_v44 = vmul.f32 %v7600_v38, %v9580_v3 }
 0x3ce   : > { %2278 = vperm.xlu1 %5798, %v7725_v18   ;;  %v2720_v17 = vmul.f32 %v7718_v42, %v2711_v4  ;;  %v953_v11 = vadd.f32 %v945_v40, %v903_v39  ;;  %v1145_v38 = vmul.f32 %v7663_v12, %v9582_v57  ;;  %v9588_v39 = vld [vmem:[#allocation16_spill] sm:$0xff] }
 0x3cf   : > { %v8233_v23 = vadd.f32 %v2113_v46, %v8139_v30  ;;  %v2481_v47 = vadd.f32 %v2473_v25, %v8142_v50  ;;  %v1095_v50 = vmul.f32 %v7647_v28, %v9581_v26  ;;  %v1195_v46 = vmul.f32 %v7745_v21, %v9584_v13  ;;  %v9585_v25 = vld [vmem:[#allocation9_spill] sm:$0xff]  ;;  %v9593_v13 = vld [vmem:[#allocation38_spill] sm:$0xff] }
 0x3d0   : > { %v2728_v55 = vadd.f32 %v2720_v17, %v2680_v2  ;;  %v1003_v30 = vadd.f32 %v995_v48, %v953_v11  ;;  %v543_v52 = vmul.f32 %v7916_v35, %v9585_v25  ;;  %v9587_v2 = vld [vmem:[#allocation124_spill] sm:$0xff] }
 0x3d1   : > { %v1245_v17 = vmul.f32 %v7718_v42, %v9587_v2  ;;  %v9589_v11 = vld [vmem:[#allocation24_spill] sm:$0xff]  ;;  %v9596_v2 = vld [vmem:[#allocation54_spill] sm:$0xff] }
 0x3d2   : > { %v2736_v18 = vmax.f32 %v8094_v61, %v2728_v55  ;;  %5801 = vset.pattern.permute.xlu2 %v9499_v20  ;;  %v1053_v36 = vadd.f32 %v1045_v44, %v1003_v30  ;;  %v9583_v20 = vld [vmem:[#allocation152_spill] sm:$0xff]  ;;  %v643_v3 = vmul.f32 %v8042_v29, %v9589_v11 }
 0x3d3   : > { %2634 = vperm.xlu2 %5801, %v5872_v31   ;;  %v9597_v11 = vld [vmem:[#allocation64_spill] sm:$0xff] }
 0x3d4   : > { %v1103_v53 = vadd.f32 %v1095_v50, %v1053_v36  ;;  %v9591_v36 = vld [vmem:[#allocation103_spill] sm:$0xff] }
 0x3d5   : > { %v2143_v60 = vpop.permute.xlu1 %2142  ;;  %v2191_v37 = vpop.permute.xlu2 %2190 }
 0x3d6   : > { %v2164_v33 = vmul.f32 %v7647_v28, %v2143_v60  ;;  %5800 = vset.pattern.permute.xlu1 %v9484_v54  ;;  %v2212_v61 = vmul.f32 %v7663_v12, %v2191_v37  ;;  %v9586_v28 = vld [vmem:[#allocation10_spill] sm:$0xff]  ;;  %v1153_v4 = vadd.f32 %v1145_v38, %v1103_v53 }
 0x3d7   : > { %2694 = vperm.xlu1 %5800, %v5871_v62   ;;  %v493_v16 = vmul.f32 %v7931_v19, %v9586_v28  ;;  %v593_v62 = vmul.f32 %v7938_v10, %v9588_v39 }
 0x3d8   : > { %v2172_v41 = vadd.f32 %v2164_v33, %v9583_v20  ;;  %v1203_v34 = vadd.f32 %v1195_v46, %v1153_v4  ;;  %v9590_v33 = vld [vmem:[#allocation32_spill] sm:$0xff]  ;;  %v743_v46 = vmul.f32 %v8062_v59, %v9593_v13 }
 0x3d9   : > { %v551_v48 = vadd.f32 %v543_v52, %v493_v16  ;;  %v693_v37 = vmul.f32 %v8055_v5, %v9590_v33  ;;  %v9595_v16 = vld [vmem:[#allocation47_spill] sm:$0xff]  ;;  %v8330_v33 = vld [vmem:[%s9599_s3] ss:$0 sm:$0xff] }
 0x3da   : > { %v8258_v40 = vadd.f32 %v2212_v61, %v2172_v41  ;;  %v1253_v44 = vadd.f32 %v1245_v17, %v1203_v34  ;;  %v843_v17 = vmul.f32 %v8088_v24, %v9596_v2  ;;  %v8349_v2 = vld [vmem:[%s8949_s4] ss:$0 sm:$0xff] }
 0x3db   : > { %5802 = vset.pattern.permute.xlu2 %v9484_v54  ;;  %v601_v60 = vadd.f32 %v593_v62, %v551_v48  ;;  %v8273_v54 = vld [vmem:[%s9232_s1 + $0xa] ss:$0 sm:$0xff] }
 0x3dc   : > { %2686 = vperm.xlu2 %5802, %v7908_v63   ;;  %v1789_v57 = vmax.f32 %v1253_v44, %v9591_v36  ;;  %v2139_v44 = vpop.permute.xlu0 %2138 }
 0x3dd   : > { %v651_v53 = vadd.f32 %v643_v3, %v601_v60  ;;  %v893_v3 = vmul.f32 %v8036_v9, %v9597_v11  ;;  %v9598_v60 = vld [vmem:[#allocation72_spill] sm:$0xff] }
 0x3de   : > { %v2295_v55 = vpop.permute.xlu1 %2294  ;;  %v2500_v50 = vpop.permute.xlu2 %2499 }
 0x3df   : > { %v2310_v30 = vmul.f32 %v7718_v42, %v2295_v55  ;;  %v2622_v26 = vmul.f32 %v7663_v12, %v2295_v55  ;;  %2682 = vperm.xlu1 %5800, %v5872_v31   ;;  %v2537_v63 = vmul.f32 %v8273_v54, %v2500_v50  ;;  %v8286_v12 = vld [vmem:[%s9232_s1 + $0xb] ss:$0 sm:$0xff]  ;;  %v9592_v31 = vld [vmem:[#allocation134_spill] sm:$0xff]  ;;  %v701_v28 = vadd.f32 %v693_v37, %v651_v53  ;;  %v8317_v50 = vld [vmem:[%s9232_s1 + $0x9] ss:$0 sm:$0xff] }
 0x3e0   : > { %v2585_v20 = vmul.f32 %v8286_v12, %v9592_v31  ;;  %v9601_v53 = vld [vmem:[#allocation88_spill] sm:$0xff] }
 0x3e1   : > { %v2318_v38 = vadd.f32 %v2310_v30, %v8178_v15  ;;  %v8281_v61 = vadd.f32 %v2622_v26, %v8181_v43  ;;  %v2545_v41 = vadd.f32 %v2537_v63, %v2481_v47  ;;  %v2671_v15 = vmul.f32 %v7745_v21, %v8201_v1  ;;  %v8299_v43 = vld [vmem:[%s9594_s2] ss:$0 sm:$0xff]  ;;  %s4668_s2 = sshll.u32 %s4664_s22, 4  ;;  %s4669_s2 = int_to_ptr.hbm [resolvable:$true] %s4668_s2 }
 0x3e2   : > { %v793_v47 = vmul.f32 %v8074_v27, %v9595_v16  ;;  %v751_v4 = vadd.f32 %v743_v46, %v701_v28  ;;  %v2748_v1 = vadd.f32 %v8299_v43, %v2736_v18  ;;  %v8324_v18 = vld [vmem:[%s9232_s1 + $0xc] ss:$0 sm:$0xff]  ;;  %v1043_v13 = vmul.f32 %v8286_v12, %v9601_v53  ;;  %s5894_s3 = sshra.s32 %s4669_s2, 4  ;;  %s5895_s3 = int_to_ptr.hbm [resolvable:$true] %s5894_s3 }
 0x3e3   : > { %v8292_v25 = vmax.f32 %v1789_v57, %v2318_v38  ;;  %v8301_v52 = vadd.f32 %v2585_v20, %v2545_v41  ;;  %v2679_v62 = vadd.f32 %v2671_v15, %v7953_v51  ;;  %v943_v51 = vmul.f32 %v8317_v50, %v9598_v60  ;;  %v9600_v38 = vld [vmem:[#allocation80_spill] sm:$0xff]  ;;  %p5901_p0 = scmp.lt.s32.totalorder %s5895_s3, %s8958_s13 }
 0x3e4   : > { %v801_v55 = vadd.f32 %v793_v47, %v751_v4  ;;  %v2163_v63 = vmul.f32 %v8324_v18, %v2139_v44  ;;  %v2756_v37 = vmax.f32 %v2748_v1, 0.0  ;;  %v993_v31 = vmul.f32 %v8273_v54, %v9600_v38  ;;  %v9606_v38 = vld [vmem:[#allocation114_spill] sm:$0xff] }
 0x3e5   : > { %v2259_v1 = vmul.f32 %v7745_v21, %v9575_v6 }
 0x3e6   : > { %v851_v26 = vadd.f32 %v843_v17, %v801_v55  ;;  %v2171_v15 = vadd.f32 %v2163_v63, %v8003_v22  ;;  %v2768_v28 = vmul.f32 %v8330_v33, %v2756_v37 }
 0x3e7   : > { %v2707_v39 = vpop.permute.xlu1 %2706  ;;  %v8310_v48 = vpop.permute.xlu2 %2650 }
 0x3e8   : > { %v2719_v34 = vmul.f32 %v7718_v42, %v2707_v39  ;;  %v901_v57 = vadd.f32 %v893_v3, %v851_v26  ;;  %v9602_v39 = vld [vmem:[#allocation96_spill] sm:$0xff]  ;;  %v9603_v3 = vld [vmem:[#allocation105_spill] sm:$0xff]  ;;  %v2780_v6 = vadd.f32 %v8349_v2, %v2768_v28 }
 0x3e9   : > { %v1093_v22 = vmul.f32 %v8324_v18, %v9602_v39 }
 0x3ea   : > { %v2727_v30 = vadd.f32 %v2719_v34, %v2679_v62  ;;  %v951_v41 = vadd.f32 %v943_v51, %v901_v57  ;;  %v9605_v51 = vld [vmem:[#allocation15_spill] sm:$0xff] }
 0x3eb   : > { %v542_v63 = vmul.f32 %v7916_v35, %v9605_v51 }
 0x3ec   : > { %v2735_v36 = vmax.f32 %v7961_v0, %v2727_v30  ;;  %v8343_v0 = vld [vmem:[%s9232_s1 + $0xd] ss:$0 sm:$0xff]  ;;  %v1001_v17 = vadd.f32 %v993_v31, %v951_v41  ;;  %v1193_v31 = vmul.f32 %v7745_v21, %v9606_v38  ;;  %v9607_v41 = vld [vmem:[#allocation8_spill] sm:$0xff] }
 0x3ed   : > { %v1143_v44 = vmul.f32 %v8343_v0, %v9603_v3  ;;  %v9604_v30 = vld [vmem:[#allocation145_spill] sm:$0xff]  ;;  %v492_v53 = vmul.f32 %v7931_v19, %v9607_v41  ;;  %v9616_v41 = vld [vmem:[#allocation63_spill] sm:$0xff] }
 0x3ee   : > { %v2747_v20 = vadd.f32 %v8299_v43, %v2735_v36  ;;  %v1051_v11 = vadd.f32 %v1043_v13, %v1001_v17  ;;  %v2210_v26 = vmul.f32 %v8343_v0, %v9604_v30  ;;  %v9608_v13 = vld [vmem:[#allocation23_spill] sm:$0xff]  ;;  %v9613_v30 = vld [vmem:[#allocation46_spill] sm:$0xff] }
 0x3ef   : > { %v2187_v46 = vpop.permute.xlu1 %2186  ;;  %v2135_v4 = vpop.permute.xlu2 %2134 }
 0x3f0   : > { %v2755_v16 = vmax.f32 %v2747_v20, 0.0  ;;  %v2211_v47 = vmul.f32 %v8343_v0, %v2187_v46  ;;  %v2162_v62 = vmul.f32 %v8324_v18, %v2135_v4  ;;  %v1101_v57 = vadd.f32 %v1093_v22, %v1051_v11  ;;  %v9610_v4 = vld [vmem:[#allocation31_spill] sm:$0xff]  ;;  %v9612_v11 = vld [vmem:[#allocation70_spill] sm:$0xff] }
 0x3f1   : > { %v642_v28 = vmul.f32 %v8042_v29, %v9610_v4  ;;  %v8389_v29 = vld [vmem:[%s9232_s1 + $0xf] ss:$0 sm:$0xff] }
 0x3f2   : > { %v2767_v34 = vmul.f32 %v8330_v33, %v2755_v16  ;;  %v2219_v55 = vadd.f32 %v2211_v47, %v2171_v15  ;;  %v2170_v60 = vadd.f32 %v2162_v62, %v8162_v7  ;;  %v592_v7 = vmul.f32 %v7938_v10, %v9608_v13  ;;  %v9609_v15 = vld [vmem:[#allocation121_spill] sm:$0xff] }
 0x3f3   : > { %v1151_v35 = vadd.f32 %v1143_v44, %v1101_v57  ;;  %v1243_v16 = vmul.f32 %v7718_v42, %v9609_v15  ;;  %v550_v47 = vadd.f32 %v542_v63, %v492_v53  ;;  %v8405_v57 = vld [vmem:[%s9232_s1 + $0xe] ss:$0 sm:$0xff]  ;;  %s5896_s1 = scalar_lea.hbm %s5895_s3, 4 }
 0x3f4   : > { %v8364_v37 = vadd.f32 %v2259_v1, %v2219_v55  ;;  %v2779_v36 = vadd.f32 %v8349_v2, %v2767_v34  ;;  %v8370_v20 = vadd.f32 %v2210_v26, %v2170_v60  ;;  %v9611_v1 = vld [vmem:[#allocation37_spill] sm:$0xff]  ;;  %v742_v26 = vmul.f32 %v8062_v59, %v9613_v30  ;;  %p5897_p11 = scmp.ne.s32.totalorder %s5895_s3, %s5896_s1  ;;  %p5902_p1 = scmp.lt.s32.totalorder %s5900_s23, %s5896_s1 }
 0x3f5   : > { %v1201_v39 = vadd.f32 %v1193_v31, %v1151_v35  ;;  %v600_v62 = vadd.f32 %v592_v7, %v550_v47  ;;  %v692_v42 = vmul.f32 %v8055_v5, %v9611_v1  ;;  %v9614_v60 = vld [vmem:[#allocation153_spill] sm:$0xff]  ;;  %v842_v59 = vmul.f32 %v8088_v24, %v9616_v41  ;;  %v9617_v7 = vld [vmem:[#allocation71_spill] sm:$0xff] }
 0x3f6   : > { %v2784_v46 = vpack.c.bf16 %v2780_v6, %v2779_v36  ;;  %v9615_v36 = vld [vmem:[#allocation53_spill] sm:$0xff]  ;;  %p5898_p12 = pnand %p5897_p11, %p6068_p5  ;;  %p5903_p2 = por %p5902_p1, %p5901_p0 }
 0x3f7   : > { %v1251_v55 = vadd.f32 %v1243_v16, %v1201_v39  ;;  %v650_v44 = vadd.f32 %v642_v28, %v600_v62  ;;  %v792_v6 = vmul.f32 %v8074_v27, %v9615_v36  ;;  %v9619_v39 = vld [vmem:[#allocation87_spill] sm:$0xff] }
 0x3f8   : > { %v2239_v17 = vpop.permute.xlu1 %2238  ;;  %2950 = vmatpush.bf16.msra.mxu0 %v2784_v46  ;;  %5566 = vmatpush.bf16.msra.mxu1 %v2784_v46  ;;  %v8382_v10 = vpop.permute.xlu2 %2286  ;;  %v9620_v62 = vld [vmem:[#allocation95_spill] sm:$0xff]  ;;  %p5899_p13 = pneg %p5898_p12 }
 0x3f9   : > { %v2260_v22 = vmul.f32 %v7745_v21, %v2239_v17  ;;  %v2604_v19 = vmul.f32 %v8324_v18, %v2239_v17  ;;  %5567 = vmatpush.bf16.msra.mxu2 %v2784_v46  ;;  %5568 = vmatpush.bf16.msra.mxu3 %v2784_v46  ;;  %v2308_v34 = vmul.f32 %v8389_v29, %v8382_v10 }
 0x3fa   : > { %v1787_v5 = vmax.f32 %v1251_v55, %v9614_v60  ;;  %v700_v63 = vadd.f32 %v692_v42, %v650_v44  ;;  %v892_v46 = vmul.f32 %v8036_v9, %v9617_v7  ;;  %v9621_v42 = vld [vmem:[#allocation104_spill] sm:$0xff]  ;;  %p5904_p3 = pnand %p5903_p2, %p5899_p13 }
 0x3fb   : > { %v2268_v21 = vadd.f32 %v2260_v22, %v8258_v40  ;;  %v8395_v3 = vadd.f32 %v2604_v19, %v9612_v11  ;;  %v2669_v40 = vmul.f32 %v8405_v57, %v8310_v48  ;;  %v9618_v48 = vld [vmem:[#allocation78_spill] sm:$0xff]  ;;  %v992_v22 = vmul.f32 %v8273_v54, %v9619_v39  ;;  %v9623_v44 = vld [vmem:[#allocation120_spill] sm:$0xff] }
 0x3fc   : > { %v750_v31 = vadd.f32 %v742_v26, %v700_v63  ;;  %v942_v4 = vmul.f32 %v8317_v50, %v9618_v48  ;;  %v1192_v30 = vmul.f32 %v8405_v57, %v9623_v44  ;;  %v9624_v26 = vld [vmem:[#allocation126_spill] sm:$0xff] }
 0x3fd   : > { %v2316_v51 = vadd.f32 %v2308_v34, %v2268_v21  ;;  %v2677_v15 = vadd.f32 %v2669_v40, %v8189_v32  ;;  %v1042_v32 = vmul.f32 %v8286_v12, %v9620_v62  ;;  %v1092_v34 = vmul.f32 %v8324_v18, %v9621_v42  ;;  %v9622_v21 = vld [vmem:[#allocation112_spill] sm:$0xff] }
 0x3fe   : > { %v800_v13 = vadd.f32 %v792_v6, %v750_v31  ;;  %v9625_v6 = vld [vmem:[#allocation129_spill] sm:$0xff] }
 0x3ff   : > { %v8409_v38 = vmax.f32 %v1787_v5, %v2316_v51 }
 0x400   : > { %v850_v47 = vadd.f32 %v842_v59, %v800_v13  ;;  %v2655_v13 = vpop.permute.xlu0 %2654 }
 0x401   : > { %v2505_v53 = vpop.permute.xlu1 %2504  ;;  %v2699_v35 = vpop.permute.xlu2 %2698  ;;  %v2670_v7 = vmul.f32 %v8405_v57, %v2655_v13 }
 0x402   : > { %v2538_v27 = vmul.f32 %v8273_v54, %v2505_v53  ;;  %v2717_v16 = vmul.f32 %v8389_v29, %v2699_v35  ;;  %v900_v17 = vadd.f32 %v892_v46, %v850_v47 }
 0x404   : > { %v8421_v28 = vadd.f32 %v2538_v27, %v8165_v14  ;;  %v2725_v24 = vadd.f32 %v2717_v16, %v2677_v15  ;;  %v950_v19 = vadd.f32 %v942_v4, %v900_v17  ;;  %v1142_v14 = vmul.f32 %v8343_v0, %v9622_v21 }
 0x405   : > { %v2678_v27 = vadd.f32 %v2670_v7, %v8281_v61 }
 0x406   : > { %v2733_v9 = vmax.f32 %v8195_v8, %v2725_v24  ;;  %v1000_v1 = vadd.f32 %v992_v22, %v950_v19  ;;  %v1242_v8 = vmul.f32 %v8389_v29, %v9624_v26  ;;  %v9627_v26 = vld [vmem:[#allocation119_spill] sm:$0xff] }
 0x408   : > { %v1050_v50 = vadd.f32 %v1042_v32, %v1000_v1  ;;  %v2745_v35 = vadd.f32 %v8299_v43, %v2733_v9 }
 0x409   : > { %v2179_v5 = vpop.permute.xlu2 %2178 }
 0x40a   : > { %v2131_v55 = vpop.permute.xlu1 %2130  ;;  %v1100_v11 = vadd.f32 %v1092_v34, %v1050_v50  ;;  %v2753_v4 = vmax.f32 %v2745_v35, 0.0  ;;  %v2209_v17 = vmul.f32 %v8343_v0, %v2179_v5  ;;  %v9626_v34 = vld [vmem:[#allocation150_spill] sm:$0xff] }
 0x40b   : > { %v2161_v47 = vmul.f32 %v8324_v18, %v2131_v55 }
 0x40c   : > { %v1150_v54 = vadd.f32 %v1142_v14, %v1100_v11  ;;  %v2765_v22 = vmul.f32 %v8330_v33, %v2753_v4 }
 0x40d   : > { %v2169_v24 = vadd.f32 %v2161_v47, %v8233_v23  ;;  %v2617_v23 = vmul.f32 %v8343_v0, %v9626_v34 }
 0x40e   : > { %v1200_v60 = vadd.f32 %v1192_v30, %v1150_v54  ;;  %v2777_v21 = vadd.f32 %v8349_v2, %v2765_v22 }
 0x40f   : > { %v2217_v62 = vadd.f32 %v2209_v17, %v2169_v24 }
 0x410   : > { %v1250_v63 = vadd.f32 %v1242_v8, %v1200_v60  ;;  %v9628_v8 = vld [vmem:[#allocation73_spill] sm:$0xff] }
 0x411   : > { %v9629_v60 = vmax.f32 %v9627_v26, %v9628_v8 }
 0x412   : > { %v1786_v40 = vmax.f32 %v1250_v63, %v9625_v6  ;;  %v2231_v59 = vpop.permute.xlu2 %2230 }
 0x413   : > { %v2283_v51 = vpop.permute.xlu1 %2282  ;;  %v2258_v7 = vmul.f32 %v8405_v57, %v2231_v59 }
 0x414   : > { %v2307_v36 = vmul.f32 %v8389_v29, %v2283_v51  ;;  %v2619_v30 = vmul.f32 %v8343_v0, %v2283_v51 }
 0x416   : > { %v2315_v31 = vadd.f32 %v2307_v36, %v8364_v37 }
 0x418   : > { %v8439_v41 = vmax.f32 %v1786_v40, %v2315_v31 }
 0x41b   : > { %v2647_v15 = vpop.permute.xlu2 %2646 }
 0x41c   : > { %v2559_v53 = vpop.permute.xlu1 %2558 }
 0x41d   : > { %v2586_v31 = vmul.f32 %v8286_v12, %v2559_v53 }
 0x424   : > { %v2691_v19 = vpop.permute.xlu2 %2690 }
 0x425   : > { %v2703_v46 = vpop.permute.xlu1 %2702  ;;  %v2715_v36 = vmul.f32 %v8389_v29, %v2691_v19 }
 0x426   : > { %v2718_v16 = vmul.f32 %v8389_v29, %v2703_v46  ;;  %v2602_v46 = vmul.f32 %v8324_v18, %v2231_v59 }
 0x428   : > { %v2726_v48 = vadd.f32 %v2718_v16, %v2678_v27  ;;  %v2594_v27 = vadd.f32 %v2586_v31, %v8421_v28  ;;  %v2639_v16 = vpop.permute.xlu0 %2638  ;;  %v2620_v28 = vmul.f32 %v8343_v0, %v8382_v10  ;;  %v5463_v31 = vld [vmem:[%s8950_s5 + $0x68] sm:$0xff] }
 0x429   : > { %v2666_v53 = vmul.f32 %v8405_v57, %v2639_v16 }
 0x42a   : > { %v2734_v37 = vmax.f32 %v8292_v25, %v2726_v48  ;;  %v2305_v25 = vmul.f32 %v8389_v29, %v9626_v34  ;;  %v2266_v48 = vadd.f32 %v2258_v7, %v8370_v20  ;;  %v2610_v4 = vadd.f32 %v2602_v46, %v2594_v27  ;;  %v5468_v7 = vld [vmem:[%s8951_s6 + $0x10] sm:$0xff]  ;;  %v5465_v46 = vld [vmem:[%s8950_s5 + $0x78] sm:$0xff]  ;;  %v5458_v27 = vld [vmem:[%s8950_s5 + $0x40] sm:$0xff] }
 0x42b   : > { %v2668_v20 = vmul.f32 %v8405_v57, %v2647_v15  ;;  %v2628_v22 = vadd.f32 %v2620_v28, %v8395_v3  ;;  %v5473_v28 = vld [vmem:[%s8951_s6 + $0x38] sm:$0xff] }
 0x42c   : > { %v2746_v39 = vadd.f32 %v8299_v43, %v2734_v37 }
 0x42d   : > { %v2635_v6 = vpop.permute.xlu2 %2634 }
 0x42e   : > { %v2754_v61 = vmax.f32 %v2746_v39, 0.0  ;;  %v2227_v9 = vpop.permute.xlu1 %2226 }
 0x42f   : > { %v2257_v32 = vmul.f32 %v8405_v57, %v2227_v9  ;;  %v2601_v1 = vmul.f32 %v8324_v18, %v2227_v9  ;;  %v2676_v9 = vadd.f32 %v2668_v20, %v2628_v22  ;;  %v5472_v22 = vld [vmem:[%s8951_s6 + $0x30] sm:$0xff] }
 0x430   : > { %v2766_v42 = vmul.f32 %v8330_v33, %v2754_v61 }
 0x431   : > { %v2265_v55 = vadd.f32 %v2257_v32, %v2217_v62  ;;  %v2609_v50 = vadd.f32 %v2601_v1, %v8301_v52  ;;  %v2627_v52 = vadd.f32 %v2619_v30, %v8217_v49 }
 0x432   : > { %v2778_v14 = vadd.f32 %v8349_v2, %v2766_v42 }
 0x433   : > { %v2313_v11 = vadd.f32 %v2305_v25, %v2265_v55  ;;  %v2625_v44 = vadd.f32 %v2617_v23, %v2609_v50 }
 0x434   : > { %v2783_v54 = vpack.c.bf16 %v2778_v14, %v2777_v21 }
 0x435   : > { %v2321_v5 = vmax.f32 %v9629_v60, %v2313_v11  ;;  %v5450_v60 = vld [vmem:[%s8950_s5] sm:$0xff] }
 0x436   : > { %2951 = vmatpush.bf16.msra.mxu0 %v2783_v54  ;;  %5569 = vmatpush.bf16.msra.mxu1 %v2783_v54  ;;  %v2687_v49 = vpop.permute.xlu2 %2686 }
 0x437   : > { %5570 = vmatpush.bf16.msra.mxu2 %v2783_v54  ;;  %5571 = vmatpush.bf16.msra.mxu3 %v2783_v54  ;;  %v2643_v63 = vpop.permute.xlu1 %2642  ;;  %v2714_v18 = vmul.f32 %v8389_v29, %v2687_v49 }
 0x438   : > { %v2667_v40 = vmul.f32 %v8405_v57, %v2643_v63  ;;  %v5455_v63 = vld [vmem:[%s8950_s5 + $0x28] sm:$0xff] }
 0x43a   : > { %v2675_v51 = vadd.f32 %v2667_v40, %v2627_v52  ;;  %v5464_v52 = vld [vmem:[%s8950_s5 + $0x70] sm:$0xff]  ;;  %v5466_v40 = vld [vmem:[%s8951_s6] sm:$0xff] }
 0x43c   : > { %v2723_v13 = vadd.f32 %v2715_v36, %v2675_v51  ;;  %v5456_v36 = vld [vmem:[%s8950_s5 + $0x30] sm:$0xff]  ;;  %v5457_v51 = vld [vmem:[%s8950_s5 + $0x38] sm:$0xff] }
 0x43e   : > { %v2731_v35 = vmax.f32 %v8439_v41, %v2723_v13  ;;  %v5469_v13 = vld [vmem:[%s8951_s6 + $0x18] sm:$0xff] }
 0x440   : > { %v2279_v47 = vpop.permute.xlu1 %2278  ;;  %v2743_v62 = vadd.f32 %v8299_v43, %v2731_v35 }
 0x441   : > { %v2306_v37 = vmul.f32 %v8389_v29, %v2279_v47  ;;  %v2618_v12 = vmul.f32 %v8343_v0, %v2279_v47  ;;  %v2665_v0 = vmul.f32 %v8405_v57, %v2635_v6  ;;  %v5467_v6 = vld [vmem:[%s8951_s6 + $0x8] sm:$0xff] }
 0x442   : > { %v2751_v10 = vmax.f32 %v2743_v62, 0.0  ;;  %v5471_v47 = vld [vmem:[%s8951_s6 + $0x28] sm:$0xff] }
 0x443   : > { %v2314_v24 = vadd.f32 %v2306_v37, %v2266_v48  ;;  %v2626_v17 = vadd.f32 %v2618_v12, %v2610_v4  ;;  %v5470_v12 = vld [vmem:[%s8951_s6 + $0x20] sm:$0xff] }
 0x444   : > { %v2763_v42 = vmul.f32 %v8330_v33, %v2751_v10 }
 0x445   : > { %v2322_v41 = vmax.f32 %v1785_v45, %v2314_v24  ;;  %v2674_v59 = vadd.f32 %v2666_v53, %v2626_v17  ;;  %v2673_v45 = vadd.f32 %v2665_v0, %v2625_v44  ;;  %v5459_v24 = vld [vmem:[%s8950_s5 + $0x48] sm:$0xff] }
 0x446   : > { %v2775_v57 = vadd.f32 %v8349_v2, %v2763_v42 }
 0x447   : > { %v2722_v39 = vadd.f32 %v2714_v18, %v2674_v59 }
 0x449   : > { %v2730_v61 = vmax.f32 %v2322_v41, %v2722_v39  ;;  %v2695_v19 = vpop.permute.xlu1 %2694 }
 0x44a   : > { %v2716_v32 = vmul.f32 %v8389_v29, %v2695_v19  ;;  %v5460_v19 = vld [vmem:[%s8950_s5 + $0x50] sm:$0xff] }
 0x44b   : > { %v2742_v3 = vadd.f32 %v8299_v43, %v2730_v61 }
 0x44c   : > { %v2724_v1 = vadd.f32 %v2716_v32, %v2676_v9  ;;  %v5475_v32 = vld [vmem:[%s8951_s6 + $0x48] sm:$0xff] }
 0x44d   : > { %v2750_v50 = vmax.f32 %v2742_v3, 0.0 }
 0x44e   : > { %v2732_v56 = vmax.f32 %v8409_v38, %v2724_v1 }
 0x44f   : > { %v2762_v44 = vmul.f32 %v8330_v33, %v2750_v50 }
 0x450   : > { %v2744_v58 = vadd.f32 %v8299_v43, %v2732_v56 }
 0x451   : > { %v2683_v15 = vpop.permute.xlu1 %2682  ;;  %v2774_v26 = vadd.f32 %v8349_v2, %v2762_v44  ;;  %v5479_v44 = vld [vmem:[%s8951_s6 + $0x68] sm:$0xff] }
 0x452   : > { %v2752_v34 = vmax.f32 %v2744_v58, 0.0  ;;  %v2713_v25 = vmul.f32 %v8389_v29, %v2683_v15  ;;  %v5474_v58 = vld [vmem:[%s8951_s6 + $0x40] sm:$0xff]  ;;  %v5461_v15 = vld [vmem:[%s8950_s5 + $0x58] sm:$0xff] }
 0x454   : > { %v2764_v23 = vmul.f32 %v8330_v33, %v2752_v34  ;;  %v2721_v55 = vadd.f32 %v2713_v25, %v2673_v45  ;;  %v5477_v34 = vld [vmem:[%s8951_s6 + $0x58] sm:$0xff] }
 0x456   : > { %v2729_v21 = vmax.f32 %v2321_v5, %v2721_v55  ;;  %v2776_v38 = vadd.f32 %v8349_v2, %v2764_v23  ;;  %v5454_v5 = vld [vmem:[%s8950_s5 + $0x20] sm:$0xff] }
 0x458   : > { %v2741_v14 = vadd.f32 %v8299_v43, %v2729_v21  ;;  %v2782_v11 = vpack.c.bf16 %v2776_v38, %v2775_v57  ;;  %v5451_v43 = vld [vmem:[%s8950_s5 + $0x8] sm:$0xff]  ;;  %v5476_v21 = vld [vmem:[%s8951_s6 + $0x50] sm:$0xff]  ;;  %v5462_v38 = vld [vmem:[%s8950_s5 + $0x60] sm:$0xff] }
 0x45a   : > { %v2749_v30 = vmax.f32 %v2741_v14, 0.0  ;;  %2952 = vmatpush.bf16.msra.mxu0 %v2782_v11  ;;  %5572 = vmatpush.bf16.msra.mxu1 %v2782_v11 }
 0x45b   : > { %5573 = vmatpush.bf16.msra.mxu2 %v2782_v11  ;;  %5574 = vmatpush.bf16.msra.mxu3 %v2782_v11 }
 0x45c   : > { %v2761_v29 = vmul.f32 %v8330_v33, %v2749_v30  ;;  %v5452_v33 = vld [vmem:[%s8950_s5 + $0x10] sm:$0xff] }
 0x45e   : > { %v2773_v54 = vadd.f32 %v8349_v2, %v2761_v29  ;;  %v5453_v2 = vld [vmem:[%s8950_s5 + $0x18] sm:$0xff] }
 0x460   : > { %v2781_v8 = vpack.c.bf16 %v2774_v26, %v2773_v54 }
 0x462   : > { %2953 = vmatpush.bf16.msra.mxu0 %v2781_v8  ;;  %5575 = vmatpush.bf16.msra.mxu1 %v2781_v8 }
 0x463   : > { %5576 = vmatpush.bf16.msra.mxu2 %v2781_v8  ;;  %5577 = vmatpush.bf16.msra.mxu3 %v2781_v8  ;;  %v5478_v8 = vld [vmem:[%s8951_s6 + $0x60] sm:$0xff] }
 0x465   : > { %4814 = vmatmul.msk.bf16.vlgmr.msra.gmra.mxu0 %vm2897_vm0, %v5450_v60  ;;  %4827 = vmatmul.msk.bf16.vlgmr.msra.gmra.mxu1 %vm2897_vm0, %v5463_v31 }
 0x466   : > { %4828 = vmatmul.msk.bf16.vlgmr.msra.gmra.mxu2 %vm2897_vm0, %v5464_v52  ;;  %3103 = vmatpush.bf16.msrb.mxu1 %v5469_v13  ;;  %v5483_v13 = vld [vmem:[%s8951_s6 + $0x88] sm:$0xff] }
 0x467   : > { %3137 = vmatpush.bf16.msrb.mxu2 %v5467_v6  ;;  %4829 = vmatmul.msk.bf16.vlgmr.msra.gmra.mxu3 %vm2897_vm0, %v5465_v46  ;;  %v5480_v6 = vld [vmem:[%s8951_s6 + $0x70] sm:$0xff] }
 0x468   : > { %3176 = vmatpush.bf16.msrb.mxu3 %v5471_v47 }
 0x46a   : > { %3104 = vmatpush.bf16.msrb.mxu1 %v5468_v7 }
 0x46b   : > { %3138 = vmatpush.bf16.msrb.mxu2 %v5466_v40 }
 0x46c   : > { %3177 = vmatpush.bf16.msrb.mxu3 %v5470_v12 }
 0x46e   : > { %3217 = vmatpush.bf16.msra.mxu1 %v5473_v28 }
 0x46f   : > { %3258 = vmatpush.bf16.msra.mxu2 %v5475_v32 }
 0x470   : > { %3299 = vmatpush.bf16.msra.mxu3 %v5477_v34  ;;  %v5492_v34 = vld [vmem:[%s8951_s6 + $0xd0] sm:$0xff] }
 0x472   : > { %3218 = vmatpush.bf16.msra.mxu1 %v5472_v22 }
 0x473   : > { %3259 = vmatpush.bf16.msra.mxu2 %v5474_v58 }
 0x474   : > { %3300 = vmatpush.bf16.msra.mxu3 %v5476_v21 }
 0x475   : > { %4815 = vmatmul.msk.bf16.gmra.mxu0 %vm2897_vm0, %v5451_v43 }
 0x485   : > { %4816 = vmatmul.msk.bf16.gmra.mxu0 %vm2897_vm0, %v5452_v33 }
 0x495   : > { %4817 = vmatmul.msk.bf16.gmra.mxu0 %vm2897_vm0, %v5453_v2  ;;  %v5481_v2 = vld [vmem:[%s8951_s6 + $0x78] sm:$0xff] }
 0x4a5   : > { %4818 = vmatmul.msk.bf16.gmra.mxu0 %vm2897_vm0, %v5454_v5 }
 0x4b5   : > { %4819 = vmatmul.msk.bf16.gmra.mxu0 %vm2897_vm0, %v5455_v63 }
 0x4c5   : > { %4820 = vmatmul.msk.bf16.gmra.mxu0 %vm2897_vm0, %v5456_v36 }
 0x4d5   : > { %4821 = vmatmul.msk.bf16.gmra.mxu0 %vm2897_vm0, %v5457_v51 }
 0x4e2   : > { %v2955_v35 = vpop.f32.mrf.mxu0 }
 0x4e3   : > { %v3035_v16 = vpack.c.bf16 %v2955_v35, %v2955_v35 }
 0x4e5   : > { %4822 = vmatmul.msk.bf16.gmra.mxu0 %vm2897_vm0, %v5458_v27  ;;  %v3113_v4 = vunpack.c.l.b16 %v3035_v16  ;;  %v5482_v16 = vld [vmem:[%s8951_s6 + $0x80] sm:$0xff] }
 0x4ea   : > { %v2957_v49 = vpop.f32.mrf.mxu0 }
 0x4eb   : > { %v3036_v48 = vpack.c.bf16 %v2957_v49, %v2957_v49 }
 0x4ed   : > { %v3114_v37 = vunpack.c.l.b16 %v3036_v48 }
 0x4ef   : > { %v3115_v53 = vpack.c.b16 %v3114_v37, %v3113_v4  ;;  %v5485_v4 = vld [vmem:[%s8951_s6 + $0x98] sm:$0xff] }
 0x4f1   : > { %4851 = vmatmul.msk.bf16.vlgmr.msrb.gmra.mxu2 %vm3093_vm1, %v3115_v53 }
 0x4f2   : > { %v2960_v17 = vpop.f32.mrf.mxu0  ;;  %3381 = vmatpush.bf16.msrb.mxu2 %v5481_v2 }
 0x4f3   : > { %v3037_v18 = vpack.c.bf16 %v2960_v17, %v2960_v17  ;;  %v5484_v17 = vld [vmem:[%s8951_s6 + $0x90] sm:$0xff] }
 0x4f5   : > { %4823 = vmatmul.msk.bf16.gmra.mxu0 %vm2897_vm0, %v5459_v24  ;;  %v3078_v20 = vunpack.c.l.b16 %v3037_v18 }
 0x4f6   : > { %3382 = vmatpush.bf16.msrb.mxu2 %v5480_v6 }
 0x4fa   : > { %v2962_v41 = vpop.f32.mrf.mxu0 }
 0x4fb   : > { %v3038_v59 = vpack.c.bf16 %v2962_v41, %v2962_v41 }
 0x4fd   : > { %v3079_v39 = vunpack.c.l.b16 %v3038_v59  ;;  %v5487_v59 = vld [vmem:[%s8951_s6 + $0xa8] sm:$0xff] }
 0x4ff   : > { %v3080_v61 = vpack.c.b16 %v3079_v39, %v3078_v20 }
 0x501   : > { %4842 = vmatmul.msk.bf16.vlgmr.msrb.gmra.mxu1 %vm3093_vm1, %v3080_v61 }
 0x502   : > { %v2965_v9 = vpop.f32.mrf.mxu0  ;;  %3340 = vmatpush.bf16.msrb.mxu1 %v5479_v44  ;;  %v5494_v44 = vld [vmem:[%s8951_s6 + $0xe0] sm:$0xff] }
 0x503   : > { %v3039_v62 = vpack.c.bf16 %v2965_v9, %v2965_v9 }
 0x505   : > { %4824 = vmatmul.msk.bf16.gmra.mxu0 %vm2897_vm0, %v5460_v19  ;;  %v3152_v10 = vunpack.c.l.b16 %v3039_v62  ;;  %v5486_v19 = vld [vmem:[%s8951_s6 + $0xa0] sm:$0xff] }
 0x506   : > { %3341 = vmatpush.bf16.msrb.mxu1 %v5478_v8 }
 0x50a   : > { %v2967_v1 = vpop.f32.mrf.mxu0 }
 0x50b   : > { %v3040_v0 = vpack.c.bf16 %v2967_v1, %v2967_v1  ;;  %v5489_v1 = vld [vmem:[%s8951_s6 + $0xb8] sm:$0xff] }
 0x50d   : > { %v3153_v56 = vunpack.c.l.b16 %v3040_v0 }
 0x50f   : > { %v3154_v45 = vpack.c.b16 %v3153_v56, %v3152_v10 }
 0x511   : > { %4864 = vmatmul.msk.bf16.vlgmr.msrb.gmra.mxu3 %vm3093_vm1, %v3154_v45  ;;  %v5488_v45 = vld [vmem:[%s8951_s6 + $0xb0] sm:$0xff] }
 0x512   : > { %v2970_v42 = vpop.f32.mrf.mxu0  ;;  %3422 = vmatpush.bf16.msrb.mxu3 %v5483_v13 }
 0x513   : > { %v3041_v3 = vpack.c.bf16 %v2970_v42, %v2970_v42  ;;  %v5493_v42 = vld [vmem:[%s8951_s6 + $0xd8] sm:$0xff] }
 0x515   : > { %4825 = vmatmul.msk.bf16.gmra.mxu0 %vm2897_vm0, %v5461_v15  ;;  %v3193_v55 = vunpack.c.l.b16 %v3041_v3 }
 0x516   : > { %3423 = vmatpush.bf16.msrb.mxu3 %v5482_v16 }
 0x51a   : > { %v2972_v25 = vpop.f32.mrf.mxu0 }
 0x51b   : > { %v3042_v23 = vpack.c.bf16 %v2972_v25, %v2972_v25 }
 0x51d   : > { %v3194_v50 = vunpack.c.l.b16 %v3042_v23  ;;  %v5491_v23 = vld [vmem:[%s8951_s6 + $0xc8] sm:$0xff] }
 0x51f   : > { %v3195_v57 = vpack.c.b16 %v3194_v50, %v3193_v55  ;;  %v5495_v55 = vld [vmem:[%s8951_s6 + $0xe8] sm:$0xff]  ;;  %v3020_v50 = vpop.f32.mrf.mxu1 }
 0x521   : > { %4877 = vmatmul.msk.bf16.vlgmr.msra.gmra.mxu1 %vm3093_vm1, %v3195_v57 }
 0x522   : > { %v2975_v14 = vpop.f32.mrf.mxu0  ;;  %3463 = vmatpush.bf16.msra.mxu1 %v5485_v4  ;;  %v3030_v4 = vpop.f32.mrf.mxu3 }
 0x523   : > { %v3043_v11 = vpack.c.bf16 %v2975_v14, %v2975_v14 }
 0x525   : > { %4826 = vmatmul.msk.bf16.gmra.mxu0 %vm2897_vm0, %v5462_v38  ;;  %v3234_v54 = vunpack.c.l.b16 %v3043_v11  ;;  %v5490_v11 = vld [vmem:[%s8951_s6 + $0xc0] sm:$0xff] }
 0x526   : > { %3464 = vmatpush.bf16.msra.mxu1 %v5484_v17 }
 0x52a   : > { %v2977_v30 = vpop.f32.mrf.mxu0  ;;  %v3032_v17 = vpop.f32.mrf.mxu3 }
 0x52b   : > { %v3044_v29 = vpack.c.bf16 %v2977_v30, %v2977_v30 }
 0x52d   : > { %v3235_v26 = vunpack.c.l.b16 %v3044_v29 }
 0x52f   : > { %v3236_v60 = vpack.c.b16 %v3235_v26, %v3234_v54  ;;  %v3022_v54 = vpop.f32.mrf.mxu1  ;;  %v3061_v26 = vpack.c.bf16 %v3020_v50, %v3020_v50 }
 0x530   : > { %v3062_v8 = vpack.c.bf16 %v3022_v54, %v3022_v54 }
 0x531   : > { %4890 = vmatmul.msk.bf16.vlgmr.msra.gmra.mxu2 %vm3093_vm1, %v3236_v60  ;;  %v5497_v60 = vld [vmem:[%s8951_s6 + $0xf8] sm:$0xff] }
 0x532   : > { %v2980_v43 = vpop.f32.mrf.mxu0  ;;  %3504 = vmatpush.bf16.msra.mxu2 %v5487_v59 }
 0x533   : > { %v3045_v33 = vpack.c.bf16 %v2980_v43, %v2980_v43  ;;  %v3603_v43 = vunpack.c.l.b16 %v3061_v26 }
 0x535   : > { %v3275_v52 = vunpack.c.l.b16 %v3045_v33  ;;  %v3604_v33 = vunpack.c.l.b16 %v3062_v8 }
 0x536   : > { %3505 = vmatpush.bf16.msra.mxu2 %v5486_v19 }
 0x53a   : > { %v2982_v5 = vpop.f32.mrf.mxu0 }
 0x53b   : > { %v3046_v63 = vpack.c.bf16 %v2982_v5, %v2982_v5  ;;  %v3025_v5 = vpop.f32.mrf.mxu2 }
 0x53d   : > { %v3276_v36 = vunpack.c.l.b16 %v3046_v63 }
 0x53f   : > { %v3277_v40 = vpack.c.b16 %v3276_v36, %v3275_v52  ;;  %v3605_v36 = vpack.c.b16 %v3604_v33, %v3603_v43 }
 0x541   : > { %4903 = vmatmul.msk.bf16.vlgmr.msra.gmra.mxu3 %vm3093_vm1, %v3277_v40 }
 0x542   : > { %v2985_v31 = vpop.f32.mrf.mxu0  ;;  %3545 = vmatpush.bf16.msra.mxu3 %v5489_v1 }
 0x543   : > { %v3047_v51 = vpack.c.bf16 %v2985_v31, %v2985_v31  ;;  %v5496_v31 = vld [vmem:[%s8951_s6 + $0xf0] sm:$0xff] }
 0x545   : > { %v3316_v27 = vunpack.c.l.b16 %v3047_v51 }
 0x546   : > { %3546 = vmatpush.bf16.msra.mxu3 %v5488_v45 }
 0x54a   : > { %v2987_v7 = vpop.f32.mrf.mxu0 }
 0x54b   : > { %v3048_v46 = vpack.c.bf16 %v2987_v7, %v2987_v7  ;;  %v3027_v7 = vpop.f32.mrf.mxu2 }
 0x54d   : > { %v3317_v35 = vunpack.c.l.b16 %v3048_v46  ;;  %v3063_v46 = vpack.c.bf16 %v3025_v5, %v3025_v5 }
 0x54f   : > { %v3318_v47 = vpack.c.b16 %v3317_v35, %v3316_v27  ;;  %v3064_v27 = vpack.c.bf16 %v3027_v7, %v3027_v7  ;;  %v3644_v35 = vunpack.c.l.b16 %v3063_v46 }
 0x551   : > { %4916 = vmatmul.msk.bf16.vlgmr.msrb.gmra.mxu1 %vm3093_vm1, %v3318_v47  ;;  %v3645_v16 = vunpack.c.l.b16 %v3064_v27 }
 0x552   : > { %v2990_v49 = vpop.f32.mrf.mxu0  ;;  %3586 = vmatpush.bf16.msrb.mxu1 %v5491_v23 }
 0x553   : > { %v3049_v48 = vpack.c.bf16 %v2990_v49, %v2990_v49 }
 0x555   : > { %v3357_v53 = vunpack.c.l.b16 %v3049_v48 }
 0x556   : > { %3587 = vmatpush.bf16.msrb.mxu1 %v5490_v11 }
 0x55a   : > { %v2992_v37 = vpop.f32.mrf.mxu0 }
 0x55b   : > { %v3050_v12 = vpack.c.bf16 %v2992_v37, %v2992_v37  ;;  %v3646_v37 = vpack.c.b16 %v3645_v16, %v3644_v35 }
 0x55d   : > { %v3358_v24 = vunpack.c.l.b16 %v3050_v12 }
 0x55f   : > { %v3359_v18 = vpack.c.b16 %v3358_v24, %v3357_v53 }
 0x561   : > { %4929 = vmatmul.msk.bf16.vlgmr.msrb.gmra.mxu2 %vm3093_vm1, %v3359_v18  ;;  %v3065_v18 = vpack.c.bf16 %v3030_v4, %v3030_v4 }
 0x562   : > { %v2995_v28 = vpop.f32.mrf.mxu0  ;;  %3627 = vmatpush.bf16.msrb.mxu2 %v5493_v42 }
 0x563   : > { %v3051_v41 = vpack.c.bf16 %v2995_v28, %v2995_v28  ;;  %v3066_v28 = vpack.c.bf16 %v3032_v17, %v3032_v17 }
 0x565   : > { %v3398_v22 = vunpack.c.l.b16 %v3051_v41  ;;  %v3685_v41 = vunpack.c.l.b16 %v3065_v18  ;;  %v3686_v59 = vunpack.c.l.b16 %v3066_v28 }
 0x566   : > { %3628 = vmatpush.bf16.msrb.mxu2 %v5492_v34 }
 0x56a   : > { %v2997_v20 = vpop.f32.mrf.mxu0 }
 0x56b   : > { %v3052_v39 = vpack.c.bf16 %v2997_v20, %v2997_v20  ;;  %v3687_v20 = vpack.c.b16 %v3686_v59, %v3685_v41 }
 0x56d   : > { %v3399_v61 = vunpack.c.l.b16 %v3052_v39 }
 0x56f   : > { %v3400_v9 = vpack.c.b16 %v3399_v61, %v3398_v22 }
 0x571   : > { %4942 = vmatmul.msk.bf16.vlgmr.msrb.gmra.mxu3 %vm3093_vm1, %v3400_v9 }
 0x572   : > { %v3000_v62 = vpop.f32.mrf.mxu0  ;;  %3668 = vmatpush.bf16.msrb.mxu3 %v5495_v55 }
 0x573   : > { %v3053_v32 = vpack.c.bf16 %v3000_v62, %v3000_v62 }
 0x574   : > { %v3140_v61 = vpop.f32.mrf.mxu2 }
 0x575   : > { %v3439_v56 = vunpack.c.l.b16 %v3053_v32 }
 0x576   : > { %3669 = vmatpush.bf16.msrb.mxu3 %v5494_v44 }
 0x57a   : > { %v3002_v0 = vpop.f32.mrf.mxu0 }
 0x57b   : > { %v3054_v10 = vpack.c.bf16 %v3002_v0, %v3002_v0 }
 0x57c   : > { %v3142_v32 = vpop.f32.mrf.mxu2 }
 0x57d   : > { %v3440_v58 = vunpack.c.l.b16 %v3054_v10 }
 0x57e   : > { %v3106_v39 = vpop.f32.mrf.mxu1 }
 0x57f   : > { %v3441_v15 = vpack.c.b16 %v3440_v58, %v3439_v56  ;;  %v3141_v55 = vadd.f32 %v3140_v61, %v3106_v39  ;;  %v5824_v39 = vld [vmem:[%s8953_s8] ss:$0 sm:$0xff] }
 0x581   : > { %4955 = vmatmul.msk.bf16.vlgmr.msra.gmra.mxu1 %vm3093_vm1, %v3441_v15 }
 0x582   : > { %v3005_v3 = vpop.f32.mrf.mxu0  ;;  %3709 = vmatpush.bf16.msra.mxu1 %v5497_v60 }
 0x583   : > { %v3055_v25 = vpack.c.bf16 %v3005_v3, %v3005_v3 }
 0x585   : > { %v3480_v38 = vunpack.c.l.b16 %v3055_v25 }
 0x586   : > { %3710 = vmatpush.bf16.msra.mxu1 %v5496_v31  ;;  %v3108_v19 = vpop.f32.mrf.mxu1 }
 0x587   : > { %v3143_v44 = vadd.f32 %v3142_v32, %v3108_v19 }
 0x58a   : > { %v3007_v21 = vpop.f32.mrf.mxu0 }
 0x58b   : > { %v3056_v57 = vpack.c.bf16 %v3007_v21, %v3007_v21 }
 0x58d   : > { %v3481_v14 = vunpack.c.l.b16 %v3056_v57 }
 0x58f   : > { %v3482_v30 = vpack.c.b16 %v3481_v14, %v3480_v38 }
 0x591   : > { %4968 = vmatmul.msk.bf16.vlgmr.msra.gmra.mxu2 %vm3093_vm1, %v3482_v30 }
 0x592   : > { %v3010_v29 = vpop.f32.mrf.mxu0 }
 0x593   : > { %v3057_v2 = vpack.c.bf16 %v3010_v29, %v3010_v29 }
 0x594   : > { %v3179_v22 = vpop.f32.mrf.mxu3 }
 0x595   : > { %v3521_v6 = vunpack.c.l.b16 %v3057_v2  ;;  %v3184_v50 = vadd.f32 %v3179_v22, %v3141_v55  ;;  %v5502_v55 = vld [vmem:[%s8956_s11] sm:$0xff] }
 0x59a   : > { %v3012_v63 = vpop.f32.mrf.mxu0 }
 0x59b   : > { %v3058_v52 = vpack.c.bf16 %v3012_v63, %v3012_v63 }
 0x59c   : > { %v3181_v9 = vpop.f32.mrf.mxu3 }
 0x59d   : > { %v3522_v40 = vunpack.c.l.b16 %v3058_v52  ;;  %v3185_v29 = vadd.f32 %v3181_v9, %v3143_v44  ;;  %v5825_v9 = vld [vmem:[%s8954_s9] ss:$0 sm:$0xff]  ;;  %v5512_v44 = vld [vmem:[%s8956_s11 + $0x50] sm:$0xff] }
 0x59e   : > { %v3220_v62 = vpop.f32.mrf.mxu1 }
 0x59f   : > { %v3523_v51 = vpack.c.b16 %v3522_v40, %v3521_v6  ;;  %v3225_v57 = vadd.f32 %v3220_v62, %v3184_v50  ;;  %v5507_v50 = vld [vmem:[%s8956_s11 + $0x28] sm:$0xff] }
 0x5a1   : > { %4981 = vmatmul.msk.bf16.vlgmr.msra.gmra.mxu3 %vm3093_vm1, %v3523_v51  ;;  %5007 = vmatmul.msk.bf16.vlgmr.msrb.gmra.mxu2 %vm3093_vm1, %v3605_v36 }
 0x5a2   : > { %v3015_v13 = vpop.f32.mrf.mxu0 }
 0x5a3   : > { %v3059_v47 = vpack.c.bf16 %v3015_v13, %v3015_v13 }
 0x5a5   : > { %v3562_v12 = vunpack.c.l.b16 %v3059_v47 }
 0x5a6   : > { %v3222_v0 = vpop.f32.mrf.mxu1 }
 0x5a7   : > { %v3226_v26 = vadd.f32 %v3222_v0, %v3185_v29  ;;  %v5511_v29 = vld [vmem:[%s8956_s11 + $0x48] sm:$0xff] }
 0x5aa   : > { %v3017_v49 = vpop.f32.mrf.mxu0 }
 0x5ab   : > { %v3060_v48 = vpack.c.bf16 %v3017_v49, %v3017_v49 }
 0x5ad   : > { %v3563_v53 = vunpack.c.l.b16 %v3060_v48 }
 0x5af   : > { %v3564_v24 = vpack.c.b16 %v3563_v53, %v3562_v12  ;;  %v5823_v53 = vld [vmem:[%s8952_s7] ss:$0 sm:$0xff] }
 0x5b1   : > { %4994 = vmatmul.msk.bf16.vlgmr.msrb.gmra.mxu1 %vm3093_vm1, %v3564_v24  ;;  %5020 = vmatmul.msk.bf16.vlgmr.msrb.gmra.mxu3 %vm3093_vm1, %v3646_v37 }
 0x5b4   : > { %v3261_v10 = vpop.f32.mrf.mxu2 }
 0x5b5   : > { %v3266_v11 = vadd.f32 %v3261_v10, %v3225_v57  ;;  %v5506_v57 = vld [vmem:[%s8956_s11 + $0x20] sm:$0xff] }
 0x5bc   : > { %v3263_v45 = vpop.f32.mrf.mxu2 }
 0x5bd   : > { %v3267_v33 = vadd.f32 %v3263_v45, %v3226_v26  ;;  %v5505_v45 = vld [vmem:[%s8956_s11 + $0x18] sm:$0xff] }
 0x5be   : > { %3910 = vmatpush.bf16.msrb.mxu1 %v5505_v45  ;;  %v5537_v26 = vld [vmem:[%s8956_s11 + $0x118] sm:$0xff]  ;;  %v5560_v45 = vld [vmem:[%s8956_s11 + $0x1d0] sm:$0xff] }
 0x5c1   : > { %5033 = vmatmul.msk.bf16.vlgmr.msra.gmra.mxu1 %vm3093_vm1, %v3687_v20 }
 0x5c4   : > { %v3302_v1 = vpop.f32.mrf.mxu3 }
 0x5c5   : > { %v3307_v30 = vadd.f32 %v3302_v1, %v3266_v11  ;;  %v5515_v11 = vld [vmem:[%s8956_s11 + $0x68] sm:$0xff] }
 0x5cc   : > { %v3304_v56 = vpop.f32.mrf.mxu3 }
 0x5cd   : > { %v3308_v63 = vadd.f32 %v3304_v56, %v3267_v33  ;;  %v5498_v56 = vld [vmem:[%s8955_s10] sm:$0xff] }
 0x5ce   : > { %v3343_v58 = vpop.f32.mrf.mxu1 }
 0x5cf   : > { %v3348_v54 = vadd.f32 %v3343_v58, %v3307_v30  ;;  %v5499_v58 = vld [vmem:[%s8955_s10 + $0x8] sm:$0xff]  ;;  %v5514_v30 = vld [vmem:[%s8956_s11 + $0x60] sm:$0xff] }
 0x5d6   : > { %v3345_v42 = vpop.f32.mrf.mxu1 }
 0x5d7   : > { %v3349_v36 = vadd.f32 %v3345_v42, %v3308_v63  ;;  %v5504_v42 = vld [vmem:[%s8956_s11 + $0x10] sm:$0xff] }
 0x5d8   : > { %3911 = vmatpush.bf16.msrb.mxu1 %v5504_v42  ;;  %v5543_v42 = vld [vmem:[%s8956_s11 + $0x148] sm:$0xff] }
 0x5e4   : > { %v3384_v3 = vpop.f32.mrf.mxu2 }
 0x5e5   : > { %v3389_v8 = vadd.f32 %v3384_v3, %v3348_v54  ;;  %v5508_v3 = vld [vmem:[%s8956_s11 + $0x30] sm:$0xff]  ;;  %v5510_v54 = vld [vmem:[%s8956_s11 + $0x40] sm:$0xff] }
 0x5ec   : > { %v3386_v23 = vpop.f32.mrf.mxu2 }
 0x5ed   : > { %v3390_v40 = vadd.f32 %v3386_v23, %v3349_v36  ;;  %v5501_v23 = vld [vmem:[%s8955_s10 + $0x18] sm:$0xff] }
 0x5f4   : > { %v3425_v15 = vpop.f32.mrf.mxu3 }
 0x5f5   : > { %v3430_v2 = vadd.f32 %v3425_v15, %v3389_v8  ;;  %v5509_v15 = vld [vmem:[%s8956_s11 + $0x38] sm:$0xff] }
 0x5f6   : > { %3870 = vmatpush.bf16.msra.mxu3 %v5509_v15  ;;  %v5541_v15 = vld [vmem:[%s8956_s11 + $0x138] sm:$0xff] }
 0x5fa   : > { %3871 = vmatpush.bf16.msra.mxu3 %v5508_v3 }
 0x5fc   : > { %v3427_v34 = vpop.f32.mrf.mxu3 }
 0x5fd   : > { %v3431_v13 = vadd.f32 %v3427_v34, %v3390_v40  ;;  %v5503_v34 = vld [vmem:[%s8956_s11 + $0x8] sm:$0xff] }
 0x5fe   : > { %v3466_v25 = vpop.f32.mrf.mxu1  ;;  %3912 = vmatpush.bf16.msrb.mxu1 %v5503_v34  ;;  %3872 = vmatpush.bf16.msra.mxu3 %v5507_v50  ;;  %v5523_v40 = vld [vmem:[%s8956_s11 + $0xa8] sm:$0xff] }
 0x5ff   : > { %v3471_v52 = vadd.f32 %v3466_v25, %v3430_v2  ;;  %v5500_v25 = vld [vmem:[%s8955_s10 + $0x10] sm:$0xff] }
 0x600   : > { %v5536_v2 = vld [vmem:[%s8956_s11 + $0x110] sm:$0xff] }
 0x602   : > { %3913 = vmatpush.bf16.msrb.mxu1 %v5502_v55  ;;  %3873 = vmatpush.bf16.msra.mxu3 %v5506_v57  ;;  %v5559_v55 = vld [vmem:[%s8956_s11 + $0x1c8] sm:$0xff] }
 0x606   : > { %v3468_v38 = vpop.f32.mrf.mxu1 }
 0x607   : > { %v3472_v35 = vadd.f32 %v3468_v38, %v3431_v13  ;;  %v5516_v38 = vld [vmem:[%s8956_s11 + $0x70] sm:$0xff]  ;;  %v5535_v13 = vld [vmem:[%s8956_s11 + $0x108] sm:$0xff] }
 0x614   : > { %v3507_v14 = vpop.f32.mrf.mxu2 }
 0x615   : > { %v3512_v6 = vadd.f32 %v3507_v14, %v3471_v52  ;;  %v5513_v14 = vld [vmem:[%s8956_s11 + $0x58] sm:$0xff] }
 0x616   : > { %3959 = vmatpush.bf16.msrb.mxu3 %v5513_v14  ;;  %v5521_v52 = vld [vmem:[%s8956_s11 + $0x98] sm:$0xff]  ;;  %v5558_v14 = vld [vmem:[%s8956_s11 + $0x1c0] sm:$0xff] }
 0x61a   : > { %3960 = vmatpush.bf16.msrb.mxu3 %v5512_v44 }
 0x61c   : > { %v3509_v5 = vpop.f32.mrf.mxu2 }
 0x61d   : > { %v3513_v16 = vadd.f32 %v3509_v5, %v3472_v35  ;;  %v5524_v5 = vld [vmem:[%s8956_s11 + $0xb0] sm:$0xff]  ;;  %v5534_v35 = vld [vmem:[%s8956_s11 + $0x100] sm:$0xff] }
 0x61e   : > { %3961 = vmatpush.bf16.msrb.mxu3 %v5511_v29 }
 0x622   : > { %3962 = vmatpush.bf16.msrb.mxu3 %v5510_v54  ;;  %v5538_v54 = vld [vmem:[%s8956_s11 + $0x120] sm:$0xff] }
 0x624   : > { %v3548_v21 = vpop.f32.mrf.mxu3  ;;  %v3630_v46 = vpop.f32.mrf.mxu2 }
 0x625   : > { %v3553_v31 = vadd.f32 %v3548_v21, %v3512_v6  ;;  %v5517_v21 = vld [vmem:[%s8956_s11 + $0x78] sm:$0xff] }
 0x626   : > { %4013 = vmatpush.bf16.msra.mxu1 %v5517_v21  ;;  %v5542_v21 = vld [vmem:[%s8956_s11 + $0x140] sm:$0xff] }
 0x62a   : > { %4014 = vmatpush.bf16.msra.mxu1 %v5516_v38 }
 0x62c   : > { %v3550_v60 = vpop.f32.mrf.mxu3  ;;  %v3632_v24 = vpop.f32.mrf.mxu2 }
 0x62d   : > { %v3554_v49 = vadd.f32 %v3550_v60, %v3513_v16  ;;  %v5525_v60 = vld [vmem:[%s8956_s11 + $0xb8] sm:$0xff]  ;;  %v5519_v16 = vld [vmem:[%s8956_s11 + $0x88] sm:$0xff] }
 0x62e   : > { %v3589_v43 = vpop.f32.mrf.mxu1  ;;  %4015 = vmatpush.bf16.msra.mxu1 %v5515_v11  ;;  %v5539_v11 = vld [vmem:[%s8956_s11 + $0x128] sm:$0xff] }
 0x62f   : > { %v3594_v7 = vadd.f32 %v3589_v43, %v3553_v31 }
 0x631   : > { %v3635_v47 = vadd.f32 %v3630_v46, %v3594_v7  ;;  %v5522_v46 = vld [vmem:[%s8956_s11 + $0xa0] sm:$0xff] }
 0x632   : > { %4016 = vmatpush.bf16.msra.mxu1 %v5514_v30  ;;  %v5557_v30 = vld [vmem:[%s8956_s11 + $0x1b8] sm:$0xff] }
 0x634   : > { %v3671_v27 = vpop.f32.mrf.mxu3 }
 0x635   : > { %v3676_v48 = vadd.f32 %v3671_v27, %v3635_v47 }
 0x636   : > { %v3591_v51 = vpop.f32.mrf.mxu1 }
 0x637   : > { %v3595_v37 = vadd.f32 %v3591_v51, %v3554_v49  ;;  %v5520_v51 = vld [vmem:[%s8956_s11 + $0x90] sm:$0xff]  ;;  %v5533_v49 = vld [vmem:[%s8956_s11 + $0xf8] sm:$0xff] }
 0x639   : > { %v3636_v18 = vadd.f32 %v3632_v24, %v3595_v37  ;;  %v5518_v37 = vld [vmem:[%s8956_s11 + $0x80] sm:$0xff]  ;;  %v5548_v24 = vld [vmem:[%s8956_s11 + $0x170] sm:$0xff] }
 0x63c   : > { %v3673_v17 = vpop.f32.mrf.mxu3 }
 0x63d   : > { %v3677_v41 = vadd.f32 %v3673_v17, %v3636_v18  ;;  %v5529_v17 = vld [vmem:[%s8956_s11 + $0xd8] sm:$0xff] }
 0x63e   : > { %v3712_v4 = vpop.f32.mrf.mxu1 }
 0x63f   : > { %v3717_v12 = vadd.f32 %v3712_v4, %v3676_v48  ;;  %v5549_v4 = vld [vmem:[%s8956_s11 + $0x178] sm:$0xff] }
 0x641   : > { %v3723_v28 = vadd.f32 %v5823_v53, %v3717_v12 }
 0x643   : > { %v3725_v20 = vmax.f32 %v3723_v28, 0.0 }
 0x645   : > { %v3731_v19 = vmul.f32 %v5824_v39, %v3725_v20 }
 0x646   : > { %v3714_v59 = vpop.f32.mrf.mxu1 }
 0x647   : > { %v3718_v22 = vadd.f32 %v3714_v59, %v3677_v41  ;;  %v3737_v1 = vadd.f32 %v5825_v9, %v3731_v19  ;;  %v5531_v41 = vld [vmem:[%s8956_s11 + $0xe8] sm:$0xff]  ;;  %v5528_v59 = vld [vmem:[%s8956_s11 + $0xd0] sm:$0xff] }
 0x648   : > { %v5527_v19 = vld [vmem:[%s8956_s11 + $0xc8] sm:$0xff] }
 0x649   : > { %v3724_v61 = vadd.f32 %v5823_v53, %v3718_v22  ;;  %v5532_v53 = vld [vmem:[%s8956_s11 + $0xf0] sm:$0xff]  ;;  %v5530_v22 = vld [vmem:[%s8956_s11 + $0xe0] sm:$0xff] }
 0x64b   : > { %v3726_v62 = vmax.f32 %v3724_v61, 0.0  ;;  %v5546_v61 = vld [vmem:[%s8956_s11 + $0x160] sm:$0xff] }
 0x64d   : > { %v3732_v32 = vmul.f32 %v5824_v39, %v3726_v62  ;;  %v5547_v39 = vld [vmem:[%s8956_s11 + $0x168] sm:$0xff]  ;;  %v5545_v62 = vld [vmem:[%s8956_s11 + $0x158] sm:$0xff] }
 0x64f   : > { %v3738_v0 = vadd.f32 %v5825_v9, %v3732_v32 }
 0x651   : > { %v3739_v10 = vpack.c.bf16 %v3738_v0, %v3737_v1  ;;  %v5561_v0 = vld [vmem:[%s8956_s11 + $0x1d8] sm:$0xff] }
 0x653   : > { %3788 = vmatpush.bf16.msra.mxu2 %v3739_v10  ;;  %v5526_v10 = vld [vmem:[%s8956_s11 + $0xc0] sm:$0xff] }
 0x656   : > { %5050 = vmatmul.msk.bf16.vlgmr.msra.gmra.mxu2 %vm3768_vm2, %v5498_v56  ;;  %v5544_v56 = vld [vmem:[%s8956_s11 + $0x150] sm:$0xff] }
 0x657   : > { %4271 = vmatpush.bf16.msrb.mxu2 %v5537_v26 }
 0x65b   : > { %4272 = vmatpush.bf16.msrb.mxu2 %v5536_v2 }
 0x65f   : > { %4273 = vmatpush.bf16.msrb.mxu2 %v5535_v13  ;;  %v5565_v13 = vld [vmem:[%s8956_s11 + $0x1f8] sm:$0xff] }
 0x663   : > { %4274 = vmatpush.bf16.msrb.mxu2 %v5534_v35  ;;  %v5563_v35 = vld [vmem:[%s8956_s11 + $0x1e8] sm:$0xff] }
 0x666   : > { %5051 = vmatmul.msk.bf16.gmra.mxu2 %vm3768_vm2, %v5499_v58 }
 0x667   : > { %4429 = vmatpush.bf16.msra.mxu2 %v5549_v4 }
 0x66b   : > { %4430 = vmatpush.bf16.msra.mxu2 %v5548_v24 }
 0x66f   : > { %4431 = vmatpush.bf16.msra.mxu2 %v5547_v39 }
 0x673   : > { %4432 = vmatpush.bf16.msra.mxu2 %v5546_v61 }
 0x676   : > { %5052 = vmatmul.msk.bf16.gmra.mxu2 %vm3768_vm2, %v5500_v25 }
 0x686   : > { %5053 = vmatmul.msk.bf16.gmra.mxu2 %vm3768_vm2, %v5501_v23  ;;  %v5540_v23 = vld [vmem:[%s8956_s11 + $0x130] sm:$0xff] }
 0x6d9   : > { %v3790_v8 = vpop.f32.mrf.mxu2 }
 0x6da   : > { %v3810_v43 = vpack.c.bf16 %v3790_v8, %v3790_v8  ;;  %v5556_v8 = vld [vmem:[%s8956_s11 + $0x1b0] sm:$0xff] }
 0x6dc   : > { %v3836_v33 = vunpack.c.l.b16 %v3810_v43  ;;  %5095 = vmatmul.msk.bf16.vlgmr.msrb.gmra.mxu1 %vm2897_vm0, %v3810_v43  ;;  %v5555_v43 = vld [vmem:[%s8956_s11 + $0x1a8] sm:$0xff] }
 0x6dd   : > { %4117 = vmatpush.bf16.msrb.mxu1 %v5525_v60  ;;  %v5553_v60 = vld [vmem:[%s8956_s11 + $0x198] sm:$0xff] }
 0x6de   : > { %v3837_v63 = vpack.c.b16 %v3836_v33, %v3836_v33  ;;  %v5552_v33 = vld [vmem:[%s8956_s11 + $0x190] sm:$0xff] }
 0x6e0   : > { %v3838_v36 = vrot.slane %v3837_v63, 2 }
 0x6e1   : > { %v3792_v6 = vpop.f32.mrf.mxu2  ;;  %4118 = vmatpush.bf16.msrb.mxu1 %v5524_v5  ;;  %v5554_v5 = vld [vmem:[%s8956_s11 + $0x1a0] sm:$0xff] }
 0x6e2   : > { %5078 = vmatmul.msk.bf16.vlgmr.msra.gmra.mxu3 %vm2897_vm0, %v3838_v36  ;;  %v3811_v31 = vpack.c.bf16 %v3792_v6, %v3792_v6 }
 0x6e3   : > { %4063 = vmatpush.bf16.msra.mxu3 %v5521_v52  ;;  %v5551_v52 = vld [vmem:[%s8956_s11 + $0x188] sm:$0xff] }
 0x6e4   : > { %v3979_v7 = vunpack.c.l.b16 %v3811_v31 }
 0x6e5   : > { %4119 = vmatpush.bf16.msrb.mxu1 %v5523_v40  ;;  %v5550_v40 = vld [vmem:[%s8956_s11 + $0x180] sm:$0xff] }
 0x6e6   : > { %v3980_v27 = vpack.c.b16 %v3979_v7, %v3979_v7 }
 0x6e7   : > { %4064 = vmatpush.bf16.msra.mxu3 %v5520_v51 }
 0x6e8   : > { %v3981_v48 = vrot.slane %v3980_v27, 2 }
 0x6e9   : > { %v3795_v47 = vpop.f32.mrf.mxu2  ;;  %4120 = vmatpush.bf16.msrb.mxu1 %v5522_v46  ;;  %v5564_v46 = vld [vmem:[%s8956_s11 + $0x1f0] sm:$0xff] }
 0x6ea   : > { %v3812_v12 = vpack.c.bf16 %v3795_v47, %v3795_v47  ;;  %v5562_v47 = vld [vmem:[%s8956_s11 + $0x1e0] sm:$0xff] }
 0x6eb   : > { %4065 = vmatpush.bf16.msra.mxu3 %v5519_v16 }
 0x6ec   : > { %5145 = vmatmul.msk.bf16.vlgmr.msra.gmra.mxu1 %vm2897_vm0, %v3981_v48  ;;  %v4083_v18 = vunpack.c.l.b16 %v3812_v12 }
 0x6ed   : > { %4221 = vmatpush.bf16.msra.mxu1 %v5533_v49 }
 0x6ee   : > { %v4084_v20 = vpack.c.b16 %v4083_v18, %v4083_v18 }
 0x6ef   : > { %4066 = vmatpush.bf16.msra.mxu3 %v5518_v37 }
 0x6f0   : > { %v4085_v9 = vrot.slane %v4084_v20, 2 }
 0x6f1   : > { %4222 = vmatpush.bf16.msra.mxu1 %v5532_v53  ;;  %v3797_v28 = vpop.f32.mrf.mxu2 }
 0x6f2   : > { %5120 = vmatmul.msk.bf16.vlgmr.msrb.gmra.mxu3 %vm2897_vm0, %v3811_v31  ;;  %v3813_v58 = vpack.c.bf16 %v3797_v28, %v3797_v28 }
 0x6f3   : > { %4167 = vmatpush.bf16.msrb.mxu3 %v5529_v17 }
 0x6f4   : > { %v4187_v34 = vunpack.c.l.b16 %v3813_v58 }
 0x6f5   : > { %4223 = vmatpush.bf16.msra.mxu1 %v5531_v41 }
 0x6f6   : > { %v4188_v57 = vpack.c.b16 %v4187_v34, %v4187_v34 }
 0x6f7   : > { %4168 = vmatpush.bf16.msrb.mxu3 %v5528_v59 }
 0x6f8   : > { %v4189_v29 = vrot.slane %v4188_v57, 2 }
 0x6f9   : > { %4224 = vmatpush.bf16.msra.mxu1 %v5530_v22  ;;  %v3800_v32 = vpop.f32.mrf.mxu2 }
 0x6fa   : > { %v3814_v1 = vpack.c.bf16 %v3800_v32, %v3800_v32 }
 0x6fb   : > { %4169 = vmatpush.bf16.msrb.mxu3 %v5527_v19 }
 0x6fc   : > { %5195 = vmatmul.msk.bf16.vlgmr.msrb.gmra.mxu1 %vm2897_vm0, %v4085_v9  ;;  %5270 = vmatmul.msk.bf16.vlgmr.msrb.gmra.mxu2 %vm2897_vm0, %v3814_v1  ;;  %v4291_v63 = vunpack.c.l.b16 %v3814_v1 }
 0x6fd   : > { %4375 = vmatpush.bf16.msrb.mxu1 %v5545_v62  ;;  %4583 = vmatpush.bf16.msrb.mxu2 %v5561_v0 }
 0x6fe   : > { %v4292_v6 = vpack.c.b16 %v4291_v63, %v4291_v63 }
 0x6ff   : > { %4170 = vmatpush.bf16.msrb.mxu3 %v5526_v10 }
 0x700   : > { %v4293_v51 = vrot.slane %v4292_v6, 2 }
 0x701   : > { %4376 = vmatpush.bf16.msrb.mxu1 %v5544_v56  ;;  %v3802_v3 = vpop.f32.mrf.mxu2  ;;  %4584 = vmatpush.bf16.msrb.mxu2 %v5560_v45 }
 0x702   : > { %5170 = vmatmul.msk.bf16.vlgmr.msra.gmra.mxu3 %vm2897_vm0, %v3812_v12  ;;  %v3815_v25 = vpack.c.bf16 %v3802_v3, %v3802_v3 }
 0x703   : > { %4325 = vmatpush.bf16.msra.mxu3 %v5541_v15 }
 0x704   : > { %v4395_v50 = vunpack.c.l.b16 %v3815_v25 }
 0x705   : > { %4377 = vmatpush.bf16.msrb.mxu1 %v5543_v42  ;;  %4585 = vmatpush.bf16.msrb.mxu2 %v5559_v55 }
 0x706   : > { %v4396_v38 = vpack.c.b16 %v4395_v50, %v4395_v50 }
 0x707   : > { %4326 = vmatpush.bf16.msra.mxu3 %v5540_v23 }
 0x708   : > { %v4397_v44 = vrot.slane %v4396_v38, 2 }
 0x709   : > { %4378 = vmatpush.bf16.msrb.mxu1 %v5542_v21  ;;  %4586 = vmatpush.bf16.msrb.mxu2 %v5558_v14  ;;  %v3805_v26 = vpop.f32.mrf.mxu2 }
 0x70a   : > { %v3816_v31 = vpack.c.bf16 %v3805_v26, %v3805_v26 }
 0x70b   : > { %4327 = vmatpush.bf16.msra.mxu3 %v5539_v11 }
 0x70c   : > { %5245 = vmatmul.msk.bf16.vlgmr.msra.gmra.mxu1 %vm2897_vm0, %v4189_v29  ;;  %5345 = vmatmul.msk.bf16.vlgmr.msra.gmra.mxu2 %vm2897_vm0, %v4397_v44  ;;  %v4499_v7 = vunpack.c.l.b16 %v3816_v31 }
 0x70d   : > { %4533 = vmatpush.bf16.msra.mxu1 %v5557_v30 }
 0x70e   : > { %v4500_v27 = vpack.c.b16 %v4499_v7, %v4499_v7 }
 0x70f   : > { %4328 = vmatpush.bf16.msra.mxu3 %v5538_v54 }
 0x710   : > { %v4501_v16 = vrot.slane %v4500_v27, 2 }
 0x711   : > { %4534 = vmatpush.bf16.msra.mxu1 %v5556_v8  ;;  %v3807_v2 = vpop.f32.mrf.mxu2 }
 0x712   : > { %5220 = vmatmul.msk.bf16.vlgmr.msrb.gmra.mxu3 %vm2897_vm0, %v3813_v58  ;;  %v3817_v36 = vpack.c.bf16 %v3807_v2, %v3807_v2 }
 0x713   : > { %4479 = vmatpush.bf16.msrb.mxu3 %v5553_v60 }
 0x714   : > { %v4603_v49 = vunpack.c.l.b16 %v3817_v36 }
 0x715   : > { %4535 = vmatpush.bf16.msra.mxu1 %v5555_v43 }
 0x716   : > { %v4604_v48 = vpack.c.b16 %v4603_v49, %v4603_v49 }
 0x717   : > { %4480 = vmatpush.bf16.msrb.mxu3 %v5552_v33  ;;  %v5826_v33 = vld [vmem:[%s8957_s12] ss:$0 sm:$0xff] }
 0x718   : > { %v4605_v4 = vrot.slane %v4604_v48, 2 }
 0x719   : > { %4536 = vmatpush.bf16.msra.mxu1 %v5554_v5 }
 0x71b   : > { %4481 = vmatpush.bf16.msrb.mxu3 %v5551_v52 }
 0x71c   : > { %5320 = vmatmul.msk.bf16.vlgmr.msrb.gmra.mxu1 %vm2897_vm0, %v3815_v25  ;;  %5420 = vmatmul.msk.bf16.vlgmr.msrb.gmra.mxu2 %vm2897_vm0, %v3817_v36 }
 0x71f   : > { %4482 = vmatpush.bf16.msrb.mxu3 %v5550_v40 }
 0x722   : > { %5295 = vmatmul.msk.bf16.vlgmr.msra.gmra.mxu3 %vm2897_vm0, %v4293_v51 }
 0x723   : > { %4637 = vmatpush.bf16.msra.mxu3 %v5565_v13 }
 0x727   : > { %4638 = vmatpush.bf16.msra.mxu3 %v5564_v46 }
 0x72b   : > { %4639 = vmatpush.bf16.msra.mxu3 %v5563_v35 }
 0x72c   : > { %5395 = vmatmul.msk.bf16.vlgmr.msra.gmra.mxu1 %vm2897_vm0, %v4501_v16 }
 0x72f   : > { %4640 = vmatpush.bf16.msra.mxu3 %v5562_v47 }
 0x732   : > { %5370 = vmatmul.msk.bf16.vlgmr.msrb.gmra.mxu3 %vm2897_vm0, %v3816_v31 }
 0x742   : > { %5445 = vmatmul.msk.bf16.vlgmr.msra.gmra.mxu3 %vm2897_vm0, %v4605_v4 }
 0x759   : > { %v3915_v37 = vpop.f32.mrf.mxu1 }
 0x761   : > { %v3917_v12 = vpop.f32.mrf.mxu1 }
 0x765   : > { %v3875_v53 = vpop.f32.mrf.mxu3 }
 0x766   : > { %v3916_v24 = vadd.f32 %v3915_v37, %v3875_v53 }
 0x769   : > { %v4018_v17 = vpop.f32.mrf.mxu1 }
 0x76d   : > { %v3877_v18 = vpop.f32.mrf.mxu3 }
 0x771   : > { %v4020_v28 = vpop.f32.mrf.mxu1 }
 0x775   : > { %v3964_v41 = vpop.f32.mrf.mxu3 }
 0x776   : > { %v3968_v59 = vadd.f32 %v3964_v41, %v3916_v24 }
 0x778   : > { %v4022_v20 = vadd.f32 %v4018_v17, %v3968_v59 }
 0x779   : > { %v4122_v39 = vpop.f32.mrf.mxu1 }
 0x77d   : > { %v3966_v22 = vpop.f32.mrf.mxu3 }
 0x77f   : > { %v4276_v61 = vpop.f32.mrf.mxu2 }
 0x781   : > { %v4124_v19 = vpop.f32.mrf.mxu1 }
 0x785   : > { %v4068_v9 = vpop.f32.mrf.mxu3 }
 0x786   : > { %v4072_v34 = vadd.f32 %v4068_v9, %v4022_v20 }
 0x787   : > { %v4278_v62 = vpop.f32.mrf.mxu2 }
 0x788   : > { %v4126_v23 = vadd.f32 %v4122_v39, %v4072_v34 }
 0x789   : > { %v4226_v32 = vpop.f32.mrf.mxu1 }
 0x78d   : > { %v4070_v1 = vpop.f32.mrf.mxu3 }
 0x78f   : > { %v4434_v0 = vpop.f32.mrf.mxu2 }
 0x791   : > { %v4228_v10 = vpop.f32.mrf.mxu1 }
 0x795   : > { %v4172_v56 = vpop.f32.mrf.mxu3 }
 0x796   : > { %v4176_v50 = vadd.f32 %v4172_v56, %v4126_v23 }
 0x797   : > { %v4436_v58 = vpop.f32.mrf.mxu2 }
 0x798   : > { %v4230_v57 = vadd.f32 %v4226_v32, %v4176_v50 }
 0x799   : > { %v4380_v45 = vpop.f32.mrf.mxu1 }
 0x79a   : > { %v4280_v14 = vadd.f32 %v4276_v61, %v4230_v57 }
 0x79d   : > { %v4174_v15 = vpop.f32.mrf.mxu3 }
 0x79f   : > { %v4588_v42 = vpop.f32.mrf.mxu2 }
 0x7a1   : > { %v4382_v3 = vpop.f32.mrf.mxu1 }
 0x7a5   : > { %v4330_v25 = vpop.f32.mrf.mxu3 }
 0x7a6   : > { %v4334_v44 = vadd.f32 %v4330_v25, %v4280_v14 }
 0x7a7   : > { %v4590_v55 = vpop.f32.mrf.mxu2 }
 0x7a8   : > { %v4384_v29 = vadd.f32 %v4380_v45, %v4334_v44 }
 0x7a9   : > { %v4538_v21 = vpop.f32.mrf.mxu1 }
 0x7aa   : > { %v4438_v54 = vadd.f32 %v4434_v0, %v4384_v29 }
 0x7ad   : > { %v4332_v38 = vpop.f32.mrf.mxu3 }
 0x7b1   : > { %v4540_v11 = vpop.f32.mrf.mxu1 }
 0x7b5   : > { %v4484_v30 = vpop.f32.mrf.mxu3 }
 0x7b6   : > { %v4488_v26 = vadd.f32 %v4484_v30, %v4438_v54 }
 0x7b8   : > { %v4542_v60 = vadd.f32 %v4538_v21, %v4488_v26 }
 0x7ba   : > { %v4592_v43 = vadd.f32 %v4588_v42, %v4542_v60 }
 0x7bd   : > { %v4486_v8 = vpop.f32.mrf.mxu3 }
 0x7c5   : > { %v4642_v2 = vpop.f32.mrf.mxu3 }
 0x7c6   : > { %v4646_v5 = vadd.f32 %v4642_v2, %v4592_v43 }
 0x7c8   : > { %v4651_v63 = vadd.f32 %v5826_v33, %v4646_v5 }
 0x7ca   : > { %4652 = vst [vmem:[%s433_s15] sm:$0xf] %v4651_v63 }
 0x7cb   : > { %5907 = shalt.err (!%p5904_p3)
}
 0x7cc   : > { %5579 = dma.vmem_to_hbm [thread:$0]  (%p6068_p5), %s4667_s16, 64, %s4669_s2, %s4654_s29  }
 0x7cd   : > { %v4644_v52 = vpop.f32.mrf.mxu3 }
 0x7ce PF: > { %p5585_p4 = scmp.ge.s32.totalorder %s5942_s28, 2  ;;  %s4680_s20 = sand.u32 1, %s5930_s25  }
 0x7cf   : > { %s4681_s22 = scalar_lea.sflag [#allocation3], %s4680_s20 }
 0x7d0   : > { %p5582_p7 = pnand %p5585_p4, %p6072_p6 }
 0x7d2   : > { %p5583_p8 = pneg %p5582_p7 }
 0x7d4   : > { %5925 = dma.done.wait (%p5583_p8), %s4681_s22, 64  }
 0x7d5   : > { %5927 = vsyncadd (%p5583_p8), %s4681_s22, 4294967232  ;;  %p23_p9 = scmp.ge.s32.totalorder %s6055_s14, 4   ;;  %s9630_s25 = smov %s5934_s26 }
 0x7d6   : > { %s9631_s26 = smov %s5938_s27  ;;  %s9632_s27 = smov %s6066_s17 }
 0x7d7   : > { %s9633_s28 = smov %s6055_s14  ;;  %25 = sbr.rel (!%p23_p9) target bundleno = 8 (0x8), region = 138 }
 0x7dc   :  { %4687 = vsyncpa [#allocation3], 1 }
 0x7dd   :  { %4689 = vsyncpa [#allocation3 + $0x1], 1 }

</bundles_post_ra>
